<compile_context>
chip_gen: v7x
topology: tpu7x:2x2x1
jax: 0.10.0
libtpu: 0.0.40
codegen_flags: <defaults>
</compile_context>

<pallas_src>
import functools

import numpy as np
import jax
import jax.numpy as jnp
from jax.experimental import pallas as pl
from jax.experimental.pallas import tpu as pltpu


def _round_up(x, m):
    return ((x + m - 1) // m) * m


# ---------------------------------------------------------------------------
# Pallas kernels
# ---------------------------------------------------------------------------
def _conv_bias_kernel(p_ref, w_ref, b_ref, o_ref, *, relu):
    # (tile_m, Kp) @ (Kp, tile_n)  + bias  -> (ReLU)
    acc = jnp.dot(p_ref[...], w_ref[...], preferred_element_type=jnp.float32)
    acc = acc + b_ref[...]
    if relu:
        acc = jnp.maximum(acc, 0.0)
    o_ref[...] = acc.astype(o_ref.dtype)


def _conv_bias_res_kernel(p_ref, w_ref, b_ref, r_ref, o_ref, *, relu):
    # (tile_m, Kp) @ (Kp, tile_n)  + bias + residual  -> (ReLU)
    acc = jnp.dot(p_ref[...], w_ref[...], preferred_element_type=jnp.float32)
    acc = acc + b_ref[...] + r_ref[...]
    if relu:
        acc = jnp.maximum(acc, 0.0)
    o_ref[...] = acc.astype(o_ref.dtype)


def _maxpool_kernel(x_ref, o_ref):
    # x_ref: (N, Ho+1, 2, Wo+1, 2*C)  -- spatially (-inf) padded activation,
    # parity-split so all window taps are contiguous / lane-aligned slices.
    n, ho, wo, c = o_ref.shape
    x = x_ref[...]
    # max over the 3 window rows (padded rows 2p, 2p+1, 2p+2)
    r = jnp.maximum(jnp.maximum(x[:, :ho, 0], x[:, :ho, 1]), x[:, 1:, 0])
    # r: (N, Ho, Wo+1, 2*C); max over the 3 window cols (padded 2q, 2q+1, 2q+2)
    o = jnp.maximum(jnp.maximum(r[:, :, :wo, :c], r[:, :, :wo, c:]),
                    r[:, :, 1:, :c])
    o_ref[...] = o


# ---------------------------------------------------------------------------
# Conv2d (+ folded BN, + residual, + ReLU) via im2col + Pallas MXU matmul
# ---------------------------------------------------------------------------
def _im2col_nhwc(x, kh, kw, stride, padding):
    N, H, W, C = x.shape
    if padding:
        x = jnp.pad(x, ((0, 0), (padding, padding), (padding, padding), (0, 0)))
    Ho = (H + 2 * padding - kh) // stride + 1
    Wo = (W + 2 * padding - kw) // stride + 1
    cols = []
    for i in range(kh):
        for j in range(kw):
            cols.append(x[:, i:i + stride * (Ho - 1) + 1:stride,
                             j:j + stride * (Wo - 1) + 1:stride, :])
    p = jnp.concatenate(cols, axis=-1) if len(cols) > 1 else cols[0]
    # column order = (kh, kw, C) -> matches the prepared weight matrix
    return p.reshape(N * Ho * Wo, kh * kw * C), Ho, Wo


def conv2d_folded(x, wmat, bias, *, kh, kw, stride, padding, relu,
                  residual=None, max_tile_m=1024):
    """x: NHWC (channels possibly zero-padded).  wmat: (Kp, Cn) bf16 with the
    BN scale already folded in.  bias: (1, Cn) f32.  Returns (N, Ho, Wo, Cn)
    f32 NHWC."""
    N, H, W, C = x.shape
    Kp, Cn = wmat.shape

    patches, Ho, Wo = _im2col_nhwc(x, kh, kw, stride, padding)
    M, K = patches.shape
    assert Kp == _round_up(K, 128), (K, Kp)

    tile_m = min(max_tile_m, _round_up(M, 8))
    Mp = _round_up(M, tile_m)
    if (Mp, Kp) != (M, K):
        patches = jnp.pad(patches, ((0, Mp - M), (0, Kp - K)))
    patches = patches.astype(wmat.dtype)               # bf16 matmul operands

    tile_n = Cn if Cn < 128 else 128
    grid = (Mp // tile_m, Cn // tile_n)

    in_specs = [
        pl.BlockSpec((tile_m, Kp), lambda i, j: (i, 0)),    # im2col patches
        pl.BlockSpec((Kp, tile_n), lambda i, j: (0, j)),    # folded weights
        pl.BlockSpec((1, tile_n), lambda i, j: (0, j)),     # bias
    ]
    args = [patches, wmat, bias]
    if residual is not None:
        assert residual.shape == (N, Ho, Wo, Cn), residual.shape
        r = residual.reshape(N * Ho * Wo, Cn)
        if Mp != M:
            r = jnp.pad(r, ((0, Mp - M), (0, 0)))
        in_specs.append(pl.BlockSpec((tile_m, tile_n), lambda i, j: (i, j)))
        args.append(r)
        kernel = functools.partial(_conv_bias_res_kernel, relu=relu)
    else:
        kernel = functools.partial(_conv_bias_kernel, relu=relu)

    out = pl.pallas_call(
        kernel,
        out_shape=jax.ShapeDtypeStruct((Mp, Cn), jnp.float32),
        grid_spec=pltpu.PrefetchScalarGridSpec(
            num_scalar_prefetch=0,
            grid=grid,
            in_specs=in_specs,
            out_specs=pl.BlockSpec((tile_m, tile_n), lambda i, j: (i, j)),
        ),
        compiler_params=pltpu.CompilerParams(
            dimension_semantics=("parallel", "parallel")),
    )(*args)
    return out[:M].reshape(N, Ho, Wo, Cn)


# ---------------------------------------------------------------------------
# MaxPool2d(kernel=3, stride=2, padding=1), NHWC, single Pallas call
# ---------------------------------------------------------------------------
def maxpool_3x3_s2_p1(x):
    N, H, W, C = x.shape
    assert H % 2 == 0 and W % 2 == 0
    Ho, Wo = H // 2, W // 2
    xp = jnp.pad(x, ((0, 0), (1, 1), (1, 1), (0, 0)),
                 constant_values=-jnp.inf)
    # free row-major reshape: (N, H+2, W+2, C) -> (N, Ho+1, 2, Wo+1, 2*C)
    x6 = xp.reshape(N, Ho + 1, 2, Wo + 1, 2 * C)
    return pl.pallas_call(
        _maxpool_kernel,
        out_shape=jax.ShapeDtypeStruct((N, Ho, Wo, C), x.dtype),
    )(x6)


# ---------------------------------------------------------------------------
# Parameter preparation: fold BN into weights, pad K / Cout, cast to bf16
# ---------------------------------------------------------------------------
def _prep_conv(w, scale, bias, cin_x, pad_cout=True):
    Cout, Cin, kh, kw = w.shape
    Cn = _round_up(Cout, 128) if pad_cout else Cout
    wf = jnp.zeros((Cn, cin_x, kh, kw), jnp.float32)
    wf = wf.at[:Cout, :Cin].set(w * scale.reshape(-1, 1, 1, 1))
    K = kh * kw * cin_x
    Kp = _round_up(K, 128)
    wmat = wf.transpose(2, 3, 1, 0).reshape(K, Cn)          # (kh, kw, cin) rows
    wmat = jnp.pad(wmat, ((0, Kp - K), (0, 0))).astype(jnp.bfloat16)
    b = jnp.pad(bias.astype(jnp.float32), (0, Cn - Cout)).reshape(1, Cn)
    return {"w": wmat, "b": b}


def prepare_params(P):
    prep = {
        "conv0": _prep_conv(P["conv0_w"], jnp.ones((3,), jnp.float32),
                            P["conv0_b"], cin_x=1, pad_cout=False),
        "conv1": _prep_conv(P["conv1_w"], *P["bn1"], cin_x=3),
    }

    def prep_block(bp, cin_x, cout):
        d = {
            "c1": _prep_conv(bp["conv1_w"], *bp["bn1"], cin_x=cin_x),
            "c2": _prep_conv(bp["conv2_w"], *bp["bn2"],
                             cin_x=_round_up(cout, 128)),
        }
        if "down_w" in bp:
            d["down"] = _prep_conv(bp["down_w"], *bp["dbn"], cin_x=cin_x)
        return d

    prep["layer1"] = [prep_block(bp, 128, 64) for bp in P["layer1"]]
    prep["layer2"] = [prep_block(P["layer2"][0], 128, 128),
                      prep_block(P["layer2"][1], 128, 128)]
    prep["layer3"] = [prep_block(P["layer3"][0], 128, 256),
                      prep_block(P["layer3"][1], 256, 256)]
    return prep


# ---------------------------------------------------------------------------
# Deterministic synthetic parameters (shapes from resnet18 up to layer3)
# ---------------------------------------------------------------------------
def _conv_w(key, cout, cin, k):
    fan_in = cin * k * k
    return jax.random.normal(key, (cout, cin, k, k), jnp.float32) / np.sqrt(fan_in)


def _bn_fold(key, c, eps=1e-5):
    k1, k2, k3, k4 = jax.random.split(key, 4)
    gamma = 1.0 + 0.1 * jax.random.normal(k1, (c,), jnp.float32)
    beta = 0.1 * jax.random.normal(k2, (c,), jnp.float32)
    mean = 0.1 * jax.random.normal(k3, (c,), jnp.float32)
    var = 0.5 + jax.random.uniform(k4, (c,), jnp.float32)
    scale = gamma / jnp.sqrt(var + eps)
    bias = beta - mean * scale
    return scale, bias


def init_params(key):
    keys = iter(jax.random.split(key, 64))
    P = {}
    # nn.Conv2d(1, 3, 3, stride=1, padding=1)  (with bias)
    P["conv0_w"] = _conv_w(next(keys), 3, 1, 3)
    P["conv0_b"] = 0.1 * jax.random.normal(next(keys), (3,), jnp.float32)
    # resnet18 stem
    P["conv1_w"] = _conv_w(next(keys), 64, 3, 7)
    P["bn1"] = _bn_fold(next(keys), 64)

    def block_params(cin, cout, down):
        bp = {
            "conv1_w": _conv_w(next(keys), cout, cin, 3),
            "bn1": _bn_fold(next(keys), cout),
            "conv2_w": _conv_w(next(keys), cout, cout, 3),
            "bn2": _bn_fold(next(keys), cout),
        }
        if down:
            bp["down_w"] = _conv_w(next(keys), cout, cin, 1)
            bp["dbn"] = _bn_fold(next(keys), cout)
        return bp

    P["layer1"] = [block_params(64, 64, False), block_params(64, 64, False)]
    P["layer2"] = [block_params(64, 128, True), block_params(128, 128, False)]
    P["layer3"] = [block_params(128, 256, True), block_params(256, 256, False)]
    return P


# ---------------------------------------------------------------------------
# Forward pass (resnet18 children()[:-3]:  conv1,bn1,relu,maxpool,layer1..3)
# ---------------------------------------------------------------------------
def basic_block(x, bprep, stride):
    identity = x
    out = conv2d_folded(x, bprep["c1"]["w"], bprep["c1"]["b"],
                        kh=3, kw=3, stride=stride, padding=1, relu=True)
    if "down" in bprep:
        identity = conv2d_folded(x, bprep["down"]["w"], bprep["down"]["b"],
                                 kh=1, kw=1, stride=stride, padding=0,
                                 relu=False)
    # residual add + ReLU fused into the second conv's epilogue
    out = conv2d_folded(out, bprep["c2"]["w"], bprep["c2"]["b"],
                        kh=3, kw=3, stride=1, padding=1, relu=True,
                        residual=identity)
    return out


def resnet18_conv5_forward(prep, x):
    x = jnp.transpose(x, (0, 2, 3, 1))                       # NCHW -> NHWC
    # prepended Conv2d(1, 3, 3, s=1, p=1) with bias (no BN / no ReLU)
    x = conv2d_folded(x, prep["conv0"]["w"], prep["conv0"]["b"],
                      kh=3, kw=3, stride=1, padding=1, relu=False)
    # stem: conv1(7x7, s2, p3) + bn1 + relu  (Cout 64 zero-padded to 128)
    x = conv2d_folded(x, prep["conv1"]["w"], prep["conv1"]["b"],
                      kh=7, kw=7, stride=2, padding=3, relu=True)
    x = maxpool_3x3_s2_p1(x)
    # layer1 (64), layer2 (128, s2), layer3 (256, s2); layer4/avgpool/fc dropped
    for bp in prep["layer1"]:
        x = basic_block(x, bp, stride=1)
    x = basic_block(x, prep["layer2"][0], stride=2)
    x = basic_block(x, prep["layer2"][1], stride=1)
    x = basic_block(x, prep["layer3"][0], stride=2)
    x = basic_block(x, prep["layer3"][1], stride=1)
    return jnp.transpose(x, (0, 3, 1, 2))                    # NHWC -> NCHW


if __name__ == "__main__":
    key = jax.random.PRNGKey(0)
    pkey, xkey = jax.random.split(key)
    params = init_params(pkey)
    prep = prepare_params(params)     # one-time BN folding / padding / bf16 cast
    # NCHW input, single channel (module expects 1-channel images)
    x = jax.random.normal(xkey, (2, 1, 32, 32), jnp.float32)

    fwd = jax.jit(resnet18_conv5_forward)
    out = jax.block_until_ready(fwd(prep, x))

    assert out.shape == (2, 256, 2, 2), out.shape
    assert bool(jnp.all(jnp.isfinite(out)))
    print("KERNEL_OK")
</pallas_src>

<mosaic_0001>
module attributes {stable_mosaic.version = 11 : i64} {
  func.func @_conv_bias_kernel(%arg0: i32, %arg1: i32, %arg2: memref<1024x128xbf16, #tpu.memory_space<vmem>>, %arg3: memref<128x3xbf16, #tpu.memory_space<vmem>>, %arg4: memref<1x3xf32, #tpu.memory_space<vmem>>, %arg5: memref<1024x3xf32, #tpu.memory_space<vmem>>) attributes {dimension_semantics = [#tpu.dimension_semantics<parallel>, #tpu.dimension_semantics<parallel>], iteration_bounds = array<i64: 2, 1>, scalar_prefetch = 0 : i64, scratch_operands = 0 : i64, tpu.core_type = #tpu.core_type<tc>, window_params = [{transform_indices = @transform_0, window_bounds = array<i64: 1024, 128>}, {transform_indices = @transform_1, window_bounds = array<i64: 128, 3>}, {transform_indices = @transform_2, window_bounds = array<i64: 1, 3>}, {transform_indices = @transform_3, window_bounds = array<i64: 1024, 3>}]} {
    %c0 = arith.constant 0 : index
    %c0_0 = arith.constant 0 : index
    %0 = vector.load %arg2[%c0, %c0_0] : memref<1024x128xbf16, #tpu.memory_space<vmem>>, vector<1024x128xbf16>
    %c0_1 = arith.constant 0 : index
    %c0_2 = arith.constant 0 : index
    %1 = vector.load %arg3[%c0_1, %c0_2] : memref<128x3xbf16, #tpu.memory_space<vmem>>, vector<128x3xbf16>
    %cst = arith.constant dense<0.000000e+00> : vector<1024x3xf32>
    %2 = tpu.matmul %0, %1, %cst {dimension_numbers = #tpu.dot_dimension_numbers<[1], [0], [0], [1], [0, 0, 1, 1], [], []>} : vector<1024x128xbf16>, vector<128x3xbf16>, vector<1024x3xf32> -> vector<1024x3xf32>
    %c0_3 = arith.constant 0 : index
    %c0_4 = arith.constant 0 : index
    %3 = vector.load %arg4[%c0_3, %c0_4] : memref<1x3xf32, #tpu.memory_space<vmem>>, vector<1x3xf32>
    %4 = vector.broadcast %3 : vector<1x3xf32> to vector<1024x3xf32>
    %5 = arith.addf %2, %4 : vector<1024x3xf32>
    %c0_5 = arith.constant 0 : index
    %c0_6 = arith.constant 0 : index
    %6 = vector.load %arg5[%c0_5, %c0_6] : memref<1024x3xf32, #tpu.memory_space<vmem>>, vector<1024x3xf32>
    tpu.vector_store %arg5[%c0_5, %c0_6], %5 {strides = array<i32>} : memref<1024x3xf32, #tpu.memory_space<vmem>>, vector<1024x3xf32>,
    return
  }
  func.func @transform_0(%arg0: i32, %arg1: i32) -> (i32, i32) {
    %c0_i32 = arith.constant 0 : i32
    %c0_i32_0 = arith.constant 0 : i32
    return %arg0, %c0_i32 : i32, i32
  }
  func.func @transform_1(%arg0: i32, %arg1: i32) -> (i32, i32) {
    %c0_i32 = arith.constant 0 : i32
    %c0_i32_0 = arith.constant 0 : i32
    return %c0_i32, %arg1 : i32, i32
  }
  func.func @transform_2(%arg0: i32, %arg1: i32) -> (i32, i32) {
    %c0_i32 = arith.constant 0 : i32
    %c0_i32_0 = arith.constant 0 : i32
    return %c0_i32, %arg1 : i32, i32
  }
  func.func @transform_3(%arg0: i32, %arg1: i32) -> (i32, i32) {
    %c0_i32 = arith.constant 0 : i32
    return %arg0, %arg1 : i32, i32
  }
}

module attributes {stable_mosaic.version = 11 : i64} {
  func.func @_conv_bias_kernel(%arg0: i32, %arg1: i32, %arg2: memref<512x256xbf16, #tpu.memory_space<vmem>>, %arg3: memref<256x128xbf16, #tpu.memory_space<vmem>>, %arg4: memref<1x128xf32, #tpu.memory_space<vmem>>, %arg5: memref<512x128xf32, #tpu.memory_space<vmem>>) attributes {dimension_semantics = [#tpu.dimension_semantics<parallel>, #tpu.dimension_semantics<parallel>], iteration_bounds = array<i64: 1, 1>, scalar_prefetch = 0 : i64, scratch_operands = 0 : i64, tpu.core_type = #tpu.core_type<tc>, window_params = [{transform_indices = @transform_0, window_bounds = array<i64: 512, 256>}, {transform_indices = @transform_1, window_bounds = array<i64: 256, 128>}, {transform_indices = @transform_2, window_bounds = array<i64: 1, 128>}, {transform_indices = @transform_3, window_bounds = array<i64: 512, 128>}]} {
    %c0 = arith.constant 0 : index
    %c0_0 = arith.constant 0 : index
    %0 = vector.load %arg2[%c0, %c0_0] : memref<512x256xbf16, #tpu.memory_space<vmem>>, vector<512x256xbf16>
    %c0_1 = arith.constant 0 : index
    %c0_2 = arith.constant 0 : index
    %1 = vector.load %arg3[%c0_1, %c0_2] : memref<256x128xbf16, #tpu.memory_space<vmem>>, vector<256x128xbf16>
    %cst = arith.constant dense<0.000000e+00> : vector<512x128xf32>
    %2 = tpu.matmul %0, %1, %cst {dimension_numbers = #tpu.dot_dimension_numbers<[1], [0], [0], [1], [0, 0, 1, 1], [], []>} : vector<512x256xbf16>, vector<256x128xbf16>, vector<512x128xf32> -> vector<512x128xf32>
    %c0_3 = arith.constant 0 : index
    %c0_4 = arith.constant 0 : index
    %3 = vector.load %arg4[%c0_3, %c0_4] : memref<1x128xf32, #tpu.memory_space<vmem>>, vector<1x128xf32>
    %4 = vector.broadcast %3 : vector<1x128xf32> to vector<512x128xf32>
    %5 = arith.addf %2, %4 : vector<512x128xf32>
    %cst_5 = arith.constant 0.000000e+00 : f32
    %6 = vector.broadcast %cst_5 : f32 to vector<512x128xf32>
    %7 = arith.maximumf %5, %6 : vector<512x128xf32>
    %c0_6 = arith.constant 0 : index
    %c0_7 = arith.constant 0 : index
    %8 = vector.load %arg5[%c0_6, %c0_7] : memref<512x128xf32, #tpu.memory_space<vmem>>, vector<512x128xf32>
    tpu.vector_store %arg5[%c0_6, %c0_7], %7 {strides = array<i32>} : memref<512x128xf32, #tpu.memory_space<vmem>>, vector<512x128xf32>,
    return
  }
  func.func @transform_0(%arg0: i32, %arg1: i32) -> (i32, i32) {
    %c0_i32 = arith.constant 0 : i32
    %c0_i32_0 = arith.constant 0 : i32
    return %arg0, %c0_i32 : i32, i32
  }
  func.func @transform_1(%arg0: i32, %arg1: i32) -> (i32, i32) {
    %c0_i32 = arith.constant 0 : i32
    %c0_i32_0 = arith.constant 0 : i32
    return %c0_i32, %arg1 : i32, i32
  }
  func.func @transform_2(%arg0: i32, %arg1: i32) -> (i32, i32) {
    %c0_i32 = arith.constant 0 : i32
    %c0_i32_0 = arith.constant 0 : i32
    return %c0_i32, %arg1 : i32, i32
  }
  func.func @transform_3(%arg0: i32, %arg1: i32) -> (i32, i32) {
    %c0_i32 = arith.constant 0 : i32
    return %arg0, %arg1 : i32, i32
  }
}

module attributes {stable_mosaic.version = 11 : i64} {
  func.func @_maxpool_kernel(%arg0: memref<2x9x2x9x256xf32, #tpu.memory_space<vmem>>, %arg1: memref<2x8x8x128xf32, #tpu.memory_space<vmem>>) attributes {dimension_semantics = [], scalar_prefetch = 0 : i64, scratch_operands = 0 : i64, tpu.core_type = #tpu.core_type<tc>} {
    %c0 = arith.constant 0 : index
    %c0_0 = arith.constant 0 : index
    %c0_1 = arith.constant 0 : index
    %c0_2 = arith.constant 0 : index
    %c0_3 = arith.constant 0 : index
    %0 = vector.load %arg0[%c0, %c0_0, %c0_1, %c0_2, %c0_3] : memref<2x9x2x9x256xf32, #tpu.memory_space<vmem>>, vector<2x9x2x9x256xf32>
    %1 = vector.extract_strided_slice %0 {offsets = [0, 0, 0, 0, 0], sizes = [2, 8, 1, 9, 256], strides = [1, 1, 1, 1, 1]} : vector<2x9x2x9x256xf32> to vector<2x8x1x9x256xf32>
    %2 = vector.shape_cast %1 : vector<2x8x1x9x256xf32> to vector<2x8x9x256xf32>
    %3 = vector.extract_strided_slice %0 {offsets = [0, 0, 1, 0, 0], sizes = [2, 8, 1, 9, 256], strides = [1, 1, 1, 1, 1]} : vector<2x9x2x9x256xf32> to vector<2x8x1x9x256xf32>
    %4 = vector.shape_cast %3 : vector<2x8x1x9x256xf32> to vector<2x8x9x256xf32>
    %5 = arith.maximumf %2, %4 : vector<2x8x9x256xf32>
    %6 = vector.extract_strided_slice %0 {offsets = [0, 1, 0, 0, 0], sizes = [2, 8, 1, 9, 256], strides = [1, 1, 1, 1, 1]} : vector<2x9x2x9x256xf32> to vector<2x8x1x9x256xf32>
    %7 = vector.shape_cast %6 : vector<2x8x1x9x256xf32> to vector<2x8x9x256xf32>
    %8 = arith.maximumf %5, %7 : vector<2x8x9x256xf32>
    %9 = vector.extract_strided_slice %8 {offsets = [0, 0, 0, 0], sizes = [2, 8, 8, 128], strides = [1, 1, 1, 1]} : vector<2x8x9x256xf32> to vector<2x8x8x128xf32>
    %10 = vector.extract_strided_slice %8 {offsets = [0, 0, 0, 128], sizes = [2, 8, 8, 128], strides = [1, 1, 1, 1]} : vector<2x8x9x256xf32> to vector<2x8x8x128xf32>
    %11 = arith.maximumf %9, %10 : vector<2x8x8x128xf32>
    %12 = vector.extract_strided_slice %8 {offsets = [0, 0, 1, 0], sizes = [2, 8, 8, 128], strides = [1, 1, 1, 1]} : vector<2x8x9x256xf32> to vector<2x8x8x128xf32>
    %13 = arith.maximumf %11, %12 : vector<2x8x8x128xf32>
    %c0_4 = arith.constant 0 : index
    %c0_5 = arith.constant 0 : index
    %c0_6 = arith.constant 0 : index
    %c0_7 = arith.constant 0 : index
    %14 = vector.load %arg1[%c0_4, %c0_5, %c0_6, %c0_7] : memref<2x8x8x128xf32, #tpu.memory_space<vmem>>, vector<2x8x8x128xf32>
    tpu.vector_store %arg1[%c0_4, %c0_5, %c0_6, %c0_7], %13 {strides = array<i32>} : memref<2x8x8x128xf32, #tpu.memory_space<vmem>>, vector<2x8x8x128xf32>,
    return
  }
}

module attributes {stable_mosaic.version = 11 : i64} {
  func.func @_conv_bias_kernel(%arg0: i32, %arg1: i32, %arg2: memref<128x1152xbf16, #tpu.memory_space<vmem>>, %arg3: memref<1152x128xbf16, #tpu.memory_space<vmem>>, %arg4: memref<1x128xf32, #tpu.memory_space<vmem>>, %arg5: memref<128x128xf32, #tpu.memory_space<vmem>>) attributes {dimension_semantics = [#tpu.dimension_semantics<parallel>, #tpu.dimension_semantics<parallel>], iteration_bounds = array<i64: 1, 1>, scalar_prefetch = 0 : i64, scratch_operands = 0 : i64, tpu.core_type = #tpu.core_type<tc>, window_params = [{transform_indices = @transform_0, window_bounds = array<i64: 128, 1152>}, {transform_indices = @transform_1, window_bounds = array<i64: 1152, 128>}, {transform_indices = @transform_2, window_bounds = array<i64: 1, 128>}, {transform_indices = @transform_3, window_bounds = array<i64: 128, 128>}]} {
    %c0 = arith.constant 0 : index
    %c0_0 = arith.constant 0 : index
    %0 = vector.load %arg2[%c0, %c0_0] : memref<128x1152xbf16, #tpu.memory_space<vmem>>, vector<128x1152xbf16>
    %c0_1 = arith.constant 0 : index
    %c0_2 = arith.constant 0 : index
    %1 = vector.load %arg3[%c0_1, %c0_2] : memref<1152x128xbf16, #tpu.memory_space<vmem>>, vector<1152x128xbf16>
    %cst = arith.constant dense<0.000000e+00> : vector<128x128xf32>
    %2 = tpu.matmul %0, %1, %cst {dimension_numbers = #tpu.dot_dimension_numbers<[1], [0], [0], [1], [0, 0, 1, 1], [], []>} : vector<128x1152xbf16>, vector<1152x128xbf16>, vector<128x128xf32> -> vector<128x128xf32>
    %c0_3 = arith.constant 0 : index
    %c0_4 = arith.constant 0 : index
    %3 = vector.load %arg4[%c0_3, %c0_4] : memref<1x128xf32, #tpu.memory_space<vmem>>, vector<1x128xf32>
    %4 = vector.broadcast %3 : vector<1x128xf32> to vector<128x128xf32>
    %5 = arith.addf %2, %4 : vector<128x128xf32>
    %cst_5 = arith.constant 0.000000e+00 : f32
    %6 = vector.broadcast %cst_5 : f32 to vector<128x128xf32>
    %7 = arith.maximumf %5, %6 : vector<128x128xf32>
    %c0_6 = arith.constant 0 : index
    %c0_7 = arith.constant 0 : index
    %8 = vector.load %arg5[%c0_6, %c0_7] : memref<128x128xf32, #tpu.memory_space<vmem>>, vector<128x128xf32>
    tpu.vector_store %arg5[%c0_6, %c0_7], %7 {strides = array<i32>} : memref<128x128xf32, #tpu.memory_space<vmem>>, vector<128x128xf32>,
    return
  }
  func.func @transform_0(%arg0: i32, %arg1: i32) -> (i32, i32) {
    %c0_i32 = arith.constant 0 : i32
    %c0_i32_0 = arith.constant 0 : i32
    return %arg0, %c0_i32 : i32, i32
  }
  func.func @transform_1(%arg0: i32, %arg1: i32) -> (i32, i32) {
    %c0_i32 = arith.constant 0 : i32
    %c0_i32_0 = arith.constant 0 : i32
    return %c0_i32, %arg1 : i32, i32
  }
  func.func @transform_2(%arg0: i32, %arg1: i32) -> (i32, i32) {
    %c0_i32 = arith.constant 0 : i32
    %c0_i32_0 = arith.constant 0 : i32
    return %c0_i32, %arg1 : i32, i32
  }
  func.func @transform_3(%arg0: i32, %arg1: i32) -> (i32, i32) {
    %c0_i32 = arith.constant 0 : i32
    return %arg0, %arg1 : i32, i32
  }
}

module attributes {stable_mosaic.version = 11 : i64} {
  func.func @_conv_bias_res_kernel(%arg0: i32, %arg1: i32, %arg2: memref<128x1152xbf16, #tpu.memory_space<vmem>>, %arg3: memref<1152x128xbf16, #tpu.memory_space<vmem>>, %arg4: memref<1x128xf32, #tpu.memory_space<vmem>>, %arg5: memref<128x128xf32, #tpu.memory_space<vmem>>, %arg6: memref<128x128xf32, #tpu.memory_space<vmem>>) attributes {dimension_semantics = [#tpu.dimension_semantics<parallel>, #tpu.dimension_semantics<parallel>], iteration_bounds = array<i64: 1, 1>, scalar_prefetch = 0 : i64, scratch_operands = 0 : i64, tpu.core_type = #tpu.core_type<tc>, window_params = [{transform_indices = @transform_0, window_bounds = array<i64: 128, 1152>}, {transform_indices = @transform_1, window_bounds = array<i64: 1152, 128>}, {transform_indices = @transform_2, window_bounds = array<i64: 1, 128>}, {transform_indices = @transform_3, window_bounds = array<i64: 128, 128>}, {transform_indices = @transform_4, window_bounds = array<i64: 128, 128>}]} {
    %c0 = arith.constant 0 : index
    %c0_0 = arith.constant 0 : index
    %0 = vector.load %arg2[%c0, %c0_0] : memref<128x1152xbf16, #tpu.memory_space<vmem>>, vector<128x1152xbf16>
    %c0_1 = arith.constant 0 : index
    %c0_2 = arith.constant 0 : index
    %1 = vector.load %arg3[%c0_1, %c0_2] : memref<1152x128xbf16, #tpu.memory_space<vmem>>, vector<1152x128xbf16>
    %cst = arith.constant dense<0.000000e+00> : vector<128x128xf32>
    %2 = tpu.matmul %0, %1, %cst {dimension_numbers = #tpu.dot_dimension_numbers<[1], [0], [0], [1], [0, 0, 1, 1], [], []>} : vector<128x1152xbf16>, vector<1152x128xbf16>, vector<128x128xf32> -> vector<128x128xf32>
    %c0_3 = arith.constant 0 : index
    %c0_4 = arith.constant 0 : index
    %3 = vector.load %arg4[%c0_3, %c0_4] : memref<1x128xf32, #tpu.memory_space<vmem>>, vector<1x128xf32>
    %4 = vector.broadcast %3 : vector<1x128xf32> to vector<128x128xf32>
    %5 = arith.addf %2, %4 : vector<128x128xf32>
    %c0_5 = arith.constant 0 : index
    %c0_6 = arith.constant 0 : index
    %6 = vector.load %arg5[%c0_5, %c0_6] : memref<128x128xf32, #tpu.memory_space<vmem>>, vector<128x128xf32>
    %7 = arith.addf %5, %6 : vector<128x128xf32>
    %cst_7 = arith.constant 0.000000e+00 : f32
    %8 = vector.broadcast %cst_7 : f32 to vector<128x128xf32>
    %9 = arith.maximumf %7, %8 : vector<128x128xf32>
    %c0_8 = arith.constant 0 : index
    %c0_9 = arith.constant 0 : index
    %10 = vector.load %arg6[%c0_8, %c0_9] : memref<128x128xf32, #tpu.memory_space<vmem>>, vector<128x128xf32>
    tpu.vector_store %arg6[%c0_8, %c0_9], %9 {strides = array<i32>} : memref<128x128xf32, #tpu.memory_space<vmem>>, vector<128x128xf32>,
    return
  }
  func.func @transform_0(%arg0: i32, %arg1: i32) -> (i32, i32) {
    %c0_i32 = arith.constant 0 : i32
    %c0_i32_0 = arith.constant 0 : i32
    return %arg0, %c0_i32 : i32, i32
  }
  func.func @transform_1(%arg0: i32, %arg1: i32) -> (i32, i32) {
    %c0_i32 = arith.constant 0 : i32
    %c0_i32_0 = arith.constant 0 : i32
    return %c0_i32, %arg1 : i32, i32
  }
  func.func @transform_2(%arg0: i32, %arg1: i32) -> (i32, i32) {
    %c0_i32 = arith.constant 0 : i32
    %c0_i32_0 = arith.constant 0 : i32
    return %c0_i32, %arg1 : i32, i32
  }
  func.func @transform_3(%arg0: i32, %arg1: i32) -> (i32, i32) {
    %c0_i32 = arith.constant 0 : i32
    return %arg0, %arg1 : i32, i32
  }
  func.func @transform_4(%arg0: i32, %arg1: i32) -> (i32, i32) {
    %c0_i32 = arith.constant 0 : i32
    return %arg0, %arg1 : i32, i32
  }
}

module attributes {stable_mosaic.version = 11 : i64} {
  func.func @_conv_bias_kernel(%arg0: i32, %arg1: i32, %arg2: memref<32x128xbf16, #tpu.memory_space<vmem>>, %arg3: memref<128x128xbf16, #tpu.memory_space<vmem>>, %arg4: memref<1x128xf32, #tpu.memory_space<vmem>>, %arg5: memref<32x128xf32, #tpu.memory_space<vmem>>) attributes {dimension_semantics = [#tpu.dimension_semantics<parallel>, #tpu.dimension_semantics<parallel>], iteration_bounds = array<i64: 1, 1>, scalar_prefetch = 0 : i64, scratch_operands = 0 : i64, tpu.core_type = #tpu.core_type<tc>, window_params = [{transform_indices = @transform_0, window_bounds = array<i64: 32, 128>}, {transform_indices = @transform_1, window_bounds = array<i64: 128, 128>}, {transform_indices = @transform_2, window_bounds = array<i64: 1, 128>}, {transform_indices = @transform_3, window_bounds = array<i64: 32, 128>}]} {
    %c0 = arith.constant 0 : index
    %c0_0 = arith.constant 0 : index
    %0 = vector.load %arg2[%c0, %c0_0] : memref<32x128xbf16, #tpu.memory_space<vmem>>, vector<32x128xbf16>
    %c0_1 = arith.constant 0 : index
    %c0_2 = arith.constant 0 : index
    %1 = vector.load %arg3[%c0_1, %c0_2] : memref<128x128xbf16, #tpu.memory_space<vmem>>, vector<128x128xbf16>
    %cst = arith.constant dense<0.000000e+00> : vector<32x128xf32>
    %2 = tpu.matmul %0, %1, %cst {dimension_numbers = #tpu.dot_dimension_numbers<[1], [0], [0], [1], [0, 0, 1, 1], [], []>} : vector<32x128xbf16>, vector<128x128xbf16>, vector<32x128xf32> -> vector<32x128xf32>
    %c0_3 = arith.constant 0 : index
    %c0_4 = arith.constant 0 : index
    %3 = vector.load %arg4[%c0_3, %c0_4] : memref<1x128xf32, #tpu.memory_space<vmem>>, vector<1x128xf32>
    %4 = vector.broadcast %3 : vector<1x128xf32> to vector<32x128xf32>
    %5 = arith.addf %2, %4 : vector<32x128xf32>
    %c0_5 = arith.constant 0 : index
    %c0_6 = arith.constant 0 : index
    %6 = vector.load %arg5[%c0_5, %c0_6] : memref<32x128xf32, #tpu.memory_space<vmem>>, vector<32x128xf32>
    tpu.vector_store %arg5[%c0_5, %c0_6], %5 {strides = array<i32>} : memref<32x128xf32, #tpu.memory_space<vmem>>, vector<32x128xf32>,
    return
  }
  func.func @transform_0(%arg0: i32, %arg1: i32) -> (i32, i32) {
    %c0_i32 = arith.constant 0 : i32
    %c0_i32_0 = arith.constant 0 : i32
    return %arg0, %c0_i32 : i32, i32
  }
  func.func @transform_1(%arg0: i32, %arg1: i32) -> (i32, i32) {
    %c0_i32 = arith.constant 0 : i32
    %c0_i32_0 = arith.constant 0 : i32
    return %c0_i32, %arg1 : i32, i32
  }
  func.func @transform_2(%arg0: i32, %arg1: i32) -> (i32, i32) {
    %c0_i32 = arith.constant 0 : i32
    %c0_i32_0 = arith.constant 0 : i32
    return %c0_i32, %arg1 : i32, i32
  }
  func.func @transform_3(%arg0: i32, %arg1: i32) -> (i32, i32) {
    %c0_i32 = arith.constant 0 : i32
    return %arg0, %arg1 : i32, i32
  }
}

module attributes {stable_mosaic.version = 11 : i64} {
  func.func @_conv_bias_kernel(%arg0: i32, %arg1: i32, %arg2: memref<8x128xbf16, #tpu.memory_space<vmem>>, %arg3: memref<128x128xbf16, #tpu.memory_space<vmem>>, %arg4: memref<1x128xf32, #tpu.memory_space<vmem>>, %arg5: memref<8x128xf32, #tpu.memory_space<vmem>>) attributes {dimension_semantics = [#tpu.dimension_semantics<parallel>, #tpu.dimension_semantics<parallel>], iteration_bounds = array<i64: 1, 2>, scalar_prefetch = 0 : i64, scratch_operands = 0 : i64, tpu.core_type = #tpu.core_type<tc>, window_params = [{transform_indices = @transform_0, window_bounds = array<i64: 8, 128>}, {transform_indices = @transform_1, window_bounds = array<i64: 128, 128>}, {transform_indices = @transform_2, window_bounds = array<i64: 1, 128>}, {transform_indices = @transform_3, window_bounds = array<i64: 8, 128>}]} {
    %c0 = arith.constant 0 : index
    %c0_0 = arith.constant 0 : index
    %0 = vector.load %arg2[%c0, %c0_0] : memref<8x128xbf16, #tpu.memory_space<vmem>>, vector<8x128xbf16>
    %c0_1 = arith.constant 0 : index
    %c0_2 = arith.constant 0 : index
    %1 = vector.load %arg3[%c0_1, %c0_2] : memref<128x128xbf16, #tpu.memory_space<vmem>>, vector<128x128xbf16>
    %cst = arith.constant dense<0.000000e+00> : vector<8x128xf32>
    %2 = tpu.matmul %0, %1, %cst {dimension_numbers = #tpu.dot_dimension_numbers<[1], [0], [0], [1], [0, 0, 1, 1], [], []>} : vector<8x128xbf16>, vector<128x128xbf16>, vector<8x128xf32> -> vector<8x128xf32>
    %c0_3 = arith.constant 0 : index
    %c0_4 = arith.constant 0 : index
    %3 = vector.load %arg4[%c0_3, %c0_4] : memref<1x128xf32, #tpu.memory_space<vmem>>, vector<1x128xf32>
    %4 = vector.broadcast %3 : vector<1x128xf32> to vector<8x128xf32>
    %5 = arith.addf %2, %4 : vector<8x128xf32>
    %c0_5 = arith.constant 0 : index
    %c0_6 = arith.constant 0 : index
    %6 = vector.load %arg5[%c0_5, %c0_6] : memref<8x128xf32, #tpu.memory_space<vmem>>, vector<8x128xf32>
    tpu.vector_store %arg5[%c0_5, %c0_6], %5 {strides = array<i32>} : memref<8x128xf32, #tpu.memory_space<vmem>>, vector<8x128xf32>,
    return
  }
  func.func @transform_0(%arg0: i32, %arg1: i32) -> (i32, i32) {
    %c0_i32 = arith.constant 0 : i32
    %c0_i32_0 = arith.constant 0 : i32
    return %arg0, %c0_i32 : i32, i32
  }
  func.func @transform_1(%arg0: i32, %arg1: i32) -> (i32, i32) {
    %c0_i32 = arith.constant 0 : i32
    %c0_i32_0 = arith.constant 0 : i32
    return %c0_i32, %arg1 : i32, i32
  }
  func.func @transform_2(%arg0: i32, %arg1: i32) -> (i32, i32) {
    %c0_i32 = arith.constant 0 : i32
    %c0_i32_0 = arith.constant 0 : i32
    return %c0_i32, %arg1 : i32, i32
  }
  func.func @transform_3(%arg0: i32, %arg1: i32) -> (i32, i32) {
    %c0_i32 = arith.constant 0 : i32
    return %arg0, %arg1 : i32, i32
  }
}

module attributes {stable_mosaic.version = 11 : i64} {
  func.func @_conv_bias_kernel(%arg0: i32, %arg1: i32, %arg2: memref<32x1152xbf16, #tpu.memory_space<vmem>>, %arg3: memref<1152x128xbf16, #tpu.memory_space<vmem>>, %arg4: memref<1x128xf32, #tpu.memory_space<vmem>>, %arg5: memref<32x128xf32, #tpu.memory_space<vmem>>) attributes {dimension_semantics = [#tpu.dimension_semantics<parallel>, #tpu.dimension_semantics<parallel>], iteration_bounds = array<i64: 1, 1>, scalar_prefetch = 0 : i64, scratch_operands = 0 : i64, tpu.core_type = #tpu.core_type<tc>, window_params = [{transform_indices = @transform_0, window_bounds = array<i64: 32, 1152>}, {transform_indices = @transform_1, window_bounds = array<i64: 1152, 128>}, {transform_indices = @transform_2, window_bounds = array<i64: 1, 128>}, {transform_indices = @transform_3, window_bounds = array<i64: 32, 128>}]} {
    %c0 = arith.constant 0 : index
    %c0_0 = arith.constant 0 : index
    %0 = vector.load %arg2[%c0, %c0_0] : memref<32x1152xbf16, #tpu.memory_space<vmem>>, vector<32x1152xbf16>
    %c0_1 = arith.constant 0 : index
    %c0_2 = arith.constant 0 : index
    %1 = vector.load %arg3[%c0_1, %c0_2] : memref<1152x128xbf16, #tpu.memory_space<vmem>>, vector<1152x128xbf16>
    %cst = arith.constant dense<0.000000e+00> : vector<32x128xf32>
    %2 = tpu.matmul %0, %1, %cst {dimension_numbers = #tpu.dot_dimension_numbers<[1], [0], [0], [1], [0, 0, 1, 1], [], []>} : vector<32x1152xbf16>, vector<1152x128xbf16>, vector<32x128xf32> -> vector<32x128xf32>
    %c0_3 = arith.constant 0 : index
    %c0_4 = arith.constant 0 : index
    %3 = vector.load %arg4[%c0_3, %c0_4] : memref<1x128xf32, #tpu.memory_space<vmem>>, vector<1x128xf32>
    %4 = vector.broadcast %3 : vector<1x128xf32> to vector<32x128xf32>
    %5 = arith.addf %2, %4 : vector<32x128xf32>
    %cst_5 = arith.constant 0.000000e+00 : f32
    %6 = vector.broadcast %cst_5 : f32 to vector<32x128xf32>
    %7 = arith.maximumf %5, %6 : vector<32x128xf32>
    %c0_6 = arith.constant 0 : index
    %c0_7 = arith.constant 0 : index
    %8 = vector.load %arg5[%c0_6, %c0_7] : memref<32x128xf32, #tpu.memory_space<vmem>>, vector<32x128xf32>
    tpu.vector_store %arg5[%c0_6, %c0_7], %7 {strides = array<i32>} : memref<32x128xf32, #tpu.memory_space<vmem>>, vector<32x128xf32>,
    return
  }
  func.func @transform_0(%arg0: i32, %arg1: i32) -> (i32, i32) {
    %c0_i32 = arith.constant 0 : i32
    %c0_i32_0 = arith.constant 0 : i32
    return %arg0, %c0_i32 : i32, i32
  }
  func.func @transform_1(%arg0: i32, %arg1: i32) -> (i32, i32) {
    %c0_i32 = arith.constant 0 : i32
    %c0_i32_0 = arith.constant 0 : i32
    return %c0_i32, %arg1 : i32, i32
  }
  func.func @transform_2(%arg0: i32, %arg1: i32) -> (i32, i32) {
    %c0_i32 = arith.constant 0 : i32
    %c0_i32_0 = arith.constant 0 : i32
    return %c0_i32, %arg1 : i32, i32
  }
  func.func @transform_3(%arg0: i32, %arg1: i32) -> (i32, i32) {
    %c0_i32 = arith.constant 0 : i32
    return %arg0, %arg1 : i32, i32
  }
}

module attributes {stable_mosaic.version = 11 : i64} {
  func.func @_conv_bias_res_kernel(%arg0: i32, %arg1: i32, %arg2: memref<32x1152xbf16, #tpu.memory_space<vmem>>, %arg3: memref<1152x128xbf16, #tpu.memory_space<vmem>>, %arg4: memref<1x128xf32, #tpu.memory_space<vmem>>, %arg5: memref<32x128xf32, #tpu.memory_space<vmem>>, %arg6: memref<32x128xf32, #tpu.memory_space<vmem>>) attributes {dimension_semantics = [#tpu.dimension_semantics<parallel>, #tpu.dimension_semantics<parallel>], iteration_bounds = array<i64: 1, 1>, scalar_prefetch = 0 : i64, scratch_operands = 0 : i64, tpu.core_type = #tpu.core_type<tc>, window_params = [{transform_indices = @transform_0, window_bounds = array<i64: 32, 1152>}, {transform_indices = @transform_1, window_bounds = array<i64: 1152, 128>}, {transform_indices = @transform_2, window_bounds = array<i64: 1, 128>}, {transform_indices = @transform_3, window_bounds = array<i64: 32, 128>}, {transform_indices = @transform_4, window_bounds = array<i64: 32, 128>}]} {
    %c0 = arith.constant 0 : index
    %c0_0 = arith.constant 0 : index
    %0 = vector.load %arg2[%c0, %c0_0] : memref<32x1152xbf16, #tpu.memory_space<vmem>>, vector<32x1152xbf16>
    %c0_1 = arith.constant 0 : index
    %c0_2 = arith.constant 0 : index
    %1 = vector.load %arg3[%c0_1, %c0_2] : memref<1152x128xbf16, #tpu.memory_space<vmem>>, vector<1152x128xbf16>
    %cst = arith.constant dense<0.000000e+00> : vector<32x128xf32>
    %2 = tpu.matmul %0, %1, %cst {dimension_numbers = #tpu.dot_dimension_numbers<[1], [0], [0], [1], [0, 0, 1, 1], [], []>} : vector<32x1152xbf16>, vector<1152x128xbf16>, vector<32x128xf32> -> vector<32x128xf32>
    %c0_3 = arith.constant 0 : index
    %c0_4 = arith.constant 0 : index
    %3 = vector.load %arg4[%c0_3, %c0_4] : memref<1x128xf32, #tpu.memory_space<vmem>>, vector<1x128xf32>
    %4 = vector.broadcast %3 : vector<1x128xf32> to vector<32x128xf32>
    %5 = arith.addf %2, %4 : vector<32x128xf32>
    %c0_5 = arith.constant 0 : index
    %c0_6 = arith.constant 0 : index
    %6 = vector.load %arg5[%c0_5, %c0_6] : memref<32x128xf32, #tpu.memory_space<vmem>>, vector<32x128xf32>
    %7 = arith.addf %5, %6 : vector<32x128xf32>
    %cst_7 = arith.constant 0.000000e+00 : f32
    %8 = vector.broadcast %cst_7 : f32 to vector<32x128xf32>
    %9 = arith.maximumf %7, %8 : vector<32x128xf32>
    %c0_8 = arith.constant 0 : index
    %c0_9 = arith.constant 0 : index
    %10 = vector.load %arg6[%c0_8, %c0_9] : memref<32x128xf32, #tpu.memory_space<vmem>>, vector<32x128xf32>
    tpu.vector_store %arg6[%c0_8, %c0_9], %9 {strides = array<i32>} : memref<32x128xf32, #tpu.memory_space<vmem>>, vector<32x128xf32>,
    return
  }
  func.func @transform_0(%arg0: i32, %arg1: i32) -> (i32, i32) {
    %c0_i32 = arith.constant 0 : i32
    %c0_i32_0 = arith.constant 0 : i32
    return %arg0, %c0_i32 : i32, i32
  }
  func.func @transform_1(%arg0: i32, %arg1: i32) -> (i32, i32) {
    %c0_i32 = arith.constant 0 : i32
    %c0_i32_0 = arith.constant 0 : i32
    return %c0_i32, %arg1 : i32, i32
  }
  func.func @transform_2(%arg0: i32, %arg1: i32) -> (i32, i32) {
    %c0_i32 = arith.constant 0 : i32
    %c0_i32_0 = arith.constant 0 : i32
    return %c0_i32, %arg1 : i32, i32
  }
  func.func @transform_3(%arg0: i32, %arg1: i32) -> (i32, i32) {
    %c0_i32 = arith.constant 0 : i32
    return %arg0, %arg1 : i32, i32
  }
  func.func @transform_4(%arg0: i32, %arg1: i32) -> (i32, i32) {
    %c0_i32 = arith.constant 0 : i32
    return %arg0, %arg1 : i32, i32
  }
}

module attributes {stable_mosaic.version = 11 : i64} {
  func.func @_conv_bias_kernel(%arg0: i32, %arg1: i32, %arg2: memref<8x1152xbf16, #tpu.memory_space<vmem>>, %arg3: memref<1152x128xbf16, #tpu.memory_space<vmem>>, %arg4: memref<1x128xf32, #tpu.memory_space<vmem>>, %arg5: memref<8x128xf32, #tpu.memory_space<vmem>>) attributes {dimension_semantics = [#tpu.dimension_semantics<parallel>, #tpu.dimension_semantics<parallel>], iteration_bounds = array<i64: 1, 2>, scalar_prefetch = 0 : i64, scratch_operands = 0 : i64, tpu.core_type = #tpu.core_type<tc>, window_params = [{transform_indices = @transform_0, window_bounds = array<i64: 8, 1152>}, {transform_indices = @transform_1, window_bounds = array<i64: 1152, 128>}, {transform_indices = @transform_2, window_bounds = array<i64: 1, 128>}, {transform_indices = @transform_3, window_bounds = array<i64: 8, 128>}]} {
    %c0 = arith.constant 0 : index
    %c0_0 = arith.constant 0 : index
    %0 = vector.load %arg2[%c0, %c0_0] : memref<8x1152xbf16, #tpu.memory_space<vmem>>, vector<8x1152xbf16>
    %c0_1 = arith.constant 0 : index
    %c0_2 = arith.constant 0 : index
    %1 = vector.load %arg3[%c0_1, %c0_2] : memref<1152x128xbf16, #tpu.memory_space<vmem>>, vector<1152x128xbf16>
    %cst = arith.constant dense<0.000000e+00> : vector<8x128xf32>
    %2 = tpu.matmul %0, %1, %cst {dimension_numbers = #tpu.dot_dimension_numbers<[1], [0], [0], [1], [0, 0, 1, 1], [], []>} : vector<8x1152xbf16>, vector<1152x128xbf16>, vector<8x128xf32> -> vector<8x128xf32>
    %c0_3 = arith.constant 0 : index
    %c0_4 = arith.constant 0 : index
    %3 = vector.load %arg4[%c0_3, %c0_4] : memref<1x128xf32, #tpu.memory_space<vmem>>, vector<1x128xf32>
    %4 = vector.broadcast %3 : vector<1x128xf32> to vector<8x128xf32>
    %5 = arith.addf %2, %4 : vector<8x128xf32>
    %cst_5 = arith.constant 0.000000e+00 : f32
    %6 = vector.broadcast %cst_5 : f32 to vector<8x128xf32>
    %7 = arith.maximumf %5, %6 : vector<8x128xf32>
    %c0_6 = arith.constant 0 : index
    %c0_7 = arith.constant 0 : index
    %8 = vector.load %arg5[%c0_6, %c0_7] : memref<8x128xf32, #tpu.memory_space<vmem>>, vector<8x128xf32>
    tpu.vector_store %arg5[%c0_6, %c0_7], %7 {strides = array<i32>} : memref<8x128xf32, #tpu.memory_space<vmem>>, vector<8x128xf32>,
    return
  }
  func.func @transform_0(%arg0: i32, %arg1: i32) -> (i32, i32) {
    %c0_i32 = arith.constant 0 : i32
    %c0_i32_0 = arith.constant 0 : i32
    return %arg0, %c0_i32 : i32, i32
  }
  func.func @transform_1(%arg0: i32, %arg1: i32) -> (i32, i32) {
    %c0_i32 = arith.constant 0 : i32
    %c0_i32_0 = arith.constant 0 : i32
    return %c0_i32, %arg1 : i32, i32
  }
  func.func @transform_2(%arg0: i32, %arg1: i32) -> (i32, i32) {
    %c0_i32 = arith.constant 0 : i32
    %c0_i32_0 = arith.constant 0 : i32
    return %c0_i32, %arg1 : i32, i32
  }
  func.func @transform_3(%arg0: i32, %arg1: i32) -> (i32, i32) {
    %c0_i32 = arith.constant 0 : i32
    return %arg0, %arg1 : i32, i32
  }
}

module attributes {stable_mosaic.version = 11 : i64} {
  func.func @_conv_bias_res_kernel(%arg0: i32, %arg1: i32, %arg2: memref<8x2304xbf16, #tpu.memory_space<vmem>>, %arg3: memref<2304x128xbf16, #tpu.memory_space<vmem>>, %arg4: memref<1x128xf32, #tpu.memory_space<vmem>>, %arg5: memref<8x128xf32, #tpu.memory_space<vmem>>, %arg6: memref<8x128xf32, #tpu.memory_space<vmem>>) attributes {dimension_semantics = [#tpu.dimension_semantics<parallel>, #tpu.dimension_semantics<parallel>], iteration_bounds = array<i64: 1, 2>, scalar_prefetch = 0 : i64, scratch_operands = 0 : i64, tpu.core_type = #tpu.core_type<tc>, window_params = [{transform_indices = @transform_0, window_bounds = array<i64: 8, 2304>}, {transform_indices = @transform_1, window_bounds = array<i64: 2304, 128>}, {transform_indices = @transform_2, window_bounds = array<i64: 1, 128>}, {transform_indices = @transform_3, window_bounds = array<i64: 8, 128>}, {transform_indices = @transform_4, window_bounds = array<i64: 8, 128>}]} {
    %c0 = arith.constant 0 : index
    %c0_0 = arith.constant 0 : index
    %0 = vector.load %arg2[%c0, %c0_0] : memref<8x2304xbf16, #tpu.memory_space<vmem>>, vector<8x2304xbf16>
    %c0_1 = arith.constant 0 : index
    %c0_2 = arith.constant 0 : index
    %1 = vector.load %arg3[%c0_1, %c0_2] : memref<2304x128xbf16, #tpu.memory_space<vmem>>, vector<2304x128xbf16>
    %cst = arith.constant dense<0.000000e+00> : vector<8x128xf32>
    %2 = tpu.matmul %0, %1, %cst {dimension_numbers = #tpu.dot_dimension_numbers<[1], [0], [0], [1], [0, 0, 1, 1], [], []>} : vector<8x2304xbf16>, vector<2304x128xbf16>, vector<8x128xf32> -> vector<8x128xf32>
    %c0_3 = arith.constant 0 : index
    %c0_4 = arith.constant 0 : index
    %3 = vector.load %arg4[%c0_3, %c0_4] : memref<1x128xf32, #tpu.memory_space<vmem>>, vector<1x128xf32>
    %4 = vector.broadcast %3 : vector<1x128xf32> to vector<8x128xf32>
    %5 = arith.addf %2, %4 : vector<8x128xf32>
    %c0_5 = arith.constant 0 : index
    %c0_6 = arith.constant 0 : index
    %6 = vector.load %arg5[%c0_5, %c0_6] : memref<8x128xf32, #tpu.memory_space<vmem>>, vector<8x128xf32>
    %7 = arith.addf %5, %6 : vector<8x128xf32>
    %cst_7 = arith.constant 0.000000e+00 : f32
    %8 = vector.broadcast %cst_7 : f32 to vector<8x128xf32>
    %9 = arith.maximumf %7, %8 : vector<8x128xf32>
    %c0_8 = arith.constant 0 : index
    %c0_9 = arith.constant 0 : index
    %10 = vector.load %arg6[%c0_8, %c0_9] : memref<8x128xf32, #tpu.memory_space<vmem>>, vector<8x128xf32>
    tpu.vector_store %arg6[%c0_8, %c0_9], %9 {strides = array<i32>} : memref<8x128xf32, #tpu.memory_space<vmem>>, vector<8x128xf32>,
    return
  }
  func.func @transform_0(%arg0: i32, %arg1: i32) -> (i32, i32) {
    %c0_i32 = arith.constant 0 : i32
    %c0_i32_0 = arith.constant 0 : i32
    return %arg0, %c0_i32 : i32, i32
  }
  func.func @transform_1(%arg0: i32, %arg1: i32) -> (i32, i32) {
    %c0_i32 = arith.constant 0 : i32
    %c0_i32_0 = arith.constant 0 : i32
    return %c0_i32, %arg1 : i32, i32
  }
  func.func @transform_2(%arg0: i32, %arg1: i32) -> (i32, i32) {
    %c0_i32 = arith.constant 0 : i32
    %c0_i32_0 = arith.constant 0 : i32
    return %c0_i32, %arg1 : i32, i32
  }
  func.func @transform_3(%arg0: i32, %arg1: i32) -> (i32, i32) {
    %c0_i32 = arith.constant 0 : i32
    return %arg0, %arg1 : i32, i32
  }
  func.func @transform_4(%arg0: i32, %arg1: i32) -> (i32, i32) {
    %c0_i32 = arith.constant 0 : i32
    return %arg0, %arg1 : i32, i32
  }
}

module attributes {stable_mosaic.version = 11 : i64} {
  func.func @_conv_bias_kernel(%arg0: i32, %arg1: i32, %arg2: memref<8x2304xbf16, #tpu.memory_space<vmem>>, %arg3: memref<2304x128xbf16, #tpu.memory_space<vmem>>, %arg4: memref<1x128xf32, #tpu.memory_space<vmem>>, %arg5: memref<8x128xf32, #tpu.memory_space<vmem>>) attributes {dimension_semantics = [#tpu.dimension_semantics<parallel>, #tpu.dimension_semantics<parallel>], iteration_bounds = array<i64: 1, 2>, scalar_prefetch = 0 : i64, scratch_operands = 0 : i64, tpu.core_type = #tpu.core_type<tc>, window_params = [{transform_indices = @transform_0, window_bounds = array<i64: 8, 2304>}, {transform_indices = @transform_1, window_bounds = array<i64: 2304, 128>}, {transform_indices = @transform_2, window_bounds = array<i64: 1, 128>}, {transform_indices = @transform_3, window_bounds = array<i64: 8, 128>}]} {
    %c0 = arith.constant 0 : index
    %c0_0 = arith.constant 0 : index
    %0 = vector.load %arg2[%c0, %c0_0] : memref<8x2304xbf16, #tpu.memory_space<vmem>>, vector<8x2304xbf16>
    %c0_1 = arith.constant 0 : index
    %c0_2 = arith.constant 0 : index
    %1 = vector.load %arg3[%c0_1, %c0_2] : memref<2304x128xbf16, #tpu.memory_space<vmem>>, vector<2304x128xbf16>
    %cst = arith.constant dense<0.000000e+00> : vector<8x128xf32>
    %2 = tpu.matmul %0, %1, %cst {dimension_numbers = #tpu.dot_dimension_numbers<[1], [0], [0], [1], [0, 0, 1, 1], [], []>} : vector<8x2304xbf16>, vector<2304x128xbf16>, vector<8x128xf32> -> vector<8x128xf32>
    %c0_3 = arith.constant 0 : index
    %c0_4 = arith.constant 0 : index
    %3 = vector.load %arg4[%c0_3, %c0_4] : memref<1x128xf32, #tpu.memory_space<vmem>>, vector<1x128xf32>
    %4 = vector.broadcast %3 : vector<1x128xf32> to vector<8x128xf32>
    %5 = arith.addf %2, %4 : vector<8x128xf32>
    %cst_5 = arith.constant 0.000000e+00 : f32
    %6 = vector.broadcast %cst_5 : f32 to vector<8x128xf32>
    %7 = arith.maximumf %5, %6 : vector<8x128xf32>
    %c0_6 = arith.constant 0 : index
    %c0_7 = arith.constant 0 : index
    %8 = vector.load %arg5[%c0_6, %c0_7] : memref<8x128xf32, #tpu.memory_space<vmem>>, vector<8x128xf32>
    tpu.vector_store %arg5[%c0_6, %c0_7], %7 {strides = array<i32>} : memref<8x128xf32, #tpu.memory_space<vmem>>, vector<8x128xf32>,
    return
  }
  func.func @transform_0(%arg0: i32, %arg1: i32) -> (i32, i32) {
    %c0_i32 = arith.constant 0 : i32
    %c0_i32_0 = arith.constant 0 : i32
    return %arg0, %c0_i32 : i32, i32
  }
  func.func @transform_1(%arg0: i32, %arg1: i32) -> (i32, i32) {
    %c0_i32 = arith.constant 0 : i32
    %c0_i32_0 = arith.constant 0 : i32
    return %c0_i32, %arg1 : i32, i32
  }
  func.func @transform_2(%arg0: i32, %arg1: i32) -> (i32, i32) {
    %c0_i32 = arith.constant 0 : i32
    %c0_i32_0 = arith.constant 0 : i32
    return %c0_i32, %arg1 : i32, i32
  }
  func.func @transform_3(%arg0: i32, %arg1: i32) -> (i32, i32) {
    %c0_i32 = arith.constant 0 : i32
    return %arg0, %arg1 : i32, i32
  }
}

</mosaic_0001>

<bundles_post_ra>
// kernel: resnet18_conv5_forward.17
= control target key start
LH: loop header
LB: loop body
LE: loop exit
PB: predicated region body
PF: predicated region fallthrough
CT: control target
= control target key end

     0   :  { %s2043_s12 = smov 0   ;;  %s2045_s13 = smov 0   ;;  %s2561_s0 = inlined_call_operand.vmem [shape: bf16[2048,128], index: 0, kind: input, shape index: {}]   ;;  %s2562_s1 = inlined_call_operand.vmem [shape: bf16[128,3], index: 1, kind: input, shape index: {}]   ;;  %s2563_s2 = inlined_call_operand.vmem [shape: f32[1,3], index: 2, kind: input, shape index: {}]   ;;  %s2564_s3 = inlined_call_operand.vmem [shape: f32[2048,3], index: 3, kind: output, shape index: {}]  }
   0x1   :  { %s2047_s14 = smov 0  }
   0x2 LB: > { %s25_s15 = sadd.s32 1, %s2017_s13  ;;  %p1591_p0 = scmp.ge.s32.totalorder %s2021_s14, 1  ;;  %s2021_s14 = sphi %s2047_s14, %s13_s14   ;;  %s2017_s13 = sphi %s2045_s13, %s2566_s13   ;;  %s2013_s12 = sphi %s2043_s12, %s2565_s12  }
   0x3   : > { %p27_p1 = scmp.ge.s32.totalorder %s25_s15, 2  ;;  %p169_p2 = scmp.lt.s32.totalorder %s2021_s14, 3 }
   0x5   : > { %s2568_s15 = smov (%p27_p1, %s25_s15), 0  ;;  %p170_p3 = pnand %p1591_p0, %p169_p2 }
   0x6   : > { %v1927_v0 = vld [vmem:[%s2562_s1] sm:$0xff] (!%p170_p3)   ;;  %s1592_s18 = sshll.u32 (!%p170_p3), %s2013_s12, 7  ;;  %v1928_v1 = vld [vmem:[%s2562_s1 + $0x8] sm:$0xff] (!%p170_p3)   ;;  %v1929_v2 = vld [vmem:[%s2562_s1 + $0x10] sm:$0xff] (!%p170_p3)   ;;  %vm1354_vm0 = vcmask (!%p170_p3), 23552  }
   0x7   : > { %173 = sbr.rel (%p170_p3) target bundleno = 377 (0x179), region = 32  ;;  %p204_p4 = scmp.lt.s32.totalorder (!%p170_p3), %s1592_s18, 255  ;;  %1743 = vmatprep.subr.bf16.mxu0 (!%p170_p3), %v1927_v0  ;;  %1887 = vmatprep.subr.bf16.mxu1 (!%p170_p3), %v1927_v0  ;;  %v1930_v3 = vld [vmem:[%s2562_s1 + $0x18] sm:$0xff] (!%p170_p3)   ;;  %v1931_v6 = vld [vmem:[%s2562_s1 + $0x20] sm:$0xff] (!%p170_p3)   ;;  %v1932_v7 = vld [vmem:[%s2562_s1 + $0x28] sm:$0xff] (!%p170_p3)  }
   0x8   : > { %1744 = vmatpush3.bf16.msra.mxu0 (!%p170_p3), %v1927_v0  ;;  %1895 = vmatpush3.bf16.msra.mxu1 (!%p170_p3), %v1927_v0  ;;  %v1933_v8 = vld [vmem:[%s2562_s1 + $0x30] sm:$0xff] (!%p170_p3)   ;;  %v1934_v9 = vld [vmem:[%s2562_s1 + $0x38] sm:$0xff] (!%p170_p3)  }
   0x9   : > { %1745 = vmatprep.subr.bf16.mxu0 (!%p170_p3), %v1928_v1  ;;  %1888 = vmatprep.subr.bf16.mxu1 (!%p170_p3), %v1928_v1 }
   0xc   : > { %1746 = vmatpush3.bf16.msra.mxu0 (!%p170_p3), %v1928_v1  ;;  %1896 = vmatpush3.bf16.msra.mxu1 (!%p170_p3), %v1928_v1 }
   0xd   : > { %1747 = vmatprep.subr.bf16.mxu0 (!%p170_p3), %v1929_v2  ;;  %1889 = vmatprep.subr.bf16.mxu1 (!%p170_p3), %v1929_v2 }
   0xe   : > { %s2570_s18 = smov (!%p204_p4, %s1592_s18), 255 }
   0xf   : > { %s1593_s23 = sshll.u32 %s2570_s18, 2  ;;  %s1595_s10 = sshll.u32 %s2570_s18, 3 }
  0x10   : > { %s2076_s26 = scalar_lea.vmem %s2561_s0, %s1593_s23  ;;  %1748 = vmatpush3.bf16.msra.mxu0 %v1929_v2  ;;  %1897 = vmatpush3.bf16.msra.mxu1 %v1929_v2  ;;  %s2166_s19 = scalar_lea.vmem %s2564_s3, %s1595_s10 }
  0x11   : > { %v1935_v4 = vld [vmem:[%s2076_s26] sm:$0xff]   ;;  %1749 = vmatprep.subr.bf16.mxu0 %v1930_v3  ;;  %1890 = vmatprep.subr.bf16.mxu1 %v1930_v3  ;;  %v1937_v10 = vld [vmem:[%s2076_s26 + $0x8] sm:$0xff]   ;;  %v1939_v12 = vld [vmem:[%s2076_s26 + $0x10] sm:$0xff]  }
  0x12   : > { %v1936_v5 = vld [vmem:[%s2076_s26 + $0x100] sm:$0xff]   ;;  %1759 = vmatprep.mubr.bf16.mxu0 %v1935_v4  ;;  %v1938_v11 = vld [vmem:[%s2076_s26 + $0x108] sm:$0xff]   ;;  %v1940_v13 = vld [vmem:[%s2076_s26 + $0x110] sm:$0xff]  }
  0x13   : > { %1823 = vmatprep.mubr.bf16.mxu1 %v1936_v5  ;;  %v1941_v14 = vld [vmem:[%s2076_s26 + $0x18] sm:$0xff]   ;;  %v1943_v16 = vld [vmem:[%s2076_s26 + $0x20] sm:$0xff]   ;;  %v1945_v18 = vld [vmem:[%s2076_s26 + $0x28] sm:$0xff]  }
  0x14   : > { %1750 = vmatpush3.bf16.msra.mxu0 %v1930_v3  ;;  %1898 = vmatpush3.bf16.msra.mxu1 %v1930_v3  ;;  %v1942_v15 = vld [vmem:[%s2076_s26 + $0x118] sm:$0xff]   ;;  %v1944_v17 = vld [vmem:[%s2076_s26 + $0x120] sm:$0xff]   ;;  %v1946_v19 = vld [vmem:[%s2076_s26 + $0x128] sm:$0xff]  }
  0x15   : > { %1751 = vmatprep.subr.bf16.mxu0 %v1931_v6  ;;  %1891 = vmatprep.subr.bf16.mxu1 %v1931_v6  ;;  %v1947_v20 = vld [vmem:[%s2076_s26 + $0x30] sm:$0xff]   ;;  %v1949_v22 = vld [vmem:[%s2076_s26 + $0x38] sm:$0xff]   ;;  %v1951_v24 = vld [vmem:[%s2076_s26 + $0x40] sm:$0xff]  }
  0x16   : > { %v1948_v21 = vld [vmem:[%s2076_s26 + $0x130] sm:$0xff]   ;;  %v1950_v23 = vld [vmem:[%s2076_s26 + $0x138] sm:$0xff]   ;;  %v1952_v25 = vld [vmem:[%s2076_s26 + $0x140] sm:$0xff]  }
  0x17   : > { %v1953_v26 = vld [vmem:[%s2076_s26 + $0x48] sm:$0xff]   ;;  %v1955_v28 = vld [vmem:[%s2076_s26 + $0x50] sm:$0xff]   ;;  %v1957_v30 = vld [vmem:[%s2076_s26 + $0x58] sm:$0xff]  }
  0x18   : > { %1752 = vmatpush3.bf16.msra.mxu0 %v1931_v6  ;;  %1899 = vmatpush3.bf16.msra.mxu1 %v1931_v6  ;;  %v1954_v27 = vld [vmem:[%s2076_s26 + $0x148] sm:$0xff]   ;;  %v1956_v29 = vld [vmem:[%s2076_s26 + $0x150] sm:$0xff]   ;;  %v1958_v31 = vld [vmem:[%s2076_s26 + $0x158] sm:$0xff]  }
  0x19   : > { %1753 = vmatprep.subr.bf16.mxu0 %v1932_v7  ;;  %1892 = vmatprep.subr.bf16.mxu1 %v1932_v7  ;;  %v1959_v32 = vld [vmem:[%s2076_s26 + $0x60] sm:$0xff]   ;;  %v1961_v34 = vld [vmem:[%s2076_s26 + $0x68] sm:$0xff]   ;;  %v1963_v36 = vld [vmem:[%s2076_s26 + $0x70] sm:$0xff]  }
  0x1a   : > { %v1960_v33 = vld [vmem:[%s2076_s26 + $0x160] sm:$0xff]   ;;  %v1962_v35 = vld [vmem:[%s2076_s26 + $0x168] sm:$0xff]   ;;  %v1964_v37 = vld [vmem:[%s2076_s26 + $0x170] sm:$0xff]  }
  0x1b   : > { %v1965_v38 = vld [vmem:[%s2076_s26 + $0x78] sm:$0xff]   ;;  %v1967_v40 = vld [vmem:[%s2076_s26 + $0x80] sm:$0xff]   ;;  %v1969_v42 = vld [vmem:[%s2076_s26 + $0x88] sm:$0xff]  }
  0x1c   : > { %1754 = vmatpush3.bf16.msra.mxu0 %v1932_v7  ;;  %1900 = vmatpush3.bf16.msra.mxu1 %v1932_v7  ;;  %v1966_v39 = vld [vmem:[%s2076_s26 + $0x178] sm:$0xff]   ;;  %v1968_v41 = vld [vmem:[%s2076_s26 + $0x180] sm:$0xff]   ;;  %v1970_v43 = vld [vmem:[%s2076_s26 + $0x188] sm:$0xff]  }
  0x1d   : > { %1755 = vmatprep.subr.bf16.mxu0 %v1933_v8  ;;  %1893 = vmatprep.subr.bf16.mxu1 %v1933_v8  ;;  %v1971_v44 = vld [vmem:[%s2076_s26 + $0x90] sm:$0xff]   ;;  %v1973_v46 = vld [vmem:[%s2076_s26 + $0x98] sm:$0xff]   ;;  %v1975_v48 = vld [vmem:[%s2076_s26 + $0xa0] sm:$0xff]  }
  0x1e   : > { %v1972_v45 = vld [vmem:[%s2076_s26 + $0x190] sm:$0xff]   ;;  %v1974_v47 = vld [vmem:[%s2076_s26 + $0x198] sm:$0xff]   ;;  %v1976_v49 = vld [vmem:[%s2076_s26 + $0x1a0] sm:$0xff]  }
  0x1f   : > { %v1977_v50 = vld [vmem:[%s2076_s26 + $0xa8] sm:$0xff]   ;;  %v1979_v52 = vld [vmem:[%s2076_s26 + $0xb0] sm:$0xff]   ;;  %v1981_v54 = vld [vmem:[%s2076_s26 + $0xb8] sm:$0xff]  }
  0x20   : > { %1756 = vmatpush3.bf16.msra.mxu0 %v1933_v8  ;;  %1901 = vmatpush3.bf16.msra.mxu1 %v1933_v8  ;;  %v1978_v51 = vld [vmem:[%s2076_s26 + $0x1a8] sm:$0xff]   ;;  %v1980_v53 = vld [vmem:[%s2076_s26 + $0x1b0] sm:$0xff]   ;;  %v1982_v55 = vld [vmem:[%s2076_s26 + $0x1b8] sm:$0xff]  }
  0x21   : > { %1757 = vmatprep.subr.bf16.mxu0 %v1934_v9  ;;  %1894 = vmatprep.subr.bf16.mxu1 %v1934_v9  ;;  %v1983_v56 = vld [vmem:[%s2076_s26 + $0xc0] sm:$0xff]   ;;  %v1985_v58 = vld [vmem:[%s2076_s26 + $0xc8] sm:$0xff]   ;;  %v1987_v60 = vld [vmem:[%s2076_s26 + $0xd0] sm:$0xff]  }
  0x22   : > { %v1984_v57 = vld [vmem:[%s2076_s26 + $0x1c0] sm:$0xff]   ;;  %v1986_v59 = vld [vmem:[%s2076_s26 + $0x1c8] sm:$0xff]   ;;  %v1988_v61 = vld [vmem:[%s2076_s26 + $0x1d0] sm:$0xff]  }
  0x23   : > { %v1989_v62 = vld [vmem:[%s2076_s26 + $0xd8] sm:$0xff]   ;;  %v1991_v0 = vld [vmem:[%s2076_s26 + $0xe0] sm:$0xff]   ;;  %v1993_v2 = vld [vmem:[%s2076_s26 + $0xe8] sm:$0xff]  }
  0x24   : > { %1758 = vmatpush3.bf16.msra.mxu0 %v1934_v9  ;;  %1902 = vmatpush3.bf16.msra.mxu1 %v1934_v9  ;;  %v1990_v63 = vld [vmem:[%s2076_s26 + $0x1d8] sm:$0xff]   ;;  %v1992_v1 = vld [vmem:[%s2076_s26 + $0x1e0] sm:$0xff]   ;;  %v1994_v3 = vld [vmem:[%s2076_s26 + $0x1e8] sm:$0xff]  }
  0x25   : > { %v1995_v4 = vld [vmem:[%s2076_s26 + $0xf0] sm:$0xff]   ;;  %v1997_v6 = vld [vmem:[%s2076_s26 + $0xf8] sm:$0xff]   ;;  %v2161_v8 = vld [vmem:[%s2563_s2] ss:$0 sm:$0xff] }
  0x26   : > { %v1996_v5 = vld [vmem:[%s2076_s26 + $0x1f0] sm:$0xff]   ;;  %v1998_v7 = vld [vmem:[%s2076_s26 + $0x1f8] sm:$0xff]  }
  0x27   : > { %1760 = vmatmul.mubr.bf16.vlgmr.msra.gmra.mrb[0].mxu0 %v1937_v10  ;;  %1824 = vmatmul.mubr.bf16.vlgmr.msra.gmra.mrb[0].mxu1 %v1938_v11 }
  0x28   : > { %1763 = vmatprep.mubr.bf16.mxu0 %v1939_v12  ;;  %1827 = vmatprep.mubr.bf16.mxu1 %v1940_v13 }
  0x2f   : > { %1764 = vmatmul.mubr.bf16.gmra.mrb[4].mxu0 %v1941_v14  ;;  %1828 = vmatmul.mubr.bf16.gmra.mrb[4].mxu1 %v1942_v15 }
  0x30   : > { %1767 = vmatprep.mubr.bf16.mxu0 %v1943_v16  ;;  %1831 = vmatprep.mubr.bf16.mxu1 %v1944_v17 }
  0x37   : > { %1768 = vmatmul.mubr.bf16.gmra.mrb[8].mxu0 %v1945_v18  ;;  %1832 = vmatmul.mubr.bf16.gmra.mrb[8].mxu1 %v1946_v19 }
  0x38   : > { %1771 = vmatprep.mubr.bf16.mxu0 %v1947_v20  ;;  %1835 = vmatprep.mubr.bf16.mxu1 %v1948_v21 }
  0x3f   : > { %1772 = vmatmul.mubr.bf16.gmra.mrb[12].mxu0 %v1949_v22  ;;  %1836 = vmatmul.mubr.bf16.gmra.mrb[12].mxu1 %v1950_v23 }
  0x40   : > { %1775 = vmatprep.mubr.bf16.mxu0 %v1951_v24  ;;  %1839 = vmatprep.mubr.bf16.mxu1 %v1952_v25 }
  0x47   : > { %1776 = vmatmul.mubr.bf16.gmra.mrb[16].mxu0 %v1953_v26  ;;  %1840 = vmatmul.mubr.bf16.gmra.mrb[16].mxu1 %v1954_v27 }
  0x48   : > { %1779 = vmatprep.mubr.bf16.mxu0 %v1955_v28  ;;  %1843 = vmatprep.mubr.bf16.mxu1 %v1956_v29 }
  0x4f   : > { %1780 = vmatmul.mubr.bf16.gmra.mrb[20].mxu0 %v1957_v30  ;;  %1844 = vmatmul.mubr.bf16.gmra.mrb[20].mxu1 %v1958_v31 }
  0x50   : > { %1783 = vmatprep.mubr.bf16.mxu0 %v1959_v32  ;;  %1847 = vmatprep.mubr.bf16.mxu1 %v1960_v33 }
  0x57   : > { %1784 = vmatmul.mubr.bf16.gmra.mrb[24].mxu0 %v1961_v34  ;;  %1848 = vmatmul.mubr.bf16.gmra.mrb[24].mxu1 %v1962_v35 }
  0x58   : > { %1787 = vmatprep.mubr.bf16.mxu0 %v1963_v36  ;;  %1851 = vmatprep.mubr.bf16.mxu1 %v1964_v37 }
  0x5f   : > { %1788 = vmatmul.mubr.bf16.gmra.mrb[28].mxu0 %v1965_v38  ;;  %1852 = vmatmul.mubr.bf16.gmra.mrb[28].mxu1 %v1966_v39 }
  0x60   : > { %1791 = vmatprep.mubr.bf16.mxu0 %v1967_v40  ;;  %1855 = vmatprep.mubr.bf16.mxu1 %v1968_v41 }
  0x67   : > { %1792 = vmatmul.mubr.bf16.gmra.mrb[32].mxu0 %v1969_v42  ;;  %1856 = vmatmul.mubr.bf16.gmra.mrb[32].mxu1 %v1970_v43 }
  0x68   : > { %1795 = vmatprep.mubr.bf16.mxu0 %v1971_v44  ;;  %1859 = vmatprep.mubr.bf16.mxu1 %v1972_v45 }
  0x6f   : > { %1796 = vmatmul.mubr.bf16.gmra.mrb[36].mxu0 %v1973_v46  ;;  %1860 = vmatmul.mubr.bf16.gmra.mrb[36].mxu1 %v1974_v47 }
  0x70   : > { %1799 = vmatprep.mubr.bf16.mxu0 %v1975_v48  ;;  %1863 = vmatprep.mubr.bf16.mxu1 %v1976_v49 }
  0x77   : > { %1800 = vmatmul.mubr.bf16.gmra.mrb[40].mxu0 %v1977_v50  ;;  %1864 = vmatmul.mubr.bf16.gmra.mrb[40].mxu1 %v1978_v51 }
  0x78   : > { %1803 = vmatprep.mubr.bf16.mxu0 %v1979_v52  ;;  %1867 = vmatprep.mubr.bf16.mxu1 %v1980_v53 }
  0x7f   : > { %1804 = vmatmul.mubr.bf16.gmra.mrb[44].mxu0 %v1981_v54  ;;  %1868 = vmatmul.mubr.bf16.gmra.mrb[44].mxu1 %v1982_v55 }
  0x80   : > { %1807 = vmatprep.mubr.bf16.mxu0 %v1983_v56  ;;  %1871 = vmatprep.mubr.bf16.mxu1 %v1984_v57 }
  0x87   : > { %1808 = vmatmul.mubr.bf16.gmra.mrb[48].mxu0 %v1985_v58  ;;  %1872 = vmatmul.mubr.bf16.gmra.mrb[48].mxu1 %v1986_v59 }
  0x88   : > { %1811 = vmatprep.mubr.bf16.mxu0 %v1987_v60  ;;  %1875 = vmatprep.mubr.bf16.mxu1 %v1988_v61 }
  0x8f   : > { %1812 = vmatmul.mubr.bf16.gmra.mrb[52].mxu0 %v1989_v62  ;;  %1876 = vmatmul.mubr.bf16.gmra.mrb[52].mxu1 %v1990_v63 }
  0x90   : > { %1815 = vmatprep.mubr.bf16.mxu0 %v1991_v0  ;;  %1879 = vmatprep.mubr.bf16.mxu1 %v1992_v1 }
  0x97   : > { %1816 = vmatmul.mubr.bf16.gmra.mrb[56].mxu0 %v1993_v2  ;;  %1880 = vmatmul.mubr.bf16.gmra.mrb[56].mxu1 %v1994_v3 }
  0x98   : > { %1819 = vmatprep.mubr.bf16.mxu0 %v1995_v4  ;;  %1883 = vmatprep.mubr.bf16.mxu1 %v1996_v5 }
  0x9f   : > { %1820 = vmatmul.mubr.bf16.gmra.mrb[60].mxu0 %v1997_v6  ;;  %1884 = vmatmul.mubr.bf16.gmra.mrb[60].mxu1 %v1998_v7 }
  0xfa   : > { %v1761_v9 = vpop.f32.mrb[0].mxu0  ;;  %v1825_v10 = vpop.f32.mrb[0].mxu1 }
  0xfb   : > { %v852_v11 = vadd.f32 %v1761_v9, %v2161_v8  ;;  %v1108_v12 = vadd.f32 %v1825_v10, %v2161_v8  ;;  %v843_v13 = vpop.f32.mrb[1].mxu0  ;;  %v1099_v14 = vpop.f32.mrb[1].mxu1 }
  0xfc   : > { %v844_v15 = vadd.f32 %v2161_v8, %v843_v13  ;;  %v1100_v16 = vadd.f32 %v2161_v8, %v1099_v14  ;;  %v1762_v17 = vpop.f32.mrb[2].mxu0  ;;  %v1826_v18 = vpop.f32.mrb[2].mxu1 }
  0xfd   : > { %1357 = vst.msk [vmem:[%s2166_s19 + $0x10] sm:$0xff] %vm1354_vm0, %v852_v11  ;;  %1421 = vst.msk [vmem:[%s2166_s19 + $0x210] sm:$0xff] %vm1354_vm0, %v1108_v12  ;;  %v855_v19 = vadd.f32 %v1762_v17, %v2161_v8  ;;  %v1111_v20 = vadd.f32 %v1826_v18, %v2161_v8  ;;  %v846_v21 = vpop.f32.mrb[3].mxu0  ;;  %v1102_v22 = vpop.f32.mrb[3].mxu1 }
  0xfe   : > { %1355 = vst.msk [vmem:[%s2166_s19] sm:$0xff] %vm1354_vm0, %v844_v15  ;;  %1419 = vst.msk [vmem:[%s2166_s19 + $0x200] sm:$0xff] %vm1354_vm0, %v1100_v16  ;;  %v847_v23 = vadd.f32 %v2161_v8, %v846_v21  ;;  %v1103_v24 = vadd.f32 %v2161_v8, %v1102_v22 }
  0xff   : > { %1358 = vst.msk [vmem:[%s2166_s19 + $0x18] sm:$0xff] %vm1354_vm0, %v855_v19  ;;  %1422 = vst.msk [vmem:[%s2166_s19 + $0x218] sm:$0xff] %vm1354_vm0, %v1111_v20 }
 0x100   : > { %1356 = vst.msk [vmem:[%s2166_s19 + $0x8] sm:$0xff] %vm1354_vm0, %v847_v23  ;;  %1420 = vst.msk [vmem:[%s2166_s19 + $0x208] sm:$0xff] %vm1354_vm0, %v1103_v24 }
 0x102   : > { %v1765_v25 = vpop.f32.mrb[4].mxu0  ;;  %v1829_v26 = vpop.f32.mrb[4].mxu1 }
 0x103   : > { %v868_v27 = vadd.f32 %v1765_v25, %v2161_v8  ;;  %v1124_v28 = vadd.f32 %v1829_v26, %v2161_v8  ;;  %v859_v29 = vpop.f32.mrb[5].mxu0  ;;  %v1115_v30 = vpop.f32.mrb[5].mxu1 }
 0x104   : > { %v860_v31 = vadd.f32 %v2161_v8, %v859_v29  ;;  %v1116_v32 = vadd.f32 %v2161_v8, %v1115_v30  ;;  %v1766_v33 = vpop.f32.mrb[6].mxu0  ;;  %v1830_v34 = vpop.f32.mrb[6].mxu1 }
 0x105   : > { %1361 = vst.msk [vmem:[%s2166_s19 + $0x30] sm:$0xff] %vm1354_vm0, %v868_v27  ;;  %1425 = vst.msk [vmem:[%s2166_s19 + $0x230] sm:$0xff] %vm1354_vm0, %v1124_v28  ;;  %v871_v35 = vadd.f32 %v1766_v33, %v2161_v8  ;;  %v1127_v36 = vadd.f32 %v1830_v34, %v2161_v8  ;;  %v862_v37 = vpop.f32.mrb[7].mxu0  ;;  %v1118_v38 = vpop.f32.mrb[7].mxu1 }
 0x106   : > { %1359 = vst.msk [vmem:[%s2166_s19 + $0x20] sm:$0xff] %vm1354_vm0, %v860_v31  ;;  %1423 = vst.msk [vmem:[%s2166_s19 + $0x220] sm:$0xff] %vm1354_vm0, %v1116_v32  ;;  %v863_v39 = vadd.f32 %v2161_v8, %v862_v37  ;;  %v1119_v40 = vadd.f32 %v2161_v8, %v1118_v38 }
 0x107   : > { %1362 = vst.msk [vmem:[%s2166_s19 + $0x38] sm:$0xff] %vm1354_vm0, %v871_v35  ;;  %1426 = vst.msk [vmem:[%s2166_s19 + $0x238] sm:$0xff] %vm1354_vm0, %v1127_v36 }
 0x108   : > { %1360 = vst.msk [vmem:[%s2166_s19 + $0x28] sm:$0xff] %vm1354_vm0, %v863_v39  ;;  %1424 = vst.msk [vmem:[%s2166_s19 + $0x228] sm:$0xff] %vm1354_vm0, %v1119_v40 }
 0x10a   : > { %v1769_v41 = vpop.f32.mrb[8].mxu0  ;;  %v1833_v42 = vpop.f32.mrb[8].mxu1 }
 0x10b   : > { %v884_v43 = vadd.f32 %v1769_v41, %v2161_v8  ;;  %v1140_v44 = vadd.f32 %v1833_v42, %v2161_v8  ;;  %v875_v45 = vpop.f32.mrb[9].mxu0  ;;  %v1131_v46 = vpop.f32.mrb[9].mxu1 }
 0x10c   : > { %v876_v47 = vadd.f32 %v2161_v8, %v875_v45  ;;  %v1132_v48 = vadd.f32 %v2161_v8, %v1131_v46  ;;  %v1770_v49 = vpop.f32.mrb[10].mxu0  ;;  %v1834_v50 = vpop.f32.mrb[10].mxu1 }
 0x10d   : > { %1365 = vst.msk [vmem:[%s2166_s19 + $0x50] sm:$0xff] %vm1354_vm0, %v884_v43  ;;  %1429 = vst.msk [vmem:[%s2166_s19 + $0x250] sm:$0xff] %vm1354_vm0, %v1140_v44  ;;  %v887_v51 = vadd.f32 %v1770_v49, %v2161_v8  ;;  %v1143_v52 = vadd.f32 %v1834_v50, %v2161_v8  ;;  %v878_v53 = vpop.f32.mrb[11].mxu0  ;;  %v1134_v54 = vpop.f32.mrb[11].mxu1 }
 0x10e   : > { %1363 = vst.msk [vmem:[%s2166_s19 + $0x40] sm:$0xff] %vm1354_vm0, %v876_v47  ;;  %1427 = vst.msk [vmem:[%s2166_s19 + $0x240] sm:$0xff] %vm1354_vm0, %v1132_v48  ;;  %v879_v55 = vadd.f32 %v2161_v8, %v878_v53  ;;  %v1135_v56 = vadd.f32 %v2161_v8, %v1134_v54 }
 0x10f   : > { %1366 = vst.msk [vmem:[%s2166_s19 + $0x58] sm:$0xff] %vm1354_vm0, %v887_v51  ;;  %1430 = vst.msk [vmem:[%s2166_s19 + $0x258] sm:$0xff] %vm1354_vm0, %v1143_v52 }
 0x110   : > { %1364 = vst.msk [vmem:[%s2166_s19 + $0x48] sm:$0xff] %vm1354_vm0, %v879_v55  ;;  %1428 = vst.msk [vmem:[%s2166_s19 + $0x248] sm:$0xff] %vm1354_vm0, %v1135_v56 }
 0x112   : > { %v1773_v57 = vpop.f32.mrb[12].mxu0  ;;  %v1837_v58 = vpop.f32.mrb[12].mxu1 }
 0x113   : > { %v900_v59 = vadd.f32 %v1773_v57, %v2161_v8  ;;  %v1156_v60 = vadd.f32 %v1837_v58, %v2161_v8  ;;  %v891_v61 = vpop.f32.mrb[13].mxu0  ;;  %v1147_v62 = vpop.f32.mrb[13].mxu1 }
 0x114   : > { %v892_v63 = vadd.f32 %v2161_v8, %v891_v61  ;;  %v1148_v0 = vadd.f32 %v2161_v8, %v1147_v62  ;;  %v1774_v1 = vpop.f32.mrb[14].mxu0  ;;  %v1838_v2 = vpop.f32.mrb[14].mxu1 }
 0x115   : > { %1369 = vst.msk [vmem:[%s2166_s19 + $0x70] sm:$0xff] %vm1354_vm0, %v900_v59  ;;  %1433 = vst.msk [vmem:[%s2166_s19 + $0x270] sm:$0xff] %vm1354_vm0, %v1156_v60  ;;  %v903_v3 = vadd.f32 %v1774_v1, %v2161_v8  ;;  %v1159_v4 = vadd.f32 %v1838_v2, %v2161_v8  ;;  %v894_v5 = vpop.f32.mrb[15].mxu0  ;;  %v1150_v6 = vpop.f32.mrb[15].mxu1 }
 0x116   : > { %1367 = vst.msk [vmem:[%s2166_s19 + $0x60] sm:$0xff] %vm1354_vm0, %v892_v63  ;;  %1431 = vst.msk [vmem:[%s2166_s19 + $0x260] sm:$0xff] %vm1354_vm0, %v1148_v0  ;;  %v895_v7 = vadd.f32 %v2161_v8, %v894_v5  ;;  %v1151_v9 = vadd.f32 %v2161_v8, %v1150_v6 }
 0x117   : > { %1370 = vst.msk [vmem:[%s2166_s19 + $0x78] sm:$0xff] %vm1354_vm0, %v903_v3  ;;  %1434 = vst.msk [vmem:[%s2166_s19 + $0x278] sm:$0xff] %vm1354_vm0, %v1159_v4 }
 0x118   : > { %1368 = vst.msk [vmem:[%s2166_s19 + $0x68] sm:$0xff] %vm1354_vm0, %v895_v7  ;;  %1432 = vst.msk [vmem:[%s2166_s19 + $0x268] sm:$0xff] %vm1354_vm0, %v1151_v9 }
 0x11a   : > { %v1777_v10 = vpop.f32.mrb[16].mxu0  ;;  %v1841_v11 = vpop.f32.mrb[16].mxu1 }
 0x11b   : > { %v916_v12 = vadd.f32 %v1777_v10, %v2161_v8  ;;  %v1172_v13 = vadd.f32 %v1841_v11, %v2161_v8  ;;  %v907_v14 = vpop.f32.mrb[17].mxu0  ;;  %v1163_v15 = vpop.f32.mrb[17].mxu1 }
 0x11c   : > { %v908_v16 = vadd.f32 %v2161_v8, %v907_v14  ;;  %v1164_v17 = vadd.f32 %v2161_v8, %v1163_v15  ;;  %v1778_v18 = vpop.f32.mrb[18].mxu0  ;;  %v1842_v19 = vpop.f32.mrb[18].mxu1 }
 0x11d   : > { %1373 = vst.msk [vmem:[%s2166_s19 + $0x90] sm:$0xff] %vm1354_vm0, %v916_v12  ;;  %1437 = vst.msk [vmem:[%s2166_s19 + $0x290] sm:$0xff] %vm1354_vm0, %v1172_v13  ;;  %v919_v20 = vadd.f32 %v1778_v18, %v2161_v8  ;;  %v1175_v21 = vadd.f32 %v1842_v19, %v2161_v8  ;;  %v910_v22 = vpop.f32.mrb[19].mxu0  ;;  %v1166_v23 = vpop.f32.mrb[19].mxu1 }
 0x11e   : > { %1371 = vst.msk [vmem:[%s2166_s19 + $0x80] sm:$0xff] %vm1354_vm0, %v908_v16  ;;  %1435 = vst.msk [vmem:[%s2166_s19 + $0x280] sm:$0xff] %vm1354_vm0, %v1164_v17  ;;  %v911_v24 = vadd.f32 %v2161_v8, %v910_v22  ;;  %v1167_v25 = vadd.f32 %v2161_v8, %v1166_v23 }
 0x11f   : > { %1374 = vst.msk [vmem:[%s2166_s19 + $0x98] sm:$0xff] %vm1354_vm0, %v919_v20  ;;  %1438 = vst.msk [vmem:[%s2166_s19 + $0x298] sm:$0xff] %vm1354_vm0, %v1175_v21 }
 0x120   : > { %1372 = vst.msk [vmem:[%s2166_s19 + $0x88] sm:$0xff] %vm1354_vm0, %v911_v24  ;;  %1436 = vst.msk [vmem:[%s2166_s19 + $0x288] sm:$0xff] %vm1354_vm0, %v1167_v25 }
 0x122   : > { %v1781_v26 = vpop.f32.mrb[20].mxu0  ;;  %v1845_v27 = vpop.f32.mrb[20].mxu1 }
 0x123   : > { %v932_v28 = vadd.f32 %v1781_v26, %v2161_v8  ;;  %v1188_v29 = vadd.f32 %v1845_v27, %v2161_v8  ;;  %v923_v30 = vpop.f32.mrb[21].mxu0  ;;  %v1179_v31 = vpop.f32.mrb[21].mxu1 }
 0x124   : > { %v924_v32 = vadd.f32 %v2161_v8, %v923_v30  ;;  %v1180_v33 = vadd.f32 %v2161_v8, %v1179_v31  ;;  %v1782_v34 = vpop.f32.mrb[22].mxu0  ;;  %v1846_v35 = vpop.f32.mrb[22].mxu1 }
 0x125   : > { %1377 = vst.msk [vmem:[%s2166_s19 + $0xb0] sm:$0xff] %vm1354_vm0, %v932_v28  ;;  %1441 = vst.msk [vmem:[%s2166_s19 + $0x2b0] sm:$0xff] %vm1354_vm0, %v1188_v29  ;;  %v935_v36 = vadd.f32 %v1782_v34, %v2161_v8  ;;  %v1191_v37 = vadd.f32 %v1846_v35, %v2161_v8  ;;  %v926_v38 = vpop.f32.mrb[23].mxu0  ;;  %v1182_v39 = vpop.f32.mrb[23].mxu1 }
 0x126   : > { %1375 = vst.msk [vmem:[%s2166_s19 + $0xa0] sm:$0xff] %vm1354_vm0, %v924_v32  ;;  %1439 = vst.msk [vmem:[%s2166_s19 + $0x2a0] sm:$0xff] %vm1354_vm0, %v1180_v33  ;;  %v927_v40 = vadd.f32 %v2161_v8, %v926_v38  ;;  %v1183_v41 = vadd.f32 %v2161_v8, %v1182_v39 }
 0x127   : > { %1378 = vst.msk [vmem:[%s2166_s19 + $0xb8] sm:$0xff] %vm1354_vm0, %v935_v36  ;;  %1442 = vst.msk [vmem:[%s2166_s19 + $0x2b8] sm:$0xff] %vm1354_vm0, %v1191_v37 }
 0x128   : > { %1376 = vst.msk [vmem:[%s2166_s19 + $0xa8] sm:$0xff] %vm1354_vm0, %v927_v40  ;;  %1440 = vst.msk [vmem:[%s2166_s19 + $0x2a8] sm:$0xff] %vm1354_vm0, %v1183_v41 }
 0x12a   : > { %v1785_v42 = vpop.f32.mrb[24].mxu0  ;;  %v1849_v43 = vpop.f32.mrb[24].mxu1 }
 0x12b   : > { %v948_v44 = vadd.f32 %v1785_v42, %v2161_v8  ;;  %v1204_v45 = vadd.f32 %v1849_v43, %v2161_v8  ;;  %v939_v46 = vpop.f32.mrb[25].mxu0  ;;  %v1195_v47 = vpop.f32.mrb[25].mxu1 }
 0x12c   : > { %v940_v48 = vadd.f32 %v2161_v8, %v939_v46  ;;  %v1196_v49 = vadd.f32 %v2161_v8, %v1195_v47  ;;  %v1786_v50 = vpop.f32.mrb[26].mxu0  ;;  %v1850_v51 = vpop.f32.mrb[26].mxu1 }
 0x12d   : > { %1381 = vst.msk [vmem:[%s2166_s19 + $0xd0] sm:$0xff] %vm1354_vm0, %v948_v44  ;;  %1445 = vst.msk [vmem:[%s2166_s19 + $0x2d0] sm:$0xff] %vm1354_vm0, %v1204_v45  ;;  %v951_v52 = vadd.f32 %v1786_v50, %v2161_v8  ;;  %v1207_v53 = vadd.f32 %v1850_v51, %v2161_v8  ;;  %v942_v54 = vpop.f32.mrb[27].mxu0  ;;  %v1198_v55 = vpop.f32.mrb[27].mxu1 }
 0x12e   : > { %1379 = vst.msk [vmem:[%s2166_s19 + $0xc0] sm:$0xff] %vm1354_vm0, %v940_v48  ;;  %1443 = vst.msk [vmem:[%s2166_s19 + $0x2c0] sm:$0xff] %vm1354_vm0, %v1196_v49  ;;  %v943_v56 = vadd.f32 %v2161_v8, %v942_v54  ;;  %v1199_v57 = vadd.f32 %v2161_v8, %v1198_v55 }
 0x12f   : > { %1382 = vst.msk [vmem:[%s2166_s19 + $0xd8] sm:$0xff] %vm1354_vm0, %v951_v52  ;;  %1446 = vst.msk [vmem:[%s2166_s19 + $0x2d8] sm:$0xff] %vm1354_vm0, %v1207_v53 }
 0x130   : > { %1380 = vst.msk [vmem:[%s2166_s19 + $0xc8] sm:$0xff] %vm1354_vm0, %v943_v56  ;;  %1444 = vst.msk [vmem:[%s2166_s19 + $0x2c8] sm:$0xff] %vm1354_vm0, %v1199_v57 }
 0x132   : > { %v1789_v58 = vpop.f32.mrb[28].mxu0  ;;  %v1853_v59 = vpop.f32.mrb[28].mxu1 }
 0x133   : > { %v964_v60 = vadd.f32 %v1789_v58, %v2161_v8  ;;  %v1220_v61 = vadd.f32 %v1853_v59, %v2161_v8  ;;  %v955_v62 = vpop.f32.mrb[29].mxu0  ;;  %v1211_v63 = vpop.f32.mrb[29].mxu1 }
 0x134   : > { %v956_v0 = vadd.f32 %v2161_v8, %v955_v62  ;;  %v1212_v1 = vadd.f32 %v2161_v8, %v1211_v63  ;;  %v1790_v2 = vpop.f32.mrb[30].mxu0  ;;  %v1854_v3 = vpop.f32.mrb[30].mxu1 }
 0x135   : > { %1385 = vst.msk [vmem:[%s2166_s19 + $0xf0] sm:$0xff] %vm1354_vm0, %v964_v60  ;;  %1449 = vst.msk [vmem:[%s2166_s19 + $0x2f0] sm:$0xff] %vm1354_vm0, %v1220_v61  ;;  %v967_v4 = vadd.f32 %v1790_v2, %v2161_v8  ;;  %v1223_v5 = vadd.f32 %v1854_v3, %v2161_v8  ;;  %v958_v6 = vpop.f32.mrb[31].mxu0  ;;  %v1214_v7 = vpop.f32.mrb[31].mxu1 }
 0x136   : > { %1383 = vst.msk [vmem:[%s2166_s19 + $0xe0] sm:$0xff] %vm1354_vm0, %v956_v0  ;;  %1447 = vst.msk [vmem:[%s2166_s19 + $0x2e0] sm:$0xff] %vm1354_vm0, %v1212_v1  ;;  %v959_v9 = vadd.f32 %v2161_v8, %v958_v6  ;;  %v1215_v10 = vadd.f32 %v2161_v8, %v1214_v7 }
 0x137   : > { %1386 = vst.msk [vmem:[%s2166_s19 + $0xf8] sm:$0xff] %vm1354_vm0, %v967_v4  ;;  %1450 = vst.msk [vmem:[%s2166_s19 + $0x2f8] sm:$0xff] %vm1354_vm0, %v1223_v5 }
 0x138   : > { %1384 = vst.msk [vmem:[%s2166_s19 + $0xe8] sm:$0xff] %vm1354_vm0, %v959_v9  ;;  %1448 = vst.msk [vmem:[%s2166_s19 + $0x2e8] sm:$0xff] %vm1354_vm0, %v1215_v10 }
 0x13a   : > { %v1793_v11 = vpop.f32.mrb[32].mxu0  ;;  %v1857_v12 = vpop.f32.mrb[32].mxu1 }
 0x13b   : > { %v980_v13 = vadd.f32 %v1793_v11, %v2161_v8  ;;  %v1236_v14 = vadd.f32 %v1857_v12, %v2161_v8  ;;  %v971_v15 = vpop.f32.mrb[33].mxu0  ;;  %v1227_v16 = vpop.f32.mrb[33].mxu1 }
 0x13c   : > { %v972_v17 = vadd.f32 %v2161_v8, %v971_v15  ;;  %v1228_v18 = vadd.f32 %v2161_v8, %v1227_v16  ;;  %v1794_v19 = vpop.f32.mrb[34].mxu0  ;;  %v1858_v20 = vpop.f32.mrb[34].mxu1 }
 0x13d   : > { %1389 = vst.msk [vmem:[%s2166_s19 + $0x110] sm:$0xff] %vm1354_vm0, %v980_v13  ;;  %1453 = vst.msk [vmem:[%s2166_s19 + $0x310] sm:$0xff] %vm1354_vm0, %v1236_v14  ;;  %v983_v21 = vadd.f32 %v1794_v19, %v2161_v8  ;;  %v1239_v22 = vadd.f32 %v1858_v20, %v2161_v8  ;;  %v974_v23 = vpop.f32.mrb[35].mxu0  ;;  %v1230_v24 = vpop.f32.mrb[35].mxu1 }
 0x13e   : > { %1387 = vst.msk [vmem:[%s2166_s19 + $0x100] sm:$0xff] %vm1354_vm0, %v972_v17  ;;  %1451 = vst.msk [vmem:[%s2166_s19 + $0x300] sm:$0xff] %vm1354_vm0, %v1228_v18  ;;  %v975_v25 = vadd.f32 %v2161_v8, %v974_v23  ;;  %v1231_v26 = vadd.f32 %v2161_v8, %v1230_v24 }
 0x13f   : > { %1390 = vst.msk [vmem:[%s2166_s19 + $0x118] sm:$0xff] %vm1354_vm0, %v983_v21  ;;  %1454 = vst.msk [vmem:[%s2166_s19 + $0x318] sm:$0xff] %vm1354_vm0, %v1239_v22 }
 0x140   : > { %1388 = vst.msk [vmem:[%s2166_s19 + $0x108] sm:$0xff] %vm1354_vm0, %v975_v25  ;;  %1452 = vst.msk [vmem:[%s2166_s19 + $0x308] sm:$0xff] %vm1354_vm0, %v1231_v26 }
 0x142   : > { %v1797_v27 = vpop.f32.mrb[36].mxu0  ;;  %v1861_v28 = vpop.f32.mrb[36].mxu1 }
 0x143   : > { %v996_v29 = vadd.f32 %v1797_v27, %v2161_v8  ;;  %v1252_v30 = vadd.f32 %v1861_v28, %v2161_v8  ;;  %v987_v31 = vpop.f32.mrb[37].mxu0  ;;  %v1243_v32 = vpop.f32.mrb[37].mxu1 }
 0x144   : > { %v988_v33 = vadd.f32 %v2161_v8, %v987_v31  ;;  %v1244_v34 = vadd.f32 %v2161_v8, %v1243_v32  ;;  %v1798_v35 = vpop.f32.mrb[38].mxu0  ;;  %v1862_v36 = vpop.f32.mrb[38].mxu1 }
 0x145   : > { %1393 = vst.msk [vmem:[%s2166_s19 + $0x130] sm:$0xff] %vm1354_vm0, %v996_v29  ;;  %1457 = vst.msk [vmem:[%s2166_s19 + $0x330] sm:$0xff] %vm1354_vm0, %v1252_v30  ;;  %v999_v37 = vadd.f32 %v1798_v35, %v2161_v8  ;;  %v1255_v38 = vadd.f32 %v1862_v36, %v2161_v8  ;;  %v990_v39 = vpop.f32.mrb[39].mxu0  ;;  %v1246_v40 = vpop.f32.mrb[39].mxu1 }
 0x146   : > { %1391 = vst.msk [vmem:[%s2166_s19 + $0x120] sm:$0xff] %vm1354_vm0, %v988_v33  ;;  %1455 = vst.msk [vmem:[%s2166_s19 + $0x320] sm:$0xff] %vm1354_vm0, %v1244_v34  ;;  %v991_v41 = vadd.f32 %v2161_v8, %v990_v39  ;;  %v1247_v42 = vadd.f32 %v2161_v8, %v1246_v40 }
 0x147   : > { %1394 = vst.msk [vmem:[%s2166_s19 + $0x138] sm:$0xff] %vm1354_vm0, %v999_v37  ;;  %1458 = vst.msk [vmem:[%s2166_s19 + $0x338] sm:$0xff] %vm1354_vm0, %v1255_v38 }
 0x148   : > { %1392 = vst.msk [vmem:[%s2166_s19 + $0x128] sm:$0xff] %vm1354_vm0, %v991_v41  ;;  %1456 = vst.msk [vmem:[%s2166_s19 + $0x328] sm:$0xff] %vm1354_vm0, %v1247_v42 }
 0x14a   : > { %v1801_v43 = vpop.f32.mrb[40].mxu0  ;;  %v1865_v44 = vpop.f32.mrb[40].mxu1 }
 0x14b   : > { %v1012_v45 = vadd.f32 %v1801_v43, %v2161_v8  ;;  %v1268_v46 = vadd.f32 %v1865_v44, %v2161_v8  ;;  %v1003_v47 = vpop.f32.mrb[41].mxu0  ;;  %v1259_v48 = vpop.f32.mrb[41].mxu1 }
 0x14c   : > { %v1004_v49 = vadd.f32 %v2161_v8, %v1003_v47  ;;  %v1260_v50 = vadd.f32 %v2161_v8, %v1259_v48  ;;  %v1802_v51 = vpop.f32.mrb[42].mxu0  ;;  %v1866_v52 = vpop.f32.mrb[42].mxu1 }
 0x14d   : > { %1397 = vst.msk [vmem:[%s2166_s19 + $0x150] sm:$0xff] %vm1354_vm0, %v1012_v45  ;;  %1461 = vst.msk [vmem:[%s2166_s19 + $0x350] sm:$0xff] %vm1354_vm0, %v1268_v46  ;;  %v1015_v53 = vadd.f32 %v1802_v51, %v2161_v8  ;;  %v1271_v54 = vadd.f32 %v1866_v52, %v2161_v8  ;;  %v1006_v55 = vpop.f32.mrb[43].mxu0  ;;  %v1262_v56 = vpop.f32.mrb[43].mxu1 }
 0x14e   : > { %1395 = vst.msk [vmem:[%s2166_s19 + $0x140] sm:$0xff] %vm1354_vm0, %v1004_v49  ;;  %1459 = vst.msk [vmem:[%s2166_s19 + $0x340] sm:$0xff] %vm1354_vm0, %v1260_v50  ;;  %v1007_v57 = vadd.f32 %v2161_v8, %v1006_v55  ;;  %v1263_v58 = vadd.f32 %v2161_v8, %v1262_v56 }
 0x14f   : > { %1398 = vst.msk [vmem:[%s2166_s19 + $0x158] sm:$0xff] %vm1354_vm0, %v1015_v53  ;;  %1462 = vst.msk [vmem:[%s2166_s19 + $0x358] sm:$0xff] %vm1354_vm0, %v1271_v54 }
 0x150   : > { %1396 = vst.msk [vmem:[%s2166_s19 + $0x148] sm:$0xff] %vm1354_vm0, %v1007_v57  ;;  %1460 = vst.msk [vmem:[%s2166_s19 + $0x348] sm:$0xff] %vm1354_vm0, %v1263_v58 }
 0x152   : > { %v1805_v59 = vpop.f32.mrb[44].mxu0  ;;  %v1869_v60 = vpop.f32.mrb[44].mxu1 }
 0x153   : > { %v1028_v61 = vadd.f32 %v1805_v59, %v2161_v8  ;;  %v1284_v62 = vadd.f32 %v1869_v60, %v2161_v8  ;;  %v1019_v63 = vpop.f32.mrb[45].mxu0  ;;  %v1275_v0 = vpop.f32.mrb[45].mxu1 }
 0x154   : > { %v1020_v1 = vadd.f32 %v2161_v8, %v1019_v63  ;;  %v1276_v2 = vadd.f32 %v2161_v8, %v1275_v0  ;;  %v1806_v3 = vpop.f32.mrb[46].mxu0  ;;  %v1870_v4 = vpop.f32.mrb[46].mxu1 }
 0x155   : > { %1401 = vst.msk [vmem:[%s2166_s19 + $0x170] sm:$0xff] %vm1354_vm0, %v1028_v61  ;;  %1465 = vst.msk [vmem:[%s2166_s19 + $0x370] sm:$0xff] %vm1354_vm0, %v1284_v62  ;;  %v1031_v5 = vadd.f32 %v1806_v3, %v2161_v8  ;;  %v1287_v6 = vadd.f32 %v1870_v4, %v2161_v8  ;;  %v1022_v7 = vpop.f32.mrb[47].mxu0  ;;  %v1278_v9 = vpop.f32.mrb[47].mxu1 }
 0x156   : > { %1399 = vst.msk [vmem:[%s2166_s19 + $0x160] sm:$0xff] %vm1354_vm0, %v1020_v1  ;;  %1463 = vst.msk [vmem:[%s2166_s19 + $0x360] sm:$0xff] %vm1354_vm0, %v1276_v2  ;;  %v1023_v10 = vadd.f32 %v2161_v8, %v1022_v7  ;;  %v1279_v11 = vadd.f32 %v2161_v8, %v1278_v9 }
 0x157   : > { %1402 = vst.msk [vmem:[%s2166_s19 + $0x178] sm:$0xff] %vm1354_vm0, %v1031_v5  ;;  %1466 = vst.msk [vmem:[%s2166_s19 + $0x378] sm:$0xff] %vm1354_vm0, %v1287_v6 }
 0x158   : > { %1400 = vst.msk [vmem:[%s2166_s19 + $0x168] sm:$0xff] %vm1354_vm0, %v1023_v10  ;;  %1464 = vst.msk [vmem:[%s2166_s19 + $0x368] sm:$0xff] %vm1354_vm0, %v1279_v11 }
 0x15a   : > { %v1809_v12 = vpop.f32.mrb[48].mxu0  ;;  %v1873_v13 = vpop.f32.mrb[48].mxu1 }
 0x15b   : > { %v1044_v14 = vadd.f32 %v1809_v12, %v2161_v8  ;;  %v1300_v15 = vadd.f32 %v1873_v13, %v2161_v8  ;;  %v1035_v16 = vpop.f32.mrb[49].mxu0  ;;  %v1291_v17 = vpop.f32.mrb[49].mxu1 }
 0x15c   : > { %v1036_v18 = vadd.f32 %v2161_v8, %v1035_v16  ;;  %v1292_v19 = vadd.f32 %v2161_v8, %v1291_v17  ;;  %v1810_v20 = vpop.f32.mrb[50].mxu0  ;;  %v1874_v21 = vpop.f32.mrb[50].mxu1 }
 0x15d   : > { %1405 = vst.msk [vmem:[%s2166_s19 + $0x190] sm:$0xff] %vm1354_vm0, %v1044_v14  ;;  %1469 = vst.msk [vmem:[%s2166_s19 + $0x390] sm:$0xff] %vm1354_vm0, %v1300_v15  ;;  %v1047_v22 = vadd.f32 %v1810_v20, %v2161_v8  ;;  %v1303_v23 = vadd.f32 %v1874_v21, %v2161_v8  ;;  %v1038_v24 = vpop.f32.mrb[51].mxu0  ;;  %v1294_v25 = vpop.f32.mrb[51].mxu1 }
 0x15e   : > { %1403 = vst.msk [vmem:[%s2166_s19 + $0x180] sm:$0xff] %vm1354_vm0, %v1036_v18  ;;  %1467 = vst.msk [vmem:[%s2166_s19 + $0x380] sm:$0xff] %vm1354_vm0, %v1292_v19  ;;  %v1039_v26 = vadd.f32 %v2161_v8, %v1038_v24  ;;  %v1295_v27 = vadd.f32 %v2161_v8, %v1294_v25 }
 0x15f   : > { %1406 = vst.msk [vmem:[%s2166_s19 + $0x198] sm:$0xff] %vm1354_vm0, %v1047_v22  ;;  %1470 = vst.msk [vmem:[%s2166_s19 + $0x398] sm:$0xff] %vm1354_vm0, %v1303_v23 }
 0x160   : > { %1404 = vst.msk [vmem:[%s2166_s19 + $0x188] sm:$0xff] %vm1354_vm0, %v1039_v26  ;;  %1468 = vst.msk [vmem:[%s2166_s19 + $0x388] sm:$0xff] %vm1354_vm0, %v1295_v27 }
 0x162   : > { %v1813_v28 = vpop.f32.mrb[52].mxu0  ;;  %v1877_v29 = vpop.f32.mrb[52].mxu1 }
 0x163   : > { %v1060_v30 = vadd.f32 %v1813_v28, %v2161_v8  ;;  %v1316_v31 = vadd.f32 %v1877_v29, %v2161_v8  ;;  %v1051_v32 = vpop.f32.mrb[53].mxu0  ;;  %v1307_v33 = vpop.f32.mrb[53].mxu1 }
 0x164   : > { %v1052_v34 = vadd.f32 %v2161_v8, %v1051_v32  ;;  %v1308_v35 = vadd.f32 %v2161_v8, %v1307_v33  ;;  %v1814_v36 = vpop.f32.mrb[54].mxu0  ;;  %v1878_v37 = vpop.f32.mrb[54].mxu1 }
 0x165   : > { %1409 = vst.msk [vmem:[%s2166_s19 + $0x1b0] sm:$0xff] %vm1354_vm0, %v1060_v30  ;;  %1473 = vst.msk [vmem:[%s2166_s19 + $0x3b0] sm:$0xff] %vm1354_vm0, %v1316_v31  ;;  %v1063_v38 = vadd.f32 %v1814_v36, %v2161_v8  ;;  %v1319_v39 = vadd.f32 %v1878_v37, %v2161_v8  ;;  %v1054_v40 = vpop.f32.mrb[55].mxu0  ;;  %v1310_v41 = vpop.f32.mrb[55].mxu1 }
 0x166   : > { %1407 = vst.msk [vmem:[%s2166_s19 + $0x1a0] sm:$0xff] %vm1354_vm0, %v1052_v34  ;;  %1471 = vst.msk [vmem:[%s2166_s19 + $0x3a0] sm:$0xff] %vm1354_vm0, %v1308_v35  ;;  %v1055_v42 = vadd.f32 %v2161_v8, %v1054_v40  ;;  %v1311_v43 = vadd.f32 %v2161_v8, %v1310_v41 }
 0x167   : > { %1410 = vst.msk [vmem:[%s2166_s19 + $0x1b8] sm:$0xff] %vm1354_vm0, %v1063_v38  ;;  %1474 = vst.msk [vmem:[%s2166_s19 + $0x3b8] sm:$0xff] %vm1354_vm0, %v1319_v39 }
 0x168   : > { %1408 = vst.msk [vmem:[%s2166_s19 + $0x1a8] sm:$0xff] %vm1354_vm0, %v1055_v42  ;;  %1472 = vst.msk [vmem:[%s2166_s19 + $0x3a8] sm:$0xff] %vm1354_vm0, %v1311_v43 }
 0x16a   : > { %v1817_v44 = vpop.f32.mrb[56].mxu0  ;;  %v1881_v45 = vpop.f32.mrb[56].mxu1 }
 0x16b   : > { %v1076_v46 = vadd.f32 %v1817_v44, %v2161_v8  ;;  %v1332_v47 = vadd.f32 %v1881_v45, %v2161_v8  ;;  %v1067_v48 = vpop.f32.mrb[57].mxu0  ;;  %v1323_v49 = vpop.f32.mrb[57].mxu1 }
 0x16c   : > { %v1068_v50 = vadd.f32 %v2161_v8, %v1067_v48  ;;  %v1324_v51 = vadd.f32 %v2161_v8, %v1323_v49  ;;  %v1818_v52 = vpop.f32.mrb[58].mxu0  ;;  %v1882_v53 = vpop.f32.mrb[58].mxu1 }
 0x16d   : > { %1413 = vst.msk [vmem:[%s2166_s19 + $0x1d0] sm:$0xff] %vm1354_vm0, %v1076_v46  ;;  %1477 = vst.msk [vmem:[%s2166_s19 + $0x3d0] sm:$0xff] %vm1354_vm0, %v1332_v47  ;;  %v1079_v54 = vadd.f32 %v1818_v52, %v2161_v8  ;;  %v1335_v55 = vadd.f32 %v1882_v53, %v2161_v8  ;;  %v1070_v56 = vpop.f32.mrb[59].mxu0  ;;  %v1326_v57 = vpop.f32.mrb[59].mxu1 }
 0x16e   : > { %1411 = vst.msk [vmem:[%s2166_s19 + $0x1c0] sm:$0xff] %vm1354_vm0, %v1068_v50  ;;  %1475 = vst.msk [vmem:[%s2166_s19 + $0x3c0] sm:$0xff] %vm1354_vm0, %v1324_v51  ;;  %v1071_v58 = vadd.f32 %v2161_v8, %v1070_v56  ;;  %v1327_v59 = vadd.f32 %v2161_v8, %v1326_v57 }
 0x16f   : > { %1414 = vst.msk [vmem:[%s2166_s19 + $0x1d8] sm:$0xff] %vm1354_vm0, %v1079_v54  ;;  %1478 = vst.msk [vmem:[%s2166_s19 + $0x3d8] sm:$0xff] %vm1354_vm0, %v1335_v55 }
 0x170   : > { %1412 = vst.msk [vmem:[%s2166_s19 + $0x1c8] sm:$0xff] %vm1354_vm0, %v1071_v58  ;;  %1476 = vst.msk [vmem:[%s2166_s19 + $0x3c8] sm:$0xff] %vm1354_vm0, %v1327_v59 }
 0x172   : > { %v1821_v60 = vpop.f32.mrb[60].mxu0  ;;  %v1885_v61 = vpop.f32.mrb[60].mxu1 }
 0x173   : > { %v1092_v62 = vadd.f32 %v1821_v60, %v2161_v8  ;;  %v1348_v63 = vadd.f32 %v1885_v61, %v2161_v8  ;;  %v1083_v0 = vpop.f32.mrb[61].mxu0  ;;  %v1339_v1 = vpop.f32.mrb[61].mxu1 }
 0x174   : > { %v1084_v2 = vadd.f32 %v2161_v8, %v1083_v0  ;;  %v1340_v3 = vadd.f32 %v2161_v8, %v1339_v1  ;;  %v1822_v4 = vpop.f32.mrb[62].mxu0  ;;  %v1886_v5 = vpop.f32.mrb[62].mxu1 }
 0x175   : > { %1417 = vst.msk [vmem:[%s2166_s19 + $0x1f0] sm:$0xff] %vm1354_vm0, %v1092_v62  ;;  %1481 = vst.msk [vmem:[%s2166_s19 + $0x3f0] sm:$0xff] %vm1354_vm0, %v1348_v63  ;;  %v1095_v6 = vadd.f32 %v1822_v4, %v2161_v8  ;;  %v1351_v7 = vadd.f32 %v1886_v5, %v2161_v8  ;;  %v1086_v9 = vpop.f32.mrb[63].mxu0  ;;  %v1342_v10 = vpop.f32.mrb[63].mxu1 }
 0x176   : > { %1415 = vst.msk [vmem:[%s2166_s19 + $0x1e0] sm:$0xff] %vm1354_vm0, %v1084_v2  ;;  %1479 = vst.msk [vmem:[%s2166_s19 + $0x3e0] sm:$0xff] %vm1354_vm0, %v1340_v3  ;;  %v1087_v11 = vadd.f32 %v2161_v8, %v1086_v9  ;;  %v1343_v12 = vadd.f32 %v2161_v8, %v1342_v10 }
 0x177   : > { %1418 = vst.msk [vmem:[%s2166_s19 + $0x1f8] sm:$0xff] %vm1354_vm0, %v1095_v6  ;;  %1482 = vst.msk [vmem:[%s2166_s19 + $0x3f8] sm:$0xff] %vm1354_vm0, %v1351_v7 }
 0x178   : > { %1416 = vst.msk [vmem:[%s2166_s19 + $0x1e8] sm:$0xff] %vm1354_vm0, %v1087_v11  ;;  %1480 = vst.msk [vmem:[%s2166_s19 + $0x3e8] sm:$0xff] %vm1354_vm0, %v1343_v12 }
 0x179 PF: > { %s13_s14 = sadd.s32 1, %s2021_s14   ;;  %s2565_s12 = smov %s2017_s13 }
 0x17a   : > { %p10_p5 = scmp.ge.s32.totalorder %s13_s14, 4   ;;  %s2566_s13 = smov %s2568_s15 }
 0x17c   :  { %12 = sbr.rel (!%p10_p5) target bundleno = 2 (0x2), region = 68 }

// kernel: resnet18_conv5_forward.18
= control target key start
LH: loop header
LB: loop body
LE: loop exit
PB: predicated region body
PF: predicated region fallthrough
CT: control target
= control target key end

     0   :  { %v1181_v0 = vmov 0   ;;  %s1735_s1 = inlined_call_operand.vmem [shape: bf16[256,128], index: 1, kind: input, shape index: {}]   ;;  %s1736_s0 = inlined_call_operand.vmem [shape: bf16[512,256], index: 0, kind: input, shape index: {}]   ;;  %s1737_s2 = inlined_call_operand.vmem [shape: f32[1,128], index: 2, kind: input, shape index: {}]   ;;  %s1738_s3 = inlined_call_operand.vmem [shape: f32[512,128], index: 3, kind: output, shape index: {}]  }
   0x1   :  { %534 = vmatprep.subr.bf16.mxu0 %v1181_v0  ;;  %1036 = vmatprep.subr.bf16.mxu1 %v1181_v0  ;;  %v1069_v1 = vld [vmem:[%s1735_s1] sm:$0xff]   ;;  %v1070_v2 = vld [vmem:[%s1735_s1 + $0x8] sm:$0xff]   ;;  %v1071_v3 = vld [vmem:[%s1735_s1 + $0x10] sm:$0xff]  }
   0x2   :  { %535 = vmatpush1.bf16.msra.mxu0 %v1069_v1  ;;  %1052 = vmatpush1.bf16.msra.mxu1 %v1069_v1  ;;  %v1072_v4 = vld [vmem:[%s1735_s1 + $0x18] sm:$0xff]   ;;  %v1073_v5 = vld [vmem:[%s1735_s1 + $0x20] sm:$0xff]   ;;  %v1074_v7 = vld [vmem:[%s1735_s1 + $0x28] sm:$0xff]  }
   0x3   :  { %536 = vmatprep.subr.bf16.mxu0 %v1181_v0  ;;  %1037 = vmatprep.subr.bf16.mxu1 %v1181_v0  ;;  %v1087_v6 = vld [vmem:[%s1736_s0 + $0x4] ss:$8 sps:$4 sm:$0xff]   ;;  %v1075_v9 = vld [vmem:[%s1735_s1 + $0x30] sm:$0xff]   ;;  %v1076_v10 = vld [vmem:[%s1735_s1 + $0x38] sm:$0xff]  }
   0x4   :  { %v1090_v8 = vld [vmem:[%s1736_s0 + $0x104] ss:$8 sps:$4 sm:$0xff]   ;;  %566 = vmatprep.mubr.bf16.mxu0 %v1087_v6  ;;  %v1079_v13 = vld [vmem:[%s1735_s1 + $0x50] sm:$0xff]   ;;  %v1080_v14 = vld [vmem:[%s1735_s1 + $0x58] sm:$0xff]  }
   0x5   :  { %694 = vmatprep.mubr.bf16.mxu1 %v1090_v8  ;;  %v1077_v11 = vld [vmem:[%s1735_s1 + $0x40] sm:$0xff]   ;;  %v1078_v12 = vld [vmem:[%s1735_s1 + $0x48] sm:$0xff]   ;;  %v1083_v17 = vld [vmem:[%s1735_s1 + $0x70] sm:$0xff]  }
   0x6   :  { %537 = vmatpush1.bf16.msra.mxu0 %v1070_v2  ;;  %1053 = vmatpush1.bf16.msra.mxu1 %v1070_v2  ;;  %v1081_v15 = vld [vmem:[%s1735_s1 + $0x60] sm:$0xff]   ;;  %v1082_v16 = vld [vmem:[%s1735_s1 + $0x68] sm:$0xff]   ;;  %v1084_v18 = vld [vmem:[%s1735_s1 + $0x78] sm:$0xff]  }
   0x7   :  { %538 = vmatprep.subr.bf16.mxu0 %v1181_v0  ;;  %1038 = vmatprep.subr.bf16.mxu1 %v1181_v0  ;;  %v1085_v19 = vld [vmem:[%s1736_s0] ss:$8 sps:$4 sm:$0xff]   ;;  %v1091_v21 = vld [vmem:[%s1736_s0 + $0x14] ss:$8 sps:$4 sm:$0xff]   ;;  %v1095_v23 = vld [vmem:[%s1736_s0 + $0x10] ss:$8 sps:$4 sm:$0xff]  }
   0x8   :  { %v1088_v20 = vld [vmem:[%s1736_s0 + $0x100] ss:$8 sps:$4 sm:$0xff]   ;;  %v1093_v22 = vld [vmem:[%s1736_s0 + $0x114] ss:$8 sps:$4 sm:$0xff]   ;;  %v1096_v24 = vld [vmem:[%s1736_s0 + $0x110] ss:$8 sps:$4 sm:$0xff]  }
   0x9   :  { %v1097_v25 = vld [vmem:[%s1736_s0 + $0x24] ss:$8 sps:$4 sm:$0xff]   ;;  %v1101_v27 = vld [vmem:[%s1736_s0 + $0x20] ss:$8 sps:$4 sm:$0xff]   ;;  %v1103_v29 = vld [vmem:[%s1736_s0 + $0x34] ss:$8 sps:$4 sm:$0xff]  }
   0xa   :  { %539 = vmatpush1.bf16.msra.mxu0 %v1071_v3  ;;  %1054 = vmatpush1.bf16.msra.mxu1 %v1071_v3  ;;  %v1099_v26 = vld [vmem:[%s1736_s0 + $0x124] ss:$8 sps:$4 sm:$0xff]   ;;  %v1102_v28 = vld [vmem:[%s1736_s0 + $0x120] ss:$8 sps:$4 sm:$0xff]   ;;  %v1105_v30 = vld [vmem:[%s1736_s0 + $0x134] ss:$8 sps:$4 sm:$0xff]  }
   0xb   :  { %540 = vmatprep.subr.bf16.mxu0 %v1181_v0  ;;  %1039 = vmatprep.subr.bf16.mxu1 %v1181_v0  ;;  %v1107_v31 = vld [vmem:[%s1736_s0 + $0x30] ss:$8 sps:$4 sm:$0xff]   ;;  %v1109_v33 = vld [vmem:[%s1736_s0 + $0x44] ss:$8 sps:$4 sm:$0xff]   ;;  %v1113_v35 = vld [vmem:[%s1736_s0 + $0x40] ss:$8 sps:$4 sm:$0xff]  }
   0xc   :  { %v1108_v32 = vld [vmem:[%s1736_s0 + $0x130] ss:$8 sps:$4 sm:$0xff]   ;;  %v1111_v34 = vld [vmem:[%s1736_s0 + $0x144] ss:$8 sps:$4 sm:$0xff]   ;;  %v1114_v36 = vld [vmem:[%s1736_s0 + $0x140] ss:$8 sps:$4 sm:$0xff]  }
   0xd   :  { %v1115_v37 = vld [vmem:[%s1736_s0 + $0x54] ss:$8 sps:$4 sm:$0xff]   ;;  %v1119_v39 = vld [vmem:[%s1736_s0 + $0x50] ss:$8 sps:$4 sm:$0xff]   ;;  %v1121_v41 = vld [vmem:[%s1736_s0 + $0x64] ss:$8 sps:$4 sm:$0xff]  }
   0xe   :  { %541 = vmatpush1.bf16.msra.mxu0 %v1072_v4  ;;  %1055 = vmatpush1.bf16.msra.mxu1 %v1072_v4  ;;  %v1117_v38 = vld [vmem:[%s1736_s0 + $0x154] ss:$8 sps:$4 sm:$0xff]   ;;  %v1120_v40 = vld [vmem:[%s1736_s0 + $0x150] ss:$8 sps:$4 sm:$0xff]   ;;  %v1123_v42 = vld [vmem:[%s1736_s0 + $0x164] ss:$8 sps:$4 sm:$0xff]  }
   0xf   :  { %542 = vmatprep.subr.bf16.mxu0 %v1181_v0  ;;  %1040 = vmatprep.subr.bf16.mxu1 %v1181_v0  ;;  %v1125_v43 = vld [vmem:[%s1736_s0 + $0x60] ss:$8 sps:$4 sm:$0xff]   ;;  %v1127_v45 = vld [vmem:[%s1736_s0 + $0x74] ss:$8 sps:$4 sm:$0xff]   ;;  %v1131_v47 = vld [vmem:[%s1736_s0 + $0x70] ss:$8 sps:$4 sm:$0xff]  }
  0x10   :  { %v1126_v44 = vld [vmem:[%s1736_s0 + $0x160] ss:$8 sps:$4 sm:$0xff]   ;;  %v1129_v46 = vld [vmem:[%s1736_s0 + $0x174] ss:$8 sps:$4 sm:$0xff]   ;;  %v1132_v48 = vld [vmem:[%s1736_s0 + $0x170] ss:$8 sps:$4 sm:$0xff]  }
  0x11   :  { %v1133_v49 = vld [vmem:[%s1736_s0 + $0x84] ss:$8 sps:$4 sm:$0xff]   ;;  %v1137_v51 = vld [vmem:[%s1736_s0 + $0x80] ss:$8 sps:$4 sm:$0xff]   ;;  %v1139_v53 = vld [vmem:[%s1736_s0 + $0x94] ss:$8 sps:$4 sm:$0xff]  }
  0x12   :  { %543 = vmatpush1.bf16.msra.mxu0 %v1073_v5  ;;  %1056 = vmatpush1.bf16.msra.mxu1 %v1073_v5  ;;  %v1135_v50 = vld [vmem:[%s1736_s0 + $0x184] ss:$8 sps:$4 sm:$0xff]   ;;  %v1138_v52 = vld [vmem:[%s1736_s0 + $0x180] ss:$8 sps:$4 sm:$0xff]   ;;  %v1141_v54 = vld [vmem:[%s1736_s0 + $0x194] ss:$8 sps:$4 sm:$0xff]  }
  0x13   :  { %544 = vmatprep.subr.bf16.mxu0 %v1181_v0  ;;  %1041 = vmatprep.subr.bf16.mxu1 %v1181_v0  ;;  %v1143_v55 = vld [vmem:[%s1736_s0 + $0x90] ss:$8 sps:$4 sm:$0xff]   ;;  %v1145_v57 = vld [vmem:[%s1736_s0 + $0xa4] ss:$8 sps:$4 sm:$0xff]   ;;  %v1149_v59 = vld [vmem:[%s1736_s0 + $0xa0] ss:$8 sps:$4 sm:$0xff]  }
  0x14   :  { %v1144_v56 = vld [vmem:[%s1736_s0 + $0x190] ss:$8 sps:$4 sm:$0xff]   ;;  %v1147_v58 = vld [vmem:[%s1736_s0 + $0x1a4] ss:$8 sps:$4 sm:$0xff]   ;;  %v1150_v60 = vld [vmem:[%s1736_s0 + $0x1a0] ss:$8 sps:$4 sm:$0xff]  }
  0x15   :  { %v1151_v61 = vld [vmem:[%s1736_s0 + $0xb4] ss:$8 sps:$4 sm:$0xff]   ;;  %v1155_v63 = vld [vmem:[%s1736_s0 + $0xb0] ss:$8 sps:$4 sm:$0xff]   ;;  %v1157_v1 = vld [vmem:[%s1736_s0 + $0xc4] ss:$8 sps:$4 sm:$0xff]  }
  0x16   :  { %545 = vmatpush1.bf16.msra.mxu0 %v1074_v7  ;;  %1057 = vmatpush1.bf16.msra.mxu1 %v1074_v7  ;;  %v1153_v62 = vld [vmem:[%s1736_s0 + $0x1b4] ss:$8 sps:$4 sm:$0xff]   ;;  %v1159_v2 = vld [vmem:[%s1736_s0 + $0x1c4] ss:$8 sps:$4 sm:$0xff]   ;;  %v1161_v3 = vld [vmem:[%s1736_s0 + $0xc0] ss:$8 sps:$4 sm:$0xff]  }
  0x17   :  { %546 = vmatprep.subr.bf16.mxu0 %v1181_v0  ;;  %1042 = vmatprep.subr.bf16.mxu1 %v1181_v0  ;;  %v1162_v4 = vld [vmem:[%s1736_s0 + $0x1c0] ss:$8 sps:$4 sm:$0xff]   ;;  %v1163_v5 = vld [vmem:[%s1736_s0 + $0xd4] ss:$8 sps:$4 sm:$0xff]   ;;  %v1167_v7 = vld [vmem:[%s1736_s0 + $0xd0] ss:$8 sps:$4 sm:$0xff]  }
  0x18   :  { %v1165_v6 = vld [vmem:[%s1736_s0 + $0x1d4] ss:$8 sps:$4 sm:$0xff]   ;;  %v1168_v8 = vld [vmem:[%s1736_s0 + $0x1d0] ss:$8 sps:$4 sm:$0xff]  }
  0x1a   :  { %547 = vmatpush1.bf16.msra.mxu0 %v1075_v9  ;;  %1058 = vmatpush1.bf16.msra.mxu1 %v1075_v9  ;;  %v1169_v9 = vld [vmem:[%s1736_s0 + $0xe4] ss:$8 sps:$4 sm:$0xff]  }
  0x1b   :  { %548 = vmatprep.subr.bf16.mxu0 %v1181_v0  ;;  %1043 = vmatprep.subr.bf16.mxu1 %v1181_v0 }
  0x1e   :  { %549 = vmatpush1.bf16.msra.mxu0 %v1076_v10  ;;  %1059 = vmatpush1.bf16.msra.mxu1 %v1076_v10  ;;  %v1171_v10 = vld [vmem:[%s1736_s0 + $0x1e4] ss:$8 sps:$4 sm:$0xff]  }
  0x1f   :  { %550 = vmatprep.subr.bf16.mxu0 %v1181_v0  ;;  %1044 = vmatprep.subr.bf16.mxu1 %v1181_v0 }
  0x22   :  { %551 = vmatpush1.bf16.msra.mxu0 %v1077_v11  ;;  %1060 = vmatpush1.bf16.msra.mxu1 %v1077_v11  ;;  %v1173_v11 = vld [vmem:[%s1736_s0 + $0xe0] ss:$8 sps:$4 sm:$0xff]  }
  0x23   :  { %552 = vmatprep.subr.bf16.mxu0 %v1181_v0  ;;  %1045 = vmatprep.subr.bf16.mxu1 %v1181_v0 }
  0x26   :  { %553 = vmatpush1.bf16.msra.mxu0 %v1078_v12  ;;  %1061 = vmatpush1.bf16.msra.mxu1 %v1078_v12  ;;  %v1174_v12 = vld [vmem:[%s1736_s0 + $0x1e0] ss:$8 sps:$4 sm:$0xff]  }
  0x27   :  { %554 = vmatprep.subr.bf16.mxu0 %v1181_v0  ;;  %1046 = vmatprep.subr.bf16.mxu1 %v1181_v0 }
  0x2a   :  { %555 = vmatpush1.bf16.msra.mxu0 %v1079_v13  ;;  %1062 = vmatpush1.bf16.msra.mxu1 %v1079_v13  ;;  %v1175_v13 = vld [vmem:[%s1736_s0 + $0xf4] ss:$8 sps:$4 sm:$0xff]  }
  0x2b   :  { %556 = vmatprep.subr.bf16.mxu0 %v1181_v0  ;;  %1047 = vmatprep.subr.bf16.mxu1 %v1181_v0 }
  0x2e   :  { %557 = vmatpush1.bf16.msra.mxu0 %v1080_v14  ;;  %1063 = vmatpush1.bf16.msra.mxu1 %v1080_v14  ;;  %v1177_v14 = vld [vmem:[%s1736_s0 + $0x1f4] ss:$8 sps:$4 sm:$0xff]  }
  0x2f   :  { %558 = vmatprep.subr.bf16.mxu0 %v1181_v0  ;;  %1048 = vmatprep.subr.bf16.mxu1 %v1181_v0 }
  0x32   :  { %559 = vmatpush1.bf16.msra.mxu0 %v1081_v15  ;;  %1064 = vmatpush1.bf16.msra.mxu1 %v1081_v15  ;;  %v1179_v15 = vld [vmem:[%s1736_s0 + $0xf0] ss:$8 sps:$4 sm:$0xff]  }
  0x33   :  { %560 = vmatprep.subr.bf16.mxu0 %v1181_v0  ;;  %1049 = vmatprep.subr.bf16.mxu1 %v1181_v0 }
  0x36   :  { %561 = vmatpush1.bf16.msra.mxu0 %v1082_v16  ;;  %1065 = vmatpush1.bf16.msra.mxu1 %v1082_v16  ;;  %v1180_v16 = vld [vmem:[%s1736_s0 + $0x1f0] ss:$8 sps:$4 sm:$0xff]  }
  0x37   :  { %562 = vmatprep.subr.bf16.mxu0 %v1181_v0  ;;  %1050 = vmatprep.subr.bf16.mxu1 %v1181_v0 }
  0x3a   :  { %563 = vmatpush1.bf16.msra.mxu0 %v1083_v17  ;;  %1066 = vmatpush1.bf16.msra.mxu1 %v1083_v17  ;;  %v1477_v17 = vld [vmem:[%s1737_s2] ss:$0 sm:$0xff] }
  0x3b   :  { %564 = vmatprep.subr.bf16.mxu0 %v1181_v0  ;;  %1051 = vmatprep.subr.bf16.mxu1 %v1181_v0  ;;  %v1156_v0 = vld [vmem:[%s1736_s0 + $0x1b0] ss:$8 sps:$4 sm:$0xff]  }
  0x3e   :  { %565 = vmatpush1.bf16.msra.mxu0 %v1084_v18  ;;  %1067 = vmatpush1.bf16.msra.mxu1 %v1084_v18 }
  0x41   :  { %567 = vmatmul.mubr.bf16.vlgmr.msra.gmra.mrb[0].mxu0 %v1085_v19  ;;  %695 = vmatmul.mubr.bf16.vlgmr.msra.gmra.mrb[0].mxu1 %v1088_v20 }
  0x42   :  { %574 = vmatprep.mubr.bf16.mxu0 %v1091_v21  ;;  %702 = vmatprep.mubr.bf16.mxu1 %v1093_v22 }
  0x49   :  { %575 = vmatmul.mubr.bf16.gmra.mrb[4].mxu0 %v1095_v23  ;;  %703 = vmatmul.mubr.bf16.gmra.mrb[4].mxu1 %v1096_v24 }
  0x4a   :  { %582 = vmatprep.mubr.bf16.mxu0 %v1097_v25  ;;  %710 = vmatprep.mubr.bf16.mxu1 %v1099_v26 }
  0x51   :  { %583 = vmatmul.mubr.bf16.gmra.mrb[8].mxu0 %v1101_v27  ;;  %711 = vmatmul.mubr.bf16.gmra.mrb[8].mxu1 %v1102_v28 }
  0x52   :  { %590 = vmatprep.mubr.bf16.mxu0 %v1103_v29  ;;  %718 = vmatprep.mubr.bf16.mxu1 %v1105_v30 }
  0x59   :  { %591 = vmatmul.mubr.bf16.gmra.mrb[12].mxu0 %v1107_v31  ;;  %719 = vmatmul.mubr.bf16.gmra.mrb[12].mxu1 %v1108_v32 }
  0x5a   :  { %598 = vmatprep.mubr.bf16.mxu0 %v1109_v33  ;;  %726 = vmatprep.mubr.bf16.mxu1 %v1111_v34 }
  0x61   :  { %599 = vmatmul.mubr.bf16.gmra.mrb[16].mxu0 %v1113_v35  ;;  %727 = vmatmul.mubr.bf16.gmra.mrb[16].mxu1 %v1114_v36 }
  0x62   :  { %606 = vmatprep.mubr.bf16.mxu0 %v1115_v37  ;;  %734 = vmatprep.mubr.bf16.mxu1 %v1117_v38 }
  0x69   :  { %607 = vmatmul.mubr.bf16.gmra.mrb[20].mxu0 %v1119_v39  ;;  %735 = vmatmul.mubr.bf16.gmra.mrb[20].mxu1 %v1120_v40 }
  0x6a   :  { %614 = vmatprep.mubr.bf16.mxu0 %v1121_v41  ;;  %742 = vmatprep.mubr.bf16.mxu1 %v1123_v42 }
  0x71   :  { %615 = vmatmul.mubr.bf16.gmra.mrb[24].mxu0 %v1125_v43  ;;  %743 = vmatmul.mubr.bf16.gmra.mrb[24].mxu1 %v1126_v44 }
  0x72   :  { %622 = vmatprep.mubr.bf16.mxu0 %v1127_v45  ;;  %750 = vmatprep.mubr.bf16.mxu1 %v1129_v46 }
  0x79   :  { %623 = vmatmul.mubr.bf16.gmra.mrb[28].mxu0 %v1131_v47  ;;  %751 = vmatmul.mubr.bf16.gmra.mrb[28].mxu1 %v1132_v48 }
  0x7a   :  { %630 = vmatprep.mubr.bf16.mxu0 %v1133_v49  ;;  %758 = vmatprep.mubr.bf16.mxu1 %v1135_v50 }
  0x81   :  { %631 = vmatmul.mubr.bf16.gmra.mrb[32].mxu0 %v1137_v51  ;;  %759 = vmatmul.mubr.bf16.gmra.mrb[32].mxu1 %v1138_v52 }
  0x82   :  { %638 = vmatprep.mubr.bf16.mxu0 %v1139_v53  ;;  %766 = vmatprep.mubr.bf16.mxu1 %v1141_v54 }
  0x89   :  { %639 = vmatmul.mubr.bf16.gmra.mrb[36].mxu0 %v1143_v55  ;;  %767 = vmatmul.mubr.bf16.gmra.mrb[36].mxu1 %v1144_v56 }
  0x8a   :  { %646 = vmatprep.mubr.bf16.mxu0 %v1145_v57  ;;  %774 = vmatprep.mubr.bf16.mxu1 %v1147_v58 }
  0x91   :  { %647 = vmatmul.mubr.bf16.gmra.mrb[40].mxu0 %v1149_v59  ;;  %775 = vmatmul.mubr.bf16.gmra.mrb[40].mxu1 %v1150_v60 }
  0x92   :  { %654 = vmatprep.mubr.bf16.mxu0 %v1151_v61  ;;  %782 = vmatprep.mubr.bf16.mxu1 %v1153_v62 }
  0x99   :  { %655 = vmatmul.mubr.bf16.gmra.mrb[44].mxu0 %v1155_v63  ;;  %783 = vmatmul.mubr.bf16.gmra.mrb[44].mxu1 %v1156_v0 }
  0x9a   :  { %662 = vmatprep.mubr.bf16.mxu0 %v1157_v1  ;;  %790 = vmatprep.mubr.bf16.mxu1 %v1159_v2 }
  0xa1   :  { %663 = vmatmul.mubr.bf16.gmra.mrb[48].mxu0 %v1161_v3  ;;  %791 = vmatmul.mubr.bf16.gmra.mrb[48].mxu1 %v1162_v4 }
  0xa2   :  { %670 = vmatprep.mubr.bf16.mxu0 %v1163_v5  ;;  %798 = vmatprep.mubr.bf16.mxu1 %v1165_v6 }
  0xa9   :  { %671 = vmatmul.mubr.bf16.gmra.mrb[52].mxu0 %v1167_v7  ;;  %799 = vmatmul.mubr.bf16.gmra.mrb[52].mxu1 %v1168_v8 }
  0xaa   :  { %678 = vmatprep.mubr.bf16.mxu0 %v1169_v9  ;;  %806 = vmatprep.mubr.bf16.mxu1 %v1171_v10 }
  0xb1   :  { %679 = vmatmul.mubr.bf16.gmra.mrb[56].mxu0 %v1173_v11  ;;  %807 = vmatmul.mubr.bf16.gmra.mrb[56].mxu1 %v1174_v12 }
  0xb2   :  { %686 = vmatprep.mubr.bf16.mxu0 %v1175_v13  ;;  %814 = vmatprep.mubr.bf16.mxu1 %v1177_v14 }
  0xb9   :  { %687 = vmatmul.mubr.bf16.gmra.mrb[60].mxu0 %v1179_v15  ;;  %815 = vmatmul.mubr.bf16.gmra.mrb[60].mxu1 %v1180_v16 }
 0x114   :  { %v568_v18 = vpop.f32.mrb[0].mxu0  ;;  %v696_v19 = vpop.f32.mrb[0].mxu1 }
 0x115   :  { %v569_v20 = vadd.f32 %v1477_v17, %v568_v18  ;;  %v697_v21 = vadd.f32 %v1477_v17, %v696_v19  ;;  %v570_v22 = vpop.f32.mrb[1].mxu0  ;;  %v698_v23 = vpop.f32.mrb[1].mxu1 }
 0x116   :  { %v571_v24 = vpop.f32.mrb[2].mxu0  ;;  %v699_v25 = vpop.f32.mrb[2].mxu1 }
 0x117   :  { %v823_v26 = vmax.f32 %v569_v20, 0.0  ;;  %v855_v27 = vmax.f32 %v697_v21, 0.0  ;;  %v572_v28 = vadd.f32 %v1477_v17, %v571_v24  ;;  %v700_v29 = vadd.f32 %v1477_v17, %v699_v25  ;;  %v573_v30 = vpop.f32.mrb[3].mxu0  ;;  %v701_v31 = vpop.f32.mrb[3].mxu1 }
 0x119   :  { %887 = vst [vmem:[%s1738_s3] sm:$0xff] %v823_v26  ;;  %919 = vst [vmem:[%s1738_s3 + $0x100] sm:$0xff] %v855_v27  ;;  %v824_v32 = vmax.f32 %v572_v28, 0.0  ;;  %v856_v33 = vmax.f32 %v700_v29, 0.0 }
 0x11b   :  { %888 = vst [vmem:[%s1738_s3 + $0x8] sm:$0xff] %v824_v32  ;;  %920 = vst [vmem:[%s1738_s3 + $0x108] sm:$0xff] %v856_v33 }
 0x11c   :  { %v576_v34 = vpop.f32.mrb[4].mxu0  ;;  %v704_v35 = vpop.f32.mrb[4].mxu1 }
 0x11d   :  { %v577_v36 = vadd.f32 %v1477_v17, %v576_v34  ;;  %v705_v37 = vadd.f32 %v1477_v17, %v704_v35  ;;  %v578_v38 = vpop.f32.mrb[5].mxu0  ;;  %v706_v39 = vpop.f32.mrb[5].mxu1 }
 0x11e   :  { %v579_v40 = vpop.f32.mrb[6].mxu0  ;;  %v707_v41 = vpop.f32.mrb[6].mxu1 }
 0x11f   :  { %v825_v42 = vmax.f32 %v577_v36, 0.0  ;;  %v857_v43 = vmax.f32 %v705_v37, 0.0  ;;  %v580_v44 = vadd.f32 %v1477_v17, %v579_v40  ;;  %v708_v45 = vadd.f32 %v1477_v17, %v707_v41  ;;  %v581_v46 = vpop.f32.mrb[7].mxu0  ;;  %v709_v47 = vpop.f32.mrb[7].mxu1 }
 0x121   :  { %889 = vst [vmem:[%s1738_s3 + $0x10] sm:$0xff] %v825_v42  ;;  %921 = vst [vmem:[%s1738_s3 + $0x110] sm:$0xff] %v857_v43  ;;  %v826_v48 = vmax.f32 %v580_v44, 0.0  ;;  %v858_v49 = vmax.f32 %v708_v45, 0.0 }
 0x123   :  { %890 = vst [vmem:[%s1738_s3 + $0x18] sm:$0xff] %v826_v48  ;;  %922 = vst [vmem:[%s1738_s3 + $0x118] sm:$0xff] %v858_v49 }
 0x124   :  { %v584_v50 = vpop.f32.mrb[8].mxu0  ;;  %v712_v51 = vpop.f32.mrb[8].mxu1 }
 0x125   :  { %v585_v52 = vadd.f32 %v1477_v17, %v584_v50  ;;  %v713_v53 = vadd.f32 %v1477_v17, %v712_v51  ;;  %v586_v54 = vpop.f32.mrb[9].mxu0  ;;  %v714_v55 = vpop.f32.mrb[9].mxu1 }
 0x126   :  { %v587_v56 = vpop.f32.mrb[10].mxu0  ;;  %v715_v57 = vpop.f32.mrb[10].mxu1 }
 0x127   :  { %v827_v58 = vmax.f32 %v585_v52, 0.0  ;;  %v859_v59 = vmax.f32 %v713_v53, 0.0  ;;  %v588_v60 = vadd.f32 %v1477_v17, %v587_v56  ;;  %v716_v61 = vadd.f32 %v1477_v17, %v715_v57  ;;  %v589_v62 = vpop.f32.mrb[11].mxu0  ;;  %v717_v63 = vpop.f32.mrb[11].mxu1 }
 0x129   :  { %891 = vst [vmem:[%s1738_s3 + $0x20] sm:$0xff] %v827_v58  ;;  %923 = vst [vmem:[%s1738_s3 + $0x120] sm:$0xff] %v859_v59  ;;  %v828_v0 = vmax.f32 %v588_v60, 0.0  ;;  %v860_v1 = vmax.f32 %v716_v61, 0.0 }
 0x12b   :  { %892 = vst [vmem:[%s1738_s3 + $0x28] sm:$0xff] %v828_v0  ;;  %924 = vst [vmem:[%s1738_s3 + $0x128] sm:$0xff] %v860_v1 }
 0x12c   :  { %v592_v2 = vpop.f32.mrb[12].mxu0  ;;  %v720_v3 = vpop.f32.mrb[12].mxu1 }
 0x12d   :  { %v593_v4 = vadd.f32 %v1477_v17, %v592_v2  ;;  %v721_v5 = vadd.f32 %v1477_v17, %v720_v3  ;;  %v594_v6 = vpop.f32.mrb[13].mxu0  ;;  %v722_v7 = vpop.f32.mrb[13].mxu1 }
 0x12e   :  { %v595_v8 = vpop.f32.mrb[14].mxu0  ;;  %v723_v9 = vpop.f32.mrb[14].mxu1 }
 0x12f   :  { %v829_v10 = vmax.f32 %v593_v4, 0.0  ;;  %v861_v11 = vmax.f32 %v721_v5, 0.0  ;;  %v596_v12 = vadd.f32 %v1477_v17, %v595_v8  ;;  %v724_v13 = vadd.f32 %v1477_v17, %v723_v9  ;;  %v597_v14 = vpop.f32.mrb[15].mxu0  ;;  %v725_v15 = vpop.f32.mrb[15].mxu1 }
 0x131   :  { %893 = vst [vmem:[%s1738_s3 + $0x30] sm:$0xff] %v829_v10  ;;  %925 = vst [vmem:[%s1738_s3 + $0x130] sm:$0xff] %v861_v11  ;;  %v830_v16 = vmax.f32 %v596_v12, 0.0  ;;  %v862_v18 = vmax.f32 %v724_v13, 0.0 }
 0x133   :  { %894 = vst [vmem:[%s1738_s3 + $0x38] sm:$0xff] %v830_v16  ;;  %926 = vst [vmem:[%s1738_s3 + $0x138] sm:$0xff] %v862_v18 }
 0x134   :  { %v600_v19 = vpop.f32.mrb[16].mxu0  ;;  %v728_v20 = vpop.f32.mrb[16].mxu1 }
 0x135   :  { %v601_v21 = vadd.f32 %v1477_v17, %v600_v19  ;;  %v729_v22 = vadd.f32 %v1477_v17, %v728_v20  ;;  %v602_v23 = vpop.f32.mrb[17].mxu0  ;;  %v730_v24 = vpop.f32.mrb[17].mxu1 }
 0x136   :  { %v603_v25 = vpop.f32.mrb[18].mxu0  ;;  %v731_v26 = vpop.f32.mrb[18].mxu1 }
 0x137   :  { %v831_v27 = vmax.f32 %v601_v21, 0.0  ;;  %v863_v28 = vmax.f32 %v729_v22, 0.0  ;;  %v604_v29 = vadd.f32 %v1477_v17, %v603_v25  ;;  %v732_v30 = vadd.f32 %v1477_v17, %v731_v26  ;;  %v605_v31 = vpop.f32.mrb[19].mxu0  ;;  %v733_v32 = vpop.f32.mrb[19].mxu1 }
 0x139   :  { %895 = vst [vmem:[%s1738_s3 + $0x40] sm:$0xff] %v831_v27  ;;  %927 = vst [vmem:[%s1738_s3 + $0x140] sm:$0xff] %v863_v28  ;;  %v832_v33 = vmax.f32 %v604_v29, 0.0  ;;  %v864_v34 = vmax.f32 %v732_v30, 0.0 }
 0x13b   :  { %896 = vst [vmem:[%s1738_s3 + $0x48] sm:$0xff] %v832_v33  ;;  %928 = vst [vmem:[%s1738_s3 + $0x148] sm:$0xff] %v864_v34 }
 0x13c   :  { %v608_v35 = vpop.f32.mrb[20].mxu0  ;;  %v736_v36 = vpop.f32.mrb[20].mxu1 }
 0x13d   :  { %v609_v37 = vadd.f32 %v1477_v17, %v608_v35  ;;  %v737_v38 = vadd.f32 %v1477_v17, %v736_v36  ;;  %v610_v39 = vpop.f32.mrb[21].mxu0  ;;  %v738_v40 = vpop.f32.mrb[21].mxu1 }
 0x13e   :  { %v611_v41 = vpop.f32.mrb[22].mxu0  ;;  %v739_v42 = vpop.f32.mrb[22].mxu1 }
 0x13f   :  { %v833_v43 = vmax.f32 %v609_v37, 0.0  ;;  %v865_v44 = vmax.f32 %v737_v38, 0.0  ;;  %v612_v45 = vadd.f32 %v1477_v17, %v611_v41  ;;  %v740_v46 = vadd.f32 %v1477_v17, %v739_v42  ;;  %v613_v47 = vpop.f32.mrb[23].mxu0  ;;  %v741_v48 = vpop.f32.mrb[23].mxu1 }
 0x141   :  { %897 = vst [vmem:[%s1738_s3 + $0x50] sm:$0xff] %v833_v43  ;;  %929 = vst [vmem:[%s1738_s3 + $0x150] sm:$0xff] %v865_v44  ;;  %v834_v49 = vmax.f32 %v612_v45, 0.0  ;;  %v866_v50 = vmax.f32 %v740_v46, 0.0 }
 0x143   :  { %898 = vst [vmem:[%s1738_s3 + $0x58] sm:$0xff] %v834_v49  ;;  %930 = vst [vmem:[%s1738_s3 + $0x158] sm:$0xff] %v866_v50 }
 0x144   :  { %v616_v51 = vpop.f32.mrb[24].mxu0  ;;  %v744_v52 = vpop.f32.mrb[24].mxu1 }
 0x145   :  { %v617_v53 = vadd.f32 %v1477_v17, %v616_v51  ;;  %v745_v54 = vadd.f32 %v1477_v17, %v744_v52  ;;  %v618_v55 = vpop.f32.mrb[25].mxu0  ;;  %v746_v56 = vpop.f32.mrb[25].mxu1 }
 0x146   :  { %v619_v57 = vpop.f32.mrb[26].mxu0  ;;  %v747_v58 = vpop.f32.mrb[26].mxu1 }
 0x147   :  { %v835_v59 = vmax.f32 %v617_v53, 0.0  ;;  %v867_v60 = vmax.f32 %v745_v54, 0.0  ;;  %v620_v61 = vadd.f32 %v1477_v17, %v619_v57  ;;  %v748_v62 = vadd.f32 %v1477_v17, %v747_v58  ;;  %v621_v63 = vpop.f32.mrb[27].mxu0  ;;  %v749_v0 = vpop.f32.mrb[27].mxu1 }
 0x149   :  { %899 = vst [vmem:[%s1738_s3 + $0x60] sm:$0xff] %v835_v59  ;;  %931 = vst [vmem:[%s1738_s3 + $0x160] sm:$0xff] %v867_v60  ;;  %v836_v1 = vmax.f32 %v620_v61, 0.0  ;;  %v868_v2 = vmax.f32 %v748_v62, 0.0 }
 0x14b   :  { %900 = vst [vmem:[%s1738_s3 + $0x68] sm:$0xff] %v836_v1  ;;  %932 = vst [vmem:[%s1738_s3 + $0x168] sm:$0xff] %v868_v2 }
 0x14c   :  { %v624_v3 = vpop.f32.mrb[28].mxu0  ;;  %v752_v4 = vpop.f32.mrb[28].mxu1 }
 0x14d   :  { %v625_v5 = vadd.f32 %v1477_v17, %v624_v3  ;;  %v753_v6 = vadd.f32 %v1477_v17, %v752_v4  ;;  %v626_v7 = vpop.f32.mrb[29].mxu0  ;;  %v754_v8 = vpop.f32.mrb[29].mxu1 }
 0x14e   :  { %v627_v9 = vpop.f32.mrb[30].mxu0  ;;  %v755_v10 = vpop.f32.mrb[30].mxu1 }
 0x14f   :  { %v837_v11 = vmax.f32 %v625_v5, 0.0  ;;  %v869_v12 = vmax.f32 %v753_v6, 0.0  ;;  %v628_v13 = vadd.f32 %v1477_v17, %v627_v9  ;;  %v756_v14 = vadd.f32 %v1477_v17, %v755_v10  ;;  %v629_v15 = vpop.f32.mrb[31].mxu0  ;;  %v757_v16 = vpop.f32.mrb[31].mxu1 }
 0x151   :  { %901 = vst [vmem:[%s1738_s3 + $0x70] sm:$0xff] %v837_v11  ;;  %933 = vst [vmem:[%s1738_s3 + $0x170] sm:$0xff] %v869_v12  ;;  %v838_v18 = vmax.f32 %v628_v13, 0.0  ;;  %v870_v19 = vmax.f32 %v756_v14, 0.0 }
 0x153   :  { %902 = vst [vmem:[%s1738_s3 + $0x78] sm:$0xff] %v838_v18  ;;  %934 = vst [vmem:[%s1738_s3 + $0x178] sm:$0xff] %v870_v19 }
 0x154   :  { %v632_v20 = vpop.f32.mrb[32].mxu0  ;;  %v760_v21 = vpop.f32.mrb[32].mxu1 }
 0x155   :  { %v633_v22 = vadd.f32 %v1477_v17, %v632_v20  ;;  %v761_v23 = vadd.f32 %v1477_v17, %v760_v21  ;;  %v634_v24 = vpop.f32.mrb[33].mxu0  ;;  %v762_v25 = vpop.f32.mrb[33].mxu1 }
 0x156   :  { %v635_v26 = vpop.f32.mrb[34].mxu0  ;;  %v763_v27 = vpop.f32.mrb[34].mxu1 }
 0x157   :  { %v839_v28 = vmax.f32 %v633_v22, 0.0  ;;  %v871_v29 = vmax.f32 %v761_v23, 0.0  ;;  %v636_v30 = vadd.f32 %v1477_v17, %v635_v26  ;;  %v764_v31 = vadd.f32 %v1477_v17, %v763_v27  ;;  %v637_v32 = vpop.f32.mrb[35].mxu0  ;;  %v765_v33 = vpop.f32.mrb[35].mxu1 }
 0x159   :  { %903 = vst [vmem:[%s1738_s3 + $0x80] sm:$0xff] %v839_v28  ;;  %935 = vst [vmem:[%s1738_s3 + $0x180] sm:$0xff] %v871_v29  ;;  %v840_v34 = vmax.f32 %v636_v30, 0.0  ;;  %v872_v35 = vmax.f32 %v764_v31, 0.0 }
 0x15b   :  { %904 = vst [vmem:[%s1738_s3 + $0x88] sm:$0xff] %v840_v34  ;;  %936 = vst [vmem:[%s1738_s3 + $0x188] sm:$0xff] %v872_v35 }
 0x15c   :  { %v640_v36 = vpop.f32.mrb[36].mxu0  ;;  %v768_v37 = vpop.f32.mrb[36].mxu1 }
 0x15d   :  { %v641_v38 = vadd.f32 %v1477_v17, %v640_v36  ;;  %v769_v39 = vadd.f32 %v1477_v17, %v768_v37  ;;  %v642_v40 = vpop.f32.mrb[37].mxu0  ;;  %v770_v41 = vpop.f32.mrb[37].mxu1 }
 0x15e   :  { %v643_v42 = vpop.f32.mrb[38].mxu0  ;;  %v771_v43 = vpop.f32.mrb[38].mxu1 }
 0x15f   :  { %v841_v44 = vmax.f32 %v641_v38, 0.0  ;;  %v873_v45 = vmax.f32 %v769_v39, 0.0  ;;  %v644_v46 = vadd.f32 %v1477_v17, %v643_v42  ;;  %v772_v47 = vadd.f32 %v1477_v17, %v771_v43  ;;  %v645_v48 = vpop.f32.mrb[39].mxu0  ;;  %v773_v49 = vpop.f32.mrb[39].mxu1 }
 0x161   :  { %905 = vst [vmem:[%s1738_s3 + $0x90] sm:$0xff] %v841_v44  ;;  %937 = vst [vmem:[%s1738_s3 + $0x190] sm:$0xff] %v873_v45  ;;  %v842_v50 = vmax.f32 %v644_v46, 0.0  ;;  %v874_v51 = vmax.f32 %v772_v47, 0.0 }
 0x163   :  { %906 = vst [vmem:[%s1738_s3 + $0x98] sm:$0xff] %v842_v50  ;;  %938 = vst [vmem:[%s1738_s3 + $0x198] sm:$0xff] %v874_v51 }
 0x164   :  { %v648_v52 = vpop.f32.mrb[40].mxu0  ;;  %v776_v53 = vpop.f32.mrb[40].mxu1 }
 0x165   :  { %v649_v54 = vadd.f32 %v1477_v17, %v648_v52  ;;  %v777_v55 = vadd.f32 %v1477_v17, %v776_v53  ;;  %v650_v56 = vpop.f32.mrb[41].mxu0  ;;  %v778_v57 = vpop.f32.mrb[41].mxu1 }
 0x166   :  { %v651_v58 = vpop.f32.mrb[42].mxu0  ;;  %v779_v59 = vpop.f32.mrb[42].mxu1 }
 0x167   :  { %v843_v60 = vmax.f32 %v649_v54, 0.0  ;;  %v875_v61 = vmax.f32 %v777_v55, 0.0  ;;  %v652_v62 = vadd.f32 %v1477_v17, %v651_v58  ;;  %v780_v63 = vadd.f32 %v1477_v17, %v779_v59  ;;  %v653_v0 = vpop.f32.mrb[43].mxu0  ;;  %v781_v1 = vpop.f32.mrb[43].mxu1 }
 0x169   :  { %907 = vst [vmem:[%s1738_s3 + $0xa0] sm:$0xff] %v843_v60  ;;  %939 = vst [vmem:[%s1738_s3 + $0x1a0] sm:$0xff] %v875_v61  ;;  %v844_v2 = vmax.f32 %v652_v62, 0.0  ;;  %v876_v3 = vmax.f32 %v780_v63, 0.0 }
 0x16b   :  { %908 = vst [vmem:[%s1738_s3 + $0xa8] sm:$0xff] %v844_v2  ;;  %940 = vst [vmem:[%s1738_s3 + $0x1a8] sm:$0xff] %v876_v3 }
 0x16c   :  { %v656_v4 = vpop.f32.mrb[44].mxu0  ;;  %v784_v5 = vpop.f32.mrb[44].mxu1 }
 0x16d   :  { %v657_v6 = vadd.f32 %v1477_v17, %v656_v4  ;;  %v785_v7 = vadd.f32 %v1477_v17, %v784_v5  ;;  %v658_v8 = vpop.f32.mrb[45].mxu0  ;;  %v786_v9 = vpop.f32.mrb[45].mxu1 }
 0x16e   :  { %v659_v10 = vpop.f32.mrb[46].mxu0  ;;  %v787_v11 = vpop.f32.mrb[46].mxu1 }
 0x16f   :  { %v845_v12 = vmax.f32 %v657_v6, 0.0  ;;  %v877_v13 = vmax.f32 %v785_v7, 0.0  ;;  %v660_v14 = vadd.f32 %v1477_v17, %v659_v10  ;;  %v788_v15 = vadd.f32 %v1477_v17, %v787_v11  ;;  %v661_v16 = vpop.f32.mrb[47].mxu0  ;;  %v789_v18 = vpop.f32.mrb[47].mxu1 }
 0x171   :  { %909 = vst [vmem:[%s1738_s3 + $0xb0] sm:$0xff] %v845_v12  ;;  %941 = vst [vmem:[%s1738_s3 + $0x1b0] sm:$0xff] %v877_v13  ;;  %v846_v19 = vmax.f32 %v660_v14, 0.0  ;;  %v878_v20 = vmax.f32 %v788_v15, 0.0 }
 0x173   :  { %910 = vst [vmem:[%s1738_s3 + $0xb8] sm:$0xff] %v846_v19  ;;  %942 = vst [vmem:[%s1738_s3 + $0x1b8] sm:$0xff] %v878_v20 }
 0x174   :  { %v664_v21 = vpop.f32.mrb[48].mxu0  ;;  %v792_v22 = vpop.f32.mrb[48].mxu1 }
 0x175   :  { %v665_v23 = vadd.f32 %v1477_v17, %v664_v21  ;;  %v793_v24 = vadd.f32 %v1477_v17, %v792_v22  ;;  %v666_v25 = vpop.f32.mrb[49].mxu0  ;;  %v794_v26 = vpop.f32.mrb[49].mxu1 }
 0x176   :  { %v667_v27 = vpop.f32.mrb[50].mxu0  ;;  %v795_v28 = vpop.f32.mrb[50].mxu1 }
 0x177   :  { %v847_v29 = vmax.f32 %v665_v23, 0.0  ;;  %v879_v30 = vmax.f32 %v793_v24, 0.0  ;;  %v668_v31 = vadd.f32 %v1477_v17, %v667_v27  ;;  %v796_v32 = vadd.f32 %v1477_v17, %v795_v28  ;;  %v669_v33 = vpop.f32.mrb[51].mxu0  ;;  %v797_v34 = vpop.f32.mrb[51].mxu1 }
 0x179   :  { %911 = vst [vmem:[%s1738_s3 + $0xc0] sm:$0xff] %v847_v29  ;;  %943 = vst [vmem:[%s1738_s3 + $0x1c0] sm:$0xff] %v879_v30  ;;  %v848_v35 = vmax.f32 %v668_v31, 0.0  ;;  %v880_v36 = vmax.f32 %v796_v32, 0.0 }
 0x17b   :  { %912 = vst [vmem:[%s1738_s3 + $0xc8] sm:$0xff] %v848_v35  ;;  %944 = vst [vmem:[%s1738_s3 + $0x1c8] sm:$0xff] %v880_v36 }
 0x17c   :  { %v672_v37 = vpop.f32.mrb[52].mxu0  ;;  %v800_v38 = vpop.f32.mrb[52].mxu1 }
 0x17d   :  { %v673_v39 = vadd.f32 %v1477_v17, %v672_v37  ;;  %v801_v40 = vadd.f32 %v1477_v17, %v800_v38  ;;  %v674_v41 = vpop.f32.mrb[53].mxu0  ;;  %v802_v42 = vpop.f32.mrb[53].mxu1 }
 0x17e   :  { %v675_v43 = vpop.f32.mrb[54].mxu0  ;;  %v803_v44 = vpop.f32.mrb[54].mxu1 }
 0x17f   :  { %v849_v45 = vmax.f32 %v673_v39, 0.0  ;;  %v881_v46 = vmax.f32 %v801_v40, 0.0  ;;  %v676_v47 = vadd.f32 %v1477_v17, %v675_v43  ;;  %v804_v48 = vadd.f32 %v1477_v17, %v803_v44  ;;  %v677_v49 = vpop.f32.mrb[55].mxu0  ;;  %v805_v50 = vpop.f32.mrb[55].mxu1 }
 0x181   :  { %913 = vst [vmem:[%s1738_s3 + $0xd0] sm:$0xff] %v849_v45  ;;  %945 = vst [vmem:[%s1738_s3 + $0x1d0] sm:$0xff] %v881_v46  ;;  %v850_v51 = vmax.f32 %v676_v47, 0.0  ;;  %v882_v52 = vmax.f32 %v804_v48, 0.0 }
 0x183   :  { %914 = vst [vmem:[%s1738_s3 + $0xd8] sm:$0xff] %v850_v51  ;;  %946 = vst [vmem:[%s1738_s3 + $0x1d8] sm:$0xff] %v882_v52 }
 0x184   :  { %v680_v53 = vpop.f32.mrb[56].mxu0  ;;  %v808_v54 = vpop.f32.mrb[56].mxu1 }
 0x185   :  { %v681_v55 = vadd.f32 %v1477_v17, %v680_v53  ;;  %v809_v56 = vadd.f32 %v1477_v17, %v808_v54  ;;  %v682_v57 = vpop.f32.mrb[57].mxu0  ;;  %v810_v58 = vpop.f32.mrb[57].mxu1 }
 0x186   :  { %v683_v59 = vpop.f32.mrb[58].mxu0  ;;  %v811_v60 = vpop.f32.mrb[58].mxu1 }
 0x187   :  { %v851_v61 = vmax.f32 %v681_v55, 0.0  ;;  %v883_v62 = vmax.f32 %v809_v56, 0.0  ;;  %v684_v63 = vadd.f32 %v1477_v17, %v683_v59  ;;  %v812_v0 = vadd.f32 %v1477_v17, %v811_v60  ;;  %v685_v1 = vpop.f32.mrb[59].mxu0  ;;  %v813_v2 = vpop.f32.mrb[59].mxu1 }
 0x189   :  { %915 = vst [vmem:[%s1738_s3 + $0xe0] sm:$0xff] %v851_v61  ;;  %947 = vst [vmem:[%s1738_s3 + $0x1e0] sm:$0xff] %v883_v62  ;;  %v852_v3 = vmax.f32 %v684_v63, 0.0  ;;  %v884_v4 = vmax.f32 %v812_v0, 0.0 }
 0x18b   :  { %916 = vst [vmem:[%s1738_s3 + $0xe8] sm:$0xff] %v852_v3  ;;  %948 = vst [vmem:[%s1738_s3 + $0x1e8] sm:$0xff] %v884_v4 }
 0x18c   :  { %v688_v5 = vpop.f32.mrb[60].mxu0  ;;  %v816_v6 = vpop.f32.mrb[60].mxu1 }
 0x18d   :  { %v689_v7 = vadd.f32 %v1477_v17, %v688_v5  ;;  %v817_v8 = vadd.f32 %v1477_v17, %v816_v6  ;;  %v690_v9 = vpop.f32.mrb[61].mxu0  ;;  %v818_v10 = vpop.f32.mrb[61].mxu1 }
 0x18e   :  { %v691_v11 = vpop.f32.mrb[62].mxu0  ;;  %v819_v12 = vpop.f32.mrb[62].mxu1 }
 0x18f   :  { %v853_v13 = vmax.f32 %v689_v7, 0.0  ;;  %v885_v14 = vmax.f32 %v817_v8, 0.0  ;;  %v692_v15 = vadd.f32 %v1477_v17, %v691_v11  ;;  %v820_v16 = vadd.f32 %v1477_v17, %v819_v12  ;;  %v693_v18 = vpop.f32.mrb[63].mxu0  ;;  %v821_v19 = vpop.f32.mrb[63].mxu1 }
 0x191   :  { %917 = vst [vmem:[%s1738_s3 + $0xf0] sm:$0xff] %v853_v13  ;;  %949 = vst [vmem:[%s1738_s3 + $0x1f0] sm:$0xff] %v885_v14  ;;  %v854_v20 = vmax.f32 %v692_v15, 0.0  ;;  %v886_v21 = vmax.f32 %v820_v16, 0.0 }
 0x193   :  { %918 = vst [vmem:[%s1738_s3 + $0xf8] sm:$0xff] %v854_v20  ;;  %950 = vst [vmem:[%s1738_s3 + $0x1f8] sm:$0xff] %v886_v21 }

// kernel: resnet18_conv5_forward.19
= control target key start
LH: loop header
LB: loop body
LE: loop exit
PB: predicated region body
PF: predicated region fallthrough
CT: control target
= control target key end

     0   :  { %vm254_vm0 = vcmask 1046528   ;;  %s735_s0 = inlined_call_operand.vmem [shape: f32[2,9,2,9,256], index: 0, kind: input, shape index: {}]   ;;  %s736_s1 = inlined_call_operand.vmem [shape: f32[2,8,8,128], index: 1, kind: output, shape index: {}]  }
   0x1   :  { %v8_v0 = vld [vmem:[%s735_s0] sm:$0xff]  ;;  %v9_v1 = vld [vmem:[%s735_s0 + $0x8] sm:$0xff]  ;;  %v10_v2 = vld [vmem:[%s735_s0 + $0x10] sm:$0x1] }
   0x2   :  { %v11_v3 = vld [vmem:[%s735_s0 + $0x20] sm:$0xff]  ;;  %v12_v4 = vld [vmem:[%s735_s0 + $0x28] sm:$0xff]  ;;  %v13_v5 = vld [vmem:[%s735_s0 + $0x30] sm:$0x1] }
   0x3   :  { %v14_v6 = vld [vmem:[%s735_s0 + $0x40] sm:$0xff]  ;;  %v15_v7 = vld [vmem:[%s735_s0 + $0x48] sm:$0xff]  ;;  %v16_v8 = vld [vmem:[%s735_s0 + $0x50] sm:$0x1]  ;;  %v110_v9 = vmax.f32 %v8_v0, %v11_v3  ;;  %v111_v10 = vmax.f32 %v9_v1, %v12_v4  ;;  %v112_v11 = vmax.f32 %v10_v2, %v13_v5 }
   0x4   :  { %v17_v12 = vld [vmem:[%s735_s0 + $0x60] sm:$0xff]  ;;  %v18_v13 = vld [vmem:[%s735_s0 + $0x68] sm:$0xff]  ;;  %v19_v14 = vld [vmem:[%s735_s0 + $0x70] sm:$0x1] }
   0x5   :  { %v158_v15 = vmax.f32 %v110_v9, %v14_v6  ;;  %v159_v16 = vmax.f32 %v111_v10, %v15_v7  ;;  %v160_v17 = vmax.f32 %v112_v11, %v16_v8  ;;  %v20_v18 = vld [vmem:[%s735_s0 + $0x80] sm:$0xff]  ;;  %v21_v19 = vld [vmem:[%s735_s0 + $0x88] sm:$0xff]  ;;  %v22_v20 = vld [vmem:[%s735_s0 + $0x90] sm:$0x1]  ;;  %v113_v21 = vmax.f32 %v14_v6, %v17_v12 }
   0x6   :  { %v114_v22 = vmax.f32 %v15_v7, %v18_v13  ;;  %v115_v23 = vmax.f32 %v16_v8, %v19_v14  ;;  %v23_v24 = vld [vmem:[%s735_s0 + $0xa0] sm:$0xff]  ;;  %v24_v25 = vld [vmem:[%s735_s0 + $0xa8] sm:$0xff]  ;;  %v25_v26 = vld [vmem:[%s735_s0 + $0xb0] sm:$0x1] }
   0x7   :  { %v206_v27 = vmax.f32 %v158_v15, %v159_v16  ;;  %v255_v28 = vrot.slane %v158_v15, 1  ;;  %v256_v29 = vrot.slane %v160_v17, 1  ;;  %v161_v30 = vmax.f32 %v113_v21, %v20_v18  ;;  %v26_v31 = vld [vmem:[%s735_s0 + $0xc0] sm:$0xff]  ;;  %v27_v32 = vld [vmem:[%s735_s0 + $0xc8] sm:$0xff]  ;;  %v28_v33 = vld [vmem:[%s735_s0 + $0xd0] sm:$0x1] }
   0x8   :  { %v162_v34 = vmax.f32 %v114_v22, %v21_v19  ;;  %v163_v35 = vmax.f32 %v115_v23, %v22_v20  ;;  %v116_v36 = vmax.f32 %v20_v18, %v23_v24  ;;  %v117_v37 = vmax.f32 %v21_v19, %v24_v25  ;;  %v29_v38 = vld [vmem:[%s735_s0 + $0xe0] sm:$0xff]  ;;  %v30_v39 = vld [vmem:[%s735_s0 + $0xe8] sm:$0xff]  ;;  %v31_v40 = vld [vmem:[%s735_s0 + $0xf0] sm:$0x1] }
   0x9   :  { %v257_v41 = vsel %vm254_vm0, %v255_v28, %v256_v29  ;;  %v258_v42 = vrot.slane %v161_v30, 1  ;;  %v118_v43 = vmax.f32 %v22_v20, %v25_v26  ;;  %v32_v44 = vld [vmem:[%s735_s0 + $0x100] sm:$0xff]  ;;  %v119_v45 = vmax.f32 %v26_v31, %v29_v38  ;;  %v33_v50 = vld [vmem:[%s735_s0 + $0x108] sm:$0xff]  ;;  %v34_v54 = vld [vmem:[%s735_s0 + $0x110] sm:$0x1] }
   0xa   :  { %v319_v46 = vmax.f32 %v206_v27, %v257_v41  ;;  %v207_v47 = vmax.f32 %v161_v30, %v162_v34  ;;  %v259_v48 = vrot.slane %v163_v35, 1  ;;  %v164_v49 = vmax.f32 %v116_v36, %v26_v31  ;;  %v35_v51 = vld [vmem:[%s735_s0 + $0x120] sm:$0xff]  ;;  %v36_v57 = vld [vmem:[%s735_s0 + $0x128] sm:$0xff]  ;;  %v37_v58 = vld [vmem:[%s735_s0 + $0x130] sm:$0x1] }
   0xb   :  { %v165_v52 = vmax.f32 %v117_v37, %v27_v32  ;;  %v166_v53 = vmax.f32 %v118_v43, %v28_v33  ;;  %v120_v55 = vmax.f32 %v27_v32, %v30_v39  ;;  %v121_v56 = vmax.f32 %v28_v33, %v31_v40  ;;  %v38_v62 = vld [vmem:[%s735_s0 + $0x140] sm:$0xff]  ;;  %v39_v5 = vld [vmem:[%s735_s0 + $0x148] sm:$0xff]  ;;  %v40_v8 = vld [vmem:[%s735_s0 + $0x150] sm:$0x1] }
   0xc   :  { %335 = vst [vmem:[%s736_s1] sm:$0xff] %v319_v46  ;;  %v260_v59 = vsel %vm254_vm0, %v258_v42, %v259_v48  ;;  %v261_v60 = vrot.slane %v164_v49, 1  ;;  %v167_v61 = vmax.f32 %v119_v45, %v32_v44  ;;  %v122_v63 = vmax.f32 %v32_v44, %v35_v51  ;;  %v41_v0 = vld [vmem:[%s735_s0 + $0x160] sm:$0xff]  ;;  %v42_v11 = vld [vmem:[%s735_s0 + $0x168] sm:$0xff]  ;;  %v43_v12 = vld [vmem:[%s735_s0 + $0x170] sm:$0x1] }
   0xd   :  { %v320_v1 = vmax.f32 %v207_v47, %v260_v59  ;;  %v208_v2 = vmax.f32 %v164_v49, %v165_v52  ;;  %v262_v3 = vrot.slane %v166_v53, 1  ;;  %v168_v4 = vmax.f32 %v120_v55, %v33_v50  ;;  %v44_v16 = vld [vmem:[%s735_s0 + $0x180] sm:$0xff]  ;;  %v45_v23 = vld [vmem:[%s735_s0 + $0x188] sm:$0xff]  ;;  %v46_v25 = vld [vmem:[%s735_s0 + $0x190] sm:$0x1] }
   0xe   :  { %v169_v6 = vmax.f32 %v121_v56, %v34_v54  ;;  %v264_v7 = vrot.slane %v167_v61, 1  ;;  %v123_v9 = vmax.f32 %v33_v50, %v36_v57  ;;  %v124_v10 = vmax.f32 %v34_v54, %v37_v58  ;;  %v47_v18 = vld [vmem:[%s735_s0 + $0x1a0] sm:$0xff]  ;;  %v48_v29 = vld [vmem:[%s735_s0 + $0x1a8] sm:$0xff]  ;;  %v49_v30 = vld [vmem:[%s735_s0 + $0x1b0] sm:$0x1] }
   0xf   :  { %336 = vst [vmem:[%s736_s1 + $0x8] sm:$0xff] %v320_v1  ;;  %v263_v13 = vsel %vm254_vm0, %v261_v60, %v262_v3  ;;  %v209_v14 = vmax.f32 %v167_v61, %v168_v4  ;;  %v170_v15 = vmax.f32 %v122_v63, %v38_v62  ;;  %v125_v17 = vmax.f32 %v38_v62, %v41_v0  ;;  %v50_v34 = vld [vmem:[%s735_s0 + $0x1c0] sm:$0xff]  ;;  %v51_v35 = vld [vmem:[%s735_s0 + $0x1c8] sm:$0xff]  ;;  %v52_v42 = vld [vmem:[%s735_s0 + $0x1d0] sm:$0x1] }
  0x10   :  { %v321_v19 = vmax.f32 %v208_v2, %v263_v13  ;;  %v265_v20 = vrot.slane %v169_v6, 1  ;;  %v171_v21 = vmax.f32 %v123_v9, %v39_v5  ;;  %v172_v22 = vmax.f32 %v124_v10, %v40_v8  ;;  %v53_v37 = vld [vmem:[%s735_s0 + $0x1e0] sm:$0xff]  ;;  %v54_v43 = vld [vmem:[%s735_s0 + $0x1e8] sm:$0xff]  ;;  %v55_v44 = vld [vmem:[%s735_s0 + $0x1f0] sm:$0x1] }
  0x11   :  { %v267_v24 = vrot.slane %v170_v15, 1  ;;  %v126_v26 = vmax.f32 %v39_v5, %v42_v11  ;;  %v127_v27 = vmax.f32 %v40_v8, %v43_v12  ;;  %v173_v28 = vmax.f32 %v125_v17, %v44_v16  ;;  %v56_v49 = vld [vmem:[%s735_s0 + $0x200] sm:$0xff]  ;;  %v57_v55 = vld [vmem:[%s735_s0 + $0x208] sm:$0xff]  ;;  %v58_v56 = vld [vmem:[%s735_s0 + $0x210] sm:$0x1] }
  0x12   :  { %337 = vst [vmem:[%s736_s1 + $0x10] sm:$0xff] %v321_v19  ;;  %v266_v31 = vsel %vm254_vm0, %v264_v7, %v265_v20  ;;  %v210_v32 = vmax.f32 %v170_v15, %v171_v21  ;;  %v268_v33 = vrot.slane %v172_v22, 1  ;;  %v128_v36 = vmax.f32 %v44_v16, %v47_v18  ;;  %v59_v50 = vld [vmem:[%s735_s0 + $0x240] sm:$0xff]  ;;  %v60_v58 = vld [vmem:[%s735_s0 + $0x248] sm:$0xff]  ;;  %v61_v63 = vld [vmem:[%s735_s0 + $0x250] sm:$0x1] }
  0x13   :  { %v322_v38 = vmax.f32 %v209_v14, %v266_v31  ;;  %v174_v39 = vmax.f32 %v126_v26, %v45_v23  ;;  %v175_v40 = vmax.f32 %v127_v27, %v46_v25  ;;  %v270_v41 = vrot.slane %v173_v28, 1  ;;  %v62_v51 = vld [vmem:[%s735_s0 + $0x260] sm:$0xff]  ;;  %v63_v0 = vld [vmem:[%s735_s0 + $0x268] sm:$0xff]  ;;  %v64_v1 = vld [vmem:[%s735_s0 + $0x270] sm:$0x1] }
  0x14   :  { %v269_v45 = vsel %vm254_vm0, %v267_v24, %v268_v33  ;;  %v129_v46 = vmax.f32 %v45_v23, %v48_v29  ;;  %v130_v47 = vmax.f32 %v46_v25, %v49_v30  ;;  %v176_v48 = vmax.f32 %v128_v36, %v50_v34  ;;  %v65_v5 = vld [vmem:[%s735_s0 + $0x280] sm:$0xff]  ;;  %v66_v12 = vld [vmem:[%s735_s0 + $0x288] sm:$0xff]  ;;  %v67_v15 = vld [vmem:[%s735_s0 + $0x290] sm:$0x1] }
  0x15   :  { %338 = vst [vmem:[%s736_s1 + $0x18] sm:$0xff] %v322_v38  ;;  %v323_v52 = vmax.f32 %v210_v32, %v269_v45  ;;  %v211_v53 = vmax.f32 %v173_v28, %v174_v39  ;;  %v271_v54 = vrot.slane %v175_v40, 1  ;;  %v131_v57 = vmax.f32 %v50_v34, %v53_v37  ;;  %v68_v7 = vld [vmem:[%s735_s0 + $0x2a0] sm:$0xff]  ;;  %v69_v18 = vld [vmem:[%s735_s0 + $0x2a8] sm:$0xff]  ;;  %v70_v19 = vld [vmem:[%s735_s0 + $0x2b0] sm:$0x1] }
  0x16   :  { %v177_v59 = vmax.f32 %v129_v46, %v51_v35  ;;  %v178_v60 = vmax.f32 %v130_v47, %v52_v42  ;;  %v273_v61 = vrot.slane %v176_v48, 1  ;;  %v132_v62 = vmax.f32 %v51_v35, %v54_v43  ;;  %v71_v23 = vld [vmem:[%s735_s0 + $0x2c0] sm:$0xff]  ;;  %v72_v30 = vld [vmem:[%s735_s0 + $0x2c8] sm:$0xff]  ;;  %v73_v32 = vld [vmem:[%s735_s0 + $0x2d0] sm:$0x1] }
  0x17   :  { %339 = vst [vmem:[%s736_s1 + $0x20] sm:$0xff] %v323_v52  ;;  %v272_v2 = vsel %vm254_vm0, %v270_v41, %v271_v54  ;;  %v133_v3 = vmax.f32 %v52_v42, %v55_v44  ;;  %v179_v4 = vmax.f32 %v131_v57, %v56_v49  ;;  %v134_v6 = vmax.f32 %v59_v50, %v62_v51  ;;  %v74_v25 = vld [vmem:[%s735_s0 + $0x2e0] sm:$0xff]  ;;  %v75_v36 = vld [vmem:[%s735_s0 + $0x2e8] sm:$0xff]  ;;  %v76_v37 = vld [vmem:[%s735_s0 + $0x2f0] sm:$0x1] }
  0x18   :  { %v324_v8 = vmax.f32 %v211_v53, %v272_v2  ;;  %v212_v9 = vmax.f32 %v176_v48, %v177_v59  ;;  %v274_v10 = vrot.slane %v178_v60, 1  ;;  %v180_v11 = vmax.f32 %v132_v62, %v57_v55  ;;  %v77_v41 = vld [vmem:[%s735_s0 + $0x300] sm:$0xff]  ;;  %v78_v48 = vld [vmem:[%s735_s0 + $0x308] sm:$0xff]  ;;  %v79_v49 = vld [vmem:[%s735_s0 + $0x310] sm:$0x1] }
  0x19   :  { %v181_v13 = vmax.f32 %v133_v3, %v58_v56  ;;  %v276_v14 = vrot.slane %v179_v4, 1  ;;  %v135_v16 = vmax.f32 %v60_v58, %v63_v0  ;;  %v136_v17 = vmax.f32 %v61_v63, %v64_v1  ;;  %v80_v43 = vld [vmem:[%s735_s0 + $0x320] sm:$0xff]  ;;  %v81_v50 = vld [vmem:[%s735_s0 + $0x328] sm:$0xff]  ;;  %v82_v55 = vld [vmem:[%s735_s0 + $0x330] sm:$0x1] }
  0x1a   :  { %340 = vst [vmem:[%s736_s1 + $0x28] sm:$0xff] %v324_v8  ;;  %v275_v20 = vsel %vm254_vm0, %v273_v61, %v274_v10  ;;  %v213_v21 = vmax.f32 %v179_v4, %v180_v11  ;;  %v182_v22 = vmax.f32 %v134_v6, %v65_v5  ;;  %v137_v24 = vmax.f32 %v65_v5, %v68_v7  ;;  %v83_v56 = vld [vmem:[%s735_s0 + $0x340] sm:$0xff]  ;;  %v84_v61 = vld [vmem:[%s735_s0 + $0x348] sm:$0xff]  ;;  %v85_v2 = vld [vmem:[%s735_s0 + $0x350] sm:$0x1] }
  0x1b   :  { %v325_v26 = vmax.f32 %v212_v9, %v275_v20  ;;  %v277_v27 = vrot.slane %v181_v13, 1  ;;  %v183_v28 = vmax.f32 %v135_v16, %v66_v12  ;;  %v184_v29 = vmax.f32 %v136_v17, %v67_v15  ;;  %v86_v57 = vld [vmem:[%s735_s0 + $0x360] sm:$0xff]  ;;  %v87_v4 = vld [vmem:[%s735_s0 + $0x368] sm:$0xff]  ;;  %v88_v5 = vld [vmem:[%s735_s0 + $0x370] sm:$0x1] }
  0x1c   :  { %v279_v31 = vrot.slane %v182_v22, 1  ;;  %v138_v33 = vmax.f32 %v66_v12, %v69_v18  ;;  %v139_v34 = vmax.f32 %v67_v15, %v70_v19  ;;  %v185_v35 = vmax.f32 %v137_v24, %v71_v23  ;;  %v89_v9 = vld [vmem:[%s735_s0 + $0x380] sm:$0xff]  ;;  %v90_v16 = vld [vmem:[%s735_s0 + $0x388] sm:$0xff]  ;;  %v91_v19 = vld [vmem:[%s735_s0 + $0x390] sm:$0x1] }
  0x1d   :  { %341 = vst [vmem:[%s736_s1 + $0x30] sm:$0xff] %v325_v26  ;;  %v278_v38 = vsel %vm254_vm0, %v276_v14, %v277_v27  ;;  %v214_v39 = vmax.f32 %v182_v22, %v183_v28  ;;  %v280_v40 = vrot.slane %v184_v29, 1  ;;  %v140_v42 = vmax.f32 %v71_v23, %v74_v25  ;;  %v92_v11 = vld [vmem:[%s735_s0 + $0x3a0] sm:$0xff]  ;;  %v93_v22 = vld [vmem:[%s735_s0 + $0x3a8] sm:$0xff]  ;;  %v94_v23 = vld [vmem:[%s735_s0 + $0x3b0] sm:$0x1] }
  0x1e   :  { %v326_v44 = vmax.f32 %v213_v21, %v278_v38  ;;  %v186_v45 = vmax.f32 %v138_v33, %v72_v30  ;;  %v187_v46 = vmax.f32 %v139_v34, %v73_v32  ;;  %v282_v47 = vrot.slane %v185_v35, 1  ;;  %v95_v27 = vld [vmem:[%s735_s0 + $0x3c0] sm:$0xff]  ;;  %v96_v34 = vld [vmem:[%s735_s0 + $0x3c8] sm:$0xff] }
  0x1f   :  { %v281_v51 = vsel %vm254_vm0, %v279_v31, %v280_v40  ;;  %v141_v52 = vmax.f32 %v72_v30, %v75_v36  ;;  %v142_v53 = vmax.f32 %v73_v32, %v76_v37  ;;  %v188_v54 = vmax.f32 %v140_v42, %v77_v41  ;;  %v98_v29 = vld [vmem:[%s735_s0 + $0x3e0] sm:$0xff]  ;;  %v97_v36 = vld [vmem:[%s735_s0 + $0x3d0] sm:$0x1]  ;;  %v99_v40 = vld [vmem:[%s735_s0 + $0x3e8] sm:$0xff] }
  0x20   :  { %342 = vst [vmem:[%s736_s1 + $0x38] sm:$0xff] %v326_v44  ;;  %v327_v58 = vmax.f32 %v214_v39, %v281_v51  ;;  %v215_v59 = vmax.f32 %v185_v35, %v186_v45  ;;  %v283_v60 = vrot.slane %v187_v46, 1  ;;  %v143_v62 = vmax.f32 %v77_v41, %v80_v43  ;;  %v100_v41 = vld [vmem:[%s735_s0 + $0x3f0] sm:$0x1]  ;;  %v101_v45 = vld [vmem:[%s735_s0 + $0x400] sm:$0xff] }
  0x21   :  { %v189_v63 = vmax.f32 %v141_v52, %v78_v48  ;;  %v190_v0 = vmax.f32 %v142_v53, %v79_v49  ;;  %v285_v1 = vrot.slane %v188_v54, 1  ;;  %v144_v3 = vmax.f32 %v78_v48, %v81_v50  ;;  %v102_v52 = vld [vmem:[%s735_s0 + $0x408] sm:$0xff] }
  0x22   :  { %343 = vst [vmem:[%s736_s1 + $0x40] sm:$0xff] %v327_v58  ;;  %v284_v6 = vsel %vm254_vm0, %v282_v47, %v283_v60  ;;  %v145_v7 = vmax.f32 %v79_v49, %v82_v55  ;;  %v191_v8 = vmax.f32 %v143_v62, %v83_v56  ;;  %v146_v10 = vmax.f32 %v83_v56, %v86_v57  ;;  %v104_v47 = vld [vmem:[%s735_s0 + $0x420] sm:$0xff]  ;;  %v105_v53 = vld [vmem:[%s735_s0 + $0x428] sm:$0xff]  ;;  %v103_v55 = vld [vmem:[%s735_s0 + $0x410] sm:$0x1] }
  0x23   :  { %v328_v12 = vmax.f32 %v215_v59, %v284_v6  ;;  %v216_v13 = vmax.f32 %v188_v54, %v189_v63  ;;  %v286_v14 = vrot.slane %v190_v0, 1  ;;  %v192_v15 = vmax.f32 %v144_v3, %v84_v61  ;;  %v106_v59 = vld [vmem:[%s735_s0 + $0x430] sm:$0x1]  ;;  %v107_v60 = vld [vmem:[%s735_s0 + $0x440] sm:$0xff]  ;;  %v108_v0 = vld [vmem:[%s735_s0 + $0x448] sm:$0xff] }
  0x24   :  { %v193_v17 = vmax.f32 %v145_v7, %v85_v2  ;;  %v288_v18 = vrot.slane %v191_v8, 1  ;;  %v147_v20 = vmax.f32 %v84_v61, %v87_v4  ;;  %v148_v21 = vmax.f32 %v85_v2, %v88_v5  ;;  %v109_v5 = vld [vmem:[%s735_s0 + $0x450] sm:$0x1] }
  0x25   :  { %344 = vst [vmem:[%s736_s1 + $0x48] sm:$0xff] %v328_v12  ;;  %v287_v24 = vsel %vm254_vm0, %v285_v1, %v286_v14  ;;  %v217_v25 = vmax.f32 %v191_v8, %v192_v15  ;;  %v194_v26 = vmax.f32 %v146_v10, %v89_v9  ;;  %v149_v28 = vmax.f32 %v89_v9, %v92_v11 }
  0x26   :  { %v329_v30 = vmax.f32 %v216_v13, %v287_v24  ;;  %v289_v31 = vrot.slane %v193_v17, 1  ;;  %v195_v32 = vmax.f32 %v147_v20, %v90_v16  ;;  %v196_v33 = vmax.f32 %v148_v21, %v91_v19 }
  0x27   :  { %v291_v35 = vrot.slane %v194_v26, 1  ;;  %v150_v37 = vmax.f32 %v90_v16, %v93_v22  ;;  %v151_v38 = vmax.f32 %v91_v19, %v94_v23  ;;  %v197_v39 = vmax.f32 %v149_v28, %v95_v27 }
  0x28   :  { %345 = vst [vmem:[%s736_s1 + $0x50] sm:$0xff] %v329_v30  ;;  %v290_v42 = vsel %vm254_vm0, %v288_v18, %v289_v31  ;;  %v218_v43 = vmax.f32 %v194_v26, %v195_v32  ;;  %v292_v44 = vrot.slane %v196_v33, 1  ;;  %v152_v46 = vmax.f32 %v95_v27, %v98_v29 }
  0x29   :  { %v330_v48 = vmax.f32 %v217_v25, %v290_v42  ;;  %v198_v49 = vmax.f32 %v150_v37, %v96_v34  ;;  %v199_v50 = vmax.f32 %v151_v38, %v97_v36  ;;  %v294_v51 = vrot.slane %v197_v39, 1 }
  0x2a   :  { %v293_v54 = vsel %vm254_vm0, %v291_v35, %v292_v44  ;;  %v153_v56 = vmax.f32 %v96_v34, %v99_v40  ;;  %v154_v57 = vmax.f32 %v97_v36, %v100_v41  ;;  %v200_v58 = vmax.f32 %v152_v46, %v101_v45 }
  0x2b   :  { %346 = vst [vmem:[%s736_s1 + $0x58] sm:$0xff] %v330_v48  ;;  %v331_v61 = vmax.f32 %v218_v43, %v293_v54  ;;  %v219_v62 = vmax.f32 %v197_v39, %v198_v49  ;;  %v295_v63 = vrot.slane %v199_v50, 1  ;;  %v155_v1 = vmax.f32 %v101_v45, %v104_v47 }
  0x2c   :  { %v201_v2 = vmax.f32 %v153_v56, %v102_v52  ;;  %v202_v3 = vmax.f32 %v154_v57, %v103_v55  ;;  %v297_v4 = vrot.slane %v200_v58, 1  ;;  %v156_v6 = vmax.f32 %v102_v52, %v105_v53 }
  0x2d   :  { %347 = vst [vmem:[%s736_s1 + $0x60] sm:$0xff] %v331_v61  ;;  %v296_v7 = vsel %vm254_vm0, %v294_v51, %v295_v63  ;;  %v157_v8 = vmax.f32 %v103_v55, %v106_v59  ;;  %v203_v9 = vmax.f32 %v155_v1, %v107_v60 }
  0x2e   :  { %v332_v10 = vmax.f32 %v219_v62, %v296_v7  ;;  %v220_v11 = vmax.f32 %v200_v58, %v201_v2  ;;  %v298_v12 = vrot.slane %v202_v3, 1  ;;  %v204_v13 = vmax.f32 %v156_v6, %v108_v0 }
  0x2f   :  { %v205_v14 = vmax.f32 %v157_v8, %v109_v5  ;;  %v300_v15 = vrot.slane %v203_v9, 1 }
  0x30   :  { %348 = vst [vmem:[%s736_s1 + $0x68] sm:$0xff] %v332_v10  ;;  %v299_v16 = vsel %vm254_vm0, %v297_v4, %v298_v12  ;;  %v221_v17 = vmax.f32 %v203_v9, %v204_v13 }
  0x31   :  { %v333_v18 = vmax.f32 %v220_v11, %v299_v16  ;;  %v301_v19 = vrot.slane %v205_v14, 1 }
  0x33   :  { %349 = vst [vmem:[%s736_s1 + $0x70] sm:$0xff] %v333_v18  ;;  %v302_v20 = vsel %vm254_vm0, %v300_v15, %v301_v19 }
  0x34   :  { %v334_v21 = vmax.f32 %v221_v17, %v302_v20 }
  0x36   :  { %350 = vst [vmem:[%s736_s1 + $0x78] sm:$0xff] %v334_v21 }

// kernel: resnet18_conv5_forward.25
= control target key start
LH: loop header
LB: loop body
LE: loop exit
PB: predicated region body
PF: predicated region fallthrough
CT: control target
= control target key end

     0   :  { %s275_s1 = inlined_call_operand.vmem [shape: bf16[128,128], index: 1, kind: input, shape index: {}]   ;;  %s276_s0 = inlined_call_operand.vmem [shape: bf16[32,128], index: 0, kind: input, shape index: {}]   ;;  %s277_s2 = inlined_call_operand.vmem [shape: f32[1,128], index: 2, kind: input, shape index: {}]   ;;  %s278_s3 = inlined_call_operand.vmem [shape: f32[32,128], index: 3, kind: output, shape index: {}]  }
   0x1   :  { %v200_v0 = vld [vmem:[%s275_s1] sm:$0xff]   ;;  %v201_v1 = vld [vmem:[%s275_s1 + $0x8] sm:$0xff]   ;;  %v202_v2 = vld [vmem:[%s275_s1 + $0x10] sm:$0xff]  }
   0x2   :  { %180 = vmatprep.subr.bf16.mxu0 %v200_v0  ;;  %v203_v3 = vld [vmem:[%s275_s1 + $0x18] sm:$0xff]   ;;  %v208_v4 = vld [vmem:[%s276_s0] sm:$0xff]   ;;  %v205_v6 = vld [vmem:[%s275_s1 + $0x28] sm:$0xff]  }
   0x3   :  { %181 = vmatpush3.bf16.msra.mxu0 %v200_v0  ;;  %196 = vmatprep.mubr.bf16.mxu0 %v208_v4  ;;  %v204_v5 = vld [vmem:[%s275_s1 + $0x20] sm:$0xff]   ;;  %v206_v7 = vld [vmem:[%s275_s1 + $0x30] sm:$0xff]   ;;  %v207_v8 = vld [vmem:[%s275_s1 + $0x38] sm:$0xff]  }
   0x4   :  { %182 = vmatprep.subr.bf16.mxu0 %v201_v1  ;;  %v209_v9 = vld [vmem:[%s276_s0 + $0x8] sm:$0xff]   ;;  %v159_v10 = vld [vmem:[%s277_s2] ss:$0 sm:$0xff] }
   0x7   :  { %183 = vmatpush3.bf16.msra.mxu0 %v201_v1 }
   0x8   :  { %184 = vmatprep.subr.bf16.mxu0 %v202_v2 }
   0xb   :  { %185 = vmatpush3.bf16.msra.mxu0 %v202_v2 }
   0xc   :  { %186 = vmatprep.subr.bf16.mxu0 %v203_v3 }
   0xf   :  { %187 = vmatpush3.bf16.msra.mxu0 %v203_v3 }
  0x10   :  { %188 = vmatprep.subr.bf16.mxu0 %v204_v5 }
  0x13   :  { %189 = vmatpush3.bf16.msra.mxu0 %v204_v5 }
  0x14   :  { %190 = vmatprep.subr.bf16.mxu0 %v205_v6 }
  0x17   :  { %191 = vmatpush3.bf16.msra.mxu0 %v205_v6 }
  0x18   :  { %192 = vmatprep.subr.bf16.mxu0 %v206_v7 }
  0x1b   :  { %193 = vmatpush3.bf16.msra.mxu0 %v206_v7 }
  0x1c   :  { %194 = vmatprep.subr.bf16.mxu0 %v207_v8 }
  0x1f   :  { %195 = vmatpush3.bf16.msra.mxu0 %v207_v8 }
  0x22   :  { %197 = vmatmul.mubr.bf16.vlgmr.msra.gmra.mrb[0].mxu0 %v209_v9 }
  0xf5   :  { %v198_v11 = vpop.f32.mrb[0].mxu0 }
  0xf6   :  { %v145_v12 = vadd.f32 %v198_v11, %v159_v10  ;;  %v136_v13 = vpop.f32.mrb[1].mxu0 }
  0xf7   :  { %v137_v14 = vadd.f32 %v159_v10, %v136_v13  ;;  %v199_v15 = vpop.f32.mrb[2].mxu0 }
  0xf8   :  { %153 = vst [vmem:[%s278_s3 + $0x10] sm:$0xff] %v145_v12  ;;  %v148_v16 = vadd.f32 %v199_v15, %v159_v10  ;;  %v139_v17 = vpop.f32.mrb[3].mxu0 }
  0xf9   :  { %151 = vst [vmem:[%s278_s3] sm:$0xff] %v137_v14  ;;  %v140_v18 = vadd.f32 %v159_v10, %v139_v17 }
  0xfa   :  { %154 = vst [vmem:[%s278_s3 + $0x18] sm:$0xff] %v148_v16 }
  0xfb   :  { %152 = vst [vmem:[%s278_s3 + $0x8] sm:$0xff] %v140_v18 }

// kernel: resnet18_conv5_forward.20
= control target key start
LH: loop header
LB: loop body
LE: loop exit
PB: predicated region body
PF: predicated region fallthrough
CT: control target
= control target key end

     0   :  { %s2807_s1 = inlined_call_operand.vmem [shape: bf16[1152,128], index: 1, kind: input, shape index: {}]   ;;  %s2808_s0 = inlined_call_operand.vmem [shape: bf16[128,1152], index: 0, kind: input, shape index: {}]   ;;  %s2809_s2 = inlined_call_operand.vmem [shape: f32[1,128], index: 2, kind: input, shape index: {}]   ;;  %s2810_s3 = inlined_call_operand.vmem [shape: f32[128,128], index: 3, kind: output, shape index: {}]  }
   0x1   :  { %v2032_v0 = vld [vmem:[%s2807_s1 + $0x40] sm:$0xff]   ;;  %v2036_v4 = vld [vmem:[%s2807_s1 + $0x48] sm:$0xff]   ;;  %v2040_v8 = vld [vmem:[%s2807_s1 + $0x50] sm:$0xff]  }
   0x2   :  { %v2033_v1 = vld [vmem:[%s2807_s1 + $0xc0] sm:$0xff]   ;;  %1712 = vmatprep.subr.bf16.mxu0 %v2032_v0  ;;  %v2037_v5 = vld [vmem:[%s2807_s1 + $0xc8] sm:$0xff]   ;;  %v2041_v9 = vld [vmem:[%s2807_s1 + $0xd0] sm:$0xff]  }
   0x3   :  { %v2034_v2 = vld [vmem:[%s2807_s1] sm:$0xff]   ;;  %1776 = vmatprep.subr.bf16.mxu1 %v2033_v1  ;;  %v2038_v6 = vld [vmem:[%s2807_s1 + $0x8] sm:$0xff]   ;;  %v2042_v10 = vld [vmem:[%s2807_s1 + $0x10] sm:$0xff]  }
   0x4   :  { %v2035_v3 = vld [vmem:[%s2807_s1 + $0x80] sm:$0xff]   ;;  %1713 = vmatpush3.bf16.msra.mxu0 %v2034_v2  ;;  %v2039_v7 = vld [vmem:[%s2807_s1 + $0x88] sm:$0xff]   ;;  %v2043_v11 = vld [vmem:[%s2807_s1 + $0x90] sm:$0xff]  }
   0x5   :  { %1777 = vmatpush3.bf16.msra.mxu1 %v2035_v3  ;;  %1714 = vmatprep.subr.bf16.mxu0 %v2036_v4  ;;  %v2044_v12 = vld [vmem:[%s2807_s1 + $0x58] sm:$0xff]   ;;  %v2048_v16 = vld [vmem:[%s2807_s1 + $0x60] sm:$0xff]   ;;  %v2052_v20 = vld [vmem:[%s2807_s1 + $0x68] sm:$0xff]  }
   0x6   :  { %1778 = vmatprep.subr.bf16.mxu1 %v2037_v5  ;;  %v2045_v13 = vld [vmem:[%s2807_s1 + $0xd8] sm:$0xff]   ;;  %v2049_v17 = vld [vmem:[%s2807_s1 + $0xe0] sm:$0xff]   ;;  %v2053_v21 = vld [vmem:[%s2807_s1 + $0xe8] sm:$0xff]  }
   0x7   :  { %v2046_v14 = vld [vmem:[%s2807_s1 + $0x18] sm:$0xff]   ;;  %v2050_v18 = vld [vmem:[%s2807_s1 + $0x20] sm:$0xff]   ;;  %v2054_v22 = vld [vmem:[%s2807_s1 + $0x28] sm:$0xff]  }
   0x8   :  { %1715 = vmatpush3.bf16.msra.mxu0 %v2038_v6  ;;  %v2047_v15 = vld [vmem:[%s2807_s1 + $0x98] sm:$0xff]   ;;  %v2051_v19 = vld [vmem:[%s2807_s1 + $0xa0] sm:$0xff]   ;;  %v2055_v23 = vld [vmem:[%s2807_s1 + $0xa8] sm:$0xff]  }
   0x9   :  { %1779 = vmatpush3.bf16.msra.mxu1 %v2039_v7  ;;  %1716 = vmatprep.subr.bf16.mxu0 %v2040_v8  ;;  %v2056_v24 = vld [vmem:[%s2807_s1 + $0x70] sm:$0xff]   ;;  %v2060_v28 = vld [vmem:[%s2807_s1 + $0x78] sm:$0xff]   ;;  %v2064_v32 = vld [vmem:[%s2808_s0] ss:$36 sps:$4 sm:$0xff]  }
   0xa   :  { %1780 = vmatprep.subr.bf16.mxu1 %v2041_v9  ;;  %v2057_v25 = vld [vmem:[%s2807_s1 + $0xf0] sm:$0xff]   ;;  %v2061_v29 = vld [vmem:[%s2807_s1 + $0xf8] sm:$0xff]   ;;  %v2066_v33 = vld [vmem:[%s2808_s0 + $0x4] ss:$36 sps:$4 sm:$0xff]  }
   0xb   :  { %v2058_v26 = vld [vmem:[%s2807_s1 + $0x30] sm:$0xff]   ;;  %v2062_v30 = vld [vmem:[%s2807_s1 + $0x38] sm:$0xff]   ;;  %v2067_v34 = vld [vmem:[%s2808_s0 + $0x8] ss:$36 sps:$4 sm:$0xff]   ;;  %1078 = vmatprep.mubr.bf16.mxu0 %v2066_v33 }
   0xc   :  { %1717 = vmatpush3.bf16.msra.mxu0 %v2042_v10  ;;  %v2059_v27 = vld [vmem:[%s2807_s1 + $0xb0] sm:$0xff]   ;;  %v2063_v31 = vld [vmem:[%s2807_s1 + $0xb8] sm:$0xff]   ;;  %v2070_v36 = vld [vmem:[%s2807_s1 + $0x140] sm:$0xff]  }
   0xd   :  { %1781 = vmatpush3.bf16.msra.mxu1 %v2043_v11  ;;  %1718 = vmatprep.subr.bf16.mxu0 %v2044_v12  ;;  %v2069_v35 = vld [vmem:[%s2808_s0 + $0xc] ss:$36 sps:$4 sm:$0xff]   ;;  %v2071_v37 = vld [vmem:[%s2807_s1 + $0x1c0] sm:$0xff]   ;;  %v2076_v41 = vld [vmem:[%s2808_s0 + $0x54] ss:$36 sps:$4 sm:$0xff]  }
   0xe   :  { %1782 = vmatprep.subr.bf16.mxu1 %v2045_v13  ;;  %1175 = vmatprep.mubr.bf16.mxu1 %v2069_v35  ;;  %v2072_v38 = vld [vmem:[%s2807_s1 + $0x100] sm:$0xff]   ;;  %v2074_v40 = vld [vmem:[%s2808_s0 + $0x4c] ss:$36 sps:$4 sm:$0xff]   ;;  %v2084_v48 = vld [vmem:[%s2808_s0 + $0x94] ss:$36 sps:$4 sm:$0xff]  }
   0xf   :  { %v2073_v39 = vld [vmem:[%s2807_s1 + $0x180] sm:$0xff]   ;;  %v2078_v42 = vld [vmem:[%s2808_s0 + $0x48] ss:$36 sps:$4 sm:$0xff]   ;;  %v2079_v43 = vld [vmem:[%s2808_s0 + $0x50] ss:$36 sps:$4 sm:$0xff]  }
  0x10   :  { %1719 = vmatpush3.bf16.msra.mxu0 %v2046_v14  ;;  %v2080_v44 = vld [vmem:[%s2807_s1 + $0x148] sm:$0xff]   ;;  %v2086_v49 = vld [vmem:[%s2808_s0 + $0x9c] ss:$36 sps:$4 sm:$0xff]   ;;  %v2088_v50 = vld [vmem:[%s2808_s0 + $0x90] ss:$36 sps:$4 sm:$0xff]  }
  0x11   :  { %1783 = vmatpush3.bf16.msra.mxu1 %v2047_v15  ;;  %1720 = vmatprep.subr.bf16.mxu0 %v2048_v16  ;;  %v2081_v45 = vld [vmem:[%s2807_s1 + $0x1c8] sm:$0xff]   ;;  %v2089_v51 = vld [vmem:[%s2808_s0 + $0x98] ss:$36 sps:$4 sm:$0xff]   ;;  %v2090_v52 = vld [vmem:[%s2807_s1 + $0x150] sm:$0xff]  }
  0x12   :  { %1784 = vmatprep.subr.bf16.mxu1 %v2049_v17  ;;  %v2082_v46 = vld [vmem:[%s2807_s1 + $0x108] sm:$0xff]   ;;  %v2091_v53 = vld [vmem:[%s2807_s1 + $0x1d0] sm:$0xff]   ;;  %v2094_v56 = vld [vmem:[%s2808_s0 + $0xdc] ss:$36 sps:$4 sm:$0xff]  }
  0x13   :  { %v2083_v47 = vld [vmem:[%s2807_s1 + $0x188] sm:$0xff]   ;;  %v2092_v54 = vld [vmem:[%s2807_s1 + $0x110] sm:$0xff]   ;;  %v2098_v58 = vld [vmem:[%s2808_s0 + $0xd8] ss:$36 sps:$4 sm:$0xff]  }
  0x14   :  { %1721 = vmatpush3.bf16.msra.mxu0 %v2050_v18  ;;  %v2093_v55 = vld [vmem:[%s2807_s1 + $0x190] sm:$0xff]   ;;  %v2096_v57 = vld [vmem:[%s2808_s0 + $0xe4] ss:$36 sps:$4 sm:$0xff]   ;;  %v2100_v60 = vld [vmem:[%s2807_s1 + $0x158] sm:$0xff]  }
  0x15   :  { %1785 = vmatpush3.bf16.msra.mxu1 %v2051_v19  ;;  %1722 = vmatprep.subr.bf16.mxu0 %v2052_v20  ;;  %v2099_v59 = vld [vmem:[%s2808_s0 + $0xe0] ss:$36 sps:$4 sm:$0xff]   ;;  %v2101_v61 = vld [vmem:[%s2807_s1 + $0x1d8] sm:$0xff]   ;;  %v2106_v1 = vld [vmem:[%s2808_s0 + $0x12c] ss:$36 sps:$4 sm:$0xff]  }
  0x16   :  { %1786 = vmatprep.subr.bf16.mxu1 %v2053_v21  ;;  %v2102_v62 = vld [vmem:[%s2807_s1 + $0x118] sm:$0xff]   ;;  %v2104_v0 = vld [vmem:[%s2808_s0 + $0x124] ss:$36 sps:$4 sm:$0xff]   ;;  %v2114_v8 = vld [vmem:[%s2808_s0 + $0x16c] ss:$36 sps:$4 sm:$0xff]  }
  0x17   :  { %v2103_v63 = vld [vmem:[%s2807_s1 + $0x198] sm:$0xff]   ;;  %v2108_v2 = vld [vmem:[%s2808_s0 + $0x120] ss:$36 sps:$4 sm:$0xff]   ;;  %v2109_v4 = vld [vmem:[%s2808_s0 + $0x128] ss:$36 sps:$4 sm:$0xff]  }
  0x18   :  { %1723 = vmatpush3.bf16.msra.mxu0 %v2054_v22  ;;  %v2110_v3 = vld [vmem:[%s2807_s1 + $0x160] sm:$0xff]   ;;  %v2116_v9 = vld [vmem:[%s2808_s0 + $0x174] ss:$36 sps:$4 sm:$0xff]   ;;  %v2120_v10 = vld [vmem:[%s2807_s1 + $0x168] sm:$0xff]  }
  0x19   :  { %1787 = vmatpush3.bf16.msra.mxu1 %v2055_v23  ;;  %1724 = vmatprep.subr.bf16.mxu0 %v2056_v24  ;;  %v2111_v5 = vld [vmem:[%s2807_s1 + $0x1e0] sm:$0xff]   ;;  %v2121_v11 = vld [vmem:[%s2807_s1 + $0x1e8] sm:$0xff]   ;;  %v2119_v15 = vld [vmem:[%s2808_s0 + $0x170] ss:$36 sps:$4 sm:$0xff]  }
  0x1a   :  { %1788 = vmatprep.subr.bf16.mxu1 %v2057_v25  ;;  %v2112_v6 = vld [vmem:[%s2807_s1 + $0x120] sm:$0xff]   ;;  %v2118_v12 = vld [vmem:[%s2808_s0 + $0x168] ss:$36 sps:$4 sm:$0xff]   ;;  %v2124_v16 = vld [vmem:[%s2808_s0 + $0x1b4] ss:$36 sps:$4 sm:$0xff]  }
  0x1b   :  { %v2113_v7 = vld [vmem:[%s2807_s1 + $0x1a0] sm:$0xff]   ;;  %v2122_v13 = vld [vmem:[%s2807_s1 + $0x128] sm:$0xff]   ;;  %v2130_v18 = vld [vmem:[%s2807_s1 + $0x170] sm:$0xff]  }
  0x1c   :  { %1725 = vmatpush3.bf16.msra.mxu0 %v2058_v26  ;;  %v2123_v14 = vld [vmem:[%s2807_s1 + $0x1a8] sm:$0xff]   ;;  %v2126_v17 = vld [vmem:[%s2808_s0 + $0x1bc] ss:$36 sps:$4 sm:$0xff]   ;;  %v2131_v19 = vld [vmem:[%s2807_s1 + $0x1f0] sm:$0xff]  }
  0x1d   :  { %1789 = vmatpush3.bf16.msra.mxu1 %v2059_v27  ;;  %1726 = vmatprep.subr.bf16.mxu0 %v2060_v28  ;;  %v2132_v20 = vld [vmem:[%s2807_s1 + $0x130] sm:$0xff]   ;;  %v2129_v23 = vld [vmem:[%s2808_s0 + $0x1b8] ss:$36 sps:$4 sm:$0xff]   ;;  %v2136_v25 = vld [vmem:[%s2808_s0 + $0x204] ss:$36 sps:$4 sm:$0xff]  }
  0x1e   :  { %1790 = vmatprep.subr.bf16.mxu1 %v2061_v29  ;;  %v2133_v21 = vld [vmem:[%s2807_s1 + $0x1b0] sm:$0xff]   ;;  %v2134_v24 = vld [vmem:[%s2808_s0 + $0x1fc] ss:$36 sps:$4 sm:$0xff]  }
  0x1f   :  { %v2128_v22 = vld [vmem:[%s2808_s0 + $0x1b0] ss:$36 sps:$4 sm:$0xff]   ;;  %v2140_v26 = vld [vmem:[%s2807_s1 + $0x178] sm:$0xff]  }
  0x20   :  { %1727 = vmatpush3.bf16.msra.mxu0 %v2062_v30  ;;  %v2141_v27 = vld [vmem:[%s2807_s1 + $0x1f8] sm:$0xff]   ;;  %v2144_v35 = vld [vmem:[%s2808_s0 + $0x10] ss:$36 sps:$4 sm:$0xff]  }
  0x21   :  { %1791 = vmatpush3.bf16.msra.mxu1 %v2063_v31  ;;  %1840 = vmatprep.subr.bf16.mxu0 %v2070_v36  ;;  %v2142_v28 = vld [vmem:[%s2807_s1 + $0x138] sm:$0xff]   ;;  %v2139_v31 = vld [vmem:[%s2808_s0 + $0x200] ss:$36 sps:$4 sm:$0xff]  }
  0x22   :  { %1904 = vmatprep.subr.bf16.mxu1 %v2071_v37  ;;  %v2143_v29 = vld [vmem:[%s2807_s1 + $0x1b8] sm:$0xff]  }
  0x23   :  { %1079 = vmatmul.mubr.bf16.vlgmr.msra.gmra.mrb[0].mxu0 %v2064_v32  ;;  %v2138_v30 = vld [vmem:[%s2808_s0 + $0x1f8] ss:$36 sps:$4 sm:$0xff]   ;;  %v2150_v32 = vld [vmem:[%s2807_s1 + $0x200] sm:$0xff]  }
  0x24   :  { %1176 = vmatmul.mubr.bf16.vlgmr.msra.gmra.mrb[0].mxu1 %v2067_v34  ;;  %1841 = vmatpush3.bf16.msra.mxu0 %v2072_v38  ;;  %v2146_v33 = vld [vmem:[%s2808_s0 + $0x14] ss:$36 sps:$4 sm:$0xff]   ;;  %v2149_v34 = vld [vmem:[%s2808_s0 + $0x1c] ss:$36 sps:$4 sm:$0xff]   ;;  %v2153_v38 = vld [vmem:[%s2808_s0 + $0x64] ss:$36 sps:$4 sm:$0xff]  }
  0x25   :  { %1905 = vmatpush3.bf16.msra.mxu1 %v2073_v39  ;;  %1086 = vmatprep.mubr.bf16.mxu0 %v2074_v40  ;;  %v2147_v36 = vld [vmem:[%s2808_s0 + $0x18] ss:$36 sps:$4 sm:$0xff]   ;;  %v2157_v39 = vld [vmem:[%s2807_s1 + $0x208] sm:$0xff]   ;;  %v2164_v40 = vld [vmem:[%s2807_s1 + $0x210] sm:$0xff]  }
  0x26   :  { %1183 = vmatprep.mubr.bf16.mxu1 %v2076_v41  ;;  %1842 = vmatprep.subr.bf16.mxu0 %v2080_v44  ;;  %v2151_v37 = vld [vmem:[%s2808_s0 + $0x5c] ss:$36 sps:$4 sm:$0xff]   ;;  %v2160_v44 = vld [vmem:[%s2808_s0 + $0xac] ss:$36 sps:$4 sm:$0xff]  }
  0x27   :  { %1906 = vmatprep.subr.bf16.mxu1 %v2081_v45  ;;  %v2155_v41 = vld [vmem:[%s2808_s0 + $0x58] ss:$36 sps:$4 sm:$0xff]  }
  0x28   :  { %1843 = vmatpush3.bf16.msra.mxu0 %v2082_v46  ;;  %v2171_v45 = vld [vmem:[%s2807_s1 + $0x218] sm:$0xff]   ;;  %v2178_v46 = vld [vmem:[%s2807_s1 + $0x220] sm:$0xff]  }
  0x29   :  { %1907 = vmatpush3.bf16.msra.mxu1 %v2083_v47  ;;  %1844 = vmatprep.subr.bf16.mxu0 %v2090_v52  ;;  %v2162_v47 = vld [vmem:[%s2808_s0 + $0xa0] ss:$36 sps:$4 sm:$0xff]   ;;  %v2169_v52 = vld [vmem:[%s2808_s0 + $0xe8] ss:$36 sps:$4 sm:$0xff]  }
  0x2a   :  { %1908 = vmatprep.subr.bf16.mxu1 %v2091_v53  ;;  %v2192_v53 = vld [vmem:[%s2807_s1 + $0x230] sm:$0xff]  }
  0x2b   :  { %1087 = vmatmul.mubr.bf16.gmra.mrb[4].mxu0 %v2078_v42  ;;  %v2156_v42 = vld [vmem:[%s2808_s0 + $0x60] ss:$36 sps:$4 sm:$0xff]  }
  0x2c   :  { %1184 = vmatmul.mubr.bf16.gmra.mrb[4].mxu1 %v2079_v43  ;;  %1094 = vmatprep.mubr.bf16.mxu0 %v2084_v48  ;;  %v2158_v43 = vld [vmem:[%s2808_s0 + $0xa4] ss:$36 sps:$4 sm:$0xff]  }
  0x2d   :  { %1191 = vmatprep.mubr.bf16.mxu1 %v2086_v49  ;;  %1845 = vmatpush3.bf16.msra.mxu0 %v2092_v54  ;;  %v2163_v48 = vld [vmem:[%s2808_s0 + $0xa8] ss:$36 sps:$4 sm:$0xff]   ;;  %v2170_v54 = vld [vmem:[%s2808_s0 + $0xf0] ss:$36 sps:$4 sm:$0xff]  }
  0x2e   :  { %1909 = vmatpush3.bf16.msra.mxu1 %v2093_v55  ;;  %1846 = vmatprep.subr.bf16.mxu0 %v2100_v60  ;;  %v2165_v49 = vld [vmem:[%s2808_s0 + $0xec] ss:$36 sps:$4 sm:$0xff]   ;;  %v2172_v55 = vld [vmem:[%s2808_s0 + $0x134] ss:$36 sps:$4 sm:$0xff]   ;;  %v2179_v60 = vld [vmem:[%s2808_s0 + $0x17c] ss:$36 sps:$4 sm:$0xff]  }
  0x2f   :  { %1910 = vmatprep.subr.bf16.mxu1 %v2101_v61  ;;  %v2181_v61 = vld [vmem:[%s2808_s0 + $0x184] ss:$36 sps:$4 sm:$0xff]  }
  0x31   :  { %1847 = vmatpush3.bf16.msra.mxu0 %v2102_v62  ;;  %v2183_v62 = vld [vmem:[%s2808_s0 + $0x178] ss:$36 sps:$4 sm:$0xff]  }
  0x32   :  { %1911 = vmatpush3.bf16.msra.mxu1 %v2103_v63  ;;  %1848 = vmatprep.subr.bf16.mxu0 %v2110_v3  ;;  %v2184_v63 = vld [vmem:[%s2808_s0 + $0x180] ss:$36 sps:$4 sm:$0xff]   ;;  %v2191_v3 = vld [vmem:[%s2808_s0 + $0x1c8] ss:$36 sps:$4 sm:$0xff]  }
  0x33   :  { %1095 = vmatmul.mubr.bf16.gmra.mrb[8].mxu0 %v2088_v50  ;;  %1912 = vmatprep.subr.bf16.mxu1 %v2111_v5  ;;  %v2167_v50 = vld [vmem:[%s2808_s0 + $0xf4] ss:$36 sps:$4 sm:$0xff]  }
  0x34   :  { %1192 = vmatmul.mubr.bf16.gmra.mrb[8].mxu1 %v2089_v51  ;;  %1102 = vmatprep.mubr.bf16.mxu0 %v2094_v56  ;;  %v2185_v51 = vld [vmem:[%s2807_s1 + $0x228] sm:$0xff]   ;;  %v2174_v56 = vld [vmem:[%s2808_s0 + $0x13c] ss:$36 sps:$4 sm:$0xff]   ;;  %v2195_v5 = vld [vmem:[%s2808_s0 + $0x214] ss:$36 sps:$4 sm:$0xff]  }
  0x35   :  { %1199 = vmatprep.mubr.bf16.mxu1 %v2096_v57  ;;  %1849 = vmatpush3.bf16.msra.mxu0 %v2112_v6  ;;  %v2199_v57 = vld [vmem:[%s2807_s1 + $0x238] sm:$0xff]   ;;  %v2197_v6 = vld [vmem:[%s2808_s0 + $0x208] ss:$36 sps:$4 sm:$0xff]  }
  0x36   :  { %1913 = vmatpush3.bf16.msra.mxu1 %v2113_v7  ;;  %1850 = vmatprep.subr.bf16.mxu0 %v2120_v10  ;;  %v2198_v7 = vld [vmem:[%s2808_s0 + $0x210] ss:$36 sps:$4 sm:$0xff]   ;;  %v2202_v10 = vld [vmem:[%s2808_s0 + $0x68] ss:$36 sps:$4 sm:$0xff]  }
  0x37   :  { %1914 = vmatprep.subr.bf16.mxu1 %v2121_v11  ;;  %v2203_v11 = vld [vmem:[%s2808_s0 + $0x188] ss:$36 sps:$4 sm:$0xff]  }
  0x39   :  { %1851 = vmatpush3.bf16.msra.mxu0 %v2122_v13  ;;  %v2205_v13 = vld [vmem:[%s2808_s0 + $0x1d0] ss:$36 sps:$4 sm:$0xff]  }
  0x3a   :  { %1915 = vmatpush3.bf16.msra.mxu1 %v2123_v14  ;;  %1852 = vmatprep.subr.bf16.mxu0 %v2130_v18  ;;  %v2206_v14 = vld [vmem:[%s2808_s0 + $0xf8] ss:$36 sps:$4 sm:$0xff]   ;;  %v2663_v18 = vld [vmem:[%s2809_s2] ss:$0 sm:$0xff] }
  0x3b   :  { %1103 = vmatmul.mubr.bf16.gmra.mrb[12].mxu0 %v2098_v58  ;;  %1916 = vmatprep.subr.bf16.mxu1 %v2131_v19  ;;  %v2176_v58 = vld [vmem:[%s2808_s0 + $0x130] ss:$36 sps:$4 sm:$0xff]  }
  0x3c   :  { %1200 = vmatmul.mubr.bf16.gmra.mrb[12].mxu1 %v2099_v59  ;;  %1110 = vmatprep.mubr.bf16.mxu0 %v2104_v0  ;;  %v2177_v59 = vld [vmem:[%s2808_s0 + $0x138] ss:$36 sps:$4 sm:$0xff]   ;;  %v2186_v0 = vld [vmem:[%s2808_s0 + $0x1c4] ss:$36 sps:$4 sm:$0xff]  }
  0x3d   :  { %1207 = vmatprep.mubr.bf16.mxu1 %v2106_v1  ;;  %1853 = vmatpush3.bf16.msra.mxu0 %v2132_v20  ;;  %v2188_v1 = vld [vmem:[%s2808_s0 + $0x1cc] ss:$36 sps:$4 sm:$0xff]  }
  0x3e   :  { %1917 = vmatpush3.bf16.msra.mxu1 %v2133_v21  ;;  %1854 = vmatprep.subr.bf16.mxu0 %v2140_v26 }
  0x3f   :  { %1918 = vmatprep.subr.bf16.mxu1 %v2141_v27 }
  0x41   :  { %1855 = vmatpush3.bf16.msra.mxu0 %v2142_v28 }
  0x42   :  { %1919 = vmatpush3.bf16.msra.mxu1 %v2143_v29  ;;  %1984 = vmatprep.subr.bf16.mxu0 %v2150_v32 }
  0x43   :  { %1111 = vmatmul.mubr.bf16.gmra.mrb[16].mxu0 %v2108_v2  ;;  %2016 = vmatprep.subr.bf16.mxu1 %v2150_v32  ;;  %v2190_v2 = vld [vmem:[%s2808_s0 + $0x1c0] ss:$36 sps:$4 sm:$0xff]  }
  0x44   :  { %1208 = vmatmul.mubr.bf16.gmra.mrb[16].mxu1 %v2109_v4  ;;  %1118 = vmatprep.mubr.bf16.mxu0 %v2114_v8  ;;  %v2193_v4 = vld [vmem:[%s2808_s0 + $0x20c] ss:$36 sps:$4 sm:$0xff]   ;;  %v2200_v8 = vld [vmem:[%s2808_s0 + $0x20] ss:$36 sps:$4 sm:$0xff]  }
  0x45   :  { %1215 = vmatprep.mubr.bf16.mxu1 %v2116_v9  ;;  %v2201_v9 = vld [vmem:[%s2808_s0 + $0x140] ss:$36 sps:$4 sm:$0xff]  }
  0x4b   :  { %1119 = vmatmul.mubr.bf16.gmra.mrb[20].mxu0 %v2118_v12  ;;  %v2204_v12 = vld [vmem:[%s2808_s0 + $0xb0] ss:$36 sps:$4 sm:$0xff]  }
  0x4c   :  { %1216 = vmatmul.mubr.bf16.gmra.mrb[20].mxu1 %v2119_v15  ;;  %1126 = vmatprep.mubr.bf16.mxu0 %v2124_v16  ;;  %v2207_v15 = vld [vmem:[%s2808_s0 + $0x218] ss:$36 sps:$4 sm:$0xff]  }
  0x4d   :  { %1223 = vmatprep.mubr.bf16.mxu1 %v2126_v17 }
  0x53   :  { %1127 = vmatmul.mubr.bf16.gmra.mrb[24].mxu0 %v2128_v22 }
  0x54   :  { %1224 = vmatmul.mubr.bf16.gmra.mrb[24].mxu1 %v2129_v23  ;;  %1134 = vmatprep.mubr.bf16.mxu0 %v2134_v24 }
  0x55   :  { %1231 = vmatprep.mubr.bf16.mxu1 %v2136_v25 }
  0x5b   :  { %1135 = vmatmul.mubr.bf16.gmra.mrb[28].mxu0 %v2138_v30 }
  0x5c   :  { %1232 = vmatmul.mubr.bf16.gmra.mrb[28].mxu1 %v2139_v31  ;;  %1272 = vmatprep.mubr.bf16.mxu0 %v2146_v33 }
  0x5d   :  { %1369 = vmatprep.mubr.bf16.mxu1 %v2149_v34 }
  0x63   :  { %1273 = vmatmul.mubr.bf16.vlgmr.msra.gmra.mrb[32].mxu0 %v2144_v35 }
  0x64   :  { %1370 = vmatmul.mubr.bf16.vlgmr.msra.gmra.mrb[32].mxu1 %v2147_v36  ;;  %1985 = vmatpush3.bf16.msra.mxu0 %v2150_v32 }
  0x65   :  { %2024 = vmatpush3.bf16.msra.mxu1 %v2150_v32  ;;  %1280 = vmatprep.mubr.bf16.mxu0 %v2151_v37 }
  0x66   :  { %1377 = vmatprep.mubr.bf16.mxu1 %v2153_v38  ;;  %1986 = vmatprep.subr.bf16.mxu0 %v2157_v39 }
  0x67   :  { %2017 = vmatprep.subr.bf16.mxu1 %v2157_v39 }
  0x68   :  { %1987 = vmatpush3.bf16.msra.mxu0 %v2157_v39 }
  0x69   :  { %2025 = vmatpush3.bf16.msra.mxu1 %v2157_v39  ;;  %1988 = vmatprep.subr.bf16.mxu0 %v2164_v40 }
  0x6a   :  { %2018 = vmatprep.subr.bf16.mxu1 %v2164_v40 }
  0x6b   :  { %1281 = vmatmul.mubr.bf16.gmra.mrb[36].mxu0 %v2155_v41 }
  0x6c   :  { %1378 = vmatmul.mubr.bf16.gmra.mrb[36].mxu1 %v2156_v42  ;;  %1288 = vmatprep.mubr.bf16.mxu0 %v2158_v43 }
  0x6d   :  { %1385 = vmatprep.mubr.bf16.mxu1 %v2160_v44  ;;  %1989 = vmatpush3.bf16.msra.mxu0 %v2164_v40 }
  0x6e   :  { %2026 = vmatpush3.bf16.msra.mxu1 %v2164_v40  ;;  %1990 = vmatprep.subr.bf16.mxu0 %v2171_v45 }
  0x6f   :  { %2019 = vmatprep.subr.bf16.mxu1 %v2171_v45 }
  0x71   :  { %1991 = vmatpush3.bf16.msra.mxu0 %v2171_v45 }
  0x72   :  { %2027 = vmatpush3.bf16.msra.mxu1 %v2171_v45  ;;  %1992 = vmatprep.subr.bf16.mxu0 %v2178_v46 }
  0x73   :  { %1289 = vmatmul.mubr.bf16.gmra.mrb[40].mxu0 %v2162_v47  ;;  %2020 = vmatprep.subr.bf16.mxu1 %v2178_v46 }
  0x74   :  { %1386 = vmatmul.mubr.bf16.gmra.mrb[40].mxu1 %v2163_v48  ;;  %1296 = vmatprep.mubr.bf16.mxu0 %v2165_v49 }
  0x75   :  { %1393 = vmatprep.mubr.bf16.mxu1 %v2167_v50  ;;  %1993 = vmatpush3.bf16.msra.mxu0 %v2178_v46 }
  0x76   :  { %2028 = vmatpush3.bf16.msra.mxu1 %v2178_v46  ;;  %1994 = vmatprep.subr.bf16.mxu0 %v2185_v51 }
  0x77   :  { %2021 = vmatprep.subr.bf16.mxu1 %v2185_v51 }
  0x79   :  { %1995 = vmatpush3.bf16.msra.mxu0 %v2185_v51 }
  0x7a   :  { %2029 = vmatpush3.bf16.msra.mxu1 %v2185_v51  ;;  %1996 = vmatprep.subr.bf16.mxu0 %v2192_v53 }
  0x7b   :  { %1297 = vmatmul.mubr.bf16.gmra.mrb[44].mxu0 %v2169_v52  ;;  %2022 = vmatprep.subr.bf16.mxu1 %v2192_v53 }
  0x7c   :  { %1394 = vmatmul.mubr.bf16.gmra.mrb[44].mxu1 %v2170_v54  ;;  %1304 = vmatprep.mubr.bf16.mxu0 %v2172_v55 }
  0x7d   :  { %1401 = vmatprep.mubr.bf16.mxu1 %v2174_v56  ;;  %1997 = vmatpush3.bf16.msra.mxu0 %v2192_v53 }
  0x7e   :  { %2030 = vmatpush3.bf16.msra.mxu1 %v2192_v53  ;;  %1998 = vmatprep.subr.bf16.mxu0 %v2199_v57 }
  0x7f   :  { %2023 = vmatprep.subr.bf16.mxu1 %v2199_v57 }
  0x81   :  { %1999 = vmatpush3.bf16.msra.mxu0 %v2199_v57 }
  0x82   :  { %2031 = vmatpush3.bf16.msra.mxu1 %v2199_v57 }
  0x83   :  { %1305 = vmatmul.mubr.bf16.gmra.mrb[48].mxu0 %v2176_v58 }
  0x84   :  { %1402 = vmatmul.mubr.bf16.gmra.mrb[48].mxu1 %v2177_v59  ;;  %1312 = vmatprep.mubr.bf16.mxu0 %v2179_v60 }
  0x85   :  { %1409 = vmatprep.mubr.bf16.mxu1 %v2181_v61 }
  0x8b   :  { %1313 = vmatmul.mubr.bf16.gmra.mrb[52].mxu0 %v2183_v62 }
  0x8c   :  { %1410 = vmatmul.mubr.bf16.gmra.mrb[52].mxu1 %v2184_v63  ;;  %1320 = vmatprep.mubr.bf16.mxu0 %v2186_v0 }
  0x8d   :  { %1417 = vmatprep.mubr.bf16.mxu1 %v2188_v1 }
  0x93   :  { %1321 = vmatmul.mubr.bf16.gmra.mrb[56].mxu0 %v2190_v2 }
  0x94   :  { %1418 = vmatmul.mubr.bf16.gmra.mrb[56].mxu1 %v2191_v3  ;;  %1328 = vmatprep.mubr.bf16.mxu0 %v2193_v4 }
  0x95   :  { %1425 = vmatprep.mubr.bf16.mxu1 %v2195_v5 }
  0x9b   :  { %1329 = vmatmul.mubr.bf16.gmra.mrb[60].mxu0 %v2197_v6 }
  0x9c   :  { %1426 = vmatmul.mubr.bf16.gmra.mrb[60].mxu1 %v2198_v7  ;;  %2000 = vmatprep.mubr.bf16.mxu0 %v2200_v8 }
  0x9d   :  { %2008 = vmatprep.mubr.bf16.mxu1 %v2201_v9 }
  0xa3   :  { %2001 = vmatmul.mubr.bf16.vlgmr.msra.gmra.mrb[64].mxu0 %v2202_v10 }
  0xa4   :  { %2009 = vmatmul.mubr.bf16.vlgmr.msra.gmra.mrb[64].mxu1 %v2203_v11  ;;  %2004 = vmatprep.mubr.bf16.mxu0 %v2204_v12 }
  0xa5   :  { %2012 = vmatprep.mubr.bf16.mxu1 %v2205_v13 }
  0xab   :  { %2005 = vmatmul.mubr.bf16.gmra.mrb[68].mxu0 %v2206_v14 }
  0xac   :  { %2013 = vmatmul.mubr.bf16.gmra.mrb[68].mxu1 %v2207_v15 }
  0xf6   :  { %v1728_v16 = vpop.f32.mrb[0].mxu0 }
  0xf7   :  { %v1792_v17 = vpop.f32.mrb[0].mxu1  ;;  %v1729_v19 = vpop.f32.mrb[1].mxu0 }
  0xf8   :  { %v1730_v20 = vadd.f32 %v1729_v19, %v1728_v16  ;;  %v1793_v21 = vpop.f32.mrb[1].mxu1  ;;  %v1731_v22 = vpop.f32.mrb[2].mxu0 }
  0xf9   :  { %v1794_v23 = vadd.f32 %v1793_v21, %v1792_v17  ;;  %v1795_v24 = vpop.f32.mrb[2].mxu1  ;;  %v1732_v25 = vpop.f32.mrb[3].mxu0 }
  0xfa   :  { %v1081_v26 = vadd.f32 %v1730_v20, %v2663_v18  ;;  %v1733_v27 = vadd.f32 %v1732_v25, %v1731_v22  ;;  %v1796_v28 = vpop.f32.mrb[3].mxu1 }
  0xfb   :  { %v1797_v29 = vadd.f32 %v1796_v28, %v1795_v24 }
  0xfc   :  { %v2666_v30 = vadd.f32 %v1794_v23, %v1081_v26  ;;  %v1084_v31 = vadd.f32 %v1733_v27, %v2663_v18 }
  0xfe   :  { %v2669_v32 = vadd.f32 %v1797_v29, %v1084_v31  ;;  %v1734_v33 = vpop.f32.mrb[4].mxu0 }
  0xff   :  { %v1798_v34 = vpop.f32.mrb[4].mxu1  ;;  %v1735_v35 = vpop.f32.mrb[5].mxu0 }
 0x100   :  { %v1736_v36 = vadd.f32 %v1735_v35, %v1734_v33  ;;  %v1799_v37 = vpop.f32.mrb[5].mxu1  ;;  %v1737_v38 = vpop.f32.mrb[6].mxu0 }
 0x101   :  { %v1800_v39 = vadd.f32 %v1799_v37, %v1798_v34  ;;  %v1801_v40 = vpop.f32.mrb[6].mxu1  ;;  %v1738_v41 = vpop.f32.mrb[7].mxu0 }
 0x102   :  { %v1089_v42 = vadd.f32 %v1736_v36, %v2663_v18  ;;  %v1739_v43 = vadd.f32 %v1738_v41, %v1737_v38  ;;  %v1802_v44 = vpop.f32.mrb[7].mxu1 }
 0x103   :  { %v1803_v45 = vadd.f32 %v1802_v44, %v1801_v40 }
 0x104   :  { %v2672_v46 = vadd.f32 %v1800_v39, %v1089_v42  ;;  %v1092_v47 = vadd.f32 %v1739_v43, %v2663_v18 }
 0x106   :  { %v2675_v48 = vadd.f32 %v1803_v45, %v1092_v47  ;;  %v1740_v49 = vpop.f32.mrb[8].mxu0 }
 0x107   :  { %v1804_v50 = vpop.f32.mrb[8].mxu1  ;;  %v1741_v51 = vpop.f32.mrb[9].mxu0 }
 0x108   :  { %v1742_v52 = vadd.f32 %v1741_v51, %v1740_v49  ;;  %v1805_v53 = vpop.f32.mrb[9].mxu1  ;;  %v1743_v54 = vpop.f32.mrb[10].mxu0 }
 0x109   :  { %v1806_v55 = vadd.f32 %v1805_v53, %v1804_v50  ;;  %v1807_v56 = vpop.f32.mrb[10].mxu1  ;;  %v1744_v57 = vpop.f32.mrb[11].mxu0 }
 0x10a   :  { %v1097_v58 = vadd.f32 %v1742_v52, %v2663_v18  ;;  %v1745_v59 = vadd.f32 %v1744_v57, %v1743_v54  ;;  %v1808_v60 = vpop.f32.mrb[11].mxu1 }
 0x10b   :  { %v1809_v61 = vadd.f32 %v1808_v60, %v1807_v56 }
 0x10c   :  { %v2678_v62 = vadd.f32 %v1806_v55, %v1097_v58  ;;  %v1100_v63 = vadd.f32 %v1745_v59, %v2663_v18 }
 0x10e   :  { %v2681_v0 = vadd.f32 %v1809_v61, %v1100_v63  ;;  %v1746_v1 = vpop.f32.mrb[12].mxu0 }
 0x10f   :  { %v1810_v2 = vpop.f32.mrb[12].mxu1  ;;  %v1747_v3 = vpop.f32.mrb[13].mxu0 }
 0x110   :  { %v1748_v4 = vadd.f32 %v1747_v3, %v1746_v1  ;;  %v1811_v5 = vpop.f32.mrb[13].mxu1  ;;  %v1749_v6 = vpop.f32.mrb[14].mxu0 }
 0x111   :  { %v1812_v7 = vadd.f32 %v1811_v5, %v1810_v2  ;;  %v1813_v8 = vpop.f32.mrb[14].mxu1  ;;  %v1750_v9 = vpop.f32.mrb[15].mxu0 }
 0x112   :  { %v1105_v10 = vadd.f32 %v1748_v4, %v2663_v18  ;;  %v1751_v11 = vadd.f32 %v1750_v9, %v1749_v6  ;;  %v1814_v12 = vpop.f32.mrb[15].mxu1 }
 0x113   :  { %v1815_v13 = vadd.f32 %v1814_v12, %v1813_v8 }
 0x114   :  { %v2684_v14 = vadd.f32 %v1812_v7, %v1105_v10  ;;  %v1108_v15 = vadd.f32 %v1751_v11, %v2663_v18 }
 0x116   :  { %v2687_v16 = vadd.f32 %v1815_v13, %v1108_v15  ;;  %v1752_v17 = vpop.f32.mrb[16].mxu0 }
 0x117   :  { %v1816_v19 = vpop.f32.mrb[16].mxu1  ;;  %v1753_v20 = vpop.f32.mrb[17].mxu0 }
 0x118   :  { %v1754_v21 = vadd.f32 %v1753_v20, %v1752_v17  ;;  %v1817_v22 = vpop.f32.mrb[17].mxu1  ;;  %v1755_v23 = vpop.f32.mrb[18].mxu0 }
 0x119   :  { %v1818_v24 = vadd.f32 %v1817_v22, %v1816_v19  ;;  %v1819_v25 = vpop.f32.mrb[18].mxu1  ;;  %v1756_v26 = vpop.f32.mrb[19].mxu0 }
 0x11a   :  { %v1113_v27 = vadd.f32 %v1754_v21, %v2663_v18  ;;  %v1757_v28 = vadd.f32 %v1756_v26, %v1755_v23  ;;  %v1820_v29 = vpop.f32.mrb[19].mxu1 }
 0x11b   :  { %v1821_v31 = vadd.f32 %v1820_v29, %v1819_v25 }
 0x11c   :  { %v2690_v33 = vadd.f32 %v1818_v24, %v1113_v27  ;;  %v1116_v34 = vadd.f32 %v1757_v28, %v2663_v18 }
 0x11e   :  { %v2693_v35 = vadd.f32 %v1821_v31, %v1116_v34  ;;  %v1758_v36 = vpop.f32.mrb[20].mxu0 }
 0x11f   :  { %v1822_v37 = vpop.f32.mrb[20].mxu1  ;;  %v1759_v38 = vpop.f32.mrb[21].mxu0 }
 0x120   :  { %v1760_v39 = vadd.f32 %v1759_v38, %v1758_v36  ;;  %v1823_v40 = vpop.f32.mrb[21].mxu1  ;;  %v1761_v41 = vpop.f32.mrb[22].mxu0 }
 0x121   :  { %v1824_v42 = vadd.f32 %v1823_v40, %v1822_v37  ;;  %v1825_v43 = vpop.f32.mrb[22].mxu1  ;;  %v1762_v44 = vpop.f32.mrb[23].mxu0 }
 0x122   :  { %v1121_v45 = vadd.f32 %v1760_v39, %v2663_v18  ;;  %v1763_v47 = vadd.f32 %v1762_v44, %v1761_v41  ;;  %v1826_v49 = vpop.f32.mrb[23].mxu1 }
 0x123   :  { %v1827_v50 = vadd.f32 %v1826_v49, %v1825_v43 }
 0x124   :  { %v2696_v51 = vadd.f32 %v1824_v42, %v1121_v45  ;;  %v1124_v52 = vadd.f32 %v1763_v47, %v2663_v18 }
 0x126   :  { %v2699_v53 = vadd.f32 %v1827_v50, %v1124_v52  ;;  %v1764_v54 = vpop.f32.mrb[24].mxu0 }
 0x127   :  { %v1828_v55 = vpop.f32.mrb[24].mxu1  ;;  %v1765_v56 = vpop.f32.mrb[25].mxu0 }
 0x128   :  { %v1766_v57 = vadd.f32 %v1765_v56, %v1764_v54  ;;  %v1829_v58 = vpop.f32.mrb[25].mxu1  ;;  %v1767_v59 = vpop.f32.mrb[26].mxu0 }
 0x129   :  { %v1830_v60 = vadd.f32 %v1829_v58, %v1828_v55  ;;  %v1831_v61 = vpop.f32.mrb[26].mxu1  ;;  %v1768_v63 = vpop.f32.mrb[27].mxu0 }
 0x12a   :  { %v1129_v1 = vadd.f32 %v1766_v57, %v2663_v18  ;;  %v1769_v2 = vadd.f32 %v1768_v63, %v1767_v59  ;;  %v1832_v3 = vpop.f32.mrb[27].mxu1 }
 0x12b   :  { %v1833_v4 = vadd.f32 %v1832_v3, %v1831_v61 }
 0x12c   :  { %v2702_v5 = vadd.f32 %v1830_v60, %v1129_v1  ;;  %v1132_v6 = vadd.f32 %v1769_v2, %v2663_v18 }
 0x12e   :  { %v2705_v7 = vadd.f32 %v1833_v4, %v1132_v6  ;;  %v1770_v8 = vpop.f32.mrb[28].mxu0 }
 0x12f   :  { %v1834_v9 = vpop.f32.mrb[28].mxu1  ;;  %v1771_v10 = vpop.f32.mrb[29].mxu0 }
 0x130   :  { %v1772_v11 = vadd.f32 %v1771_v10, %v1770_v8  ;;  %v1835_v12 = vpop.f32.mrb[29].mxu1  ;;  %v1773_v13 = vpop.f32.mrb[30].mxu0 }
 0x131   :  { %v1836_v15 = vadd.f32 %v1835_v12, %v1834_v9  ;;  %v1837_v17 = vpop.f32.mrb[30].mxu1  ;;  %v1774_v19 = vpop.f32.mrb[31].mxu0 }
 0x132   :  { %v1137_v20 = vadd.f32 %v1772_v11, %v2663_v18  ;;  %v1775_v21 = vadd.f32 %v1774_v19, %v1773_v13  ;;  %v1838_v22 = vpop.f32.mrb[31].mxu1 }
 0x133   :  { %v1839_v23 = vadd.f32 %v1838_v22, %v1837_v17 }
 0x134   :  { %v2708_v24 = vadd.f32 %v1836_v15, %v1137_v20  ;;  %v1140_v25 = vadd.f32 %v1775_v21, %v2663_v18 }
 0x136   :  { %v2711_v26 = vadd.f32 %v1839_v23, %v1140_v25  ;;  %v1856_v27 = vpop.f32.mrb[32].mxu0 }
 0x137   :  { %v1920_v28 = vpop.f32.mrb[32].mxu1  ;;  %v1857_v29 = vpop.f32.mrb[33].mxu0 }
 0x138   :  { %v1858_v31 = vadd.f32 %v1857_v29, %v1856_v27  ;;  %v1921_v34 = vpop.f32.mrb[33].mxu1  ;;  %v1859_v36 = vpop.f32.mrb[34].mxu0 }
 0x139   :  { %v1922_v37 = vadd.f32 %v1921_v34, %v1920_v28  ;;  %v1923_v38 = vpop.f32.mrb[34].mxu1  ;;  %v1860_v39 = vpop.f32.mrb[35].mxu0 }
 0x13a   :  { %v1275_v40 = vadd.f32 %v1858_v31, %v2666_v30  ;;  %v1861_v41 = vadd.f32 %v1860_v39, %v1859_v36  ;;  %v1924_v42 = vpop.f32.mrb[35].mxu1 }
 0x13b   :  { %v1925_v43 = vadd.f32 %v1924_v42, %v1923_v38 }
 0x13c   :  { %v1278_v44 = vadd.f32 %v1861_v41, %v2669_v32  ;;  %v2715_v45 = vadd.f32 %v1922_v37, %v1275_v40 }
 0x13e   :  { %v1862_v18 = vpop.f32.mrb[36].mxu0  ;;  %v2717_v47 = vadd.f32 %v1925_v43, %v1278_v44 }
 0x13f   :  { %v1926_v49 = vpop.f32.mrb[36].mxu1  ;;  %v1863_v50 = vpop.f32.mrb[37].mxu0 }
 0x140   :  { %v1864_v52 = vadd.f32 %v1863_v50, %v1862_v18  ;;  %v1927_v54 = vpop.f32.mrb[37].mxu1  ;;  %v1865_v55 = vpop.f32.mrb[38].mxu0 }
 0x141   :  { %v1928_v56 = vadd.f32 %v1927_v54, %v1926_v49  ;;  %v1929_v57 = vpop.f32.mrb[38].mxu1  ;;  %v1866_v58 = vpop.f32.mrb[39].mxu0 }
 0x142   :  { %v1283_v30 = vadd.f32 %v1864_v52, %v2672_v46  ;;  %v1867_v59 = vadd.f32 %v1866_v58, %v1865_v55  ;;  %v1930_v60 = vpop.f32.mrb[39].mxu1 }
 0x143   :  { %v1931_v61 = vadd.f32 %v1930_v60, %v1929_v57 }
 0x144   :  { %v1286_v32 = vadd.f32 %v1867_v59, %v2675_v48  ;;  %v2721_v63 = vadd.f32 %v1928_v56, %v1283_v30 }
 0x146   :  { %v1868_v1 = vpop.f32.mrb[40].mxu0  ;;  %v2723_v2 = vadd.f32 %v1931_v61, %v1286_v32 }
 0x147   :  { %v1932_v3 = vpop.f32.mrb[40].mxu1  ;;  %v1869_v4 = vpop.f32.mrb[41].mxu0 }
 0x148   :  { %v1870_v6 = vadd.f32 %v1869_v4, %v1868_v1  ;;  %v1933_v8 = vpop.f32.mrb[41].mxu1  ;;  %v1871_v9 = vpop.f32.mrb[42].mxu0 }
 0x149   :  { %v1934_v10 = vadd.f32 %v1933_v8, %v1932_v3  ;;  %v1935_v11 = vpop.f32.mrb[42].mxu1  ;;  %v1872_v12 = vpop.f32.mrb[43].mxu0 }
 0x14a   :  { %v1291_v46 = vadd.f32 %v1870_v6, %v2678_v62  ;;  %v1873_v13 = vadd.f32 %v1872_v12, %v1871_v9  ;;  %v1936_v15 = vpop.f32.mrb[43].mxu1 }
 0x14b   :  { %v1937_v17 = vadd.f32 %v1936_v15, %v1935_v11 }
 0x14c   :  { %v1294_v48 = vadd.f32 %v1873_v13, %v2681_v0  ;;  %v2727_v19 = vadd.f32 %v1934_v10, %v1291_v46 }
 0x14e   :  { %v1874_v20 = vpop.f32.mrb[44].mxu0  ;;  %v2729_v21 = vadd.f32 %v1937_v17, %v1294_v48 }
 0x14f   :  { %v1938_v22 = vpop.f32.mrb[44].mxu1  ;;  %v1875_v23 = vpop.f32.mrb[45].mxu0 }
 0x150   :  { %v1876_v25 = vadd.f32 %v1875_v23, %v1874_v20  ;;  %v1939_v27 = vpop.f32.mrb[45].mxu1  ;;  %v1877_v28 = vpop.f32.mrb[46].mxu0 }
 0x151   :  { %v1940_v29 = vadd.f32 %v1939_v27, %v1938_v22  ;;  %v1941_v31 = vpop.f32.mrb[46].mxu1  ;;  %v1878_v34 = vpop.f32.mrb[47].mxu0 }
 0x152   :  { %v1299_v62 = vadd.f32 %v1876_v25, %v2684_v14  ;;  %v1879_v36 = vadd.f32 %v1878_v34, %v1877_v28  ;;  %v1942_v37 = vpop.f32.mrb[47].mxu1 }
 0x153   :  { %v1943_v38 = vadd.f32 %v1942_v37, %v1941_v31 }
 0x154   :  { %v1302_v0 = vadd.f32 %v1879_v36, %v2687_v16  ;;  %v2733_v39 = vadd.f32 %v1940_v29, %v1299_v62 }
 0x156   :  { %v1880_v40 = vpop.f32.mrb[48].mxu0  ;;  %v2735_v41 = vadd.f32 %v1943_v38, %v1302_v0 }
 0x157   :  { %v1944_v42 = vpop.f32.mrb[48].mxu1  ;;  %v1881_v43 = vpop.f32.mrb[49].mxu0 }
 0x158   :  { %v1882_v44 = vadd.f32 %v1881_v43, %v1880_v40  ;;  %v1945_v18 = vpop.f32.mrb[49].mxu1  ;;  %v1883_v49 = vpop.f32.mrb[50].mxu0 }
 0x159   :  { %v1946_v50 = vadd.f32 %v1945_v18, %v1944_v42  ;;  %v1947_v52 = vpop.f32.mrb[50].mxu1  ;;  %v1884_v54 = vpop.f32.mrb[51].mxu0 }
 0x15a   :  { %v1307_v14 = vadd.f32 %v1882_v44, %v2690_v33  ;;  %v1885_v55 = vadd.f32 %v1884_v54, %v1883_v49  ;;  %v1948_v56 = vpop.f32.mrb[51].mxu1 }
 0x15b   :  { %v1949_v57 = vadd.f32 %v1948_v56, %v1947_v52 }
 0x15c   :  { %v1310_v16 = vadd.f32 %v1885_v55, %v2693_v35  ;;  %v1404_v58 = vadd.f32 %v1946_v50, %v1307_v14 }
 0x15e   :  { %v1886_v30 = vpop.f32.mrb[52].mxu0  ;;  %v2739_v59 = vadd.f32 %v1949_v57, %v1310_v16 }
 0x15f   :  { %v1950_v60 = vpop.f32.mrb[52].mxu1  ;;  %v1887_v61 = vpop.f32.mrb[53].mxu0 }
 0x160   :  { %v1888_v32 = vadd.f32 %v1887_v61, %v1886_v30  ;;  %v1951_v1 = vpop.f32.mrb[53].mxu1  ;;  %v1889_v3 = vpop.f32.mrb[54].mxu0 }
 0x161   :  { %v1952_v4 = vadd.f32 %v1951_v1, %v1950_v60  ;;  %v1953_v6 = vpop.f32.mrb[54].mxu1  ;;  %v1890_v8 = vpop.f32.mrb[55].mxu0 }
 0x162   :  { %v1315_v9 = vadd.f32 %v1888_v32, %v2696_v51  ;;  %v1891_v33 = vadd.f32 %v1890_v8, %v1889_v3  ;;  %v1954_v10 = vpop.f32.mrb[55].mxu1 }
 0x163   :  { %v1955_v11 = vadd.f32 %v1954_v10, %v1953_v6 }
 0x164   :  { %v1318_v12 = vadd.f32 %v1891_v33, %v2699_v53  ;;  %v1412_v35 = vadd.f32 %v1952_v4, %v1315_v9 }
 0x166   :  { %v1892_v46 = vpop.f32.mrb[56].mxu0  ;;  %v1415_v13 = vadd.f32 %v1955_v11, %v1318_v12 }
 0x167   :  { %v1956_v15 = vpop.f32.mrb[56].mxu1  ;;  %v1893_v17 = vpop.f32.mrb[57].mxu0 }
 0x168   :  { %v1894_v48 = vadd.f32 %v1893_v17, %v1892_v46  ;;  %v1957_v20 = vpop.f32.mrb[57].mxu1  ;;  %v1895_v22 = vpop.f32.mrb[58].mxu0 }
 0x169   :  { %v1958_v23 = vadd.f32 %v1957_v20, %v1956_v15  ;;  %v1959_v25 = vpop.f32.mrb[58].mxu1  ;;  %v1896_v27 = vpop.f32.mrb[59].mxu0 }
 0x16a   :  { %v1323_v28 = vadd.f32 %v1894_v48, %v2702_v5  ;;  %v1897_v29 = vadd.f32 %v1896_v27, %v1895_v22  ;;  %v1960_v51 = vpop.f32.mrb[59].mxu1 }
 0x16b   :  { %v1961_v31 = vadd.f32 %v1960_v51, %v1959_v25 }
 0x16c   :  { %v1326_v34 = vadd.f32 %v1897_v29, %v2705_v7  ;;  %v1420_v62 = vadd.f32 %v1958_v23, %v1323_v28 }
 0x16e   :  { %v1898_v53 = vpop.f32.mrb[60].mxu0  ;;  %v2745_v36 = vadd.f32 %v1961_v31, %v1326_v34 }
 0x16f   :  { %v1962_v37 = vpop.f32.mrb[60].mxu1  ;;  %v1899_v38 = vpop.f32.mrb[61].mxu0 }
 0x170   :  { %v1900_v0 = vadd.f32 %v1899_v38, %v1898_v53  ;;  %v1963_v40 = vpop.f32.mrb[61].mxu1  ;;  %v1901_v42 = vpop.f32.mrb[62].mxu0 }
 0x171   :  { %v1964_v43 = vadd.f32 %v1963_v40, %v1962_v37  ;;  %v1965_v44 = vpop.f32.mrb[62].mxu1  ;;  %v1902_v18 = vpop.f32.mrb[63].mxu0 }
 0x172   :  { %v1331_v49 = vadd.f32 %v1900_v0, %v2708_v24  ;;  %v1903_v5 = vadd.f32 %v1902_v18, %v1901_v42  ;;  %v1966_v50 = vpop.f32.mrb[63].mxu1 }
 0x173   :  { %v1967_v52 = vadd.f32 %v1966_v50, %v1965_v44 }
 0x174   :  { %v1334_v54 = vadd.f32 %v1903_v5, %v2711_v26  ;;  %v1428_v7 = vadd.f32 %v1964_v43, %v1331_v49 }
 0x176   :  { %v2002_v14 = vpop.f32.mrb[64].mxu0  ;;  %v1431_v55 = vadd.f32 %v1967_v52, %v1334_v54 }
 0x177   :  { %v1477_v56 = vadd.f32 %v2002_v14, %v2721_v63  ;;  %v2010_v57 = vpop.f32.mrb[64].mxu1  ;;  %v1468_v16 = vpop.f32.mrb[65].mxu0 }
 0x178   :  { %v1509_v30 = vadd.f32 %v2010_v57, %v1412_v35  ;;  %v1469_v60 = vadd.f32 %v1468_v16, %v2715_v45  ;;  %v1500_v61 = vpop.f32.mrb[65].mxu1  ;;  %v2003_v32 = vpop.f32.mrb[66].mxu0 }
 0x179   :  { %v1533_v1 = vmax.f32 %v1477_v56, 0.0  ;;  %v1501_v3 = vadd.f32 %v1500_v61, %v1404_v58  ;;  %v1480_v24 = vadd.f32 %v2003_v32, %v2723_v2  ;;  %v2011_v4 = vpop.f32.mrb[66].mxu1  ;;  %v1471_v6 = vpop.f32.mrb[67].mxu0 }
 0x17a   :  { %v1541_v8 = vmax.f32 %v1509_v30, 0.0  ;;  %v1531_v26 = vmax.f32 %v1469_v60, 0.0  ;;  %v1512_v9 = vadd.f32 %v2011_v4, %v1415_v13  ;;  %v1472_v33 = vadd.f32 %v1471_v6, %v2717_v47  ;;  %v1503_v10 = vpop.f32.mrb[67].mxu1 }
 0x17b   :  { %1549 = vst [vmem:[%s2810_s3 + $0x10] sm:$0xff] %v1533_v1  ;;  %v1539_v63 = vmax.f32 %v1501_v3, 0.0  ;;  %v1534_v45 = vmax.f32 %v1480_v24, 0.0  ;;  %v1504_v11 = vadd.f32 %v1503_v10, %v2739_v59 }
 0x17c   :  { %1557 = vst [vmem:[%s2810_s3 + $0x50] sm:$0xff] %v1541_v8  ;;  %1547 = vst [vmem:[%s2810_s3] sm:$0xff] %v1531_v26  ;;  %v1542_v2 = vmax.f32 %v1512_v9, 0.0  ;;  %v1532_v58 = vmax.f32 %v1472_v33, 0.0 }
 0x17d   :  { %1555 = vst [vmem:[%s2810_s3 + $0x40] sm:$0xff] %v1539_v63  ;;  %1550 = vst [vmem:[%s2810_s3 + $0x18] sm:$0xff] %v1534_v45  ;;  %v1540_v47 = vmax.f32 %v1504_v11, 0.0 }
 0x17e   :  { %1558 = vst [vmem:[%s2810_s3 + $0x58] sm:$0xff] %v1542_v2  ;;  %1548 = vst [vmem:[%s2810_s3 + $0x8] sm:$0xff] %v1532_v58  ;;  %v2006_v59 = vpop.f32.mrb[68].mxu0 }
 0x17f   :  { %1556 = vst [vmem:[%s2810_s3 + $0x48] sm:$0xff] %v1540_v47  ;;  %v1493_v12 = vadd.f32 %v2006_v59, %v2733_v39  ;;  %v2014_v35 = vpop.f32.mrb[68].mxu1  ;;  %v1484_v46 = vpop.f32.mrb[69].mxu0 }
 0x180   :  { %v1525_v13 = vadd.f32 %v2014_v35, %v1428_v7  ;;  %v1485_v15 = vadd.f32 %v1484_v46, %v2727_v19  ;;  %v1516_v17 = vpop.f32.mrb[69].mxu1  ;;  %v2007_v48 = vpop.f32.mrb[70].mxu0 }
 0x181   :  { %v1537_v20 = vmax.f32 %v1493_v12, 0.0  ;;  %v1517_v22 = vadd.f32 %v1516_v17, %v1420_v62  ;;  %v1496_v23 = vadd.f32 %v2007_v48, %v2735_v41  ;;  %v2015_v25 = vpop.f32.mrb[70].mxu1  ;;  %v1487_v27 = vpop.f32.mrb[71].mxu0 }
 0x182   :  { %v1545_v28 = vmax.f32 %v1525_v13, 0.0  ;;  %v1535_v29 = vmax.f32 %v1485_v15, 0.0  ;;  %v1528_v51 = vadd.f32 %v2015_v25, %v1431_v55  ;;  %v1488_v31 = vadd.f32 %v1487_v27, %v2729_v21  ;;  %v1519_v34 = vpop.f32.mrb[71].mxu1 }
 0x183   :  { %1553 = vst [vmem:[%s2810_s3 + $0x30] sm:$0xff] %v1537_v20  ;;  %v1543_v39 = vmax.f32 %v1517_v22, 0.0  ;;  %v1538_v19 = vmax.f32 %v1496_v23, 0.0  ;;  %v1520_v53 = vadd.f32 %v1519_v34, %v2745_v36 }
 0x184   :  { %1561 = vst [vmem:[%s2810_s3 + $0x70] sm:$0xff] %v1545_v28  ;;  %1551 = vst [vmem:[%s2810_s3 + $0x20] sm:$0xff] %v1535_v29  ;;  %v1546_v41 = vmax.f32 %v1528_v51, 0.0  ;;  %v1536_v62 = vmax.f32 %v1488_v31, 0.0 }
 0x185   :  { %1559 = vst [vmem:[%s2810_s3 + $0x60] sm:$0xff] %v1543_v39  ;;  %1554 = vst [vmem:[%s2810_s3 + $0x38] sm:$0xff] %v1538_v19  ;;  %v1544_v21 = vmax.f32 %v1520_v53, 0.0 }
 0x186   :  { %1562 = vst [vmem:[%s2810_s3 + $0x78] sm:$0xff] %v1546_v41  ;;  %1552 = vst [vmem:[%s2810_s3 + $0x28] sm:$0xff] %v1536_v62 }
 0x187   :  { %1560 = vst [vmem:[%s2810_s3 + $0x68] sm:$0xff] %v1544_v21 }

// kernel: resnet18_conv5_forward.21
= control target key start
LH: loop header
LB: loop body
LE: loop exit
PB: predicated region body
PF: predicated region fallthrough
CT: control target
= control target key end

     0   :  { %s2904_s1 = inlined_call_operand.vmem [shape: bf16[1152,128], index: 1, kind: input, shape index: {}]   ;;  %s2905_s0 = inlined_call_operand.vmem [shape: bf16[128,1152], index: 0, kind: input, shape index: {}]   ;;  %s2906_s2 = inlined_call_operand.vmem [shape: f32[1,128], index: 2, kind: input, shape index: {}]   ;;  %s2907_s3 = inlined_call_operand.vmem [shape: f32[128,128], index: 3, kind: input, shape index: {}]   ;;  %s2908_s4 = inlined_call_operand.vmem [shape: f32[128,128], index: 4, kind: output, shape index: {}]  }
   0x1   :  { %v2067_v0 = vld [vmem:[%s2904_s1 + $0x40] sm:$0xff]   ;;  %v2071_v4 = vld [vmem:[%s2904_s1 + $0x48] sm:$0xff]   ;;  %v2075_v8 = vld [vmem:[%s2904_s1 + $0x50] sm:$0xff]  }
   0x2   :  { %v2068_v1 = vld [vmem:[%s2904_s1 + $0xc0] sm:$0xff]   ;;  %1747 = vmatprep.subr.bf16.mxu0 %v2067_v0  ;;  %v2072_v5 = vld [vmem:[%s2904_s1 + $0xc8] sm:$0xff]   ;;  %v2076_v9 = vld [vmem:[%s2904_s1 + $0xd0] sm:$0xff]  }
   0x3   :  { %v2069_v2 = vld [vmem:[%s2904_s1] sm:$0xff]   ;;  %1811 = vmatprep.subr.bf16.mxu1 %v2068_v1  ;;  %v2073_v6 = vld [vmem:[%s2904_s1 + $0x8] sm:$0xff]   ;;  %v2077_v10 = vld [vmem:[%s2904_s1 + $0x10] sm:$0xff]  }
   0x4   :  { %v2070_v3 = vld [vmem:[%s2904_s1 + $0x80] sm:$0xff]   ;;  %1748 = vmatpush3.bf16.msra.mxu0 %v2069_v2  ;;  %v2074_v7 = vld [vmem:[%s2904_s1 + $0x88] sm:$0xff]   ;;  %v2078_v11 = vld [vmem:[%s2904_s1 + $0x90] sm:$0xff]  }
   0x5   :  { %1812 = vmatpush3.bf16.msra.mxu1 %v2070_v3  ;;  %1749 = vmatprep.subr.bf16.mxu0 %v2071_v4  ;;  %v2079_v12 = vld [vmem:[%s2904_s1 + $0x58] sm:$0xff]   ;;  %v2083_v16 = vld [vmem:[%s2904_s1 + $0x60] sm:$0xff]   ;;  %v2087_v20 = vld [vmem:[%s2904_s1 + $0x68] sm:$0xff]  }
   0x6   :  { %1813 = vmatprep.subr.bf16.mxu1 %v2072_v5  ;;  %v2080_v13 = vld [vmem:[%s2904_s1 + $0xd8] sm:$0xff]   ;;  %v2084_v17 = vld [vmem:[%s2904_s1 + $0xe0] sm:$0xff]   ;;  %v2088_v21 = vld [vmem:[%s2904_s1 + $0xe8] sm:$0xff]  }
   0x7   :  { %v2081_v14 = vld [vmem:[%s2904_s1 + $0x18] sm:$0xff]   ;;  %v2085_v18 = vld [vmem:[%s2904_s1 + $0x20] sm:$0xff]   ;;  %v2089_v22 = vld [vmem:[%s2904_s1 + $0x28] sm:$0xff]  }
   0x8   :  { %1750 = vmatpush3.bf16.msra.mxu0 %v2073_v6  ;;  %v2082_v15 = vld [vmem:[%s2904_s1 + $0x98] sm:$0xff]   ;;  %v2086_v19 = vld [vmem:[%s2904_s1 + $0xa0] sm:$0xff]   ;;  %v2090_v23 = vld [vmem:[%s2904_s1 + $0xa8] sm:$0xff]  }
   0x9   :  { %1814 = vmatpush3.bf16.msra.mxu1 %v2074_v7  ;;  %1751 = vmatprep.subr.bf16.mxu0 %v2075_v8  ;;  %v2091_v24 = vld [vmem:[%s2904_s1 + $0x70] sm:$0xff]   ;;  %v2095_v28 = vld [vmem:[%s2904_s1 + $0x78] sm:$0xff]   ;;  %v2099_v32 = vld [vmem:[%s2905_s0] ss:$36 sps:$4 sm:$0xff]  }
   0xa   :  { %1815 = vmatprep.subr.bf16.mxu1 %v2076_v9  ;;  %v2092_v25 = vld [vmem:[%s2904_s1 + $0xf0] sm:$0xff]   ;;  %v2096_v29 = vld [vmem:[%s2904_s1 + $0xf8] sm:$0xff]   ;;  %v2101_v33 = vld [vmem:[%s2905_s0 + $0x4] ss:$36 sps:$4 sm:$0xff]  }
   0xb   :  { %v2093_v26 = vld [vmem:[%s2904_s1 + $0x30] sm:$0xff]   ;;  %v2097_v30 = vld [vmem:[%s2904_s1 + $0x38] sm:$0xff]   ;;  %v2102_v34 = vld [vmem:[%s2905_s0 + $0x8] ss:$36 sps:$4 sm:$0xff]   ;;  %1081 = vmatprep.mubr.bf16.mxu0 %v2101_v33 }
   0xc   :  { %1752 = vmatpush3.bf16.msra.mxu0 %v2077_v10  ;;  %v2094_v27 = vld [vmem:[%s2904_s1 + $0xb0] sm:$0xff]   ;;  %v2098_v31 = vld [vmem:[%s2904_s1 + $0xb8] sm:$0xff]   ;;  %v2105_v36 = vld [vmem:[%s2904_s1 + $0x140] sm:$0xff]  }
   0xd   :  { %1816 = vmatpush3.bf16.msra.mxu1 %v2078_v11  ;;  %1753 = vmatprep.subr.bf16.mxu0 %v2079_v12  ;;  %v2104_v35 = vld [vmem:[%s2905_s0 + $0xc] ss:$36 sps:$4 sm:$0xff]   ;;  %v2106_v37 = vld [vmem:[%s2904_s1 + $0x1c0] sm:$0xff]   ;;  %v2111_v41 = vld [vmem:[%s2905_s0 + $0x54] ss:$36 sps:$4 sm:$0xff]  }
   0xe   :  { %1817 = vmatprep.subr.bf16.mxu1 %v2080_v13  ;;  %1178 = vmatprep.mubr.bf16.mxu1 %v2104_v35  ;;  %v2107_v38 = vld [vmem:[%s2904_s1 + $0x100] sm:$0xff]   ;;  %v2109_v40 = vld [vmem:[%s2905_s0 + $0x4c] ss:$36 sps:$4 sm:$0xff]   ;;  %v2119_v48 = vld [vmem:[%s2905_s0 + $0x94] ss:$36 sps:$4 sm:$0xff]  }
   0xf   :  { %v2108_v39 = vld [vmem:[%s2904_s1 + $0x180] sm:$0xff]   ;;  %v2113_v42 = vld [vmem:[%s2905_s0 + $0x48] ss:$36 sps:$4 sm:$0xff]   ;;  %v2114_v43 = vld [vmem:[%s2905_s0 + $0x50] ss:$36 sps:$4 sm:$0xff]  }
  0x10   :  { %1754 = vmatpush3.bf16.msra.mxu0 %v2081_v14  ;;  %v2115_v44 = vld [vmem:[%s2904_s1 + $0x148] sm:$0xff]   ;;  %v2121_v49 = vld [vmem:[%s2905_s0 + $0x9c] ss:$36 sps:$4 sm:$0xff]   ;;  %v2123_v50 = vld [vmem:[%s2905_s0 + $0x90] ss:$36 sps:$4 sm:$0xff]  }
  0x11   :  { %1818 = vmatpush3.bf16.msra.mxu1 %v2082_v15  ;;  %1755 = vmatprep.subr.bf16.mxu0 %v2083_v16  ;;  %v2116_v45 = vld [vmem:[%s2904_s1 + $0x1c8] sm:$0xff]   ;;  %v2124_v51 = vld [vmem:[%s2905_s0 + $0x98] ss:$36 sps:$4 sm:$0xff]   ;;  %v2125_v52 = vld [vmem:[%s2904_s1 + $0x150] sm:$0xff]  }
  0x12   :  { %1819 = vmatprep.subr.bf16.mxu1 %v2084_v17  ;;  %v2117_v46 = vld [vmem:[%s2904_s1 + $0x108] sm:$0xff]   ;;  %v2126_v53 = vld [vmem:[%s2904_s1 + $0x1d0] sm:$0xff]   ;;  %v2129_v56 = vld [vmem:[%s2905_s0 + $0xdc] ss:$36 sps:$4 sm:$0xff]  }
  0x13   :  { %v2118_v47 = vld [vmem:[%s2904_s1 + $0x188] sm:$0xff]   ;;  %v2127_v54 = vld [vmem:[%s2904_s1 + $0x110] sm:$0xff]   ;;  %v2133_v58 = vld [vmem:[%s2905_s0 + $0xd8] ss:$36 sps:$4 sm:$0xff]  }
  0x14   :  { %1756 = vmatpush3.bf16.msra.mxu0 %v2085_v18  ;;  %v2128_v55 = vld [vmem:[%s2904_s1 + $0x190] sm:$0xff]   ;;  %v2131_v57 = vld [vmem:[%s2905_s0 + $0xe4] ss:$36 sps:$4 sm:$0xff]   ;;  %v2135_v60 = vld [vmem:[%s2904_s1 + $0x158] sm:$0xff]  }
  0x15   :  { %1820 = vmatpush3.bf16.msra.mxu1 %v2086_v19  ;;  %1757 = vmatprep.subr.bf16.mxu0 %v2087_v20  ;;  %v2134_v59 = vld [vmem:[%s2905_s0 + $0xe0] ss:$36 sps:$4 sm:$0xff]   ;;  %v2136_v61 = vld [vmem:[%s2904_s1 + $0x1d8] sm:$0xff]   ;;  %v2141_v1 = vld [vmem:[%s2905_s0 + $0x12c] ss:$36 sps:$4 sm:$0xff]  }
  0x16   :  { %1821 = vmatprep.subr.bf16.mxu1 %v2088_v21  ;;  %v2137_v62 = vld [vmem:[%s2904_s1 + $0x118] sm:$0xff]   ;;  %v2139_v0 = vld [vmem:[%s2905_s0 + $0x124] ss:$36 sps:$4 sm:$0xff]   ;;  %v2149_v8 = vld [vmem:[%s2905_s0 + $0x16c] ss:$36 sps:$4 sm:$0xff]  }
  0x17   :  { %v2138_v63 = vld [vmem:[%s2904_s1 + $0x198] sm:$0xff]   ;;  %v2143_v2 = vld [vmem:[%s2905_s0 + $0x120] ss:$36 sps:$4 sm:$0xff]   ;;  %v2144_v4 = vld [vmem:[%s2905_s0 + $0x128] ss:$36 sps:$4 sm:$0xff]  }
  0x18   :  { %1758 = vmatpush3.bf16.msra.mxu0 %v2089_v22  ;;  %v2145_v3 = vld [vmem:[%s2904_s1 + $0x160] sm:$0xff]   ;;  %v2151_v9 = vld [vmem:[%s2905_s0 + $0x174] ss:$36 sps:$4 sm:$0xff]   ;;  %v2155_v10 = vld [vmem:[%s2904_s1 + $0x168] sm:$0xff]  }
  0x19   :  { %1822 = vmatpush3.bf16.msra.mxu1 %v2090_v23  ;;  %1759 = vmatprep.subr.bf16.mxu0 %v2091_v24  ;;  %v2146_v5 = vld [vmem:[%s2904_s1 + $0x1e0] sm:$0xff]   ;;  %v2156_v11 = vld [vmem:[%s2904_s1 + $0x1e8] sm:$0xff]   ;;  %v2154_v15 = vld [vmem:[%s2905_s0 + $0x170] ss:$36 sps:$4 sm:$0xff]  }
  0x1a   :  { %1823 = vmatprep.subr.bf16.mxu1 %v2092_v25  ;;  %v2147_v6 = vld [vmem:[%s2904_s1 + $0x120] sm:$0xff]   ;;  %v2153_v12 = vld [vmem:[%s2905_s0 + $0x168] ss:$36 sps:$4 sm:$0xff]   ;;  %v2159_v16 = vld [vmem:[%s2905_s0 + $0x1b4] ss:$36 sps:$4 sm:$0xff]  }
  0x1b   :  { %v2148_v7 = vld [vmem:[%s2904_s1 + $0x1a0] sm:$0xff]   ;;  %v2157_v13 = vld [vmem:[%s2904_s1 + $0x128] sm:$0xff]   ;;  %v2165_v18 = vld [vmem:[%s2904_s1 + $0x170] sm:$0xff]  }
  0x1c   :  { %1760 = vmatpush3.bf16.msra.mxu0 %v2093_v26  ;;  %v2158_v14 = vld [vmem:[%s2904_s1 + $0x1a8] sm:$0xff]   ;;  %v2161_v17 = vld [vmem:[%s2905_s0 + $0x1bc] ss:$36 sps:$4 sm:$0xff]   ;;  %v2166_v19 = vld [vmem:[%s2904_s1 + $0x1f0] sm:$0xff]  }
  0x1d   :  { %1824 = vmatpush3.bf16.msra.mxu1 %v2094_v27  ;;  %1761 = vmatprep.subr.bf16.mxu0 %v2095_v28  ;;  %v2167_v20 = vld [vmem:[%s2904_s1 + $0x130] sm:$0xff]   ;;  %v2164_v23 = vld [vmem:[%s2905_s0 + $0x1b8] ss:$36 sps:$4 sm:$0xff]   ;;  %v2171_v25 = vld [vmem:[%s2905_s0 + $0x204] ss:$36 sps:$4 sm:$0xff]  }
  0x1e   :  { %1825 = vmatprep.subr.bf16.mxu1 %v2096_v29  ;;  %v2168_v21 = vld [vmem:[%s2904_s1 + $0x1b0] sm:$0xff]   ;;  %v2169_v24 = vld [vmem:[%s2905_s0 + $0x1fc] ss:$36 sps:$4 sm:$0xff]  }
  0x1f   :  { %v2163_v22 = vld [vmem:[%s2905_s0 + $0x1b0] ss:$36 sps:$4 sm:$0xff]   ;;  %v2175_v26 = vld [vmem:[%s2904_s1 + $0x178] sm:$0xff]  }
  0x20   :  { %1762 = vmatpush3.bf16.msra.mxu0 %v2097_v30  ;;  %v2176_v27 = vld [vmem:[%s2904_s1 + $0x1f8] sm:$0xff]   ;;  %v2179_v35 = vld [vmem:[%s2905_s0 + $0x10] ss:$36 sps:$4 sm:$0xff]  }
  0x21   :  { %1826 = vmatpush3.bf16.msra.mxu1 %v2098_v31  ;;  %1875 = vmatprep.subr.bf16.mxu0 %v2105_v36  ;;  %v2177_v28 = vld [vmem:[%s2904_s1 + $0x138] sm:$0xff]   ;;  %v2174_v31 = vld [vmem:[%s2905_s0 + $0x200] ss:$36 sps:$4 sm:$0xff]  }
  0x22   :  { %1939 = vmatprep.subr.bf16.mxu1 %v2106_v37  ;;  %v2178_v29 = vld [vmem:[%s2904_s1 + $0x1b8] sm:$0xff]  }
  0x23   :  { %1082 = vmatmul.mubr.bf16.vlgmr.msra.gmra.mrb[0].mxu0 %v2099_v32  ;;  %v2173_v30 = vld [vmem:[%s2905_s0 + $0x1f8] ss:$36 sps:$4 sm:$0xff]   ;;  %v2185_v32 = vld [vmem:[%s2904_s1 + $0x200] sm:$0xff]  }
  0x24   :  { %1179 = vmatmul.mubr.bf16.vlgmr.msra.gmra.mrb[0].mxu1 %v2102_v34  ;;  %1876 = vmatpush3.bf16.msra.mxu0 %v2107_v38  ;;  %v2181_v33 = vld [vmem:[%s2905_s0 + $0x14] ss:$36 sps:$4 sm:$0xff]   ;;  %v2184_v34 = vld [vmem:[%s2905_s0 + $0x1c] ss:$36 sps:$4 sm:$0xff]   ;;  %v2188_v38 = vld [vmem:[%s2905_s0 + $0x64] ss:$36 sps:$4 sm:$0xff]  }
  0x25   :  { %1940 = vmatpush3.bf16.msra.mxu1 %v2108_v39  ;;  %1089 = vmatprep.mubr.bf16.mxu0 %v2109_v40  ;;  %v2182_v36 = vld [vmem:[%s2905_s0 + $0x18] ss:$36 sps:$4 sm:$0xff]   ;;  %v2192_v39 = vld [vmem:[%s2904_s1 + $0x208] sm:$0xff]   ;;  %v2199_v40 = vld [vmem:[%s2904_s1 + $0x210] sm:$0xff]  }
  0x26   :  { %1186 = vmatprep.mubr.bf16.mxu1 %v2111_v41  ;;  %1877 = vmatprep.subr.bf16.mxu0 %v2115_v44  ;;  %v2186_v37 = vld [vmem:[%s2905_s0 + $0x5c] ss:$36 sps:$4 sm:$0xff]   ;;  %v2195_v44 = vld [vmem:[%s2905_s0 + $0xac] ss:$36 sps:$4 sm:$0xff]  }
  0x27   :  { %1941 = vmatprep.subr.bf16.mxu1 %v2116_v45  ;;  %v2190_v41 = vld [vmem:[%s2905_s0 + $0x58] ss:$36 sps:$4 sm:$0xff]  }
  0x28   :  { %1878 = vmatpush3.bf16.msra.mxu0 %v2117_v46  ;;  %v2206_v45 = vld [vmem:[%s2904_s1 + $0x218] sm:$0xff]   ;;  %v2213_v46 = vld [vmem:[%s2904_s1 + $0x220] sm:$0xff]  }
  0x29   :  { %1942 = vmatpush3.bf16.msra.mxu1 %v2118_v47  ;;  %1879 = vmatprep.subr.bf16.mxu0 %v2125_v52  ;;  %v2197_v47 = vld [vmem:[%s2905_s0 + $0xa0] ss:$36 sps:$4 sm:$0xff]   ;;  %v2204_v52 = vld [vmem:[%s2905_s0 + $0xe8] ss:$36 sps:$4 sm:$0xff]  }
  0x2a   :  { %1943 = vmatprep.subr.bf16.mxu1 %v2126_v53  ;;  %v2227_v53 = vld [vmem:[%s2904_s1 + $0x230] sm:$0xff]  }
  0x2b   :  { %1090 = vmatmul.mubr.bf16.gmra.mrb[4].mxu0 %v2113_v42  ;;  %v2191_v42 = vld [vmem:[%s2905_s0 + $0x60] ss:$36 sps:$4 sm:$0xff]  }
  0x2c   :  { %1187 = vmatmul.mubr.bf16.gmra.mrb[4].mxu1 %v2114_v43  ;;  %1097 = vmatprep.mubr.bf16.mxu0 %v2119_v48  ;;  %v2193_v43 = vld [vmem:[%s2905_s0 + $0xa4] ss:$36 sps:$4 sm:$0xff]  }
  0x2d   :  { %1194 = vmatprep.mubr.bf16.mxu1 %v2121_v49  ;;  %1880 = vmatpush3.bf16.msra.mxu0 %v2127_v54  ;;  %v2198_v48 = vld [vmem:[%s2905_s0 + $0xa8] ss:$36 sps:$4 sm:$0xff]   ;;  %v2205_v54 = vld [vmem:[%s2905_s0 + $0xf0] ss:$36 sps:$4 sm:$0xff]  }
  0x2e   :  { %1944 = vmatpush3.bf16.msra.mxu1 %v2128_v55  ;;  %1881 = vmatprep.subr.bf16.mxu0 %v2135_v60  ;;  %v2200_v49 = vld [vmem:[%s2905_s0 + $0xec] ss:$36 sps:$4 sm:$0xff]   ;;  %v2207_v55 = vld [vmem:[%s2905_s0 + $0x134] ss:$36 sps:$4 sm:$0xff]   ;;  %v2214_v60 = vld [vmem:[%s2905_s0 + $0x17c] ss:$36 sps:$4 sm:$0xff]  }
  0x2f   :  { %1945 = vmatprep.subr.bf16.mxu1 %v2136_v61  ;;  %v2216_v61 = vld [vmem:[%s2905_s0 + $0x184] ss:$36 sps:$4 sm:$0xff]  }
  0x31   :  { %1882 = vmatpush3.bf16.msra.mxu0 %v2137_v62  ;;  %v2218_v62 = vld [vmem:[%s2905_s0 + $0x178] ss:$36 sps:$4 sm:$0xff]  }
  0x32   :  { %1946 = vmatpush3.bf16.msra.mxu1 %v2138_v63  ;;  %1883 = vmatprep.subr.bf16.mxu0 %v2145_v3  ;;  %v2219_v63 = vld [vmem:[%s2905_s0 + $0x180] ss:$36 sps:$4 sm:$0xff]   ;;  %v2226_v3 = vld [vmem:[%s2905_s0 + $0x1c8] ss:$36 sps:$4 sm:$0xff]  }
  0x33   :  { %1098 = vmatmul.mubr.bf16.gmra.mrb[8].mxu0 %v2123_v50  ;;  %1947 = vmatprep.subr.bf16.mxu1 %v2146_v5  ;;  %v2202_v50 = vld [vmem:[%s2905_s0 + $0xf4] ss:$36 sps:$4 sm:$0xff]  }
  0x34   :  { %1195 = vmatmul.mubr.bf16.gmra.mrb[8].mxu1 %v2124_v51  ;;  %1105 = vmatprep.mubr.bf16.mxu0 %v2129_v56  ;;  %v2220_v51 = vld [vmem:[%s2904_s1 + $0x228] sm:$0xff]   ;;  %v2209_v56 = vld [vmem:[%s2905_s0 + $0x13c] ss:$36 sps:$4 sm:$0xff]   ;;  %v2230_v5 = vld [vmem:[%s2905_s0 + $0x214] ss:$36 sps:$4 sm:$0xff]  }
  0x35   :  { %1202 = vmatprep.mubr.bf16.mxu1 %v2131_v57  ;;  %1884 = vmatpush3.bf16.msra.mxu0 %v2147_v6  ;;  %v2234_v57 = vld [vmem:[%s2904_s1 + $0x238] sm:$0xff]   ;;  %v2232_v6 = vld [vmem:[%s2905_s0 + $0x208] ss:$36 sps:$4 sm:$0xff]  }
  0x36   :  { %1948 = vmatpush3.bf16.msra.mxu1 %v2148_v7  ;;  %1885 = vmatprep.subr.bf16.mxu0 %v2155_v10  ;;  %v2233_v7 = vld [vmem:[%s2905_s0 + $0x210] ss:$36 sps:$4 sm:$0xff]   ;;  %v2237_v10 = vld [vmem:[%s2905_s0 + $0x68] ss:$36 sps:$4 sm:$0xff]  }
  0x37   :  { %1949 = vmatprep.subr.bf16.mxu1 %v2156_v11  ;;  %v2238_v11 = vld [vmem:[%s2905_s0 + $0x188] ss:$36 sps:$4 sm:$0xff]  }
  0x39   :  { %1886 = vmatpush3.bf16.msra.mxu0 %v2157_v13  ;;  %v2240_v13 = vld [vmem:[%s2905_s0 + $0x1d0] ss:$36 sps:$4 sm:$0xff]  }
  0x3a   :  { %1950 = vmatpush3.bf16.msra.mxu1 %v2158_v14  ;;  %1887 = vmatprep.subr.bf16.mxu0 %v2165_v18  ;;  %v2241_v14 = vld [vmem:[%s2905_s0 + $0xf8] ss:$36 sps:$4 sm:$0xff]   ;;  %v2703_v18 = vld [vmem:[%s2906_s2] ss:$0 sm:$0xff] }
  0x3b   :  { %1106 = vmatmul.mubr.bf16.gmra.mrb[12].mxu0 %v2133_v58  ;;  %1951 = vmatprep.subr.bf16.mxu1 %v2166_v19  ;;  %v2211_v58 = vld [vmem:[%s2905_s0 + $0x130] ss:$36 sps:$4 sm:$0xff]  }
  0x3c   :  { %1203 = vmatmul.mubr.bf16.gmra.mrb[12].mxu1 %v2134_v59  ;;  %1113 = vmatprep.mubr.bf16.mxu0 %v2139_v0  ;;  %v2212_v59 = vld [vmem:[%s2905_s0 + $0x138] ss:$36 sps:$4 sm:$0xff]   ;;  %v2221_v0 = vld [vmem:[%s2905_s0 + $0x1c4] ss:$36 sps:$4 sm:$0xff]  }
  0x3d   :  { %1210 = vmatprep.mubr.bf16.mxu1 %v2141_v1  ;;  %1888 = vmatpush3.bf16.msra.mxu0 %v2167_v20  ;;  %v2223_v1 = vld [vmem:[%s2905_s0 + $0x1cc] ss:$36 sps:$4 sm:$0xff]  }
  0x3e   :  { %1952 = vmatpush3.bf16.msra.mxu1 %v2168_v21  ;;  %1889 = vmatprep.subr.bf16.mxu0 %v2175_v26 }
  0x3f   :  { %1953 = vmatprep.subr.bf16.mxu1 %v2176_v27 }
  0x41   :  { %1890 = vmatpush3.bf16.msra.mxu0 %v2177_v28 }
  0x42   :  { %1954 = vmatpush3.bf16.msra.mxu1 %v2178_v29  ;;  %2019 = vmatprep.subr.bf16.mxu0 %v2185_v32 }
  0x43   :  { %1114 = vmatmul.mubr.bf16.gmra.mrb[16].mxu0 %v2143_v2  ;;  %2051 = vmatprep.subr.bf16.mxu1 %v2185_v32  ;;  %v2225_v2 = vld [vmem:[%s2905_s0 + $0x1c0] ss:$36 sps:$4 sm:$0xff]  }
  0x44   :  { %1211 = vmatmul.mubr.bf16.gmra.mrb[16].mxu1 %v2144_v4  ;;  %1121 = vmatprep.mubr.bf16.mxu0 %v2149_v8  ;;  %v2228_v4 = vld [vmem:[%s2905_s0 + $0x20c] ss:$36 sps:$4 sm:$0xff]   ;;  %v2235_v8 = vld [vmem:[%s2905_s0 + $0x20] ss:$36 sps:$4 sm:$0xff]  }
  0x45   :  { %1218 = vmatprep.mubr.bf16.mxu1 %v2151_v9  ;;  %v2236_v9 = vld [vmem:[%s2905_s0 + $0x140] ss:$36 sps:$4 sm:$0xff]  }
  0x4b   :  { %1122 = vmatmul.mubr.bf16.gmra.mrb[20].mxu0 %v2153_v12  ;;  %v2239_v12 = vld [vmem:[%s2905_s0 + $0xb0] ss:$36 sps:$4 sm:$0xff]  }
  0x4c   :  { %1219 = vmatmul.mubr.bf16.gmra.mrb[20].mxu1 %v2154_v15  ;;  %1129 = vmatprep.mubr.bf16.mxu0 %v2159_v16  ;;  %v2242_v15 = vld [vmem:[%s2905_s0 + $0x218] ss:$36 sps:$4 sm:$0xff]  }
  0x4d   :  { %1226 = vmatprep.mubr.bf16.mxu1 %v2161_v17 }
  0x53   :  { %1130 = vmatmul.mubr.bf16.gmra.mrb[24].mxu0 %v2163_v22 }
  0x54   :  { %1227 = vmatmul.mubr.bf16.gmra.mrb[24].mxu1 %v2164_v23  ;;  %1137 = vmatprep.mubr.bf16.mxu0 %v2169_v24 }
  0x55   :  { %1234 = vmatprep.mubr.bf16.mxu1 %v2171_v25 }
  0x5b   :  { %1138 = vmatmul.mubr.bf16.gmra.mrb[28].mxu0 %v2173_v30 }
  0x5c   :  { %1235 = vmatmul.mubr.bf16.gmra.mrb[28].mxu1 %v2174_v31  ;;  %1275 = vmatprep.mubr.bf16.mxu0 %v2181_v33 }
  0x5d   :  { %1372 = vmatprep.mubr.bf16.mxu1 %v2184_v34 }
  0x63   :  { %1276 = vmatmul.mubr.bf16.vlgmr.msra.gmra.mrb[32].mxu0 %v2179_v35 }
  0x64   :  { %1373 = vmatmul.mubr.bf16.vlgmr.msra.gmra.mrb[32].mxu1 %v2182_v36  ;;  %2020 = vmatpush3.bf16.msra.mxu0 %v2185_v32 }
  0x65   :  { %2059 = vmatpush3.bf16.msra.mxu1 %v2185_v32  ;;  %1283 = vmatprep.mubr.bf16.mxu0 %v2186_v37 }
  0x66   :  { %1380 = vmatprep.mubr.bf16.mxu1 %v2188_v38  ;;  %2021 = vmatprep.subr.bf16.mxu0 %v2192_v39 }
  0x67   :  { %2052 = vmatprep.subr.bf16.mxu1 %v2192_v39 }
  0x68   :  { %2022 = vmatpush3.bf16.msra.mxu0 %v2192_v39 }
  0x69   :  { %2060 = vmatpush3.bf16.msra.mxu1 %v2192_v39  ;;  %2023 = vmatprep.subr.bf16.mxu0 %v2199_v40 }
  0x6a   :  { %2053 = vmatprep.subr.bf16.mxu1 %v2199_v40 }
  0x6b   :  { %1284 = vmatmul.mubr.bf16.gmra.mrb[36].mxu0 %v2190_v41 }
  0x6c   :  { %1381 = vmatmul.mubr.bf16.gmra.mrb[36].mxu1 %v2191_v42  ;;  %1291 = vmatprep.mubr.bf16.mxu0 %v2193_v43 }
  0x6d   :  { %1388 = vmatprep.mubr.bf16.mxu1 %v2195_v44  ;;  %2024 = vmatpush3.bf16.msra.mxu0 %v2199_v40 }
  0x6e   :  { %2061 = vmatpush3.bf16.msra.mxu1 %v2199_v40  ;;  %2025 = vmatprep.subr.bf16.mxu0 %v2206_v45 }
  0x6f   :  { %2054 = vmatprep.subr.bf16.mxu1 %v2206_v45 }
  0x71   :  { %2026 = vmatpush3.bf16.msra.mxu0 %v2206_v45 }
  0x72   :  { %2062 = vmatpush3.bf16.msra.mxu1 %v2206_v45  ;;  %2027 = vmatprep.subr.bf16.mxu0 %v2213_v46 }
  0x73   :  { %1292 = vmatmul.mubr.bf16.gmra.mrb[40].mxu0 %v2197_v47  ;;  %2055 = vmatprep.subr.bf16.mxu1 %v2213_v46 }
  0x74   :  { %1389 = vmatmul.mubr.bf16.gmra.mrb[40].mxu1 %v2198_v48  ;;  %1299 = vmatprep.mubr.bf16.mxu0 %v2200_v49 }
  0x75   :  { %1396 = vmatprep.mubr.bf16.mxu1 %v2202_v50  ;;  %2028 = vmatpush3.bf16.msra.mxu0 %v2213_v46 }
  0x76   :  { %2063 = vmatpush3.bf16.msra.mxu1 %v2213_v46  ;;  %2029 = vmatprep.subr.bf16.mxu0 %v2220_v51 }
  0x77   :  { %2056 = vmatprep.subr.bf16.mxu1 %v2220_v51 }
  0x79   :  { %2030 = vmatpush3.bf16.msra.mxu0 %v2220_v51 }
  0x7a   :  { %2064 = vmatpush3.bf16.msra.mxu1 %v2220_v51  ;;  %2031 = vmatprep.subr.bf16.mxu0 %v2227_v53 }
  0x7b   :  { %1300 = vmatmul.mubr.bf16.gmra.mrb[44].mxu0 %v2204_v52  ;;  %2057 = vmatprep.subr.bf16.mxu1 %v2227_v53 }
  0x7c   :  { %1397 = vmatmul.mubr.bf16.gmra.mrb[44].mxu1 %v2205_v54  ;;  %1307 = vmatprep.mubr.bf16.mxu0 %v2207_v55 }
  0x7d   :  { %1404 = vmatprep.mubr.bf16.mxu1 %v2209_v56  ;;  %2032 = vmatpush3.bf16.msra.mxu0 %v2227_v53 }
  0x7e   :  { %2065 = vmatpush3.bf16.msra.mxu1 %v2227_v53  ;;  %2033 = vmatprep.subr.bf16.mxu0 %v2234_v57 }
  0x7f   :  { %2058 = vmatprep.subr.bf16.mxu1 %v2234_v57 }
  0x81   :  { %2034 = vmatpush3.bf16.msra.mxu0 %v2234_v57 }
  0x82   :  { %2066 = vmatpush3.bf16.msra.mxu1 %v2234_v57 }
  0x83   :  { %1308 = vmatmul.mubr.bf16.gmra.mrb[48].mxu0 %v2211_v58 }
  0x84   :  { %1405 = vmatmul.mubr.bf16.gmra.mrb[48].mxu1 %v2212_v59  ;;  %1315 = vmatprep.mubr.bf16.mxu0 %v2214_v60 }
  0x85   :  { %1412 = vmatprep.mubr.bf16.mxu1 %v2216_v61 }
  0x8b   :  { %1316 = vmatmul.mubr.bf16.gmra.mrb[52].mxu0 %v2218_v62 }
  0x8c   :  { %1413 = vmatmul.mubr.bf16.gmra.mrb[52].mxu1 %v2219_v63  ;;  %1323 = vmatprep.mubr.bf16.mxu0 %v2221_v0 }
  0x8d   :  { %1420 = vmatprep.mubr.bf16.mxu1 %v2223_v1 }
  0x93   :  { %1324 = vmatmul.mubr.bf16.gmra.mrb[56].mxu0 %v2225_v2 }
  0x94   :  { %1421 = vmatmul.mubr.bf16.gmra.mrb[56].mxu1 %v2226_v3  ;;  %1331 = vmatprep.mubr.bf16.mxu0 %v2228_v4 }
  0x95   :  { %1428 = vmatprep.mubr.bf16.mxu1 %v2230_v5 }
  0x9b   :  { %1332 = vmatmul.mubr.bf16.gmra.mrb[60].mxu0 %v2232_v6 }
  0x9c   :  { %1429 = vmatmul.mubr.bf16.gmra.mrb[60].mxu1 %v2233_v7  ;;  %2035 = vmatprep.mubr.bf16.mxu0 %v2235_v8 }
  0x9d   :  { %2043 = vmatprep.mubr.bf16.mxu1 %v2236_v9 }
  0xa3   :  { %2036 = vmatmul.mubr.bf16.vlgmr.msra.gmra.mrb[64].mxu0 %v2237_v10 }
  0xa4   :  { %2044 = vmatmul.mubr.bf16.vlgmr.msra.gmra.mrb[64].mxu1 %v2238_v11  ;;  %2039 = vmatprep.mubr.bf16.mxu0 %v2239_v12 }
  0xa5   :  { %2047 = vmatprep.mubr.bf16.mxu1 %v2240_v13 }
  0xab   :  { %2040 = vmatmul.mubr.bf16.gmra.mrb[68].mxu0 %v2241_v14 }
  0xac   :  { %2048 = vmatmul.mubr.bf16.gmra.mrb[68].mxu1 %v2242_v15 }
  0xf6   :  { %v1763_v16 = vpop.f32.mrb[0].mxu0 }
  0xf7   :  { %v1827_v17 = vpop.f32.mrb[0].mxu1  ;;  %v1764_v19 = vpop.f32.mrb[1].mxu0 }
  0xf8   :  { %v1765_v20 = vadd.f32 %v1764_v19, %v1763_v16  ;;  %v1828_v21 = vpop.f32.mrb[1].mxu1  ;;  %v1766_v22 = vpop.f32.mrb[2].mxu0 }
  0xf9   :  { %v1829_v23 = vadd.f32 %v1828_v21, %v1827_v17  ;;  %v1830_v24 = vpop.f32.mrb[2].mxu1  ;;  %v1767_v25 = vpop.f32.mrb[3].mxu0 }
  0xfa   :  { %v1084_v26 = vadd.f32 %v1765_v20, %v2703_v18  ;;  %v1768_v27 = vadd.f32 %v1767_v25, %v1766_v22  ;;  %v1831_v28 = vpop.f32.mrb[3].mxu1 }
  0xfb   :  { %v1832_v29 = vadd.f32 %v1831_v28, %v1830_v24 }
  0xfc   :  { %v2706_v30 = vadd.f32 %v1829_v23, %v1084_v26  ;;  %v1087_v31 = vadd.f32 %v1768_v27, %v2703_v18 }
  0xfe   :  { %v2709_v32 = vadd.f32 %v1832_v29, %v1087_v31  ;;  %v1769_v33 = vpop.f32.mrb[4].mxu0 }
  0xff   :  { %v1833_v34 = vpop.f32.mrb[4].mxu1  ;;  %v1770_v35 = vpop.f32.mrb[5].mxu0 }
 0x100   :  { %v1771_v36 = vadd.f32 %v1770_v35, %v1769_v33  ;;  %v1834_v37 = vpop.f32.mrb[5].mxu1  ;;  %v1772_v38 = vpop.f32.mrb[6].mxu0 }
 0x101   :  { %v1835_v39 = vadd.f32 %v1834_v37, %v1833_v34  ;;  %v1836_v40 = vpop.f32.mrb[6].mxu1  ;;  %v1773_v41 = vpop.f32.mrb[7].mxu0 }
 0x102   :  { %v1092_v42 = vadd.f32 %v1771_v36, %v2703_v18  ;;  %v1774_v43 = vadd.f32 %v1773_v41, %v1772_v38  ;;  %v1837_v44 = vpop.f32.mrb[7].mxu1 }
 0x103   :  { %v1838_v45 = vadd.f32 %v1837_v44, %v1836_v40 }
 0x104   :  { %v2712_v46 = vadd.f32 %v1835_v39, %v1092_v42  ;;  %v1095_v47 = vadd.f32 %v1774_v43, %v2703_v18 }
 0x106   :  { %v2715_v48 = vadd.f32 %v1838_v45, %v1095_v47  ;;  %v1775_v49 = vpop.f32.mrb[8].mxu0 }
 0x107   :  { %v1839_v50 = vpop.f32.mrb[8].mxu1  ;;  %v1776_v51 = vpop.f32.mrb[9].mxu0 }
 0x108   :  { %v1777_v52 = vadd.f32 %v1776_v51, %v1775_v49  ;;  %v1840_v53 = vpop.f32.mrb[9].mxu1  ;;  %v1778_v54 = vpop.f32.mrb[10].mxu0 }
 0x109   :  { %v1841_v55 = vadd.f32 %v1840_v53, %v1839_v50  ;;  %v1842_v56 = vpop.f32.mrb[10].mxu1  ;;  %v1779_v57 = vpop.f32.mrb[11].mxu0 }
 0x10a   :  { %v1100_v58 = vadd.f32 %v1777_v52, %v2703_v18  ;;  %v1780_v59 = vadd.f32 %v1779_v57, %v1778_v54  ;;  %v1843_v60 = vpop.f32.mrb[11].mxu1 }
 0x10b   :  { %v1844_v61 = vadd.f32 %v1843_v60, %v1842_v56 }
 0x10c   :  { %v2718_v62 = vadd.f32 %v1841_v55, %v1100_v58  ;;  %v1103_v63 = vadd.f32 %v1780_v59, %v2703_v18 }
 0x10e   :  { %v2721_v0 = vadd.f32 %v1844_v61, %v1103_v63  ;;  %v1781_v1 = vpop.f32.mrb[12].mxu0 }
 0x10f   :  { %v1845_v2 = vpop.f32.mrb[12].mxu1  ;;  %v1782_v3 = vpop.f32.mrb[13].mxu0 }
 0x110   :  { %v1783_v4 = vadd.f32 %v1782_v3, %v1781_v1  ;;  %v1846_v5 = vpop.f32.mrb[13].mxu1  ;;  %v1784_v6 = vpop.f32.mrb[14].mxu0 }
 0x111   :  { %v1847_v7 = vadd.f32 %v1846_v5, %v1845_v2  ;;  %v1848_v8 = vpop.f32.mrb[14].mxu1  ;;  %v1785_v9 = vpop.f32.mrb[15].mxu0 }
 0x112   :  { %v1108_v10 = vadd.f32 %v1783_v4, %v2703_v18  ;;  %v1786_v11 = vadd.f32 %v1785_v9, %v1784_v6  ;;  %v1849_v12 = vpop.f32.mrb[15].mxu1 }
 0x113   :  { %v1850_v13 = vadd.f32 %v1849_v12, %v1848_v8 }
 0x114   :  { %v2724_v14 = vadd.f32 %v1847_v7, %v1108_v10  ;;  %v1111_v15 = vadd.f32 %v1786_v11, %v2703_v18 }
 0x116   :  { %v2727_v16 = vadd.f32 %v1850_v13, %v1111_v15  ;;  %v1787_v17 = vpop.f32.mrb[16].mxu0 }
 0x117   :  { %v1851_v19 = vpop.f32.mrb[16].mxu1  ;;  %v1788_v20 = vpop.f32.mrb[17].mxu0 }
 0x118   :  { %v1789_v21 = vadd.f32 %v1788_v20, %v1787_v17  ;;  %v1852_v22 = vpop.f32.mrb[17].mxu1  ;;  %v1790_v23 = vpop.f32.mrb[18].mxu0 }
 0x119   :  { %v1853_v24 = vadd.f32 %v1852_v22, %v1851_v19  ;;  %v1854_v25 = vpop.f32.mrb[18].mxu1  ;;  %v1791_v26 = vpop.f32.mrb[19].mxu0 }
 0x11a   :  { %v1116_v27 = vadd.f32 %v1789_v21, %v2703_v18  ;;  %v1792_v28 = vadd.f32 %v1791_v26, %v1790_v23  ;;  %v1855_v29 = vpop.f32.mrb[19].mxu1 }
 0x11b   :  { %v1856_v31 = vadd.f32 %v1855_v29, %v1854_v25 }
 0x11c   :  { %v2730_v33 = vadd.f32 %v1853_v24, %v1116_v27  ;;  %v1119_v34 = vadd.f32 %v1792_v28, %v2703_v18 }
 0x11e   :  { %v2733_v35 = vadd.f32 %v1856_v31, %v1119_v34  ;;  %v1793_v36 = vpop.f32.mrb[20].mxu0 }
 0x11f   :  { %v1857_v37 = vpop.f32.mrb[20].mxu1  ;;  %v1794_v38 = vpop.f32.mrb[21].mxu0 }
 0x120   :  { %v1795_v39 = vadd.f32 %v1794_v38, %v1793_v36  ;;  %v1858_v40 = vpop.f32.mrb[21].mxu1  ;;  %v1796_v41 = vpop.f32.mrb[22].mxu0 }
 0x121   :  { %v1859_v42 = vadd.f32 %v1858_v40, %v1857_v37  ;;  %v1860_v43 = vpop.f32.mrb[22].mxu1  ;;  %v1797_v44 = vpop.f32.mrb[23].mxu0 }
 0x122   :  { %v1124_v45 = vadd.f32 %v1795_v39, %v2703_v18  ;;  %v1798_v47 = vadd.f32 %v1797_v44, %v1796_v41  ;;  %v1861_v49 = vpop.f32.mrb[23].mxu1 }
 0x123   :  { %v1862_v50 = vadd.f32 %v1861_v49, %v1860_v43 }
 0x124   :  { %v2736_v51 = vadd.f32 %v1859_v42, %v1124_v45  ;;  %v1127_v52 = vadd.f32 %v1798_v47, %v2703_v18 }
 0x126   :  { %v2739_v53 = vadd.f32 %v1862_v50, %v1127_v52  ;;  %v1799_v54 = vpop.f32.mrb[24].mxu0 }
 0x127   :  { %v1863_v55 = vpop.f32.mrb[24].mxu1  ;;  %v1800_v56 = vpop.f32.mrb[25].mxu0 }
 0x128   :  { %v1801_v57 = vadd.f32 %v1800_v56, %v1799_v54  ;;  %v1864_v58 = vpop.f32.mrb[25].mxu1  ;;  %v1802_v59 = vpop.f32.mrb[26].mxu0 }
 0x129   :  { %v1865_v60 = vadd.f32 %v1864_v58, %v1863_v55  ;;  %v1866_v61 = vpop.f32.mrb[26].mxu1  ;;  %v1803_v63 = vpop.f32.mrb[27].mxu0 }
 0x12a   :  { %v1132_v1 = vadd.f32 %v1801_v57, %v2703_v18  ;;  %v1804_v2 = vadd.f32 %v1803_v63, %v1802_v59  ;;  %v1867_v3 = vpop.f32.mrb[27].mxu1 }
 0x12b   :  { %v1868_v4 = vadd.f32 %v1867_v3, %v1866_v61 }
 0x12c   :  { %v2742_v5 = vadd.f32 %v1865_v60, %v1132_v1  ;;  %v1135_v6 = vadd.f32 %v1804_v2, %v2703_v18 }
 0x12e   :  { %v2745_v7 = vadd.f32 %v1868_v4, %v1135_v6  ;;  %v1805_v8 = vpop.f32.mrb[28].mxu0 }
 0x12f   :  { %v1869_v9 = vpop.f32.mrb[28].mxu1  ;;  %v1806_v10 = vpop.f32.mrb[29].mxu0 }
 0x130   :  { %v1807_v11 = vadd.f32 %v1806_v10, %v1805_v8  ;;  %v1870_v12 = vpop.f32.mrb[29].mxu1  ;;  %v1808_v13 = vpop.f32.mrb[30].mxu0 }
 0x131   :  { %v1871_v15 = vadd.f32 %v1870_v12, %v1869_v9  ;;  %v1872_v17 = vpop.f32.mrb[30].mxu1  ;;  %v1809_v19 = vpop.f32.mrb[31].mxu0 }
 0x132   :  { %v1140_v20 = vadd.f32 %v1807_v11, %v2703_v18  ;;  %v1810_v21 = vadd.f32 %v1809_v19, %v1808_v13  ;;  %v1873_v22 = vpop.f32.mrb[31].mxu1 }
 0x133   :  { %v1874_v23 = vadd.f32 %v1873_v22, %v1872_v17 }
 0x134   :  { %v2748_v24 = vadd.f32 %v1871_v15, %v1140_v20  ;;  %v1143_v25 = vadd.f32 %v1810_v21, %v2703_v18 }
 0x136   :  { %v2751_v26 = vadd.f32 %v1874_v23, %v1143_v25  ;;  %v1891_v27 = vpop.f32.mrb[32].mxu0 }
 0x137   :  { %v1955_v28 = vpop.f32.mrb[32].mxu1  ;;  %v1892_v29 = vpop.f32.mrb[33].mxu0 }
 0x138   :  { %v1893_v31 = vadd.f32 %v1892_v29, %v1891_v27  ;;  %v1956_v34 = vpop.f32.mrb[33].mxu1  ;;  %v1894_v36 = vpop.f32.mrb[34].mxu0 }
 0x139   :  { %v1957_v37 = vadd.f32 %v1956_v34, %v1955_v28  ;;  %v1958_v38 = vpop.f32.mrb[34].mxu1  ;;  %v1895_v39 = vpop.f32.mrb[35].mxu0 }
 0x13a   :  { %v1278_v40 = vadd.f32 %v1893_v31, %v2706_v30  ;;  %v1896_v41 = vadd.f32 %v1895_v39, %v1894_v36  ;;  %v1959_v42 = vpop.f32.mrb[35].mxu1 }
 0x13b   :  { %v1960_v43 = vadd.f32 %v1959_v42, %v1958_v38 }
 0x13c   :  { %v1281_v44 = vadd.f32 %v1896_v41, %v2709_v32  ;;  %v2755_v45 = vadd.f32 %v1957_v37, %v1278_v40 }
 0x13e   :  { %v1897_v18 = vpop.f32.mrb[36].mxu0  ;;  %v2757_v47 = vadd.f32 %v1960_v43, %v1281_v44 }
 0x13f   :  { %v1961_v49 = vpop.f32.mrb[36].mxu1  ;;  %v1898_v50 = vpop.f32.mrb[37].mxu0 }
 0x140   :  { %v1899_v52 = vadd.f32 %v1898_v50, %v1897_v18  ;;  %v1962_v54 = vpop.f32.mrb[37].mxu1  ;;  %v1900_v55 = vpop.f32.mrb[38].mxu0 }
 0x141   :  { %v1963_v56 = vadd.f32 %v1962_v54, %v1961_v49  ;;  %v1964_v57 = vpop.f32.mrb[38].mxu1  ;;  %v1901_v58 = vpop.f32.mrb[39].mxu0 }
 0x142   :  { %v1286_v30 = vadd.f32 %v1899_v52, %v2712_v46  ;;  %v1902_v59 = vadd.f32 %v1901_v58, %v1900_v55  ;;  %v1965_v60 = vpop.f32.mrb[39].mxu1 }
 0x143   :  { %v1966_v61 = vadd.f32 %v1965_v60, %v1964_v57 }
 0x144   :  { %v1289_v32 = vadd.f32 %v1902_v59, %v2715_v48  ;;  %v2761_v63 = vadd.f32 %v1963_v56, %v1286_v30 }
 0x146   :  { %v1903_v1 = vpop.f32.mrb[40].mxu0  ;;  %v2763_v2 = vadd.f32 %v1966_v61, %v1289_v32 }
 0x147   :  { %v1967_v3 = vpop.f32.mrb[40].mxu1  ;;  %v1904_v4 = vpop.f32.mrb[41].mxu0 }
 0x148   :  { %v1905_v6 = vadd.f32 %v1904_v4, %v1903_v1  ;;  %v1968_v8 = vpop.f32.mrb[41].mxu1  ;;  %v1906_v9 = vpop.f32.mrb[42].mxu0 }
 0x149   :  { %v1969_v10 = vadd.f32 %v1968_v8, %v1967_v3  ;;  %v1970_v11 = vpop.f32.mrb[42].mxu1  ;;  %v1907_v12 = vpop.f32.mrb[43].mxu0 }
 0x14a   :  { %v1294_v46 = vadd.f32 %v1905_v6, %v2718_v62  ;;  %v1908_v13 = vadd.f32 %v1907_v12, %v1906_v9  ;;  %v1971_v15 = vpop.f32.mrb[43].mxu1 }
 0x14b   :  { %v1972_v17 = vadd.f32 %v1971_v15, %v1970_v11 }
 0x14c   :  { %v1297_v48 = vadd.f32 %v1908_v13, %v2721_v0  ;;  %v2767_v19 = vadd.f32 %v1969_v10, %v1294_v46 }
 0x14e   :  { %v1909_v20 = vpop.f32.mrb[44].mxu0  ;;  %v2769_v21 = vadd.f32 %v1972_v17, %v1297_v48 }
 0x14f   :  { %v1973_v22 = vpop.f32.mrb[44].mxu1  ;;  %v1910_v23 = vpop.f32.mrb[45].mxu0 }
 0x150   :  { %v1911_v25 = vadd.f32 %v1910_v23, %v1909_v20  ;;  %v1974_v27 = vpop.f32.mrb[45].mxu1  ;;  %v1912_v28 = vpop.f32.mrb[46].mxu0 }
 0x151   :  { %v1975_v29 = vadd.f32 %v1974_v27, %v1973_v22  ;;  %v1976_v31 = vpop.f32.mrb[46].mxu1  ;;  %v1913_v34 = vpop.f32.mrb[47].mxu0 }
 0x152   :  { %v1302_v62 = vadd.f32 %v1911_v25, %v2724_v14  ;;  %v1914_v36 = vadd.f32 %v1913_v34, %v1912_v28  ;;  %v1977_v37 = vpop.f32.mrb[47].mxu1 }
 0x153   :  { %v1978_v38 = vadd.f32 %v1977_v37, %v1976_v31 }
 0x154   :  { %v1305_v0 = vadd.f32 %v1914_v36, %v2727_v16  ;;  %v2773_v39 = vadd.f32 %v1975_v29, %v1302_v62 }
 0x156   :  { %v1915_v40 = vpop.f32.mrb[48].mxu0  ;;  %v2775_v41 = vadd.f32 %v1978_v38, %v1305_v0 }
 0x157   :  { %v1979_v42 = vpop.f32.mrb[48].mxu1  ;;  %v1916_v43 = vpop.f32.mrb[49].mxu0 }
 0x158   :  { %v1917_v44 = vadd.f32 %v1916_v43, %v1915_v40  ;;  %v1980_v18 = vpop.f32.mrb[49].mxu1  ;;  %v1918_v49 = vpop.f32.mrb[50].mxu0 }
 0x159   :  { %v1981_v50 = vadd.f32 %v1980_v18, %v1979_v42  ;;  %v1982_v52 = vpop.f32.mrb[50].mxu1  ;;  %v1919_v54 = vpop.f32.mrb[51].mxu0 }
 0x15a   :  { %v1310_v14 = vadd.f32 %v1917_v44, %v2730_v33  ;;  %v1920_v55 = vadd.f32 %v1919_v54, %v1918_v49  ;;  %v1983_v56 = vpop.f32.mrb[51].mxu1 }
 0x15b   :  { %v1984_v57 = vadd.f32 %v1983_v56, %v1982_v52 }
 0x15c   :  { %v1313_v16 = vadd.f32 %v1920_v55, %v2733_v35  ;;  %v2779_v58 = vadd.f32 %v1981_v50, %v1310_v14  ;;  %v1536_v55 = vld [vmem:[%s2907_s3 + $0x10] sm:$0xff] }
 0x15e   :  { %v1921_v30 = vpop.f32.mrb[52].mxu0  ;;  %v2781_v59 = vadd.f32 %v1984_v57, %v1313_v16 }
 0x15f   :  { %v1985_v60 = vpop.f32.mrb[52].mxu1  ;;  %v1922_v61 = vpop.f32.mrb[53].mxu0 }
 0x160   :  { %v1923_v32 = vadd.f32 %v1922_v61, %v1921_v30  ;;  %v1986_v1 = vpop.f32.mrb[53].mxu1  ;;  %v1924_v3 = vpop.f32.mrb[54].mxu0 }
 0x161   :  { %v1987_v4 = vadd.f32 %v1986_v1, %v1985_v60  ;;  %v1988_v6 = vpop.f32.mrb[54].mxu1  ;;  %v1925_v8 = vpop.f32.mrb[55].mxu0  ;;  %v1542_v1 = vld [vmem:[%s2907_s3 + $0x40] sm:$0xff] }
 0x162   :  { %v1318_v33 = vadd.f32 %v1923_v32, %v2736_v51  ;;  %v1926_v9 = vadd.f32 %v1925_v8, %v1924_v3  ;;  %v1989_v10 = vpop.f32.mrb[55].mxu1 }
 0x163   :  { %v1990_v11 = vadd.f32 %v1989_v10, %v1988_v6  ;;  %v1535_v10 = vld [vmem:[%s2907_s3 + $0x8] sm:$0xff] }
 0x164   :  { %v1321_v35 = vadd.f32 %v1926_v9, %v2739_v53  ;;  %v1415_v12 = vadd.f32 %v1987_v4, %v1318_v33 }
 0x166   :  { %v1927_v46 = vpop.f32.mrb[56].mxu0  ;;  %v1418_v13 = vadd.f32 %v1990_v11, %v1321_v35 }
 0x167   :  { %v1991_v15 = vpop.f32.mrb[56].mxu1  ;;  %v1928_v17 = vpop.f32.mrb[57].mxu0 }
 0x168   :  { %v1929_v48 = vadd.f32 %v1928_v17, %v1927_v46  ;;  %v1992_v20 = vpop.f32.mrb[57].mxu1  ;;  %v1930_v22 = vpop.f32.mrb[58].mxu0 }
 0x169   :  { %v1993_v23 = vadd.f32 %v1992_v20, %v1991_v15  ;;  %v1994_v25 = vpop.f32.mrb[58].mxu1  ;;  %v1931_v27 = vpop.f32.mrb[59].mxu0 }
 0x16a   :  { %v1326_v28 = vadd.f32 %v1929_v48, %v2742_v5  ;;  %v1932_v29 = vadd.f32 %v1931_v27, %v1930_v22  ;;  %v1995_v51 = vpop.f32.mrb[59].mxu1 }
 0x16b   :  { %v1996_v31 = vadd.f32 %v1995_v51, %v1994_v25 }
 0x16c   :  { %v1329_v34 = vadd.f32 %v1932_v29, %v2745_v7  ;;  %v2787_v62 = vadd.f32 %v1993_v23, %v1326_v28 }
 0x16e   :  { %v1933_v53 = vpop.f32.mrb[60].mxu0  ;;  %v2789_v36 = vadd.f32 %v1996_v31, %v1329_v34  ;;  %v1540_v31 = vld [vmem:[%s2907_s3 + $0x30] sm:$0xff] }
 0x16f   :  { %v1997_v37 = vpop.f32.mrb[60].mxu1  ;;  %v1934_v38 = vpop.f32.mrb[61].mxu0 }
 0x170   :  { %v1935_v0 = vadd.f32 %v1934_v38, %v1933_v53  ;;  %v1998_v40 = vpop.f32.mrb[61].mxu1  ;;  %v1936_v42 = vpop.f32.mrb[62].mxu0  ;;  %v1548_v38 = vld [vmem:[%s2907_s3 + $0x70] sm:$0xff] }
 0x171   :  { %v1999_v43 = vadd.f32 %v1998_v40, %v1997_v37  ;;  %v2000_v44 = vpop.f32.mrb[62].mxu1  ;;  %v1937_v18 = vpop.f32.mrb[63].mxu0  ;;  %v1538_v40 = vld [vmem:[%s2907_s3 + $0x20] sm:$0xff] }
 0x172   :  { %v1334_v5 = vadd.f32 %v1935_v0, %v2748_v24  ;;  %v1938_v49 = vadd.f32 %v1937_v18, %v1936_v42  ;;  %v2001_v50 = vpop.f32.mrb[63].mxu1  ;;  %v1544_v24 = vld [vmem:[%s2907_s3 + $0x50] sm:$0xff] }
 0x173   :  { %v2002_v52 = vadd.f32 %v2001_v50, %v2000_v44  ;;  %v1546_v44 = vld [vmem:[%s2907_s3 + $0x60] sm:$0xff] }
 0x174   :  { %v1337_v7 = vadd.f32 %v1938_v49, %v2751_v26  ;;  %v1431_v54 = vadd.f32 %v1999_v43, %v1334_v5  ;;  %v1534_v26 = vld [vmem:[%s2907_s3] sm:$0xff]  ;;  %v1541_v5 = vld [vmem:[%s2907_s3 + $0x38] sm:$0xff] }
 0x176   :  { %v2037_v14 = vpop.f32.mrb[64].mxu0  ;;  %v2796_v56 = vadd.f32 %v2002_v52, %v1337_v7  ;;  %v1549_v7 = vld [vmem:[%s2907_s3 + $0x78] sm:$0xff] }
 0x177   :  { %v1480_v57 = vadd.f32 %v2037_v14, %v2761_v63  ;;  %v2045_v16 = vpop.f32.mrb[64].mxu1  ;;  %v1471_v30 = vpop.f32.mrb[65].mxu0  ;;  %v1537_v63 = vld [vmem:[%s2907_s3 + $0x18] sm:$0xff]  ;;  %v1539_v14 = vld [vmem:[%s2907_s3 + $0x28] sm:$0xff] }
 0x178   :  { %v1512_v60 = vadd.f32 %v2045_v16, %v1415_v12  ;;  %v1472_v61 = vadd.f32 %v1471_v30, %v2755_v45  ;;  %v1503_v32 = vpop.f32.mrb[65].mxu1  ;;  %v2038_v3 = vpop.f32.mrb[66].mxu0  ;;  %v1545_v45 = vld [vmem:[%s2907_s3 + $0x58] sm:$0xff] }
 0x179   :  { %v1552_v4 = vadd.f32 %v1536_v55, %v1480_v57  ;;  %v1504_v6 = vadd.f32 %v1503_v32, %v2779_v58  ;;  %v1483_v8 = vadd.f32 %v2038_v3, %v2763_v2  ;;  %v2046_v33 = vpop.f32.mrb[66].mxu1  ;;  %v1474_v9 = vpop.f32.mrb[67].mxu0  ;;  %v1543_v2 = vld [vmem:[%s2907_s3 + $0x48] sm:$0xff] }
 0x17a   :  { %v1560_v11 = vadd.f32 %v1544_v24, %v1512_v60  ;;  %v1550_v35 = vadd.f32 %v1534_v26, %v1472_v61  ;;  %v1515_v12 = vadd.f32 %v2046_v33, %v1418_v13  ;;  %v1475_v46 = vadd.f32 %v1474_v9, %v2757_v47  ;;  %v1506_v15 = vpop.f32.mrb[67].mxu1 }
 0x17b   :  { %v1568_v58 = vmax.f32 %v1552_v4, 0.0  ;;  %v1558_v17 = vadd.f32 %v1542_v1, %v1504_v6  ;;  %v1553_v48 = vadd.f32 %v1537_v63, %v1483_v8  ;;  %v1507_v20 = vadd.f32 %v1506_v15, %v2781_v59 }
 0x17c   :  { %v1576_v22 = vmax.f32 %v1560_v11, 0.0  ;;  %v1566_v23 = vmax.f32 %v1550_v35, 0.0  ;;  %v1561_v25 = vadd.f32 %v1545_v45, %v1515_v12  ;;  %v1551_v27 = vadd.f32 %v1535_v10, %v1475_v46 }
 0x17d   :  { %1584 = vst [vmem:[%s2908_s4 + $0x10] sm:$0xff] %v1568_v58  ;;  %v1574_v13 = vmax.f32 %v1558_v17, 0.0  ;;  %v1569_v47 = vmax.f32 %v1553_v48, 0.0  ;;  %v1559_v28 = vadd.f32 %v1543_v2, %v1507_v20 }
 0x17e   :  { %1592 = vst [vmem:[%s2908_s4 + $0x50] sm:$0xff] %v1576_v22  ;;  %1582 = vst [vmem:[%s2908_s4] sm:$0xff] %v1566_v23  ;;  %v1577_v59 = vmax.f32 %v1561_v25, 0.0  ;;  %v1567_v29 = vmax.f32 %v1551_v27, 0.0  ;;  %v2041_v51 = vpop.f32.mrb[68].mxu0 }
 0x17f   :  { %1590 = vst [vmem:[%s2908_s4 + $0x40] sm:$0xff] %v1574_v13  ;;  %1585 = vst [vmem:[%s2908_s4 + $0x18] sm:$0xff] %v1569_v47  ;;  %v1575_v34 = vmax.f32 %v1559_v28, 0.0  ;;  %v1496_v53 = vadd.f32 %v2041_v51, %v2773_v39  ;;  %v2049_v37 = vpop.f32.mrb[68].mxu1  ;;  %v1487_v0 = vpop.f32.mrb[69].mxu0 }
 0x180   :  { %1593 = vst [vmem:[%s2908_s4 + $0x58] sm:$0xff] %v1577_v59  ;;  %1583 = vst [vmem:[%s2908_s4 + $0x8] sm:$0xff] %v1567_v29  ;;  %v1528_v42 = vadd.f32 %v2049_v37, %v1431_v54  ;;  %v1488_v39 = vadd.f32 %v1487_v0, %v2767_v19  ;;  %v1519_v43 = vpop.f32.mrb[69].mxu1  ;;  %v2042_v18 = vpop.f32.mrb[70].mxu0 }
 0x181   :  { %1591 = vst [vmem:[%s2908_s4 + $0x48] sm:$0xff] %v1575_v34  ;;  %v1556_v49 = vadd.f32 %v1540_v31, %v1496_v53  ;;  %v1520_v50 = vadd.f32 %v1519_v43, %v2787_v62  ;;  %v1499_v52 = vadd.f32 %v2042_v18, %v2775_v41  ;;  %v2050_v19 = vpop.f32.mrb[70].mxu1  ;;  %v1490_v54 = vpop.f32.mrb[71].mxu0  ;;  %v1547_v41 = vld [vmem:[%s2907_s3 + $0x68] sm:$0xff] }
 0x182   :  { %v1564_v55 = vadd.f32 %v1548_v38, %v1528_v42  ;;  %v1554_v57 = vadd.f32 %v1538_v40, %v1488_v39  ;;  %v1531_v16 = vadd.f32 %v2050_v19, %v2796_v56  ;;  %v1491_v24 = vadd.f32 %v1490_v54, %v2769_v21  ;;  %v1522_v30 = vpop.f32.mrb[71].mxu1 }
 0x183   :  { %v1572_v62 = vmax.f32 %v1556_v49, 0.0  ;;  %v1562_v26 = vadd.f32 %v1546_v44, %v1520_v50  ;;  %v1557_v60 = vadd.f32 %v1541_v5, %v1499_v52  ;;  %v1523_v61 = vadd.f32 %v1522_v30, %v2789_v36 }
 0x184   :  { %v1580_v32 = vmax.f32 %v1564_v55, 0.0  ;;  %v1570_v1 = vmax.f32 %v1554_v57, 0.0  ;;  %v1565_v3 = vadd.f32 %v1549_v7, %v1531_v16  ;;  %v1555_v63 = vadd.f32 %v1539_v14, %v1491_v24 }
 0x185   :  { %1588 = vst [vmem:[%s2908_s4 + $0x30] sm:$0xff] %v1572_v62  ;;  %v1578_v56 = vmax.f32 %v1562_v26, 0.0  ;;  %v1573_v21 = vmax.f32 %v1557_v60, 0.0  ;;  %v1563_v4 = vadd.f32 %v1547_v41, %v1523_v61 }
 0x186   :  { %1596 = vst [vmem:[%s2908_s4 + $0x70] sm:$0xff] %v1580_v32  ;;  %1586 = vst [vmem:[%s2908_s4 + $0x20] sm:$0xff] %v1570_v1  ;;  %v1581_v36 = vmax.f32 %v1565_v3, 0.0  ;;  %v1571_v6 = vmax.f32 %v1555_v63, 0.0 }
 0x187   :  { %1594 = vst [vmem:[%s2908_s4 + $0x60] sm:$0xff] %v1578_v56  ;;  %1589 = vst [vmem:[%s2908_s4 + $0x38] sm:$0xff] %v1573_v21  ;;  %v1579_v8 = vmax.f32 %v1563_v4, 0.0 }
 0x188   :  { %1597 = vst [vmem:[%s2908_s4 + $0x78] sm:$0xff] %v1581_v36  ;;  %1587 = vst [vmem:[%s2908_s4 + $0x28] sm:$0xff] %v1571_v6 }
 0x189   :  { %1595 = vst [vmem:[%s2908_s4 + $0x68] sm:$0xff] %v1579_v8 }

// kernel: resnet18_conv5_forward.30
= control target key start
LH: loop header
LB: loop body
LE: loop exit
PB: predicated region body
PF: predicated region fallthrough
CT: control target
= control target key end

     0   :  { %s707_s12 = smov 0   ;;  %s709_s13 = smov 0   ;;  %s797_s0 = inlined_call_operand.vmem [shape: bf16[8,128], index: 0, kind: input, shape index: {}]   ;;  %s798_s1 = inlined_call_operand.vmem [shape: bf16[128,256], index: 1, kind: input, shape index: {}]   ;;  %s799_s2 = inlined_call_operand.vmem [shape: f32[1,256], index: 2, kind: input, shape index: {}]   ;;  %s800_s3 = inlined_call_operand.vmem [shape: f32[8,256], index: 3, kind: output, shape index: {}]  }
   0x1   :  { %s711_s14 = smov 0   ;;  %s713_s15 = smov 0  }
   0x2   :  { %s715_s16 = smov 0  }
   0x3 LB: > { %s22_s17 = sadd.s32 1, %s679_s15  ;;  %p65_p1 = scmp.ne.s32.totalorder %s671_s13, %s667_s12  ;;  %s683_s16 = sphi %s715_s16, %s13_s16   ;;  %s679_s15 = sphi %s713_s15, %s804_s15   ;;  %s675_s14 = sphi %s711_s14, %s803_s14   ;;  %s671_s13 = sphi %s709_s13, %s802_s13   ;;  %s667_s12 = sphi %s707_s12, %s801_s12  }
   0x4   : > { %p23_p0 = scmp.ge.s32.totalorder %s22_s17, 2  ;;  %p66_p2 = scmp.eq.s32.totalorder %s683_s16, 0 }
   0x5   : > { %s58_s19 = sadd.s32 1, %s671_s13  ;;  %p549_p5 = scmp.ge.s32.totalorder %s683_s16, 2 }
   0x6   : > { %s806_s17 = smov (%p23_p0, %s22_s17), 0  ;;  %p67_p3 = por %p66_p2, %p65_p1 }
   0x7   : > { %s55_s18 = ssub.s32 %s679_s15, %s806_s17  ;;  %152 = sbr.rel (%p549_p5) target bundleno = 28 (0x1c), region = 20 }
   0x8   : > { %p56_p4 = scmp.eq.s32.totalorder %s55_s18, 0 }
   0xa   : > { %s742_s20 = scalar_select %p56_p4, %s671_s13, %s58_s19  }
   0xe   : > { %155 = sbr.rel (!%p67_p3) target bundleno = 28 (0x1c), region = 24  ;;  %s157_s21 = sand.u32 (%p67_p3), 1, %s671_s13  }
   0xf   : > { %s551_s22 = sshll.u32 (%p67_p3), %s679_s15, 2  ;;  %s550_s23 = sshll.u32 (%p67_p3), %s157_s21, 6 }
  0x10   : > { %s750_s26 = scalar_lea.vmem (%p67_p3), %s798_s1, %s551_s22  ;;  %s159_s27 = scalar_lea.vmem (%p67_p3), [#allocation2], %s550_s23 }
  0x11   : > { %v177_v0 = vld [vmem:[%s750_s26] sm:$0xf] (%p67_p3)  ;;  %v179_v1 = vld [vmem:[%s750_s26 + $0x8] sm:$0xf] (%p67_p3)  ;;  %v181_v2 = vld [vmem:[%s750_s26 + $0x10] sm:$0xf] (%p67_p3) }
  0x12   : > { %178 = vst [vmem:[%s159_s27] sm:$0xf] (%p67_p3), %v177_v0  ;;  %180 = vst [vmem:[%s159_s27 + $0x4] sm:$0xf] (%p67_p3), %v179_v1  ;;  %v183_v3 = vld [vmem:[%s750_s26 + $0x18] sm:$0xf] (%p67_p3) }
  0x13   : > { %v185_v4 = vld [vmem:[%s750_s26 + $0x20] sm:$0xf] (%p67_p3)  ;;  %182 = vst [vmem:[%s159_s27 + $0x8] sm:$0xf] (%p67_p3), %v181_v2  ;;  %184 = vst [vmem:[%s159_s27 + $0xc] sm:$0xf] (%p67_p3), %v183_v3 }
  0x14   : > { %186 = vst [vmem:[%s159_s27 + $0x10] sm:$0xf] (%p67_p3), %v185_v4  ;;  %v187_v5 = vld [vmem:[%s750_s26 + $0x28] sm:$0xf] (%p67_p3)  ;;  %v189_v6 = vld [vmem:[%s750_s26 + $0x30] sm:$0xf] (%p67_p3) }
  0x15   : > { %v191_v7 = vld [vmem:[%s750_s26 + $0x38] sm:$0xf]  ;;  %188 = vst [vmem:[%s159_s27 + $0x14] sm:$0xf] %v187_v5  ;;  %190 = vst [vmem:[%s159_s27 + $0x18] sm:$0xf] %v189_v6 }
  0x16   : > { %192 = vst [vmem:[%s159_s27 + $0x1c] sm:$0xf] %v191_v7  ;;  %v193_v8 = vld [vmem:[%s750_s26 + $0x40] sm:$0xf]  ;;  %v195_v9 = vld [vmem:[%s750_s26 + $0x48] sm:$0xf] }
  0x17   : > { %v197_v10 = vld [vmem:[%s750_s26 + $0x50] sm:$0xf]  ;;  %194 = vst [vmem:[%s159_s27 + $0x20] sm:$0xf] %v193_v8  ;;  %196 = vst [vmem:[%s159_s27 + $0x24] sm:$0xf] %v195_v9 }
  0x18   : > { %198 = vst [vmem:[%s159_s27 + $0x28] sm:$0xf] %v197_v10  ;;  %v199_v11 = vld [vmem:[%s750_s26 + $0x58] sm:$0xf]  ;;  %v201_v12 = vld [vmem:[%s750_s26 + $0x60] sm:$0xf] }
  0x19   : > { %v203_v13 = vld [vmem:[%s750_s26 + $0x68] sm:$0xf]  ;;  %200 = vst [vmem:[%s159_s27 + $0x2c] sm:$0xf] %v199_v11  ;;  %202 = vst [vmem:[%s159_s27 + $0x30] sm:$0xf] %v201_v12 }
  0x1a   : > { %204 = vst [vmem:[%s159_s27 + $0x34] sm:$0xf] %v203_v13  ;;  %v205_v14 = vld [vmem:[%s750_s26 + $0x70] sm:$0xf]  ;;  %v207_v15 = vld [vmem:[%s750_s26 + $0x78] sm:$0xf] }
  0x1b   : > { %206 = vst [vmem:[%s159_s27 + $0x38] sm:$0xf] %v205_v14  ;;  %208 = vst [vmem:[%s159_s27 + $0x3c] sm:$0xf] %v207_v15 }
  0x1c PF: > { %p552_p6 = scmp.ge.s32.totalorder %s683_s16, 1  ;;  %p268_p7 = scmp.lt.s32.totalorder %s683_s16, 3 }
  0x1e   : > { %p269_p8 = pnand %p552_p6, %p268_p7 }
  0x1f   : > { %s275_s28 = sand.u32 (!%p269_p8), 1, %s667_s12   ;;  %v685_v16 = vmov (!%p269_p8), 0.0   ;;  %vm686_vm0 = vmmov (!%p269_p8), 0   ;;  %v324_v25 = vld [vmem:[%s797_s0] sm:$0xf] (!%p269_p8)  ;;  %p312_p9 = scmp.lt.s32.totalorder (!%p269_p8), %s675_s14, 1 }
  0x20   : > { %272 = sbr.rel (%p269_p8) target bundleno = 281 (0x119), region = 69  ;;  %575 = vmatprep.subr.bf16.mxu0 (!%p269_p8), %v685_v16  ;;  %s553_s29 = sshll.u32 (!%p269_p8), %s275_s28, 6  ;;  %591 = vmatprep.mubr.msk.bf16.mxu0 (!%p269_p8), %vm686_vm0, %v685_v16 }
  0x21   : > { %s277_s30 = scalar_lea.vmem (!%p269_p8), [#allocation2], %s553_s29 }
  0x22   : > { %v637_v17 = vld [vmem:[%s277_s30] sm:$0xff] (!%p269_p8)   ;;  %v638_v18 = vld [vmem:[%s277_s30 + $0x8] sm:$0xff] (!%p269_p8)   ;;  %v639_v19 = vld [vmem:[%s277_s30 + $0x10] sm:$0xff] (!%p269_p8)  }
  0x23   : > { %576 = vmatpush3.bf16.msra.mxu0 (!%p269_p8), %v637_v17  ;;  %v640_v20 = vld [vmem:[%s277_s30 + $0x18] sm:$0xff] (!%p269_p8)   ;;  %v641_v21 = vld [vmem:[%s277_s30 + $0x20] sm:$0xff] (!%p269_p8)   ;;  %v642_v22 = vld [vmem:[%s277_s30 + $0x28] sm:$0xff] (!%p269_p8)  }
  0x24   : > { %577 = vmatprep.subr.bf16.mxu0 (!%p269_p8), %v685_v16  ;;  %v643_v23 = vld [vmem:[%s277_s30 + $0x30] sm:$0xff] (!%p269_p8)   ;;  %v644_v24 = vld [vmem:[%s277_s30 + $0x38] sm:$0xff] (!%p269_p8)  }
  0x27   : > { %578 = vmatpush3.bf16.msra.mxu0 %v638_v18  ;;  %s808_s14 = smov (!%p312_p9, %s675_s14), 1 }
  0x28   : > { %579 = vmatprep.subr.bf16.mxu0 %v685_v16  ;;  %s314_s8 = scalar_lea.vmem %s799_s2, %s808_s14  ;;  %s554_s9 = sshll.u32 %s808_s14, 3 }
  0x29   : > { %v555_v26 = vld [vmem:[%s314_s8] ss:$0 sm:$0xff]  ;;  %s322_s12 = scalar_lea.vmem %s800_s3, %s554_s9 }
  0x2b   : > { %580 = vmatpush3.bf16.msra.mxu0 %v639_v19 }
  0x2c   : > { %581 = vmatprep.subr.bf16.mxu0 %v685_v16 }
  0x2f   : > { %582 = vmatpush3.bf16.msra.mxu0 %v640_v20 }
  0x30   : > { %583 = vmatprep.subr.bf16.mxu0 %v685_v16 }
  0x33   : > { %584 = vmatpush3.bf16.msra.mxu0 %v641_v21 }
  0x34   : > { %585 = vmatprep.subr.bf16.mxu0 %v685_v16 }
  0x37   : > { %586 = vmatpush3.bf16.msra.mxu0 %v642_v22 }
  0x38   : > { %587 = vmatprep.subr.bf16.mxu0 %v685_v16 }
  0x3b   : > { %588 = vmatpush3.bf16.msra.mxu0 %v643_v23 }
  0x3c   : > { %589 = vmatprep.subr.bf16.mxu0 %v685_v16 }
  0x3f   : > { %590 = vmatpush3.bf16.msra.mxu0 %v644_v24 }
  0x42   : > { %592 = vmatmul.mubr.bf16.vlgmr.msra.gmra.mrb[0].mxu0 %v324_v25 }
 0x115   : > { %v430_v27 = vpop.f32.mrb[0].mxu0 }
 0x116   : > { %v431_v28 = vadd.f32 %v555_v26, %v430_v27  ;;  %v593_v29 = vpop.f32.mrb[1].mxu0 }
 0x117   : > { %v433_v30 = vpop.f32.mrb[2].mxu0 }
 0x118   : > { %436 = vst [vmem:[%s322_s12] sm:$0xff] %v431_v28  ;;  %v594_v31 = vpop.f32.mrb[3].mxu0 }
 0x119 PF: > { %s13_s16 = sadd.s32 1, %s683_s16   ;;  %s801_s12 = smov %s671_s13 }
 0x11a   : > { %p10_p10 = scmp.ge.s32.totalorder %s13_s16, 4   ;;  %s802_s13 = smov %s742_s20 }
 0x11b   : > { %s803_s14 = smov %s679_s15  ;;  %s804_s15 = smov %s806_s17 }
 0x11c   :  { %12 = sbr.rel (!%p10_p10) target bundleno = 3 (0x3), region = 114 }

// kernel: resnet18_conv5_forward.24
= control target key start
LH: loop header
LB: loop body
LE: loop exit
PB: predicated region body
PF: predicated region fallthrough
CT: control target
= control target key end

     0   :  { %s1603_s1 = inlined_call_operand.vmem [shape: bf16[1152,128], index: 1, kind: input, shape index: {}]   ;;  %s1604_s0 = inlined_call_operand.vmem [shape: bf16[32,1152], index: 0, kind: input, shape index: {}]   ;;  %s1605_s2 = inlined_call_operand.vmem [shape: f32[1,128], index: 2, kind: input, shape index: {}]   ;;  %s1606_s3 = inlined_call_operand.vmem [shape: f32[32,128], index: 3, kind: output, shape index: {}]  }
   0x1   :  { %v1200_v0 = vld [vmem:[%s1603_s1 + $0x40] sm:$0xff]   ;;  %v1204_v4 = vld [vmem:[%s1603_s1 + $0x48] sm:$0xff]   ;;  %v1208_v8 = vld [vmem:[%s1603_s1 + $0x50] sm:$0xff]  }
   0x2   :  { %v1201_v1 = vld [vmem:[%s1603_s1] sm:$0xff]   ;;  %1058 = vmatprep.subr.bf16.mxu0 %v1200_v0  ;;  %v1205_v5 = vld [vmem:[%s1603_s1 + $0x8] sm:$0xff]   ;;  %v1209_v9 = vld [vmem:[%s1603_s1 + $0x10] sm:$0xff]  }
   0x3   :  { %v1202_v2 = vld [vmem:[%s1603_s1 + $0xc0] sm:$0xff]   ;;  %1059 = vmatpush3.bf16.msra.mxu0 %v1201_v1  ;;  %v1206_v6 = vld [vmem:[%s1603_s1 + $0xc8] sm:$0xff]   ;;  %v1210_v10 = vld [vmem:[%s1603_s1 + $0xd0] sm:$0xff]  }
   0x4   :  { %v1203_v3 = vld [vmem:[%s1603_s1 + $0x80] sm:$0xff]   ;;  %1086 = vmatprep.subr.bf16.mxu1 %v1202_v2  ;;  %1060 = vmatprep.subr.bf16.mxu0 %v1204_v4  ;;  %v1207_v7 = vld [vmem:[%s1603_s1 + $0x88] sm:$0xff]   ;;  %v1211_v11 = vld [vmem:[%s1603_s1 + $0x90] sm:$0xff]  }
   0x5   :  { %1087 = vmatpush3.bf16.msra.mxu1 %v1203_v3  ;;  %v1212_v12 = vld [vmem:[%s1603_s1 + $0x58] sm:$0xff]   ;;  %v1216_v16 = vld [vmem:[%s1603_s1 + $0x60] sm:$0xff]   ;;  %v1220_v20 = vld [vmem:[%s1603_s1 + $0x68] sm:$0xff]  }
   0x6   :  { %1088 = vmatprep.subr.bf16.mxu1 %v1206_v6  ;;  %v1213_v13 = vld [vmem:[%s1603_s1 + $0x18] sm:$0xff]   ;;  %v1217_v17 = vld [vmem:[%s1603_s1 + $0x20] sm:$0xff]   ;;  %v1221_v21 = vld [vmem:[%s1603_s1 + $0x28] sm:$0xff]  }
   0x7   :  { %1061 = vmatpush3.bf16.msra.mxu0 %v1205_v5  ;;  %v1214_v14 = vld [vmem:[%s1603_s1 + $0xd8] sm:$0xff]   ;;  %v1218_v18 = vld [vmem:[%s1603_s1 + $0xe0] sm:$0xff]   ;;  %v1222_v22 = vld [vmem:[%s1603_s1 + $0xe8] sm:$0xff]  }
   0x8   :  { %1062 = vmatprep.subr.bf16.mxu0 %v1208_v8  ;;  %v1215_v15 = vld [vmem:[%s1603_s1 + $0x98] sm:$0xff]   ;;  %v1219_v19 = vld [vmem:[%s1603_s1 + $0xa0] sm:$0xff]   ;;  %v1223_v23 = vld [vmem:[%s1603_s1 + $0xa8] sm:$0xff]  }
   0x9   :  { %1089 = vmatpush3.bf16.msra.mxu1 %v1207_v7  ;;  %v1224_v24 = vld [vmem:[%s1603_s1 + $0x70] sm:$0xff]   ;;  %v1228_v28 = vld [vmem:[%s1603_s1 + $0x78] sm:$0xff]   ;;  %v1231_v31 = vld [vmem:[%s1604_s0] ss:$36 sps:$4 sm:$0xff]  }
   0xa   :  { %1090 = vmatprep.subr.bf16.mxu1 %v1210_v10  ;;  %v1225_v25 = vld [vmem:[%s1603_s1 + $0x30] sm:$0xff]   ;;  %v1229_v29 = vld [vmem:[%s1603_s1 + $0x38] sm:$0xff]   ;;  %v1233_v32 = vld [vmem:[%s1604_s0 + $0x4] ss:$36 sps:$4 sm:$0xff]  }
   0xb   :  { %1063 = vmatpush3.bf16.msra.mxu0 %v1209_v9  ;;  %v1226_v26 = vld [vmem:[%s1603_s1 + $0xf0] sm:$0xff]   ;;  %v1230_v30 = vld [vmem:[%s1603_s1 + $0xf8] sm:$0xff]   ;;  %742 = vmatprep.mubr.bf16.mxu0 %v1233_v32  ;;  %v1235_v34 = vld [vmem:[%s1603_s1 + $0x140] sm:$0xff]  }
   0xc   :  { %1064 = vmatprep.subr.bf16.mxu0 %v1212_v12  ;;  %v1227_v27 = vld [vmem:[%s1603_s1 + $0xb0] sm:$0xff]   ;;  %v1234_v33 = vld [vmem:[%s1603_s1 + $0xb8] sm:$0xff]   ;;  %v1236_v35 = vld [vmem:[%s1604_s0 + $0x8] ss:$36 sps:$4 sm:$0xff]  }
   0xd   :  { %1091 = vmatpush3.bf16.msra.mxu1 %v1211_v11  ;;  %v1238_v36 = vld [vmem:[%s1604_s0 + $0xc] ss:$36 sps:$4 sm:$0xff]   ;;  %v1239_v37 = vld [vmem:[%s1603_s1 + $0x100] sm:$0xff]   ;;  %v1250_v48 = vld [vmem:[%s1603_s1 + $0x158] sm:$0xff]  }
   0xe   :  { %1092 = vmatprep.subr.bf16.mxu1 %v1214_v14  ;;  %791 = vmatprep.mubr.bf16.mxu1 %v1238_v36  ;;  %v1240_v38 = vld [vmem:[%s1603_s1 + $0x1c0] sm:$0xff]   ;;  %v1242_v40 = vld [vmem:[%s1603_s1 + $0x148] sm:$0xff]   ;;  %v1246_v44 = vld [vmem:[%s1603_s1 + $0x150] sm:$0xff]  }
   0xf   :  { %1065 = vmatpush3.bf16.msra.mxu0 %v1213_v13  ;;  %v1241_v39 = vld [vmem:[%s1603_s1 + $0x180] sm:$0xff]   ;;  %v1243_v41 = vld [vmem:[%s1603_s1 + $0x108] sm:$0xff]   ;;  %v1247_v45 = vld [vmem:[%s1603_s1 + $0x110] sm:$0xff]  }
  0x10   :  { %1066 = vmatprep.subr.bf16.mxu0 %v1216_v16  ;;  %v1244_v42 = vld [vmem:[%s1603_s1 + $0x1c8] sm:$0xff]   ;;  %v1248_v46 = vld [vmem:[%s1603_s1 + $0x1d0] sm:$0xff]   ;;  %v1251_v49 = vld [vmem:[%s1603_s1 + $0x118] sm:$0xff]  }
  0x11   :  { %1093 = vmatpush3.bf16.msra.mxu1 %v1215_v15  ;;  %v1245_v43 = vld [vmem:[%s1603_s1 + $0x188] sm:$0xff]   ;;  %v1249_v47 = vld [vmem:[%s1603_s1 + $0x190] sm:$0xff]   ;;  %v1252_v50 = vld [vmem:[%s1603_s1 + $0x1d8] sm:$0xff]  }
  0x12   :  { %1094 = vmatprep.subr.bf16.mxu1 %v1218_v18  ;;  %v1253_v51 = vld [vmem:[%s1603_s1 + $0x198] sm:$0xff]   ;;  %v1254_v52 = vld [vmem:[%s1603_s1 + $0x160] sm:$0xff]   ;;  %v1258_v56 = vld [vmem:[%s1603_s1 + $0x168] sm:$0xff]  }
  0x13   :  { %1067 = vmatpush3.bf16.msra.mxu0 %v1217_v17  ;;  %v1255_v53 = vld [vmem:[%s1603_s1 + $0x120] sm:$0xff]   ;;  %v1259_v57 = vld [vmem:[%s1604_s0 + $0x4c] ss:$36 sps:$4 sm:$0xff]   ;;  %v1264_v61 = vld [vmem:[%s1604_s0 + $0x54] ss:$36 sps:$4 sm:$0xff]  }
  0x14   :  { %1068 = vmatprep.subr.bf16.mxu0 %v1220_v20  ;;  %v1256_v54 = vld [vmem:[%s1603_s1 + $0x1e0] sm:$0xff]   ;;  %v1261_v58 = vld [vmem:[%s1603_s1 + $0x128] sm:$0xff]   ;;  %v1267_v63 = vld [vmem:[%s1604_s0 + $0x50] ss:$36 sps:$4 sm:$0xff]  }
  0x15   :  { %1095 = vmatpush3.bf16.msra.mxu1 %v1219_v19  ;;  %v1257_v55 = vld [vmem:[%s1603_s1 + $0x1a0] sm:$0xff]   ;;  %v1262_v59 = vld [vmem:[%s1604_s0 + $0x48] ss:$36 sps:$4 sm:$0xff]   ;;  %v1268_v0 = vld [vmem:[%s1603_s1 + $0x170] sm:$0xff]  }
  0x16   :  { %1096 = vmatprep.subr.bf16.mxu1 %v1222_v22  ;;  %v1263_v60 = vld [vmem:[%s1603_s1 + $0x1e8] sm:$0xff]   ;;  %v1269_v1 = vld [vmem:[%s1603_s1 + $0x130] sm:$0xff]   ;;  %v1272_v4 = vld [vmem:[%s1603_s1 + $0x178] sm:$0xff]  }
  0x17   :  { %1069 = vmatpush3.bf16.msra.mxu0 %v1221_v21  ;;  %v1266_v62 = vld [vmem:[%s1603_s1 + $0x1a8] sm:$0xff]   ;;  %v1270_v2 = vld [vmem:[%s1603_s1 + $0x1f0] sm:$0xff]   ;;  %v1273_v5 = vld [vmem:[%s1603_s1 + $0x138] sm:$0xff]  }
  0x18   :  { %1070 = vmatprep.subr.bf16.mxu0 %v1224_v24  ;;  %v1271_v3 = vld [vmem:[%s1603_s1 + $0x1b0] sm:$0xff]   ;;  %v1274_v6 = vld [vmem:[%s1603_s1 + $0x1f8] sm:$0xff]   ;;  %v1279_v10 = vld [vmem:[%s1603_s1 + $0x200] sm:$0xff]  }
  0x19   :  { %1097 = vmatpush3.bf16.msra.mxu1 %v1223_v23  ;;  %v1275_v7 = vld [vmem:[%s1604_s0 + $0x10] ss:$36 sps:$4 sm:$0xff]   ;;  %v1278_v9 = vld [vmem:[%s1603_s1 + $0x1b8] sm:$0xff]   ;;  %v1283_v13 = vld [vmem:[%s1603_s1 + $0x208] sm:$0xff]  }
  0x1a   :  { %1098 = vmatprep.subr.bf16.mxu1 %v1226_v26  ;;  %v1277_v8 = vld [vmem:[%s1604_s0 + $0x14] ss:$36 sps:$4 sm:$0xff]   ;;  %v1282_v12 = vld [vmem:[%s1604_s0 + $0x1c] ss:$36 sps:$4 sm:$0xff]   ;;  %v1288_v17 = vld [vmem:[%s1604_s0 + $0x64] ss:$36 sps:$4 sm:$0xff]  }
  0x1b   :  { %1071 = vmatpush3.bf16.msra.mxu0 %v1225_v25  ;;  %v1280_v11 = vld [vmem:[%s1604_s0 + $0x18] ss:$36 sps:$4 sm:$0xff]   ;;  %v1287_v16 = vld [vmem:[%s1603_s1 + $0x210] sm:$0xff]   ;;  %v1290_v18 = vld [vmem:[%s1604_s0 + $0x60] ss:$36 sps:$4 sm:$0xff]  }
  0x1c   :  { %1072 = vmatprep.subr.bf16.mxu0 %v1228_v28  ;;  %v1284_v14 = vld [vmem:[%s1604_s0 + $0x5c] ss:$36 sps:$4 sm:$0xff]   ;;  %v1293_v22 = vld [vmem:[%s1603_s1 + $0x228] sm:$0xff]   ;;  %v1294_v23 = vld [vmem:[%s1603_s1 + $0x230] sm:$0xff]  }
  0x1d   :  { %1099 = vmatpush3.bf16.msra.mxu1 %v1227_v27  ;;  %v1286_v15 = vld [vmem:[%s1604_s0 + $0x58] ss:$36 sps:$4 sm:$0xff]   ;;  %v1292_v20 = vld [vmem:[%s1603_s1 + $0x220] sm:$0xff]   ;;  %v1297_v25 = vld [vmem:[%s1604_s0 + $0x68] ss:$36 sps:$4 sm:$0xff]  }
  0x1e   :  { %1100 = vmatprep.subr.bf16.mxu1 %v1230_v30  ;;  %v1291_v19 = vld [vmem:[%s1603_s1 + $0x218] sm:$0xff]   ;;  %v1296_v21 = vld [vmem:[%s1604_s0 + $0x20] ss:$36 sps:$4 sm:$0xff]  }
  0x1f   :  { %1073 = vmatpush3.bf16.msra.mxu0 %v1229_v29  ;;  %v1295_v24 = vld [vmem:[%s1603_s1 + $0x238] sm:$0xff]   ;;  %v967_v27 = vld [vmem:[%s1605_s2] ss:$0 sm:$0xff] }
  0x20   :  { %1114 = vmatprep.subr.bf16.mxu0 %v1235_v34 }
  0x21   :  { %1101 = vmatpush3.bf16.msra.mxu1 %v1234_v33 }
  0x22   :  { %743 = vmatmul.mubr.bf16.vlgmr.msra.gmra.mrb[0].mxu0 %v1231_v31  ;;  %1142 = vmatprep.subr.bf16.mxu1 %v1240_v38 }
  0x23   :  { %1115 = vmatpush3.bf16.msra.mxu0 %v1239_v37  ;;  %750 = vmatprep.mubr.bf16.mxu0 %v1259_v57 }
  0x24   :  { %792 = vmatmul.mubr.bf16.vlgmr.msra.gmra.mrb[0].mxu1 %v1236_v35  ;;  %1116 = vmatprep.subr.bf16.mxu0 %v1242_v40 }
  0x25   :  { %1143 = vmatpush3.bf16.msra.mxu1 %v1241_v39  ;;  %799 = vmatprep.mubr.bf16.mxu1 %v1264_v61 }
  0x26   :  { %1144 = vmatprep.subr.bf16.mxu1 %v1244_v42 }
  0x27   :  { %1117 = vmatpush3.bf16.msra.mxu0 %v1243_v41 }
  0x28   :  { %1118 = vmatprep.subr.bf16.mxu0 %v1246_v44 }
  0x29   :  { %1145 = vmatpush3.bf16.msra.mxu1 %v1245_v43 }
  0x2a   :  { %1146 = vmatprep.subr.bf16.mxu1 %v1248_v46  ;;  %751 = vmatmul.mubr.bf16.gmra.mrb[4].mxu0 %v1262_v59 }
  0x2b   :  { %1119 = vmatpush3.bf16.msra.mxu0 %v1247_v45  ;;  %840 = vmatprep.mubr.bf16.mxu0 %v1277_v8 }
  0x2c   :  { %1120 = vmatprep.subr.bf16.mxu0 %v1250_v48  ;;  %800 = vmatmul.mubr.bf16.gmra.mrb[4].mxu1 %v1267_v63 }
  0x2d   :  { %1147 = vmatpush3.bf16.msra.mxu1 %v1249_v47  ;;  %889 = vmatprep.mubr.bf16.mxu1 %v1282_v12 }
  0x2e   :  { %1148 = vmatprep.subr.bf16.mxu1 %v1252_v50 }
  0x2f   :  { %1121 = vmatpush3.bf16.msra.mxu0 %v1251_v49 }
  0x30   :  { %1122 = vmatprep.subr.bf16.mxu0 %v1254_v52 }
  0x31   :  { %1149 = vmatpush3.bf16.msra.mxu1 %v1253_v51 }
  0x32   :  { %1150 = vmatprep.subr.bf16.mxu1 %v1256_v54 }
  0x33   :  { %1123 = vmatpush3.bf16.msra.mxu0 %v1255_v53 }
  0x34   :  { %1124 = vmatprep.subr.bf16.mxu0 %v1258_v56 }
  0x35   :  { %1151 = vmatpush3.bf16.msra.mxu1 %v1257_v55 }
  0x36   :  { %1152 = vmatprep.subr.bf16.mxu1 %v1263_v60 }
  0x37   :  { %1125 = vmatpush3.bf16.msra.mxu0 %v1261_v58 }
  0x38   :  { %1126 = vmatprep.subr.bf16.mxu0 %v1268_v0 }
  0x39   :  { %1153 = vmatpush3.bf16.msra.mxu1 %v1266_v62 }
  0x3a   :  { %1154 = vmatprep.subr.bf16.mxu1 %v1270_v2 }
  0x3b   :  { %1127 = vmatpush3.bf16.msra.mxu0 %v1269_v1 }
  0x3c   :  { %1128 = vmatprep.subr.bf16.mxu0 %v1272_v4 }
  0x3d   :  { %1155 = vmatpush3.bf16.msra.mxu1 %v1271_v3 }
  0x3e   :  { %1156 = vmatprep.subr.bf16.mxu1 %v1274_v6 }
  0x3f   :  { %1129 = vmatpush3.bf16.msra.mxu0 %v1273_v5 }
  0x40   :  { %1180 = vmatprep.subr.bf16.mxu0 %v1279_v10 }
  0x41   :  { %1157 = vmatpush3.bf16.msra.mxu1 %v1278_v9 }
  0x42   :  { %841 = vmatmul.mubr.bf16.vlgmr.msra.gmra.mrb[8].mxu0 %v1275_v7 }
  0x43   :  { %1181 = vmatpush3.bf16.msra.mxu0 %v1279_v10  ;;  %848 = vmatprep.mubr.bf16.mxu0 %v1284_v14 }
  0x44   :  { %890 = vmatmul.mubr.bf16.vlgmr.msra.gmra.mrb[8].mxu1 %v1280_v11  ;;  %1182 = vmatprep.subr.bf16.mxu0 %v1283_v13 }
  0x45   :  { %897 = vmatprep.mubr.bf16.mxu1 %v1288_v17 }
  0x47   :  { %1183 = vmatpush3.bf16.msra.mxu0 %v1283_v13 }
  0x48   :  { %1184 = vmatprep.subr.bf16.mxu0 %v1287_v16 }
  0x4a   :  { %849 = vmatmul.mubr.bf16.gmra.mrb[12].mxu0 %v1286_v15 }
  0x4b   :  { %1185 = vmatpush3.bf16.msra.mxu0 %v1287_v16  ;;  %1196 = vmatprep.mubr.bf16.mxu0 %v1296_v21 }
  0x4c   :  { %898 = vmatmul.mubr.bf16.gmra.mrb[12].mxu1 %v1290_v18  ;;  %1186 = vmatprep.subr.bf16.mxu0 %v1291_v19 }
  0x4f   :  { %1187 = vmatpush3.bf16.msra.mxu0 %v1291_v19 }
  0x50   :  { %1188 = vmatprep.subr.bf16.mxu0 %v1292_v20 }
  0x53   :  { %1189 = vmatpush3.bf16.msra.mxu0 %v1292_v20 }
  0x54   :  { %1190 = vmatprep.subr.bf16.mxu0 %v1293_v22 }
  0x57   :  { %1191 = vmatpush3.bf16.msra.mxu0 %v1293_v22 }
  0x58   :  { %1192 = vmatprep.subr.bf16.mxu0 %v1294_v23 }
  0x5b   :  { %1193 = vmatpush3.bf16.msra.mxu0 %v1294_v23 }
  0x5c   :  { %1194 = vmatprep.subr.bf16.mxu0 %v1295_v24 }
  0x5f   :  { %1195 = vmatpush3.bf16.msra.mxu0 %v1295_v24 }
  0x62   :  { %1197 = vmatmul.mubr.bf16.vlgmr.msra.gmra.mrb[16].mxu0 %v1297_v25 }
  0xf5   :  { %v1074_v26 = vpop.f32.mrb[0].mxu0 }
  0xf6   :  { %v1075_v28 = vpop.f32.mrb[1].mxu0 }
  0xf7   :  { %v1076_v29 = vadd.f32 %v1075_v28, %v1074_v26  ;;  %v1077_v30 = vpop.f32.mrb[2].mxu0  ;;  %v1102_v31 = vpop.f32.mrb[0].mxu1 }
  0xf8   :  { %v1078_v32 = vpop.f32.mrb[3].mxu0  ;;  %v1103_v35 = vpop.f32.mrb[1].mxu1 }
  0xf9   :  { %v745_v33 = vadd.f32 %v1076_v29, %v967_v27  ;;  %v1079_v34 = vadd.f32 %v1078_v32, %v1077_v30  ;;  %v1104_v36 = vadd.f32 %v1103_v35, %v1102_v31  ;;  %v1105_v37 = vpop.f32.mrb[2].mxu1 }
  0xfa   :  { %v1106_v39 = vpop.f32.mrb[3].mxu1 }
  0xfb   :  { %v748_v38 = vadd.f32 %v1079_v34, %v967_v27  ;;  %v794_v40 = vadd.f32 %v1104_v36, %v745_v33  ;;  %v1107_v41 = vadd.f32 %v1106_v39, %v1105_v37 }
  0xfd   :  { %v797_v42 = vadd.f32 %v1107_v41, %v748_v38  ;;  %v1080_v43 = vpop.f32.mrb[4].mxu0 }
  0xfe   :  { %v1081_v44 = vpop.f32.mrb[5].mxu0 }
  0xff   :  { %v1082_v45 = vadd.f32 %v1081_v44, %v1080_v43  ;;  %v1083_v46 = vpop.f32.mrb[6].mxu0  ;;  %v1108_v47 = vpop.f32.mrb[4].mxu1 }
 0x100   :  { %v1084_v48 = vpop.f32.mrb[7].mxu0  ;;  %v1109_v51 = vpop.f32.mrb[5].mxu1 }
 0x101   :  { %v753_v49 = vadd.f32 %v1082_v45, %v967_v27  ;;  %v1085_v50 = vadd.f32 %v1084_v48, %v1083_v46  ;;  %v1110_v52 = vadd.f32 %v1109_v51, %v1108_v47  ;;  %v1111_v53 = vpop.f32.mrb[6].mxu1 }
 0x102   :  { %v1112_v55 = vpop.f32.mrb[7].mxu1 }
 0x103   :  { %v756_v54 = vadd.f32 %v1085_v50, %v967_v27  ;;  %v802_v56 = vadd.f32 %v1110_v52, %v753_v49  ;;  %v1113_v57 = vadd.f32 %v1112_v55, %v1111_v53 }
 0x105   :  { %v805_v58 = vadd.f32 %v1113_v57, %v756_v54 }
 0x115   :  { %v1130_v59 = vpop.f32.mrb[8].mxu0 }
 0x116   :  { %v1131_v60 = vpop.f32.mrb[9].mxu0 }
 0x117   :  { %v1132_v61 = vadd.f32 %v1131_v60, %v1130_v59  ;;  %v1133_v62 = vpop.f32.mrb[10].mxu0  ;;  %v1158_v63 = vpop.f32.mrb[8].mxu1 }
 0x118   :  { %v1134_v0 = vpop.f32.mrb[11].mxu0  ;;  %v1159_v3 = vpop.f32.mrb[9].mxu1 }
 0x119   :  { %v843_v1 = vadd.f32 %v1132_v61, %v794_v40  ;;  %v1135_v2 = vadd.f32 %v1134_v0, %v1133_v62  ;;  %v1160_v4 = vadd.f32 %v1159_v3, %v1158_v63  ;;  %v1161_v5 = vpop.f32.mrb[10].mxu1 }
 0x11a   :  { %v1162_v7 = vpop.f32.mrb[11].mxu1 }
 0x11b   :  { %v846_v6 = vadd.f32 %v1135_v2, %v797_v42  ;;  %v1163_v8 = vadd.f32 %v1162_v7, %v1161_v5  ;;  %v892_v9 = vadd.f32 %v1160_v4, %v843_v1 }
 0x11d   :  { %v1136_v10 = vpop.f32.mrb[12].mxu0  ;;  %v895_v12 = vadd.f32 %v1163_v8, %v846_v6 }
 0x11e   :  { %v1137_v11 = vpop.f32.mrb[13].mxu0 }
 0x11f   :  { %v1138_v13 = vadd.f32 %v1137_v11, %v1136_v10  ;;  %v1139_v14 = vpop.f32.mrb[14].mxu0  ;;  %v1164_v15 = vpop.f32.mrb[12].mxu1 }
 0x120   :  { %v1140_v16 = vpop.f32.mrb[15].mxu0  ;;  %v1165_v19 = vpop.f32.mrb[13].mxu1 }
 0x121   :  { %v851_v17 = vadd.f32 %v1138_v13, %v802_v56  ;;  %v1141_v18 = vadd.f32 %v1140_v16, %v1139_v14  ;;  %v1166_v20 = vadd.f32 %v1165_v19, %v1164_v15  ;;  %v1167_v21 = vpop.f32.mrb[14].mxu1 }
 0x122   :  { %v1168_v23 = vpop.f32.mrb[15].mxu1 }
 0x123   :  { %v854_v22 = vadd.f32 %v1141_v18, %v805_v58  ;;  %v1169_v24 = vadd.f32 %v1168_v23, %v1167_v21  ;;  %v900_v25 = vadd.f32 %v1166_v20, %v851_v17 }
 0x125   :  { %v903_v26 = vadd.f32 %v1169_v24, %v854_v22 }
 0x135   :  { %v1198_v27 = vpop.f32.mrb[16].mxu0 }
 0x136   :  { %v949_v28 = vadd.f32 %v1198_v27, %v900_v25  ;;  %v940_v29 = vpop.f32.mrb[17].mxu0 }
 0x137   :  { %v941_v30 = vadd.f32 %v940_v29, %v892_v9  ;;  %v1199_v31 = vpop.f32.mrb[18].mxu0 }
 0x138   :  { %v957_v32 = vmax.f32 %v949_v28, 0.0  ;;  %v952_v33 = vadd.f32 %v1199_v31, %v903_v26  ;;  %v943_v34 = vpop.f32.mrb[19].mxu0 }
 0x139   :  { %v955_v35 = vmax.f32 %v941_v30, 0.0  ;;  %v944_v36 = vadd.f32 %v943_v34, %v895_v12 }
 0x13a   :  { %961 = vst [vmem:[%s1606_s3 + $0x10] sm:$0xff] %v957_v32  ;;  %v958_v37 = vmax.f32 %v952_v33, 0.0 }
 0x13b   :  { %959 = vst [vmem:[%s1606_s3] sm:$0xff] %v955_v35  ;;  %v956_v38 = vmax.f32 %v944_v36, 0.0 }
 0x13c   :  { %962 = vst [vmem:[%s1606_s3 + $0x18] sm:$0xff] %v958_v37 }
 0x13d   :  { %960 = vst [vmem:[%s1606_s3 + $0x8] sm:$0xff] %v956_v38 }

// kernel: resnet18_conv5_forward.26
= control target key start
LH: loop header
LB: loop body
LE: loop exit
PB: predicated region body
PF: predicated region fallthrough
CT: control target
= control target key end

     0   :  { %s1631_s1 = inlined_call_operand.vmem [shape: bf16[1152,128], index: 1, kind: input, shape index: {}]   ;;  %s1632_s0 = inlined_call_operand.vmem [shape: bf16[32,1152], index: 0, kind: input, shape index: {}]   ;;  %s1633_s2 = inlined_call_operand.vmem [shape: f32[1,128], index: 2, kind: input, shape index: {}]   ;;  %s1634_s3 = inlined_call_operand.vmem [shape: f32[32,128], index: 3, kind: input, shape index: {}]   ;;  %s1635_s4 = inlined_call_operand.vmem [shape: f32[32,128], index: 4, kind: output, shape index: {}]  }
   0x1   :  { %v1211_v0 = vld [vmem:[%s1631_s1 + $0x40] sm:$0xff]   ;;  %v1215_v4 = vld [vmem:[%s1631_s1 + $0x48] sm:$0xff]   ;;  %v1219_v8 = vld [vmem:[%s1631_s1 + $0x50] sm:$0xff]  }
   0x2   :  { %v1212_v1 = vld [vmem:[%s1631_s1] sm:$0xff]   ;;  %1069 = vmatprep.subr.bf16.mxu0 %v1211_v0  ;;  %v1216_v5 = vld [vmem:[%s1631_s1 + $0x8] sm:$0xff]   ;;  %v1220_v9 = vld [vmem:[%s1631_s1 + $0x10] sm:$0xff]  }
   0x3   :  { %v1213_v2 = vld [vmem:[%s1631_s1 + $0xc0] sm:$0xff]   ;;  %1070 = vmatpush3.bf16.msra.mxu0 %v1212_v1  ;;  %v1217_v6 = vld [vmem:[%s1631_s1 + $0xc8] sm:$0xff]   ;;  %v1221_v10 = vld [vmem:[%s1631_s1 + $0xd0] sm:$0xff]  }
   0x4   :  { %v1214_v3 = vld [vmem:[%s1631_s1 + $0x80] sm:$0xff]   ;;  %1097 = vmatprep.subr.bf16.mxu1 %v1213_v2  ;;  %1071 = vmatprep.subr.bf16.mxu0 %v1215_v4  ;;  %v1218_v7 = vld [vmem:[%s1631_s1 + $0x88] sm:$0xff]   ;;  %v1222_v11 = vld [vmem:[%s1631_s1 + $0x90] sm:$0xff]  }
   0x5   :  { %1098 = vmatpush3.bf16.msra.mxu1 %v1214_v3  ;;  %v1223_v12 = vld [vmem:[%s1631_s1 + $0x58] sm:$0xff]   ;;  %v1227_v16 = vld [vmem:[%s1631_s1 + $0x60] sm:$0xff]   ;;  %v1231_v20 = vld [vmem:[%s1631_s1 + $0x68] sm:$0xff]  }
   0x6   :  { %1099 = vmatprep.subr.bf16.mxu1 %v1217_v6  ;;  %v1224_v13 = vld [vmem:[%s1631_s1 + $0x18] sm:$0xff]   ;;  %v1228_v17 = vld [vmem:[%s1631_s1 + $0x20] sm:$0xff]   ;;  %v1232_v21 = vld [vmem:[%s1631_s1 + $0x28] sm:$0xff]  }
   0x7   :  { %1072 = vmatpush3.bf16.msra.mxu0 %v1216_v5  ;;  %v1225_v14 = vld [vmem:[%s1631_s1 + $0xd8] sm:$0xff]   ;;  %v1229_v18 = vld [vmem:[%s1631_s1 + $0xe0] sm:$0xff]   ;;  %v1233_v22 = vld [vmem:[%s1631_s1 + $0xe8] sm:$0xff]  }
   0x8   :  { %1073 = vmatprep.subr.bf16.mxu0 %v1219_v8  ;;  %v1226_v15 = vld [vmem:[%s1631_s1 + $0x98] sm:$0xff]   ;;  %v1230_v19 = vld [vmem:[%s1631_s1 + $0xa0] sm:$0xff]   ;;  %v1234_v23 = vld [vmem:[%s1631_s1 + $0xa8] sm:$0xff]  }
   0x9   :  { %1100 = vmatpush3.bf16.msra.mxu1 %v1218_v7  ;;  %v1235_v24 = vld [vmem:[%s1631_s1 + $0x70] sm:$0xff]   ;;  %v1239_v28 = vld [vmem:[%s1631_s1 + $0x78] sm:$0xff]   ;;  %v1242_v31 = vld [vmem:[%s1632_s0] ss:$36 sps:$4 sm:$0xff]  }
   0xa   :  { %1101 = vmatprep.subr.bf16.mxu1 %v1221_v10  ;;  %v1236_v25 = vld [vmem:[%s1631_s1 + $0x30] sm:$0xff]   ;;  %v1240_v29 = vld [vmem:[%s1631_s1 + $0x38] sm:$0xff]   ;;  %v1244_v32 = vld [vmem:[%s1632_s0 + $0x4] ss:$36 sps:$4 sm:$0xff]  }
   0xb   :  { %1074 = vmatpush3.bf16.msra.mxu0 %v1220_v9  ;;  %v1237_v26 = vld [vmem:[%s1631_s1 + $0xf0] sm:$0xff]   ;;  %v1241_v30 = vld [vmem:[%s1631_s1 + $0xf8] sm:$0xff]   ;;  %745 = vmatprep.mubr.bf16.mxu0 %v1244_v32  ;;  %v1246_v34 = vld [vmem:[%s1631_s1 + $0x140] sm:$0xff]  }
   0xc   :  { %1075 = vmatprep.subr.bf16.mxu0 %v1223_v12  ;;  %v1238_v27 = vld [vmem:[%s1631_s1 + $0xb0] sm:$0xff]   ;;  %v1245_v33 = vld [vmem:[%s1631_s1 + $0xb8] sm:$0xff]   ;;  %v1247_v35 = vld [vmem:[%s1632_s0 + $0x8] ss:$36 sps:$4 sm:$0xff]  }
   0xd   :  { %1102 = vmatpush3.bf16.msra.mxu1 %v1222_v11  ;;  %v1249_v36 = vld [vmem:[%s1632_s0 + $0xc] ss:$36 sps:$4 sm:$0xff]   ;;  %v1250_v37 = vld [vmem:[%s1631_s1 + $0x100] sm:$0xff]   ;;  %v1261_v48 = vld [vmem:[%s1631_s1 + $0x158] sm:$0xff]  }
   0xe   :  { %1103 = vmatprep.subr.bf16.mxu1 %v1225_v14  ;;  %794 = vmatprep.mubr.bf16.mxu1 %v1249_v36  ;;  %v1251_v38 = vld [vmem:[%s1631_s1 + $0x1c0] sm:$0xff]   ;;  %v1253_v40 = vld [vmem:[%s1631_s1 + $0x148] sm:$0xff]   ;;  %v1257_v44 = vld [vmem:[%s1631_s1 + $0x150] sm:$0xff]  }
   0xf   :  { %1076 = vmatpush3.bf16.msra.mxu0 %v1224_v13  ;;  %v1252_v39 = vld [vmem:[%s1631_s1 + $0x180] sm:$0xff]   ;;  %v1254_v41 = vld [vmem:[%s1631_s1 + $0x108] sm:$0xff]   ;;  %v1258_v45 = vld [vmem:[%s1631_s1 + $0x110] sm:$0xff]  }
  0x10   :  { %1077 = vmatprep.subr.bf16.mxu0 %v1227_v16  ;;  %v1255_v42 = vld [vmem:[%s1631_s1 + $0x1c8] sm:$0xff]   ;;  %v1259_v46 = vld [vmem:[%s1631_s1 + $0x1d0] sm:$0xff]   ;;  %v1262_v49 = vld [vmem:[%s1631_s1 + $0x118] sm:$0xff]  }
  0x11   :  { %1104 = vmatpush3.bf16.msra.mxu1 %v1226_v15  ;;  %v1256_v43 = vld [vmem:[%s1631_s1 + $0x188] sm:$0xff]   ;;  %v1260_v47 = vld [vmem:[%s1631_s1 + $0x190] sm:$0xff]   ;;  %v1263_v50 = vld [vmem:[%s1631_s1 + $0x1d8] sm:$0xff]  }
  0x12   :  { %1105 = vmatprep.subr.bf16.mxu1 %v1229_v18  ;;  %v1264_v51 = vld [vmem:[%s1631_s1 + $0x198] sm:$0xff]   ;;  %v1265_v52 = vld [vmem:[%s1631_s1 + $0x160] sm:$0xff]   ;;  %v1269_v56 = vld [vmem:[%s1631_s1 + $0x168] sm:$0xff]  }
  0x13   :  { %1078 = vmatpush3.bf16.msra.mxu0 %v1228_v17  ;;  %v1266_v53 = vld [vmem:[%s1631_s1 + $0x120] sm:$0xff]   ;;  %v1270_v57 = vld [vmem:[%s1632_s0 + $0x4c] ss:$36 sps:$4 sm:$0xff]   ;;  %v1275_v61 = vld [vmem:[%s1632_s0 + $0x54] ss:$36 sps:$4 sm:$0xff]  }
  0x14   :  { %1079 = vmatprep.subr.bf16.mxu0 %v1231_v20  ;;  %v1267_v54 = vld [vmem:[%s1631_s1 + $0x1e0] sm:$0xff]   ;;  %v1272_v58 = vld [vmem:[%s1631_s1 + $0x128] sm:$0xff]   ;;  %v1278_v63 = vld [vmem:[%s1632_s0 + $0x50] ss:$36 sps:$4 sm:$0xff]  }
  0x15   :  { %1106 = vmatpush3.bf16.msra.mxu1 %v1230_v19  ;;  %v1268_v55 = vld [vmem:[%s1631_s1 + $0x1a0] sm:$0xff]   ;;  %v1273_v59 = vld [vmem:[%s1632_s0 + $0x48] ss:$36 sps:$4 sm:$0xff]   ;;  %v1279_v0 = vld [vmem:[%s1631_s1 + $0x170] sm:$0xff]  }
  0x16   :  { %1107 = vmatprep.subr.bf16.mxu1 %v1233_v22  ;;  %v1274_v60 = vld [vmem:[%s1631_s1 + $0x1e8] sm:$0xff]   ;;  %v1280_v1 = vld [vmem:[%s1631_s1 + $0x130] sm:$0xff]   ;;  %v1283_v4 = vld [vmem:[%s1631_s1 + $0x178] sm:$0xff]  }
  0x17   :  { %1080 = vmatpush3.bf16.msra.mxu0 %v1232_v21  ;;  %v1277_v62 = vld [vmem:[%s1631_s1 + $0x1a8] sm:$0xff]   ;;  %v1281_v2 = vld [vmem:[%s1631_s1 + $0x1f0] sm:$0xff]   ;;  %v1284_v5 = vld [vmem:[%s1631_s1 + $0x138] sm:$0xff]  }
  0x18   :  { %1081 = vmatprep.subr.bf16.mxu0 %v1235_v24  ;;  %v1282_v3 = vld [vmem:[%s1631_s1 + $0x1b0] sm:$0xff]   ;;  %v1285_v6 = vld [vmem:[%s1631_s1 + $0x1f8] sm:$0xff]   ;;  %v1290_v10 = vld [vmem:[%s1631_s1 + $0x200] sm:$0xff]  }
  0x19   :  { %1108 = vmatpush3.bf16.msra.mxu1 %v1234_v23  ;;  %v1286_v7 = vld [vmem:[%s1632_s0 + $0x10] ss:$36 sps:$4 sm:$0xff]   ;;  %v1289_v9 = vld [vmem:[%s1631_s1 + $0x1b8] sm:$0xff]   ;;  %v1294_v13 = vld [vmem:[%s1631_s1 + $0x208] sm:$0xff]  }
  0x1a   :  { %1109 = vmatprep.subr.bf16.mxu1 %v1237_v26  ;;  %v1288_v8 = vld [vmem:[%s1632_s0 + $0x14] ss:$36 sps:$4 sm:$0xff]   ;;  %v1293_v12 = vld [vmem:[%s1632_s0 + $0x1c] ss:$36 sps:$4 sm:$0xff]   ;;  %v1299_v17 = vld [vmem:[%s1632_s0 + $0x64] ss:$36 sps:$4 sm:$0xff]  }
  0x1b   :  { %1082 = vmatpush3.bf16.msra.mxu0 %v1236_v25  ;;  %v1291_v11 = vld [vmem:[%s1632_s0 + $0x18] ss:$36 sps:$4 sm:$0xff]   ;;  %v1298_v16 = vld [vmem:[%s1631_s1 + $0x210] sm:$0xff]   ;;  %v1301_v18 = vld [vmem:[%s1632_s0 + $0x60] ss:$36 sps:$4 sm:$0xff]  }
  0x1c   :  { %1083 = vmatprep.subr.bf16.mxu0 %v1239_v28  ;;  %v1295_v14 = vld [vmem:[%s1632_s0 + $0x5c] ss:$36 sps:$4 sm:$0xff]   ;;  %v1304_v22 = vld [vmem:[%s1631_s1 + $0x228] sm:$0xff]   ;;  %v1305_v23 = vld [vmem:[%s1631_s1 + $0x230] sm:$0xff]  }
  0x1d   :  { %1110 = vmatpush3.bf16.msra.mxu1 %v1238_v27  ;;  %v1297_v15 = vld [vmem:[%s1632_s0 + $0x58] ss:$36 sps:$4 sm:$0xff]   ;;  %v1303_v20 = vld [vmem:[%s1631_s1 + $0x220] sm:$0xff]   ;;  %v1308_v25 = vld [vmem:[%s1632_s0 + $0x68] ss:$36 sps:$4 sm:$0xff]  }
  0x1e   :  { %1111 = vmatprep.subr.bf16.mxu1 %v1241_v30  ;;  %v1302_v19 = vld [vmem:[%s1631_s1 + $0x218] sm:$0xff]   ;;  %v1307_v21 = vld [vmem:[%s1632_s0 + $0x20] ss:$36 sps:$4 sm:$0xff]  }
  0x1f   :  { %1084 = vmatpush3.bf16.msra.mxu0 %v1240_v29  ;;  %v1306_v24 = vld [vmem:[%s1631_s1 + $0x238] sm:$0xff]   ;;  %v978_v27 = vld [vmem:[%s1633_s2] ss:$0 sm:$0xff] }
  0x20   :  { %1125 = vmatprep.subr.bf16.mxu0 %v1246_v34 }
  0x21   :  { %1112 = vmatpush3.bf16.msra.mxu1 %v1245_v33 }
  0x22   :  { %746 = vmatmul.mubr.bf16.vlgmr.msra.gmra.mrb[0].mxu0 %v1242_v31  ;;  %1153 = vmatprep.subr.bf16.mxu1 %v1251_v38 }
  0x23   :  { %1126 = vmatpush3.bf16.msra.mxu0 %v1250_v37  ;;  %753 = vmatprep.mubr.bf16.mxu0 %v1270_v57 }
  0x24   :  { %795 = vmatmul.mubr.bf16.vlgmr.msra.gmra.mrb[0].mxu1 %v1247_v35  ;;  %1127 = vmatprep.subr.bf16.mxu0 %v1253_v40 }
  0x25   :  { %1154 = vmatpush3.bf16.msra.mxu1 %v1252_v39  ;;  %802 = vmatprep.mubr.bf16.mxu1 %v1275_v61 }
  0x26   :  { %1155 = vmatprep.subr.bf16.mxu1 %v1255_v42 }
  0x27   :  { %1128 = vmatpush3.bf16.msra.mxu0 %v1254_v41 }
  0x28   :  { %1129 = vmatprep.subr.bf16.mxu0 %v1257_v44 }
  0x29   :  { %1156 = vmatpush3.bf16.msra.mxu1 %v1256_v43 }
  0x2a   :  { %1157 = vmatprep.subr.bf16.mxu1 %v1259_v46  ;;  %754 = vmatmul.mubr.bf16.gmra.mrb[4].mxu0 %v1273_v59 }
  0x2b   :  { %1130 = vmatpush3.bf16.msra.mxu0 %v1258_v45  ;;  %843 = vmatprep.mubr.bf16.mxu0 %v1288_v8 }
  0x2c   :  { %1131 = vmatprep.subr.bf16.mxu0 %v1261_v48  ;;  %803 = vmatmul.mubr.bf16.gmra.mrb[4].mxu1 %v1278_v63 }
  0x2d   :  { %1158 = vmatpush3.bf16.msra.mxu1 %v1260_v47  ;;  %892 = vmatprep.mubr.bf16.mxu1 %v1293_v12 }
  0x2e   :  { %1159 = vmatprep.subr.bf16.mxu1 %v1263_v50 }
  0x2f   :  { %1132 = vmatpush3.bf16.msra.mxu0 %v1262_v49 }
  0x30   :  { %1133 = vmatprep.subr.bf16.mxu0 %v1265_v52 }
  0x31   :  { %1160 = vmatpush3.bf16.msra.mxu1 %v1264_v51 }
  0x32   :  { %1161 = vmatprep.subr.bf16.mxu1 %v1267_v54 }
  0x33   :  { %1134 = vmatpush3.bf16.msra.mxu0 %v1266_v53 }
  0x34   :  { %1135 = vmatprep.subr.bf16.mxu0 %v1269_v56 }
  0x35   :  { %1162 = vmatpush3.bf16.msra.mxu1 %v1268_v55 }
  0x36   :  { %1163 = vmatprep.subr.bf16.mxu1 %v1274_v60 }
  0x37   :  { %1136 = vmatpush3.bf16.msra.mxu0 %v1272_v58 }
  0x38   :  { %1137 = vmatprep.subr.bf16.mxu0 %v1279_v0 }
  0x39   :  { %1164 = vmatpush3.bf16.msra.mxu1 %v1277_v62 }
  0x3a   :  { %1165 = vmatprep.subr.bf16.mxu1 %v1281_v2 }
  0x3b   :  { %1138 = vmatpush3.bf16.msra.mxu0 %v1280_v1 }
  0x3c   :  { %1139 = vmatprep.subr.bf16.mxu0 %v1283_v4 }
  0x3d   :  { %1166 = vmatpush3.bf16.msra.mxu1 %v1282_v3 }
  0x3e   :  { %1167 = vmatprep.subr.bf16.mxu1 %v1285_v6 }
  0x3f   :  { %1140 = vmatpush3.bf16.msra.mxu0 %v1284_v5 }
  0x40   :  { %1191 = vmatprep.subr.bf16.mxu0 %v1290_v10 }
  0x41   :  { %1168 = vmatpush3.bf16.msra.mxu1 %v1289_v9 }
  0x42   :  { %844 = vmatmul.mubr.bf16.vlgmr.msra.gmra.mrb[8].mxu0 %v1286_v7 }
  0x43   :  { %1192 = vmatpush3.bf16.msra.mxu0 %v1290_v10  ;;  %851 = vmatprep.mubr.bf16.mxu0 %v1295_v14 }
  0x44   :  { %893 = vmatmul.mubr.bf16.vlgmr.msra.gmra.mrb[8].mxu1 %v1291_v11  ;;  %1193 = vmatprep.subr.bf16.mxu0 %v1294_v13 }
  0x45   :  { %900 = vmatprep.mubr.bf16.mxu1 %v1299_v17 }
  0x47   :  { %1194 = vmatpush3.bf16.msra.mxu0 %v1294_v13 }
  0x48   :  { %1195 = vmatprep.subr.bf16.mxu0 %v1298_v16 }
  0x4a   :  { %852 = vmatmul.mubr.bf16.gmra.mrb[12].mxu0 %v1297_v15 }
  0x4b   :  { %1196 = vmatpush3.bf16.msra.mxu0 %v1298_v16  ;;  %1207 = vmatprep.mubr.bf16.mxu0 %v1307_v21 }
  0x4c   :  { %901 = vmatmul.mubr.bf16.gmra.mrb[12].mxu1 %v1301_v18  ;;  %1197 = vmatprep.subr.bf16.mxu0 %v1302_v19 }
  0x4f   :  { %1198 = vmatpush3.bf16.msra.mxu0 %v1302_v19 }
  0x50   :  { %1199 = vmatprep.subr.bf16.mxu0 %v1303_v20 }
  0x53   :  { %1200 = vmatpush3.bf16.msra.mxu0 %v1303_v20 }
  0x54   :  { %1201 = vmatprep.subr.bf16.mxu0 %v1304_v22 }
  0x57   :  { %1202 = vmatpush3.bf16.msra.mxu0 %v1304_v22 }
  0x58   :  { %1203 = vmatprep.subr.bf16.mxu0 %v1305_v23 }
  0x5b   :  { %1204 = vmatpush3.bf16.msra.mxu0 %v1305_v23 }
  0x5c   :  { %1205 = vmatprep.subr.bf16.mxu0 %v1306_v24 }
  0x5f   :  { %1206 = vmatpush3.bf16.msra.mxu0 %v1306_v24 }
  0x62   :  { %1208 = vmatmul.mubr.bf16.vlgmr.msra.gmra.mrb[16].mxu0 %v1308_v25 }
  0xf5   :  { %v1085_v26 = vpop.f32.mrb[0].mxu0 }
  0xf6   :  { %v1086_v28 = vpop.f32.mrb[1].mxu0 }
  0xf7   :  { %v1087_v29 = vadd.f32 %v1086_v28, %v1085_v26  ;;  %v1088_v30 = vpop.f32.mrb[2].mxu0  ;;  %v1113_v31 = vpop.f32.mrb[0].mxu1  ;;  %v960_v28 = vld [vmem:[%s1634_s3 + $0x10] sm:$0xff] }
  0xf8   :  { %v1089_v32 = vpop.f32.mrb[3].mxu0  ;;  %v1114_v35 = vpop.f32.mrb[1].mxu1 }
  0xf9   :  { %v748_v33 = vadd.f32 %v1087_v29, %v978_v27  ;;  %v1090_v34 = vadd.f32 %v1089_v32, %v1088_v30  ;;  %v1115_v36 = vadd.f32 %v1114_v35, %v1113_v31  ;;  %v1116_v37 = vpop.f32.mrb[2].mxu1  ;;  %v958_v31 = vld [vmem:[%s1634_s3] sm:$0xff] }
  0xfa   :  { %v1117_v39 = vpop.f32.mrb[3].mxu1 }
  0xfb   :  { %v751_v38 = vadd.f32 %v1090_v34, %v978_v27  ;;  %v797_v40 = vadd.f32 %v1115_v36, %v748_v33  ;;  %v1118_v41 = vadd.f32 %v1117_v39, %v1116_v37  ;;  %v961_v34 = vld [vmem:[%s1634_s3 + $0x18] sm:$0xff] }
  0xfd   :  { %v800_v42 = vadd.f32 %v1118_v41, %v751_v38  ;;  %v1091_v43 = vpop.f32.mrb[4].mxu0  ;;  %v959_v38 = vld [vmem:[%s1634_s3 + $0x8] sm:$0xff] }
  0xfe   :  { %v1092_v44 = vpop.f32.mrb[5].mxu0 }
  0xff   :  { %v1093_v45 = vadd.f32 %v1092_v44, %v1091_v43  ;;  %v1094_v46 = vpop.f32.mrb[6].mxu0  ;;  %v1119_v47 = vpop.f32.mrb[4].mxu1 }
 0x100   :  { %v1095_v48 = vpop.f32.mrb[7].mxu0  ;;  %v1120_v51 = vpop.f32.mrb[5].mxu1 }
 0x101   :  { %v756_v49 = vadd.f32 %v1093_v45, %v978_v27  ;;  %v1096_v50 = vadd.f32 %v1095_v48, %v1094_v46  ;;  %v1121_v52 = vadd.f32 %v1120_v51, %v1119_v47  ;;  %v1122_v53 = vpop.f32.mrb[6].mxu1 }
 0x102   :  { %v1123_v55 = vpop.f32.mrb[7].mxu1 }
 0x103   :  { %v759_v54 = vadd.f32 %v1096_v50, %v978_v27  ;;  %v805_v56 = vadd.f32 %v1121_v52, %v756_v49  ;;  %v1124_v57 = vadd.f32 %v1123_v55, %v1122_v53 }
 0x105   :  { %v808_v58 = vadd.f32 %v1124_v57, %v759_v54 }
 0x115   :  { %v1141_v59 = vpop.f32.mrb[8].mxu0 }
 0x116   :  { %v1142_v60 = vpop.f32.mrb[9].mxu0 }
 0x117   :  { %v1143_v61 = vadd.f32 %v1142_v60, %v1141_v59  ;;  %v1144_v62 = vpop.f32.mrb[10].mxu0  ;;  %v1169_v63 = vpop.f32.mrb[8].mxu1 }
 0x118   :  { %v1145_v0 = vpop.f32.mrb[11].mxu0  ;;  %v1170_v3 = vpop.f32.mrb[9].mxu1 }
 0x119   :  { %v846_v1 = vadd.f32 %v1143_v61, %v797_v40  ;;  %v1146_v2 = vadd.f32 %v1145_v0, %v1144_v62  ;;  %v1171_v4 = vadd.f32 %v1170_v3, %v1169_v63  ;;  %v1172_v5 = vpop.f32.mrb[10].mxu1 }
 0x11a   :  { %v1173_v7 = vpop.f32.mrb[11].mxu1 }
 0x11b   :  { %v849_v6 = vadd.f32 %v1146_v2, %v800_v42  ;;  %v1174_v8 = vadd.f32 %v1173_v7, %v1172_v5  ;;  %v895_v9 = vadd.f32 %v1171_v4, %v846_v1 }
 0x11d   :  { %v1147_v10 = vpop.f32.mrb[12].mxu0  ;;  %v898_v12 = vadd.f32 %v1174_v8, %v849_v6 }
 0x11e   :  { %v1148_v11 = vpop.f32.mrb[13].mxu0 }
 0x11f   :  { %v1149_v13 = vadd.f32 %v1148_v11, %v1147_v10  ;;  %v1150_v14 = vpop.f32.mrb[14].mxu0  ;;  %v1175_v15 = vpop.f32.mrb[12].mxu1 }
 0x120   :  { %v1151_v16 = vpop.f32.mrb[15].mxu0  ;;  %v1176_v19 = vpop.f32.mrb[13].mxu1 }
 0x121   :  { %v854_v17 = vadd.f32 %v1149_v13, %v805_v56  ;;  %v1152_v18 = vadd.f32 %v1151_v16, %v1150_v14  ;;  %v1177_v20 = vadd.f32 %v1176_v19, %v1175_v15  ;;  %v1178_v21 = vpop.f32.mrb[14].mxu1 }
 0x122   :  { %v1179_v23 = vpop.f32.mrb[15].mxu1 }
 0x123   :  { %v857_v22 = vadd.f32 %v1152_v18, %v808_v58  ;;  %v1180_v24 = vadd.f32 %v1179_v23, %v1178_v21  ;;  %v903_v25 = vadd.f32 %v1177_v20, %v854_v17 }
 0x125   :  { %v906_v26 = vadd.f32 %v1180_v24, %v857_v22 }
 0x135   :  { %v1209_v27 = vpop.f32.mrb[16].mxu0 }
 0x136   :  { %v952_v29 = vadd.f32 %v1209_v27, %v903_v25  ;;  %v943_v30 = vpop.f32.mrb[17].mxu0 }
 0x137   :  { %v944_v32 = vadd.f32 %v943_v30, %v895_v9  ;;  %v1210_v33 = vpop.f32.mrb[18].mxu0 }
 0x138   :  { %v964_v35 = vadd.f32 %v960_v28, %v952_v29  ;;  %v955_v36 = vadd.f32 %v1210_v33, %v906_v26  ;;  %v946_v37 = vpop.f32.mrb[19].mxu0 }
 0x139   :  { %v962_v39 = vadd.f32 %v958_v31, %v944_v32  ;;  %v947_v40 = vadd.f32 %v946_v37, %v898_v12 }
 0x13a   :  { %v968_v41 = vmax.f32 %v964_v35, 0.0  ;;  %v965_v42 = vadd.f32 %v961_v34, %v955_v36 }
 0x13b   :  { %v966_v43 = vmax.f32 %v962_v39, 0.0  ;;  %v963_v44 = vadd.f32 %v959_v38, %v947_v40 }
 0x13c   :  { %972 = vst [vmem:[%s1635_s4 + $0x10] sm:$0xff] %v968_v41  ;;  %v969_v45 = vmax.f32 %v965_v42, 0.0 }
 0x13d   :  { %970 = vst [vmem:[%s1635_s4] sm:$0xff] %v966_v43  ;;  %v967_v46 = vmax.f32 %v963_v44, 0.0 }
 0x13e   :  { %973 = vst [vmem:[%s1635_s4 + $0x18] sm:$0xff] %v969_v45 }
 0x13f   :  { %971 = vst [vmem:[%s1635_s4 + $0x8] sm:$0xff] %v967_v46 }

// kernel: resnet18_conv5_forward.29
= control target key start
LH: loop header
LB: loop body
LE: loop exit
PB: predicated region body
PF: predicated region fallthrough
CT: control target
= control target key end

     0   :  { %s2165_s12 = smov 0   ;;  %s2167_s13 = smov 0   ;;  %s2643_s0 = inlined_call_operand.vmem [shape: bf16[8,1152], index: 0, kind: input, shape index: {}]   ;;  %s2644_s1 = inlined_call_operand.vmem [shape: bf16[1152,256], index: 1, kind: input, shape index: {}]   ;;  %s2645_s2 = inlined_call_operand.vmem [shape: f32[1,256], index: 2, kind: input, shape index: {}]   ;;  %s2646_s3 = inlined_call_operand.vmem [shape: f32[8,256], index: 3, kind: output, shape index: {}]  }
   0x1   :  { %s2169_s14 = smov 0   ;;  %s2171_s15 = smov 0  }
   0x2   :  { %s2173_s16 = smov 0  }
   0x3 LB: > { %s22_s17 = sadd.s32 1, %s2137_s15  ;;  %p65_p1 = scmp.ne.s32.totalorder %s2129_s13, %s2125_s12  ;;  %s2141_s16 = sphi %s2173_s16, %s13_s16   ;;  %s2137_s15 = sphi %s2171_s15, %s2650_s15   ;;  %s2133_s14 = sphi %s2169_s14, %s2649_s14   ;;  %s2129_s13 = sphi %s2167_s13, %s2648_s13   ;;  %s2125_s12 = sphi %s2165_s12, %s2647_s12  }
   0x4   : > { %p23_p0 = scmp.ge.s32.totalorder %s22_s17, 2  ;;  %p66_p2 = scmp.eq.s32.totalorder %s2141_s16, 0 }
   0x5   : > { %s58_s19 = sadd.s32 1, %s2129_s13  ;;  %p1773_p5 = scmp.ge.s32.totalorder %s2141_s16, 2 }
   0x6   : > { %s2652_s17 = smov (%p23_p0, %s22_s17), 0  ;;  %p67_p3 = por %p66_p2, %p65_p1 }
   0x7   : > { %s55_s18 = ssub.s32 %s2137_s15, %s2652_s17  ;;  %153 = sbr.rel (%p1773_p5) target bundleno = 114 (0x72), region = 20 }
   0x8   : > { %p56_p4 = scmp.eq.s32.totalorder %s55_s18, 0 }
   0xa   : > { %s2200_s20 = scalar_select %p56_p4, %s2129_s13, %s58_s19  }
   0xe   : > { %156 = sbr.rel (!%p67_p3) target bundleno = 114 (0x72), region = 24  ;;  %s158_s21 = sand.u32 (%p67_p3), 1, %s2129_s13  }
   0xf   : > { %s1774_s22 = sshll.u32 (%p67_p3), %s2137_s15, 2  ;;  %s1978_s23 = smul.u32 (%p67_p3), 576, %s158_s21 }
  0x10   : > { %s2208_s26 = scalar_lea.vmem (%p67_p3), %s2644_s1, %s1774_s22 }
  0x11   : > { %v178_v0 = vld [vmem:[%s2208_s26] sm:$0xf] (%p67_p3)  ;;  %v180_v1 = vld [vmem:[%s2208_s26 + $0x8] sm:$0xf] (%p67_p3)  ;;  %v182_v2 = vld [vmem:[%s2208_s26 + $0x10] sm:$0xf] (%p67_p3) }
  0x12   : > { %v184_v3 = vld [vmem:[%s2208_s26 + $0x18] sm:$0xf] (%p67_p3)  ;;  %v186_v4 = vld [vmem:[%s2208_s26 + $0x20] sm:$0xf] (%p67_p3)  ;;  %s2215_s27 = scalar_lea.vmem (%p67_p3), [#allocation2], %s1978_s23 }
  0x13   : > { %179 = vst [vmem:[%s2215_s27] sm:$0xf] (%p67_p3), %v178_v0  ;;  %181 = vst [vmem:[%s2215_s27 + $0x4] sm:$0xf] (%p67_p3), %v180_v1  ;;  %v188_v5 = vld [vmem:[%s2208_s26 + $0x28] sm:$0xf] (%p67_p3) }
  0x14   : > { %183 = vst [vmem:[%s2215_s27 + $0x8] sm:$0xf] (%p67_p3), %v182_v2  ;;  %185 = vst [vmem:[%s2215_s27 + $0xc] sm:$0xf] (%p67_p3), %v184_v3  ;;  %v190_v6 = vld [vmem:[%s2208_s26 + $0x30] sm:$0xf] (%p67_p3) }
  0x15   : > { %187 = vst [vmem:[%s2215_s27 + $0x10] sm:$0xf] %v186_v4  ;;  %v192_v7 = vld [vmem:[%s2208_s26 + $0x38] sm:$0xf]  ;;  %189 = vst [vmem:[%s2215_s27 + $0x14] sm:$0xf] %v188_v5 }
  0x16   : > { %191 = vst [vmem:[%s2215_s27 + $0x18] sm:$0xf] %v190_v6  ;;  %193 = vst [vmem:[%s2215_s27 + $0x1c] sm:$0xf] %v192_v7  ;;  %v194_v8 = vld [vmem:[%s2208_s26 + $0x40] sm:$0xf] }
  0x17   : > { %v196_v9 = vld [vmem:[%s2208_s26 + $0x48] sm:$0xf]  ;;  %v198_v10 = vld [vmem:[%s2208_s26 + $0x50] sm:$0xf]  ;;  %195 = vst [vmem:[%s2215_s27 + $0x20] sm:$0xf] %v194_v8 }
  0x18   : > { %197 = vst [vmem:[%s2215_s27 + $0x24] sm:$0xf] %v196_v9  ;;  %199 = vst [vmem:[%s2215_s27 + $0x28] sm:$0xf] %v198_v10  ;;  %v200_v11 = vld [vmem:[%s2208_s26 + $0x58] sm:$0xf] }
  0x19   : > { %v202_v12 = vld [vmem:[%s2208_s26 + $0x60] sm:$0xf]  ;;  %v204_v13 = vld [vmem:[%s2208_s26 + $0x68] sm:$0xf]  ;;  %201 = vst [vmem:[%s2215_s27 + $0x2c] sm:$0xf] %v200_v11 }
  0x1a   : > { %203 = vst [vmem:[%s2215_s27 + $0x30] sm:$0xf] %v202_v12  ;;  %205 = vst [vmem:[%s2215_s27 + $0x34] sm:$0xf] %v204_v13  ;;  %v206_v14 = vld [vmem:[%s2208_s26 + $0x70] sm:$0xf] }
  0x1b   : > { %v208_v15 = vld [vmem:[%s2208_s26 + $0x78] sm:$0xf]  ;;  %v210_v16 = vld [vmem:[%s2208_s26 + $0x80] sm:$0xf]  ;;  %207 = vst [vmem:[%s2215_s27 + $0x38] sm:$0xf] %v206_v14 }
  0x1c   : > { %209 = vst [vmem:[%s2215_s27 + $0x3c] sm:$0xf] %v208_v15  ;;  %211 = vst [vmem:[%s2215_s27 + $0x40] sm:$0xf] %v210_v16  ;;  %v212_v17 = vld [vmem:[%s2208_s26 + $0x88] sm:$0xf] }
  0x1d   : > { %v214_v18 = vld [vmem:[%s2208_s26 + $0x90] sm:$0xf]  ;;  %v216_v19 = vld [vmem:[%s2208_s26 + $0x98] sm:$0xf]  ;;  %213 = vst [vmem:[%s2215_s27 + $0x44] sm:$0xf] %v212_v17 }
  0x1e   : > { %215 = vst [vmem:[%s2215_s27 + $0x48] sm:$0xf] %v214_v18  ;;  %217 = vst [vmem:[%s2215_s27 + $0x4c] sm:$0xf] %v216_v19  ;;  %v218_v20 = vld [vmem:[%s2208_s26 + $0xa0] sm:$0xf] }
  0x1f   : > { %v220_v21 = vld [vmem:[%s2208_s26 + $0xa8] sm:$0xf]  ;;  %v222_v22 = vld [vmem:[%s2208_s26 + $0xb0] sm:$0xf]  ;;  %219 = vst [vmem:[%s2215_s27 + $0x50] sm:$0xf] %v218_v20 }
  0x20   : > { %221 = vst [vmem:[%s2215_s27 + $0x54] sm:$0xf] %v220_v21  ;;  %223 = vst [vmem:[%s2215_s27 + $0x58] sm:$0xf] %v222_v22  ;;  %v224_v23 = vld [vmem:[%s2208_s26 + $0xb8] sm:$0xf] }
  0x21   : > { %v226_v24 = vld [vmem:[%s2208_s26 + $0xc0] sm:$0xf]  ;;  %v228_v25 = vld [vmem:[%s2208_s26 + $0xc8] sm:$0xf]  ;;  %225 = vst [vmem:[%s2215_s27 + $0x5c] sm:$0xf] %v224_v23 }
  0x22   : > { %227 = vst [vmem:[%s2215_s27 + $0x60] sm:$0xf] %v226_v24  ;;  %229 = vst [vmem:[%s2215_s27 + $0x64] sm:$0xf] %v228_v25  ;;  %v230_v26 = vld [vmem:[%s2208_s26 + $0xd0] sm:$0xf] }
  0x23   : > { %v232_v27 = vld [vmem:[%s2208_s26 + $0xd8] sm:$0xf]  ;;  %v234_v28 = vld [vmem:[%s2208_s26 + $0xe0] sm:$0xf]  ;;  %231 = vst [vmem:[%s2215_s27 + $0x68] sm:$0xf] %v230_v26 }
  0x24   : > { %233 = vst [vmem:[%s2215_s27 + $0x6c] sm:$0xf] %v232_v27  ;;  %235 = vst [vmem:[%s2215_s27 + $0x70] sm:$0xf] %v234_v28  ;;  %v236_v29 = vld [vmem:[%s2208_s26 + $0xe8] sm:$0xf] }
  0x25   : > { %v238_v30 = vld [vmem:[%s2208_s26 + $0xf0] sm:$0xf]  ;;  %v240_v31 = vld [vmem:[%s2208_s26 + $0xf8] sm:$0xf]  ;;  %237 = vst [vmem:[%s2215_s27 + $0x74] sm:$0xf] %v236_v29 }
  0x26   : > { %239 = vst [vmem:[%s2215_s27 + $0x78] sm:$0xf] %v238_v30  ;;  %241 = vst [vmem:[%s2215_s27 + $0x7c] sm:$0xf] %v240_v31  ;;  %v242_v32 = vld [vmem:[%s2208_s26 + $0x100] sm:$0xf] }
  0x27   : > { %v244_v33 = vld [vmem:[%s2208_s26 + $0x108] sm:$0xf]  ;;  %v246_v34 = vld [vmem:[%s2208_s26 + $0x110] sm:$0xf]  ;;  %243 = vst [vmem:[%s2215_s27 + $0x80] sm:$0xf] %v242_v32 }
  0x28   : > { %245 = vst [vmem:[%s2215_s27 + $0x84] sm:$0xf] %v244_v33  ;;  %247 = vst [vmem:[%s2215_s27 + $0x88] sm:$0xf] %v246_v34  ;;  %v248_v35 = vld [vmem:[%s2208_s26 + $0x118] sm:$0xf] }
  0x29   : > { %v250_v36 = vld [vmem:[%s2208_s26 + $0x120] sm:$0xf]  ;;  %v252_v37 = vld [vmem:[%s2208_s26 + $0x128] sm:$0xf]  ;;  %249 = vst [vmem:[%s2215_s27 + $0x8c] sm:$0xf] %v248_v35 }
  0x2a   : > { %251 = vst [vmem:[%s2215_s27 + $0x90] sm:$0xf] %v250_v36  ;;  %253 = vst [vmem:[%s2215_s27 + $0x94] sm:$0xf] %v252_v37  ;;  %v254_v38 = vld [vmem:[%s2208_s26 + $0x130] sm:$0xf] }
  0x2b   : > { %v256_v39 = vld [vmem:[%s2208_s26 + $0x138] sm:$0xf]  ;;  %v258_v40 = vld [vmem:[%s2208_s26 + $0x140] sm:$0xf]  ;;  %255 = vst [vmem:[%s2215_s27 + $0x98] sm:$0xf] %v254_v38 }
  0x2c   : > { %257 = vst [vmem:[%s2215_s27 + $0x9c] sm:$0xf] %v256_v39  ;;  %259 = vst [vmem:[%s2215_s27 + $0xa0] sm:$0xf] %v258_v40  ;;  %v260_v41 = vld [vmem:[%s2208_s26 + $0x148] sm:$0xf] }
  0x2d   : > { %v262_v42 = vld [vmem:[%s2208_s26 + $0x150] sm:$0xf]  ;;  %v264_v43 = vld [vmem:[%s2208_s26 + $0x158] sm:$0xf]  ;;  %261 = vst [vmem:[%s2215_s27 + $0xa4] sm:$0xf] %v260_v41 }
  0x2e   : > { %263 = vst [vmem:[%s2215_s27 + $0xa8] sm:$0xf] %v262_v42  ;;  %265 = vst [vmem:[%s2215_s27 + $0xac] sm:$0xf] %v264_v43  ;;  %v266_v44 = vld [vmem:[%s2208_s26 + $0x160] sm:$0xf] }
  0x2f   : > { %v268_v45 = vld [vmem:[%s2208_s26 + $0x168] sm:$0xf]  ;;  %v270_v46 = vld [vmem:[%s2208_s26 + $0x170] sm:$0xf]  ;;  %267 = vst [vmem:[%s2215_s27 + $0xb0] sm:$0xf] %v266_v44 }
  0x30   : > { %269 = vst [vmem:[%s2215_s27 + $0xb4] sm:$0xf] %v268_v45  ;;  %271 = vst [vmem:[%s2215_s27 + $0xb8] sm:$0xf] %v270_v46  ;;  %v272_v47 = vld [vmem:[%s2208_s26 + $0x178] sm:$0xf] }
  0x31   : > { %v274_v48 = vld [vmem:[%s2208_s26 + $0x180] sm:$0xf]  ;;  %v276_v49 = vld [vmem:[%s2208_s26 + $0x188] sm:$0xf]  ;;  %273 = vst [vmem:[%s2215_s27 + $0xbc] sm:$0xf] %v272_v47 }
  0x32   : > { %275 = vst [vmem:[%s2215_s27 + $0xc0] sm:$0xf] %v274_v48  ;;  %277 = vst [vmem:[%s2215_s27 + $0xc4] sm:$0xf] %v276_v49  ;;  %v278_v50 = vld [vmem:[%s2208_s26 + $0x190] sm:$0xf] }
  0x33   : > { %v280_v51 = vld [vmem:[%s2208_s26 + $0x198] sm:$0xf]  ;;  %v282_v52 = vld [vmem:[%s2208_s26 + $0x1a0] sm:$0xf]  ;;  %279 = vst [vmem:[%s2215_s27 + $0xc8] sm:$0xf] %v278_v50 }
  0x34   : > { %281 = vst [vmem:[%s2215_s27 + $0xcc] sm:$0xf] %v280_v51  ;;  %283 = vst [vmem:[%s2215_s27 + $0xd0] sm:$0xf] %v282_v52  ;;  %v284_v53 = vld [vmem:[%s2208_s26 + $0x1a8] sm:$0xf] }
  0x35   : > { %v286_v54 = vld [vmem:[%s2208_s26 + $0x1b0] sm:$0xf]  ;;  %v288_v55 = vld [vmem:[%s2208_s26 + $0x1b8] sm:$0xf]  ;;  %285 = vst [vmem:[%s2215_s27 + $0xd4] sm:$0xf] %v284_v53 }
  0x36   : > { %287 = vst [vmem:[%s2215_s27 + $0xd8] sm:$0xf] %v286_v54  ;;  %289 = vst [vmem:[%s2215_s27 + $0xdc] sm:$0xf] %v288_v55  ;;  %v290_v56 = vld [vmem:[%s2208_s26 + $0x1c0] sm:$0xf] }
  0x37   : > { %v292_v57 = vld [vmem:[%s2208_s26 + $0x1c8] sm:$0xf]  ;;  %v294_v58 = vld [vmem:[%s2208_s26 + $0x1d0] sm:$0xf]  ;;  %291 = vst [vmem:[%s2215_s27 + $0xe0] sm:$0xf] %v290_v56 }
  0x38   : > { %293 = vst [vmem:[%s2215_s27 + $0xe4] sm:$0xf] %v292_v57  ;;  %295 = vst [vmem:[%s2215_s27 + $0xe8] sm:$0xf] %v294_v58  ;;  %v296_v59 = vld [vmem:[%s2208_s26 + $0x1d8] sm:$0xf] }
  0x39   : > { %v298_v60 = vld [vmem:[%s2208_s26 + $0x1e0] sm:$0xf]  ;;  %v300_v61 = vld [vmem:[%s2208_s26 + $0x1e8] sm:$0xf]  ;;  %297 = vst [vmem:[%s2215_s27 + $0xec] sm:$0xf] %v296_v59 }
  0x3a   : > { %299 = vst [vmem:[%s2215_s27 + $0xf0] sm:$0xf] %v298_v60  ;;  %301 = vst [vmem:[%s2215_s27 + $0xf4] sm:$0xf] %v300_v61  ;;  %v302_v62 = vld [vmem:[%s2208_s26 + $0x1f0] sm:$0xf] }
  0x3b   : > { %v304_v63 = vld [vmem:[%s2208_s26 + $0x1f8] sm:$0xf]  ;;  %v306_v0 = vld [vmem:[%s2208_s26 + $0x200] sm:$0xf]  ;;  %303 = vst [vmem:[%s2215_s27 + $0xf8] sm:$0xf] %v302_v62 }
  0x3c   : > { %305 = vst [vmem:[%s2215_s27 + $0xfc] sm:$0xf] %v304_v63  ;;  %307 = vst [vmem:[%s2215_s27 + $0x100] sm:$0xf] %v306_v0  ;;  %v308_v1 = vld [vmem:[%s2208_s26 + $0x208] sm:$0xf] }
  0x3d   : > { %v310_v2 = vld [vmem:[%s2208_s26 + $0x210] sm:$0xf]  ;;  %v312_v3 = vld [vmem:[%s2208_s26 + $0x218] sm:$0xf]  ;;  %309 = vst [vmem:[%s2215_s27 + $0x104] sm:$0xf] %v308_v1 }
  0x3e   : > { %311 = vst [vmem:[%s2215_s27 + $0x108] sm:$0xf] %v310_v2  ;;  %313 = vst [vmem:[%s2215_s27 + $0x10c] sm:$0xf] %v312_v3  ;;  %v314_v4 = vld [vmem:[%s2208_s26 + $0x220] sm:$0xf] }
  0x3f   : > { %v316_v5 = vld [vmem:[%s2208_s26 + $0x228] sm:$0xf]  ;;  %v318_v6 = vld [vmem:[%s2208_s26 + $0x230] sm:$0xf]  ;;  %315 = vst [vmem:[%s2215_s27 + $0x110] sm:$0xf] %v314_v4 }
  0x40   : > { %317 = vst [vmem:[%s2215_s27 + $0x114] sm:$0xf] %v316_v5  ;;  %319 = vst [vmem:[%s2215_s27 + $0x118] sm:$0xf] %v318_v6  ;;  %v320_v7 = vld [vmem:[%s2208_s26 + $0x238] sm:$0xf] }
  0x41   : > { %v322_v8 = vld [vmem:[%s2208_s26 + $0x240] sm:$0xf]  ;;  %v324_v9 = vld [vmem:[%s2208_s26 + $0x248] sm:$0xf]  ;;  %321 = vst [vmem:[%s2215_s27 + $0x11c] sm:$0xf] %v320_v7 }
  0x42   : > { %323 = vst [vmem:[%s2215_s27 + $0x120] sm:$0xf] %v322_v8  ;;  %325 = vst [vmem:[%s2215_s27 + $0x124] sm:$0xf] %v324_v9  ;;  %v326_v10 = vld [vmem:[%s2208_s26 + $0x250] sm:$0xf] }
  0x43   : > { %v328_v11 = vld [vmem:[%s2208_s26 + $0x258] sm:$0xf]  ;;  %v330_v12 = vld [vmem:[%s2208_s26 + $0x260] sm:$0xf]  ;;  %327 = vst [vmem:[%s2215_s27 + $0x128] sm:$0xf] %v326_v10 }
  0x44   : > { %329 = vst [vmem:[%s2215_s27 + $0x12c] sm:$0xf] %v328_v11  ;;  %331 = vst [vmem:[%s2215_s27 + $0x130] sm:$0xf] %v330_v12  ;;  %v332_v13 = vld [vmem:[%s2208_s26 + $0x268] sm:$0xf] }
  0x45   : > { %v334_v14 = vld [vmem:[%s2208_s26 + $0x270] sm:$0xf]  ;;  %v336_v15 = vld [vmem:[%s2208_s26 + $0x278] sm:$0xf]  ;;  %333 = vst [vmem:[%s2215_s27 + $0x134] sm:$0xf] %v332_v13 }
  0x46   : > { %335 = vst [vmem:[%s2215_s27 + $0x138] sm:$0xf] %v334_v14  ;;  %337 = vst [vmem:[%s2215_s27 + $0x13c] sm:$0xf] %v336_v15  ;;  %v338_v16 = vld [vmem:[%s2208_s26 + $0x280] sm:$0xf] }
  0x47   : > { %v340_v17 = vld [vmem:[%s2208_s26 + $0x288] sm:$0xf]  ;;  %v342_v18 = vld [vmem:[%s2208_s26 + $0x290] sm:$0xf]  ;;  %339 = vst [vmem:[%s2215_s27 + $0x140] sm:$0xf] %v338_v16 }
  0x48   : > { %341 = vst [vmem:[%s2215_s27 + $0x144] sm:$0xf] %v340_v17  ;;  %343 = vst [vmem:[%s2215_s27 + $0x148] sm:$0xf] %v342_v18  ;;  %v344_v19 = vld [vmem:[%s2208_s26 + $0x298] sm:$0xf] }
  0x49   : > { %v346_v20 = vld [vmem:[%s2208_s26 + $0x2a0] sm:$0xf]  ;;  %v348_v21 = vld [vmem:[%s2208_s26 + $0x2a8] sm:$0xf]  ;;  %345 = vst [vmem:[%s2215_s27 + $0x14c] sm:$0xf] %v344_v19 }
  0x4a   : > { %347 = vst [vmem:[%s2215_s27 + $0x150] sm:$0xf] %v346_v20  ;;  %349 = vst [vmem:[%s2215_s27 + $0x154] sm:$0xf] %v348_v21  ;;  %v350_v22 = vld [vmem:[%s2208_s26 + $0x2b0] sm:$0xf] }
  0x4b   : > { %v352_v23 = vld [vmem:[%s2208_s26 + $0x2b8] sm:$0xf]  ;;  %v354_v24 = vld [vmem:[%s2208_s26 + $0x2c0] sm:$0xf]  ;;  %351 = vst [vmem:[%s2215_s27 + $0x158] sm:$0xf] %v350_v22 }
  0x4c   : > { %353 = vst [vmem:[%s2215_s27 + $0x15c] sm:$0xf] %v352_v23  ;;  %355 = vst [vmem:[%s2215_s27 + $0x160] sm:$0xf] %v354_v24  ;;  %v356_v25 = vld [vmem:[%s2208_s26 + $0x2c8] sm:$0xf] }
  0x4d   : > { %v358_v26 = vld [vmem:[%s2208_s26 + $0x2d0] sm:$0xf]  ;;  %v360_v27 = vld [vmem:[%s2208_s26 + $0x2d8] sm:$0xf]  ;;  %357 = vst [vmem:[%s2215_s27 + $0x164] sm:$0xf] %v356_v25 }
  0x4e   : > { %359 = vst [vmem:[%s2215_s27 + $0x168] sm:$0xf] %v358_v26  ;;  %361 = vst [vmem:[%s2215_s27 + $0x16c] sm:$0xf] %v360_v27  ;;  %v362_v28 = vld [vmem:[%s2208_s26 + $0x2e0] sm:$0xf] }
  0x4f   : > { %v364_v29 = vld [vmem:[%s2208_s26 + $0x2e8] sm:$0xf]  ;;  %v366_v30 = vld [vmem:[%s2208_s26 + $0x2f0] sm:$0xf]  ;;  %363 = vst [vmem:[%s2215_s27 + $0x170] sm:$0xf] %v362_v28 }
  0x50   : > { %365 = vst [vmem:[%s2215_s27 + $0x174] sm:$0xf] %v364_v29  ;;  %367 = vst [vmem:[%s2215_s27 + $0x178] sm:$0xf] %v366_v30  ;;  %v368_v31 = vld [vmem:[%s2208_s26 + $0x2f8] sm:$0xf] }
  0x51   : > { %v370_v32 = vld [vmem:[%s2208_s26 + $0x300] sm:$0xf]  ;;  %v372_v33 = vld [vmem:[%s2208_s26 + $0x308] sm:$0xf]  ;;  %369 = vst [vmem:[%s2215_s27 + $0x17c] sm:$0xf] %v368_v31 }
  0x52   : > { %371 = vst [vmem:[%s2215_s27 + $0x180] sm:$0xf] %v370_v32  ;;  %373 = vst [vmem:[%s2215_s27 + $0x184] sm:$0xf] %v372_v33  ;;  %v374_v34 = vld [vmem:[%s2208_s26 + $0x310] sm:$0xf] }
  0x53   : > { %v376_v35 = vld [vmem:[%s2208_s26 + $0x318] sm:$0xf]  ;;  %v378_v36 = vld [vmem:[%s2208_s26 + $0x320] sm:$0xf]  ;;  %375 = vst [vmem:[%s2215_s27 + $0x188] sm:$0xf] %v374_v34 }
  0x54   : > { %377 = vst [vmem:[%s2215_s27 + $0x18c] sm:$0xf] %v376_v35  ;;  %379 = vst [vmem:[%s2215_s27 + $0x190] sm:$0xf] %v378_v36  ;;  %v380_v37 = vld [vmem:[%s2208_s26 + $0x328] sm:$0xf] }
  0x55   : > { %v382_v38 = vld [vmem:[%s2208_s26 + $0x330] sm:$0xf]  ;;  %v384_v39 = vld [vmem:[%s2208_s26 + $0x338] sm:$0xf]  ;;  %381 = vst [vmem:[%s2215_s27 + $0x194] sm:$0xf] %v380_v37 }
  0x56   : > { %383 = vst [vmem:[%s2215_s27 + $0x198] sm:$0xf] %v382_v38  ;;  %385 = vst [vmem:[%s2215_s27 + $0x19c] sm:$0xf] %v384_v39  ;;  %v386_v40 = vld [vmem:[%s2208_s26 + $0x340] sm:$0xf] }
  0x57   : > { %v388_v41 = vld [vmem:[%s2208_s26 + $0x348] sm:$0xf]  ;;  %v390_v42 = vld [vmem:[%s2208_s26 + $0x350] sm:$0xf]  ;;  %387 = vst [vmem:[%s2215_s27 + $0x1a0] sm:$0xf] %v386_v40 }
  0x58   : > { %389 = vst [vmem:[%s2215_s27 + $0x1a4] sm:$0xf] %v388_v41  ;;  %391 = vst [vmem:[%s2215_s27 + $0x1a8] sm:$0xf] %v390_v42  ;;  %v392_v43 = vld [vmem:[%s2208_s26 + $0x358] sm:$0xf] }
  0x59   : > { %v394_v44 = vld [vmem:[%s2208_s26 + $0x360] sm:$0xf]  ;;  %v396_v45 = vld [vmem:[%s2208_s26 + $0x368] sm:$0xf]  ;;  %393 = vst [vmem:[%s2215_s27 + $0x1ac] sm:$0xf] %v392_v43 }
  0x5a   : > { %395 = vst [vmem:[%s2215_s27 + $0x1b0] sm:$0xf] %v394_v44  ;;  %397 = vst [vmem:[%s2215_s27 + $0x1b4] sm:$0xf] %v396_v45  ;;  %v398_v46 = vld [vmem:[%s2208_s26 + $0x370] sm:$0xf] }
  0x5b   : > { %v400_v47 = vld [vmem:[%s2208_s26 + $0x378] sm:$0xf]  ;;  %v402_v48 = vld [vmem:[%s2208_s26 + $0x380] sm:$0xf]  ;;  %399 = vst [vmem:[%s2215_s27 + $0x1b8] sm:$0xf] %v398_v46 }
  0x5c   : > { %401 = vst [vmem:[%s2215_s27 + $0x1bc] sm:$0xf] %v400_v47  ;;  %403 = vst [vmem:[%s2215_s27 + $0x1c0] sm:$0xf] %v402_v48  ;;  %v404_v49 = vld [vmem:[%s2208_s26 + $0x388] sm:$0xf] }
  0x5d   : > { %v406_v50 = vld [vmem:[%s2208_s26 + $0x390] sm:$0xf]  ;;  %v408_v51 = vld [vmem:[%s2208_s26 + $0x398] sm:$0xf]  ;;  %405 = vst [vmem:[%s2215_s27 + $0x1c4] sm:$0xf] %v404_v49 }
  0x5e   : > { %407 = vst [vmem:[%s2215_s27 + $0x1c8] sm:$0xf] %v406_v50  ;;  %409 = vst [vmem:[%s2215_s27 + $0x1cc] sm:$0xf] %v408_v51  ;;  %v410_v52 = vld [vmem:[%s2208_s26 + $0x3a0] sm:$0xf] }
  0x5f   : > { %v412_v53 = vld [vmem:[%s2208_s26 + $0x3a8] sm:$0xf]  ;;  %v414_v54 = vld [vmem:[%s2208_s26 + $0x3b0] sm:$0xf]  ;;  %411 = vst [vmem:[%s2215_s27 + $0x1d0] sm:$0xf] %v410_v52 }
  0x60   : > { %413 = vst [vmem:[%s2215_s27 + $0x1d4] sm:$0xf] %v412_v53  ;;  %415 = vst [vmem:[%s2215_s27 + $0x1d8] sm:$0xf] %v414_v54  ;;  %v416_v55 = vld [vmem:[%s2208_s26 + $0x3b8] sm:$0xf] }
  0x61   : > { %v418_v56 = vld [vmem:[%s2208_s26 + $0x3c0] sm:$0xf]  ;;  %v420_v57 = vld [vmem:[%s2208_s26 + $0x3c8] sm:$0xf]  ;;  %417 = vst [vmem:[%s2215_s27 + $0x1dc] sm:$0xf] %v416_v55 }
  0x62   : > { %419 = vst [vmem:[%s2215_s27 + $0x1e0] sm:$0xf] %v418_v56  ;;  %421 = vst [vmem:[%s2215_s27 + $0x1e4] sm:$0xf] %v420_v57  ;;  %v422_v58 = vld [vmem:[%s2208_s26 + $0x3d0] sm:$0xf] }
  0x63   : > { %v424_v59 = vld [vmem:[%s2208_s26 + $0x3d8] sm:$0xf]  ;;  %v426_v60 = vld [vmem:[%s2208_s26 + $0x3e0] sm:$0xf]  ;;  %423 = vst [vmem:[%s2215_s27 + $0x1e8] sm:$0xf] %v422_v58 }
  0x64   : > { %425 = vst [vmem:[%s2215_s27 + $0x1ec] sm:$0xf] %v424_v59  ;;  %427 = vst [vmem:[%s2215_s27 + $0x1f0] sm:$0xf] %v426_v60  ;;  %v428_v61 = vld [vmem:[%s2208_s26 + $0x3e8] sm:$0xf] }
  0x65   : > { %v430_v62 = vld [vmem:[%s2208_s26 + $0x3f0] sm:$0xf]  ;;  %v432_v63 = vld [vmem:[%s2208_s26 + $0x3f8] sm:$0xf]  ;;  %429 = vst [vmem:[%s2215_s27 + $0x1f4] sm:$0xf] %v428_v61 }
  0x66   : > { %431 = vst [vmem:[%s2215_s27 + $0x1f8] sm:$0xf] %v430_v62  ;;  %433 = vst [vmem:[%s2215_s27 + $0x1fc] sm:$0xf] %v432_v63  ;;  %v434_v0 = vld [vmem:[%s2208_s26 + $0x400] sm:$0xf] }
  0x67   : > { %v436_v1 = vld [vmem:[%s2208_s26 + $0x408] sm:$0xf]  ;;  %v438_v2 = vld [vmem:[%s2208_s26 + $0x410] sm:$0xf]  ;;  %435 = vst [vmem:[%s2215_s27 + $0x200] sm:$0xf] %v434_v0 }
  0x68   : > { %437 = vst [vmem:[%s2215_s27 + $0x204] sm:$0xf] %v436_v1  ;;  %439 = vst [vmem:[%s2215_s27 + $0x208] sm:$0xf] %v438_v2  ;;  %v440_v3 = vld [vmem:[%s2208_s26 + $0x418] sm:$0xf] }
  0x69   : > { %v442_v4 = vld [vmem:[%s2208_s26 + $0x420] sm:$0xf]  ;;  %v444_v5 = vld [vmem:[%s2208_s26 + $0x428] sm:$0xf]  ;;  %441 = vst [vmem:[%s2215_s27 + $0x20c] sm:$0xf] %v440_v3 }
  0x6a   : > { %443 = vst [vmem:[%s2215_s27 + $0x210] sm:$0xf] %v442_v4  ;;  %445 = vst [vmem:[%s2215_s27 + $0x214] sm:$0xf] %v444_v5  ;;  %v446_v6 = vld [vmem:[%s2208_s26 + $0x430] sm:$0xf] }
  0x6b   : > { %v448_v7 = vld [vmem:[%s2208_s26 + $0x438] sm:$0xf]  ;;  %v450_v8 = vld [vmem:[%s2208_s26 + $0x440] sm:$0xf]  ;;  %447 = vst [vmem:[%s2215_s27 + $0x218] sm:$0xf] %v446_v6 }
  0x6c   : > { %449 = vst [vmem:[%s2215_s27 + $0x21c] sm:$0xf] %v448_v7  ;;  %451 = vst [vmem:[%s2215_s27 + $0x220] sm:$0xf] %v450_v8  ;;  %v452_v9 = vld [vmem:[%s2208_s26 + $0x448] sm:$0xf] }
  0x6d   : > { %v454_v10 = vld [vmem:[%s2208_s26 + $0x450] sm:$0xf]  ;;  %v456_v11 = vld [vmem:[%s2208_s26 + $0x458] sm:$0xf]  ;;  %453 = vst [vmem:[%s2215_s27 + $0x224] sm:$0xf] %v452_v9 }
  0x6e   : > { %455 = vst [vmem:[%s2215_s27 + $0x228] sm:$0xf] %v454_v10  ;;  %457 = vst [vmem:[%s2215_s27 + $0x22c] sm:$0xf] %v456_v11  ;;  %v458_v12 = vld [vmem:[%s2208_s26 + $0x460] sm:$0xf] }
  0x6f   : > { %v460_v13 = vld [vmem:[%s2208_s26 + $0x468] sm:$0xf]  ;;  %v462_v14 = vld [vmem:[%s2208_s26 + $0x470] sm:$0xf]  ;;  %459 = vst [vmem:[%s2215_s27 + $0x230] sm:$0xf] %v458_v12 }
  0x70   : > { %461 = vst [vmem:[%s2215_s27 + $0x234] sm:$0xf] %v460_v13  ;;  %463 = vst [vmem:[%s2215_s27 + $0x238] sm:$0xf] %v462_v14  ;;  %v464_v15 = vld [vmem:[%s2208_s26 + $0x478] sm:$0xf] }
  0x71   : > { %465 = vst [vmem:[%s2215_s27 + $0x23c] sm:$0xf] %v464_v15 }
  0x72 PF: > { %p1775_p6 = scmp.ge.s32.totalorder %s2141_s16, 1  ;;  %p781_p7 = scmp.lt.s32.totalorder %s2141_s16, 3 }
  0x74   : > { %p782_p8 = pnand %p1775_p6, %p781_p7 }
  0x75   : > { %s788_s28 = sand.u32 (!%p782_p8), 1, %s2125_s12   ;;  %v2506_v16 = vld [vmem:[%s2643_s0] sm:$0xff] (!%p782_p8)  ;;  %v2511_v17 = vld [vmem:[%s2643_s0 + $0x8] sm:$0xff] (!%p782_p8)  ;;  %v2549_v47 = vld [vmem:[%s2643_s0 + $0x10] sm:$0xff] (!%p782_p8)  ;;  %vm2144_vm0 = vmmov (!%p782_p8), 0   ;;  %p827_p9 = scmp.lt.s32.totalorder (!%p782_p8), %s2133_s14, 1 }
  0x76   : > { %785 = sbr.rel (%p782_p8) target bundleno = 436 (0x1b4), region = 69  ;;  %v1779_v18 = vcombine.high (!%p782_p8), %v2506_v16, %v2506_v16  ;;  %v1781_v19 = vcombine.high (!%p782_p8), %v2511_v17, %v2511_v17  ;;  %v2556_v50 = vld [vmem:[%s2643_s0 + $0x18] sm:$0xff] (!%p782_p8)  ;;  %v1778_v53 = vcombine.low (!%p782_p8), %v2506_v16, %v2506_v16  ;;  %v1783_v55 = vcombine.high (!%p782_p8), %v2549_v47, %v2549_v47 }
  0x77   : > { %s1979_s6 = smul.u32 (!%p782_p8), 576, %s788_s28  ;;  %v1780_v57 = vcombine.low (!%p782_p8), %v2511_v17, %v2511_v17  ;;  %v1785_v59 = vcombine.high (!%p782_p8), %v2556_v50, %v2556_v50 }
  0x78   : > { %1491 = vmatprep.mubr.bf16.mxu0 (!%p782_p8), %v1779_v18  ;;  %1531 = vmatprep.mubr.bf16.mxu1 (!%p782_p8), %v1781_v19 }
  0x79   : > { %s2517_s7 = scalar_lea.vmem (!%p782_p8), [#allocation2], %s1979_s6 }
  0x7a   : > { %v2022_v20 = vld [vmem:[%s2517_s7 + $0x40] sm:$0xff] (!%p782_p8)   ;;  %v2026_v24 = vld [vmem:[%s2517_s7 + $0x48] sm:$0xff] (!%p782_p8)   ;;  %v2030_v28 = vld [vmem:[%s2517_s7 + $0x50] sm:$0xff] (!%p782_p8)  }
  0x7b   : > { %v2023_v21 = vld [vmem:[%s2517_s7] sm:$0xff] (!%p782_p8)   ;;  %1861 = vmatprep.subr.bf16.mxu0 (!%p782_p8), %v2022_v20  ;;  %v2027_v25 = vld [vmem:[%s2517_s7 + $0x8] sm:$0xff] (!%p782_p8)   ;;  %v2031_v29 = vld [vmem:[%s2517_s7 + $0x10] sm:$0xff] (!%p782_p8)  }
  0x7c   : > { %v2024_v22 = vld [vmem:[%s2517_s7 + $0xc0] sm:$0xff] (!%p782_p8)   ;;  %1862 = vmatpush3.bf16.msra.mxu0 (!%p782_p8), %v2023_v21  ;;  %v2028_v26 = vld [vmem:[%s2517_s7 + $0xc8] sm:$0xff] (!%p782_p8)   ;;  %v2032_v30 = vld [vmem:[%s2517_s7 + $0xd0] sm:$0xff] (!%p782_p8)  }
  0x7d   : > { %v2025_v23 = vld [vmem:[%s2517_s7 + $0x80] sm:$0xff]   ;;  %1883 = vmatprep.subr.bf16.mxu1 %v2024_v22  ;;  %1863 = vmatprep.subr.bf16.mxu0 %v2026_v24  ;;  %v2029_v27 = vld [vmem:[%s2517_s7 + $0x88] sm:$0xff]   ;;  %v2033_v31 = vld [vmem:[%s2517_s7 + $0x90] sm:$0xff]   ;;  %s2654_s14 = smov (!%p827_p9, %s2133_s14), 1 }
  0x7e   : > { %1884 = vmatpush3.bf16.msra.mxu1 %v2025_v23  ;;  %v2034_v32 = vld [vmem:[%s2517_s7 + $0x58] sm:$0xff]   ;;  %v2038_v36 = vld [vmem:[%s2517_s7 + $0x60] sm:$0xff]   ;;  %v2042_v40 = vld [vmem:[%s2517_s7 + $0x68] sm:$0xff]   ;;  %s829_s22 = scalar_lea.vmem %s2645_s2, %s2654_s14  ;;  %s1776_s23 = sshll.u32 %s2654_s14, 3 }
  0x7f   : > { %1885 = vmatprep.subr.bf16.mxu1 %v2028_v26  ;;  %v2035_v33 = vld [vmem:[%s2517_s7 + $0x18] sm:$0xff]   ;;  %v2039_v37 = vld [vmem:[%s2517_s7 + $0x20] sm:$0xff]   ;;  %v2043_v41 = vld [vmem:[%s2517_s7 + $0x28] sm:$0xff]   ;;  %s837_s26 = scalar_lea.vmem %s2646_s3, %s1776_s23 }
  0x80   : > { %1864 = vmatpush3.bf16.msra.mxu0 %v2027_v25  ;;  %v2036_v34 = vld [vmem:[%s2517_s7 + $0xd8] sm:$0xff]   ;;  %v2040_v38 = vld [vmem:[%s2517_s7 + $0xe0] sm:$0xff]   ;;  %v2044_v42 = vld [vmem:[%s2517_s7 + $0xe8] sm:$0xff]   ;;  %v1782_v25 = vcombine.low %v2549_v47, %v2549_v47 }
  0x81   : > { %1865 = vmatprep.subr.bf16.mxu0 %v2030_v28  ;;  %v2037_v35 = vld [vmem:[%s2517_s7 + $0x98] sm:$0xff]   ;;  %v2041_v39 = vld [vmem:[%s2517_s7 + $0xa0] sm:$0xff]   ;;  %v2045_v43 = vld [vmem:[%s2517_s7 + $0xa8] sm:$0xff]   ;;  %v1784_v28 = vcombine.low %v2556_v50, %v2556_v50 }
  0x82   : > { %1886 = vmatpush3.bf16.msra.mxu1 %v2029_v27  ;;  %v2046_v44 = vld [vmem:[%s2517_s7 + $0x70] sm:$0xff]   ;;  %v2050_v49 = vld [vmem:[%s2517_s7 + $0x78] sm:$0xff]   ;;  %v2056_v56 = vld [vmem:[%s2517_s7 + $0x140] sm:$0xff]   ;;  %v2143_v27 = vmov 0.0  }
  0x83   : > { %1887 = vmatprep.subr.bf16.mxu1 %v2032_v30  ;;  %v2047_v45 = vld [vmem:[%s2517_s7 + $0x30] sm:$0xff]   ;;  %v2051_v51 = vld [vmem:[%s2517_s7 + $0x38] sm:$0xff]   ;;  %v2059_v58 = vld [vmem:[%s2517_s7 + $0x100] sm:$0xff]  }
  0x84   : > { %1866 = vmatpush3.bf16.msra.mxu0 %v2031_v29  ;;  %v2048_v46 = vld [vmem:[%s2517_s7 + $0xf0] sm:$0xff]   ;;  %v2052_v52 = vld [vmem:[%s2517_s7 + $0xf8] sm:$0xff]   ;;  %v2060_v60 = vld [vmem:[%s2517_s7 + $0x1c0] sm:$0xff]  }
  0x85   : > { %1867 = vmatprep.subr.bf16.mxu0 %v2034_v32  ;;  %v2049_v48 = vld [vmem:[%s2517_s7 + $0xb0] sm:$0xff]   ;;  %v2055_v54 = vld [vmem:[%s2517_s7 + $0xb8] sm:$0xff]   ;;  %v2061_v61 = vld [vmem:[%s2517_s7 + $0x180] sm:$0xff]  }
  0x86   : > { %1888 = vmatpush3.bf16.msra.mxu1 %v2033_v31  ;;  %v2062_v62 = vld [vmem:[%s2517_s7 + $0x148] sm:$0xff]   ;;  %v2066_v2 = vld [vmem:[%s2517_s7 + $0x150] sm:$0xff]   ;;  %v2070_v6 = vld [vmem:[%s2517_s7 + $0x158] sm:$0xff]  }
  0x87   : > { %1889 = vmatprep.subr.bf16.mxu1 %v2036_v34  ;;  %v2063_v63 = vld [vmem:[%s2517_s7 + $0x108] sm:$0xff]   ;;  %v2067_v3 = vld [vmem:[%s2517_s7 + $0x110] sm:$0xff]   ;;  %v2071_v7 = vld [vmem:[%s2517_s7 + $0x118] sm:$0xff]  }
  0x88   : > { %1868 = vmatpush3.bf16.msra.mxu0 %v2035_v33  ;;  %v2064_v0 = vld [vmem:[%s2517_s7 + $0x1c8] sm:$0xff]   ;;  %v2068_v4 = vld [vmem:[%s2517_s7 + $0x1d0] sm:$0xff]   ;;  %v2072_v8 = vld [vmem:[%s2517_s7 + $0x1d8] sm:$0xff]  }
  0x89   : > { %1869 = vmatprep.subr.bf16.mxu0 %v2038_v36  ;;  %v2065_v1 = vld [vmem:[%s2517_s7 + $0x188] sm:$0xff]   ;;  %v2069_v5 = vld [vmem:[%s2517_s7 + $0x190] sm:$0xff]   ;;  %v2073_v9 = vld [vmem:[%s2517_s7 + $0x198] sm:$0xff]  }
  0x8a   : > { %1890 = vmatpush3.bf16.msra.mxu1 %v2037_v35  ;;  %v2074_v10 = vld [vmem:[%s2517_s7 + $0x160] sm:$0xff]   ;;  %v2078_v14 = vld [vmem:[%s2517_s7 + $0x168] sm:$0xff]   ;;  %v2082_v18 = vld [vmem:[%s2517_s7 + $0x170] sm:$0xff]  }
  0x8b   : > { %1891 = vmatprep.subr.bf16.mxu1 %v2040_v38  ;;  %v2075_v11 = vld [vmem:[%s2517_s7 + $0x120] sm:$0xff]   ;;  %v2079_v15 = vld [vmem:[%s2517_s7 + $0x128] sm:$0xff]   ;;  %v2083_v19 = vld [vmem:[%s2517_s7 + $0x130] sm:$0xff]  }
  0x8c   : > { %1870 = vmatpush3.bf16.msra.mxu0 %v2039_v37  ;;  %v2076_v12 = vld [vmem:[%s2517_s7 + $0x1e0] sm:$0xff]   ;;  %v2080_v16 = vld [vmem:[%s2517_s7 + $0x1e8] sm:$0xff]   ;;  %v2084_v20 = vld [vmem:[%s2517_s7 + $0x1f0] sm:$0xff]  }
  0x8d   : > { %1871 = vmatprep.subr.bf16.mxu0 %v2042_v40  ;;  %v2077_v13 = vld [vmem:[%s2517_s7 + $0x1a0] sm:$0xff]   ;;  %v2081_v17 = vld [vmem:[%s2517_s7 + $0x1a8] sm:$0xff]   ;;  %v2085_v21 = vld [vmem:[%s2517_s7 + $0x1b0] sm:$0xff]  }
  0x8e   : > { %1892 = vmatpush3.bf16.msra.mxu1 %v2041_v39  ;;  %v2086_v22 = vld [vmem:[%s2517_s7 + $0x178] sm:$0xff]   ;;  %v2094_v29 = vld [vmem:[%s2517_s7 + $0x200] sm:$0xff]   ;;  %v2095_v30 = vld [vmem:[%s2517_s7 + $0x208] sm:$0xff]  }
  0x8f   : > { %1893 = vmatprep.subr.bf16.mxu1 %v2044_v42  ;;  %v2087_v23 = vld [vmem:[%s2517_s7 + $0x138] sm:$0xff]   ;;  %v2096_v31 = vld [vmem:[%s2517_s7 + $0x210] sm:$0xff]   ;;  %v2098_v33 = vld [vmem:[%s2517_s7 + $0x220] sm:$0xff]  }
  0x90   : > { %1872 = vmatpush3.bf16.msra.mxu0 %v2043_v41  ;;  %v2088_v24 = vld [vmem:[%s2517_s7 + $0x1f8] sm:$0xff]   ;;  %v2099_v34 = vld [vmem:[%s2517_s7 + $0x228] sm:$0xff]   ;;  %v2100_v35 = vld [vmem:[%s2517_s7 + $0x230] sm:$0xff]  }
  0x91   : > { %1873 = vmatprep.subr.bf16.mxu0 %v2046_v44  ;;  %v2091_v26 = vld [vmem:[%s2517_s7 + $0x1b8] sm:$0xff]   ;;  %v2102_v37 = vld [vmem:[%s2643_s0 + $0x20] ss:$0 sps:$4 sm:$0xff]  }
  0x92   : > { %1894 = vmatpush3.bf16.msra.mxu1 %v2045_v43  ;;  %v2097_v32 = vld [vmem:[%s2517_s7 + $0x218] sm:$0xff]   ;;  %v1777_v39 = vld [vmem:[%s829_s22] ss:$0 sm:$0xff] }
  0x93   : > { %1895 = vmatprep.subr.bf16.mxu1 %v2048_v46  ;;  %v2101_v36 = vld [vmem:[%s2517_s7 + $0x238] sm:$0xff]  }
  0x94   : > { %1874 = vmatpush3.bf16.msra.mxu0 %v2047_v45 }
  0x95   : > { %1875 = vmatprep.subr.bf16.mxu0 %v2050_v49 }
  0x96   : > { %1896 = vmatpush3.bf16.msra.mxu1 %v2049_v48 }
  0x97   : > { %1897 = vmatprep.subr.bf16.mxu1 %v2052_v52 }
  0x98   : > { %1876 = vmatpush3.bf16.msra.mxu0 %v2051_v51 }
  0x99   : > { %1905 = vmatprep.subr.bf16.mxu0 %v2056_v56 }
  0x9a   : > { %1898 = vmatpush3.bf16.msra.mxu1 %v2055_v54 }
  0x9b   : > { %1492 = vmatmul.mubr.bf16.vlgmr.msra.gmra.mrb[0].mxu0 %v1778_v53  ;;  %1927 = vmatprep.subr.bf16.mxu1 %v2060_v60 }
  0x9c   : > { %1906 = vmatpush3.bf16.msra.mxu0 %v2059_v58  ;;  %1571 = vmatprep.mubr.bf16.mxu0 %v1783_v55 }
  0x9d   : > { %1532 = vmatmul.mubr.bf16.vlgmr.msra.gmra.mrb[0].mxu1 %v1780_v57  ;;  %1907 = vmatprep.subr.bf16.mxu0 %v2062_v62 }
  0x9e   : > { %1928 = vmatpush3.bf16.msra.mxu1 %v2061_v61  ;;  %1611 = vmatprep.mubr.bf16.mxu1 %v1785_v59 }
  0x9f   : > { %1929 = vmatprep.subr.bf16.mxu1 %v2064_v0 }
  0xa0   : > { %1908 = vmatpush3.bf16.msra.mxu0 %v2063_v63 }
  0xa1   : > { %1909 = vmatprep.subr.bf16.mxu0 %v2066_v2 }
  0xa2   : > { %1930 = vmatpush3.bf16.msra.mxu1 %v2065_v1 }
  0xa3   : > { %1931 = vmatprep.subr.bf16.mxu1 %v2068_v4 }
  0xa4   : > { %1910 = vmatpush3.bf16.msra.mxu0 %v2067_v3 }
  0xa5   : > { %1911 = vmatprep.subr.bf16.mxu0 %v2070_v6 }
  0xa6   : > { %1932 = vmatpush3.bf16.msra.mxu1 %v2069_v5 }
  0xa7   : > { %1933 = vmatprep.subr.bf16.mxu1 %v2072_v8 }
  0xa8   : > { %1912 = vmatpush3.bf16.msra.mxu0 %v2071_v7 }
  0xa9   : > { %1913 = vmatprep.subr.bf16.mxu0 %v2074_v10 }
  0xaa   : > { %1934 = vmatpush3.bf16.msra.mxu1 %v2073_v9 }
  0xab   : > { %1935 = vmatprep.subr.bf16.mxu1 %v2076_v12 }
  0xac   : > { %1914 = vmatpush3.bf16.msra.mxu0 %v2075_v11 }
  0xad   : > { %1915 = vmatprep.subr.bf16.mxu0 %v2078_v14 }
  0xae   : > { %1936 = vmatpush3.bf16.msra.mxu1 %v2077_v13 }
  0xaf   : > { %1937 = vmatprep.subr.bf16.mxu1 %v2080_v16 }
  0xb0   : > { %1916 = vmatpush3.bf16.msra.mxu0 %v2079_v15 }
  0xb1   : > { %1917 = vmatprep.subr.bf16.mxu0 %v2082_v18 }
  0xb2   : > { %1938 = vmatpush3.bf16.msra.mxu1 %v2081_v17 }
  0xb3   : > { %1939 = vmatprep.subr.bf16.mxu1 %v2084_v20 }
  0xb4   : > { %1918 = vmatpush3.bf16.msra.mxu0 %v2083_v19 }
  0xb5   : > { %1919 = vmatprep.subr.bf16.mxu0 %v2086_v22 }
  0xb6   : > { %1940 = vmatpush3.bf16.msra.mxu1 %v2085_v21 }
  0xb7   : > { %1941 = vmatprep.subr.bf16.mxu1 %v2088_v24 }
  0xb8   : > { %1920 = vmatpush3.bf16.msra.mxu0 %v2087_v23 }
  0xb9   : > { %1958 = vmatprep.subr.bf16.mxu0 %v2143_v27 }
  0xba   : > { %1942 = vmatpush3.bf16.msra.mxu1 %v2091_v26 }
  0xbb   : > { %1572 = vmatmul.mubr.bf16.vlgmr.msra.gmra.mrb[4].mxu0 %v1782_v25 }
  0xbc   : > { %1959 = vmatpush3.bf16.msra.mxu0 %v2094_v29  ;;  %1974 = vmatprep.mubr.msk.bf16.mxu0 %vm2144_vm0, %v2143_v27 }
  0xbd   : > { %1612 = vmatmul.mubr.bf16.vlgmr.msra.gmra.mrb[4].mxu1 %v1784_v28  ;;  %1960 = vmatprep.subr.bf16.mxu0 %v2143_v27 }
  0xc0   : > { %1961 = vmatpush3.bf16.msra.mxu0 %v2095_v30 }
  0xc1   : > { %1962 = vmatprep.subr.bf16.mxu0 %v2143_v27 }
  0xc4   : > { %1963 = vmatpush3.bf16.msra.mxu0 %v2096_v31 }
  0xc5   : > { %1964 = vmatprep.subr.bf16.mxu0 %v2143_v27 }
  0xc8   : > { %1965 = vmatpush3.bf16.msra.mxu0 %v2097_v32 }
  0xc9   : > { %1966 = vmatprep.subr.bf16.mxu0 %v2143_v27 }
  0xcc   : > { %1967 = vmatpush3.bf16.msra.mxu0 %v2098_v33 }
  0xcd   : > { %1968 = vmatprep.subr.bf16.mxu0 %v2143_v27 }
  0xd0   : > { %1969 = vmatpush3.bf16.msra.mxu0 %v2099_v34 }
  0xd1   : > { %1970 = vmatprep.subr.bf16.mxu0 %v2143_v27 }
  0xd4   : > { %1971 = vmatpush3.bf16.msra.mxu0 %v2100_v35 }
  0xd5   : > { %1972 = vmatprep.subr.bf16.mxu0 %v2143_v27 }
  0xd8   : > { %1973 = vmatpush3.bf16.msra.mxu0 %v2101_v36 }
  0xdb   : > { %1975 = vmatmul.mubr.bf16.vlgmr.msra.gmra.mrb[8].mxu0 %v2102_v37 }
 0x16e   : > { %v1877_v38 = vpop.f32.mrb[0].mxu0 }
 0x16f   : > { %v1878_v40 = vpop.f32.mrb[1].mxu0 }
 0x170   : > { %v1879_v41 = vadd.f32 %v1878_v40, %v1877_v38  ;;  %v1880_v42 = vpop.f32.mrb[2].mxu0  ;;  %v1899_v43 = vpop.f32.mrb[0].mxu1 }
 0x171   : > { %v1881_v44 = vpop.f32.mrb[3].mxu0  ;;  %v1900_v45 = vpop.f32.mrb[1].mxu1 }
 0x172   : > { %v1494_v46 = vadd.f32 %v1879_v41, %v1777_v39  ;;  %v1901_v47 = vadd.f32 %v1900_v45, %v1899_v43  ;;  %v1902_v48 = vpop.f32.mrb[2].mxu1 }
 0x173   : > { %v1903_v49 = vpop.f32.mrb[3].mxu1 }
 0x174   : > { %v1534_v50 = vadd.f32 %v1901_v47, %v1494_v46 }
 0x18e   : > { %v1921_v51 = vpop.f32.mrb[4].mxu0 }
 0x18f   : > { %v1922_v52 = vpop.f32.mrb[5].mxu0 }
 0x190   : > { %v1923_v53 = vadd.f32 %v1922_v52, %v1921_v51  ;;  %v1924_v54 = vpop.f32.mrb[6].mxu0  ;;  %v1943_v55 = vpop.f32.mrb[4].mxu1 }
 0x191   : > { %v1925_v56 = vpop.f32.mrb[7].mxu0  ;;  %v1944_v57 = vpop.f32.mrb[5].mxu1 }
 0x192   : > { %v1574_v58 = vadd.f32 %v1923_v53, %v1534_v50  ;;  %v1945_v59 = vadd.f32 %v1944_v57, %v1943_v55  ;;  %v1946_v60 = vpop.f32.mrb[6].mxu1 }
 0x193   : > { %v1947_v61 = vpop.f32.mrb[7].mxu1 }
 0x194   : > { %v1614_v62 = vadd.f32 %v1945_v59, %v1574_v58 }
 0x1ae   : > { %v1653_v63 = vpop.f32.mrb[8].mxu0 }
 0x1af   : > { %v1654_v0 = vadd.f32 %v1653_v63, %v1614_v62  ;;  %v1976_v1 = vpop.f32.mrb[9].mxu0 }
 0x1b0   : > { %v1656_v2 = vpop.f32.mrb[10].mxu0 }
 0x1b1   : > { %v1659_v3 = vmax.f32 %v1654_v0, 0.0  ;;  %v1977_v4 = vpop.f32.mrb[11].mxu0 }
 0x1b3   : > { %1660 = vst [vmem:[%s837_s26] sm:$0xff] %v1659_v3 }
 0x1b4 PF: > { %s13_s16 = sadd.s32 1, %s2141_s16   ;;  %s2647_s12 = smov %s2129_s13 }
 0x1b5   : > { %p10_p10 = scmp.ge.s32.totalorder %s13_s16, 4   ;;  %s2648_s13 = smov %s2200_s20 }
 0x1b6   : > { %s2649_s14 = smov %s2137_s15  ;;  %s2650_s15 = smov %s2652_s17 }
 0x1b7   :  { %12 = sbr.rel (!%p10_p10) target bundleno = 3 (0x3), region = 114 }

// kernel: resnet18_conv5_forward.31
= control target key start
LH: loop header
LB: loop body
LE: loop exit
PB: predicated region body
PF: predicated region fallthrough
CT: control target
= control target key end

     0   :  { %s3835_s15 = smov 0   ;;  %s3837_s16 = smov 0   ;;  %s4706_s0 = inlined_call_operand.vmem [shape: bf16[8,2304], index: 0, kind: input, shape index: {}]   ;;  %s4707_s1 = inlined_call_operand.vmem [shape: bf16[2304,256], index: 1, kind: input, shape index: {}]   ;;  %s4708_s2 = inlined_call_operand.vmem [shape: f32[1,256], index: 2, kind: input, shape index: {}]   ;;  %s4709_s3 = inlined_call_operand.vmem [shape: f32[8,256], index: 3, kind: input, shape index: {}]   ;;  %s4710_s4 = inlined_call_operand.vmem [shape: f32[8,256], index: 4, kind: output, shape index: {}]  }
   0x1   :  { %s3839_s17 = smov 0   ;;  %s3841_s18 = smov 0  }
   0x2   :  { %s3843_s19 = smov 0  }
   0x3 LB: > { %s23_s20 = sadd.s32 1, %s3804_s18  ;;  %p66_p1 = scmp.ne.s32.totalorder %s3796_s16, %s3792_s15  ;;  %s3808_s19 = sphi %s3843_s19, %s14_s19   ;;  %s3804_s18 = sphi %s3841_s18, %s4714_s18   ;;  %s3800_s17 = sphi %s3839_s17, %s4713_s17   ;;  %s3796_s16 = sphi %s3837_s16, %s4712_s16   ;;  %s3792_s15 = sphi %s3835_s15, %s4711_s15  }
   0x4   : > { %p24_p0 = scmp.ge.s32.totalorder %s23_s20, 2  ;;  %p67_p2 = scmp.eq.s32.totalorder %s3808_s19, 0 }
   0x5   : > { %s59_s22 = sadd.s32 1, %s3796_s16  ;;  %p3198_p5 = scmp.ge.s32.totalorder %s3808_s19, 2 }
   0x6   : > { %s4716_s20 = smov (%p24_p0, %s23_s20), 0  ;;  %p68_p3 = por %p67_p2, %p66_p1 }
   0x7   : > { %s56_s21 = ssub.s32 %s3804_s18, %s4716_s20  ;;  %182 = sbr.rel (%p3198_p5) target bundleno = 210 (0xd2), region = 20 }
   0x8   : > { %p57_p4 = scmp.eq.s32.totalorder %s56_s21, 0 }
   0xa   : > { %s3870_s23 = scalar_select %p57_p4, %s3796_s16, %s59_s22  }
   0xe   : > { %185 = sbr.rel (!%p68_p3) target bundleno = 210 (0xd2), region = 24  ;;  %s187_s24 = sand.u32 (%p68_p3), 1, %s3796_s16  }
   0xf   : > { %s3199_s25 = sshll.u32 (%p68_p3), %s3804_s18, 2  ;;  %s3566_s26 = smul.u32 (%p68_p3), 1152, %s187_s24 }
  0x10   : > { %s3878_s29 = scalar_lea.vmem (%p68_p3), %s4707_s1, %s3199_s25 }
  0x11   : > { %v207_v0 = vld [vmem:[%s3878_s29] sm:$0xf] (%p68_p3)  ;;  %v209_v1 = vld [vmem:[%s3878_s29 + $0x8] sm:$0xf] (%p68_p3)  ;;  %v211_v2 = vld [vmem:[%s3878_s29 + $0x10] sm:$0xf] (%p68_p3) }
  0x12   : > { %v213_v3 = vld [vmem:[%s3878_s29 + $0x18] sm:$0xf] (%p68_p3)  ;;  %v215_v4 = vld [vmem:[%s3878_s29 + $0x20] sm:$0xf] (%p68_p3)  ;;  %s3885_s30 = scalar_lea.vmem (%p68_p3), [#allocation2], %s3566_s26 }
  0x13   : > { %208 = vst [vmem:[%s3885_s30] sm:$0xf] (%p68_p3), %v207_v0  ;;  %210 = vst [vmem:[%s3885_s30 + $0x4] sm:$0xf] (%p68_p3), %v209_v1  ;;  %v217_v5 = vld [vmem:[%s3878_s29 + $0x28] sm:$0xf] (%p68_p3) }
  0x14   : > { %212 = vst [vmem:[%s3885_s30 + $0x8] sm:$0xf] (%p68_p3), %v211_v2  ;;  %214 = vst [vmem:[%s3885_s30 + $0xc] sm:$0xf] (%p68_p3), %v213_v3  ;;  %v219_v6 = vld [vmem:[%s3878_s29 + $0x30] sm:$0xf] (%p68_p3) }
  0x15   : > { %216 = vst [vmem:[%s3885_s30 + $0x10] sm:$0xf] %v215_v4  ;;  %v221_v7 = vld [vmem:[%s3878_s29 + $0x38] sm:$0xf]  ;;  %218 = vst [vmem:[%s3885_s30 + $0x14] sm:$0xf] %v217_v5 }
  0x16   : > { %220 = vst [vmem:[%s3885_s30 + $0x18] sm:$0xf] %v219_v6  ;;  %222 = vst [vmem:[%s3885_s30 + $0x1c] sm:$0xf] %v221_v7  ;;  %v223_v8 = vld [vmem:[%s3878_s29 + $0x40] sm:$0xf] }
  0x17   : > { %v225_v9 = vld [vmem:[%s3878_s29 + $0x48] sm:$0xf]  ;;  %v227_v10 = vld [vmem:[%s3878_s29 + $0x50] sm:$0xf]  ;;  %224 = vst [vmem:[%s3885_s30 + $0x20] sm:$0xf] %v223_v8 }
  0x18   : > { %226 = vst [vmem:[%s3885_s30 + $0x24] sm:$0xf] %v225_v9  ;;  %228 = vst [vmem:[%s3885_s30 + $0x28] sm:$0xf] %v227_v10  ;;  %v229_v11 = vld [vmem:[%s3878_s29 + $0x58] sm:$0xf] }
  0x19   : > { %v231_v12 = vld [vmem:[%s3878_s29 + $0x60] sm:$0xf]  ;;  %v233_v13 = vld [vmem:[%s3878_s29 + $0x68] sm:$0xf]  ;;  %230 = vst [vmem:[%s3885_s30 + $0x2c] sm:$0xf] %v229_v11 }
  0x1a   : > { %232 = vst [vmem:[%s3885_s30 + $0x30] sm:$0xf] %v231_v12  ;;  %234 = vst [vmem:[%s3885_s30 + $0x34] sm:$0xf] %v233_v13  ;;  %v235_v14 = vld [vmem:[%s3878_s29 + $0x70] sm:$0xf] }
  0x1b   : > { %v237_v15 = vld [vmem:[%s3878_s29 + $0x78] sm:$0xf]  ;;  %v239_v16 = vld [vmem:[%s3878_s29 + $0x80] sm:$0xf]  ;;  %236 = vst [vmem:[%s3885_s30 + $0x38] sm:$0xf] %v235_v14 }
  0x1c   : > { %238 = vst [vmem:[%s3885_s30 + $0x3c] sm:$0xf] %v237_v15  ;;  %240 = vst [vmem:[%s3885_s30 + $0x40] sm:$0xf] %v239_v16  ;;  %v241_v17 = vld [vmem:[%s3878_s29 + $0x88] sm:$0xf] }
  0x1d   : > { %v243_v18 = vld [vmem:[%s3878_s29 + $0x90] sm:$0xf]  ;;  %v245_v19 = vld [vmem:[%s3878_s29 + $0x98] sm:$0xf]  ;;  %242 = vst [vmem:[%s3885_s30 + $0x44] sm:$0xf] %v241_v17 }
  0x1e   : > { %244 = vst [vmem:[%s3885_s30 + $0x48] sm:$0xf] %v243_v18  ;;  %246 = vst [vmem:[%s3885_s30 + $0x4c] sm:$0xf] %v245_v19  ;;  %v247_v20 = vld [vmem:[%s3878_s29 + $0xa0] sm:$0xf] }
  0x1f   : > { %v249_v21 = vld [vmem:[%s3878_s29 + $0xa8] sm:$0xf]  ;;  %v251_v22 = vld [vmem:[%s3878_s29 + $0xb0] sm:$0xf]  ;;  %248 = vst [vmem:[%s3885_s30 + $0x50] sm:$0xf] %v247_v20 }
  0x20   : > { %250 = vst [vmem:[%s3885_s30 + $0x54] sm:$0xf] %v249_v21  ;;  %252 = vst [vmem:[%s3885_s30 + $0x58] sm:$0xf] %v251_v22  ;;  %v253_v23 = vld [vmem:[%s3878_s29 + $0xb8] sm:$0xf] }
  0x21   : > { %v255_v24 = vld [vmem:[%s3878_s29 + $0xc0] sm:$0xf]  ;;  %v257_v25 = vld [vmem:[%s3878_s29 + $0xc8] sm:$0xf]  ;;  %254 = vst [vmem:[%s3885_s30 + $0x5c] sm:$0xf] %v253_v23 }
  0x22   : > { %256 = vst [vmem:[%s3885_s30 + $0x60] sm:$0xf] %v255_v24  ;;  %258 = vst [vmem:[%s3885_s30 + $0x64] sm:$0xf] %v257_v25  ;;  %v259_v26 = vld [vmem:[%s3878_s29 + $0xd0] sm:$0xf] }
  0x23   : > { %v261_v27 = vld [vmem:[%s3878_s29 + $0xd8] sm:$0xf]  ;;  %v263_v28 = vld [vmem:[%s3878_s29 + $0xe0] sm:$0xf]  ;;  %260 = vst [vmem:[%s3885_s30 + $0x68] sm:$0xf] %v259_v26 }
  0x24   : > { %262 = vst [vmem:[%s3885_s30 + $0x6c] sm:$0xf] %v261_v27  ;;  %264 = vst [vmem:[%s3885_s30 + $0x70] sm:$0xf] %v263_v28  ;;  %v265_v29 = vld [vmem:[%s3878_s29 + $0xe8] sm:$0xf] }
  0x25   : > { %v267_v30 = vld [vmem:[%s3878_s29 + $0xf0] sm:$0xf]  ;;  %v269_v31 = vld [vmem:[%s3878_s29 + $0xf8] sm:$0xf]  ;;  %266 = vst [vmem:[%s3885_s30 + $0x74] sm:$0xf] %v265_v29 }
  0x26   : > { %268 = vst [vmem:[%s3885_s30 + $0x78] sm:$0xf] %v267_v30  ;;  %270 = vst [vmem:[%s3885_s30 + $0x7c] sm:$0xf] %v269_v31  ;;  %v271_v32 = vld [vmem:[%s3878_s29 + $0x100] sm:$0xf] }
  0x27   : > { %v273_v33 = vld [vmem:[%s3878_s29 + $0x108] sm:$0xf]  ;;  %v275_v34 = vld [vmem:[%s3878_s29 + $0x110] sm:$0xf]  ;;  %272 = vst [vmem:[%s3885_s30 + $0x80] sm:$0xf] %v271_v32 }
  0x28   : > { %274 = vst [vmem:[%s3885_s30 + $0x84] sm:$0xf] %v273_v33  ;;  %276 = vst [vmem:[%s3885_s30 + $0x88] sm:$0xf] %v275_v34  ;;  %v277_v35 = vld [vmem:[%s3878_s29 + $0x118] sm:$0xf] }
  0x29   : > { %v279_v36 = vld [vmem:[%s3878_s29 + $0x120] sm:$0xf]  ;;  %v281_v37 = vld [vmem:[%s3878_s29 + $0x128] sm:$0xf]  ;;  %278 = vst [vmem:[%s3885_s30 + $0x8c] sm:$0xf] %v277_v35 }
  0x2a   : > { %280 = vst [vmem:[%s3885_s30 + $0x90] sm:$0xf] %v279_v36  ;;  %282 = vst [vmem:[%s3885_s30 + $0x94] sm:$0xf] %v281_v37  ;;  %v283_v38 = vld [vmem:[%s3878_s29 + $0x130] sm:$0xf] }
  0x2b   : > { %v285_v39 = vld [vmem:[%s3878_s29 + $0x138] sm:$0xf]  ;;  %v287_v40 = vld [vmem:[%s3878_s29 + $0x140] sm:$0xf]  ;;  %284 = vst [vmem:[%s3885_s30 + $0x98] sm:$0xf] %v283_v38 }
  0x2c   : > { %286 = vst [vmem:[%s3885_s30 + $0x9c] sm:$0xf] %v285_v39  ;;  %288 = vst [vmem:[%s3885_s30 + $0xa0] sm:$0xf] %v287_v40  ;;  %v289_v41 = vld [vmem:[%s3878_s29 + $0x148] sm:$0xf] }
  0x2d   : > { %v291_v42 = vld [vmem:[%s3878_s29 + $0x150] sm:$0xf]  ;;  %v293_v43 = vld [vmem:[%s3878_s29 + $0x158] sm:$0xf]  ;;  %290 = vst [vmem:[%s3885_s30 + $0xa4] sm:$0xf] %v289_v41 }
  0x2e   : > { %292 = vst [vmem:[%s3885_s30 + $0xa8] sm:$0xf] %v291_v42  ;;  %294 = vst [vmem:[%s3885_s30 + $0xac] sm:$0xf] %v293_v43  ;;  %v295_v44 = vld [vmem:[%s3878_s29 + $0x160] sm:$0xf] }
  0x2f   : > { %v297_v45 = vld [vmem:[%s3878_s29 + $0x168] sm:$0xf]  ;;  %v299_v46 = vld [vmem:[%s3878_s29 + $0x170] sm:$0xf]  ;;  %296 = vst [vmem:[%s3885_s30 + $0xb0] sm:$0xf] %v295_v44 }
  0x30   : > { %298 = vst [vmem:[%s3885_s30 + $0xb4] sm:$0xf] %v297_v45  ;;  %300 = vst [vmem:[%s3885_s30 + $0xb8] sm:$0xf] %v299_v46  ;;  %v301_v47 = vld [vmem:[%s3878_s29 + $0x178] sm:$0xf] }
  0x31   : > { %v303_v48 = vld [vmem:[%s3878_s29 + $0x180] sm:$0xf]  ;;  %v305_v49 = vld [vmem:[%s3878_s29 + $0x188] sm:$0xf]  ;;  %302 = vst [vmem:[%s3885_s30 + $0xbc] sm:$0xf] %v301_v47 }
  0x32   : > { %304 = vst [vmem:[%s3885_s30 + $0xc0] sm:$0xf] %v303_v48  ;;  %306 = vst [vmem:[%s3885_s30 + $0xc4] sm:$0xf] %v305_v49  ;;  %v307_v50 = vld [vmem:[%s3878_s29 + $0x190] sm:$0xf] }
  0x33   : > { %v309_v51 = vld [vmem:[%s3878_s29 + $0x198] sm:$0xf]  ;;  %v311_v52 = vld [vmem:[%s3878_s29 + $0x1a0] sm:$0xf]  ;;  %308 = vst [vmem:[%s3885_s30 + $0xc8] sm:$0xf] %v307_v50 }
  0x34   : > { %310 = vst [vmem:[%s3885_s30 + $0xcc] sm:$0xf] %v309_v51  ;;  %312 = vst [vmem:[%s3885_s30 + $0xd0] sm:$0xf] %v311_v52  ;;  %v313_v53 = vld [vmem:[%s3878_s29 + $0x1a8] sm:$0xf] }
  0x35   : > { %v315_v54 = vld [vmem:[%s3878_s29 + $0x1b0] sm:$0xf]  ;;  %v317_v55 = vld [vmem:[%s3878_s29 + $0x1b8] sm:$0xf]  ;;  %314 = vst [vmem:[%s3885_s30 + $0xd4] sm:$0xf] %v313_v53 }
  0x36   : > { %316 = vst [vmem:[%s3885_s30 + $0xd8] sm:$0xf] %v315_v54  ;;  %318 = vst [vmem:[%s3885_s30 + $0xdc] sm:$0xf] %v317_v55  ;;  %v319_v56 = vld [vmem:[%s3878_s29 + $0x1c0] sm:$0xf] }
  0x37   : > { %v321_v57 = vld [vmem:[%s3878_s29 + $0x1c8] sm:$0xf]  ;;  %v323_v58 = vld [vmem:[%s3878_s29 + $0x1d0] sm:$0xf]  ;;  %320 = vst [vmem:[%s3885_s30 + $0xe0] sm:$0xf] %v319_v56 }
  0x38   : > { %322 = vst [vmem:[%s3885_s30 + $0xe4] sm:$0xf] %v321_v57  ;;  %324 = vst [vmem:[%s3885_s30 + $0xe8] sm:$0xf] %v323_v58  ;;  %v325_v59 = vld [vmem:[%s3878_s29 + $0x1d8] sm:$0xf] }
  0x39   : > { %v327_v60 = vld [vmem:[%s3878_s29 + $0x1e0] sm:$0xf]  ;;  %v329_v61 = vld [vmem:[%s3878_s29 + $0x1e8] sm:$0xf]  ;;  %326 = vst [vmem:[%s3885_s30 + $0xec] sm:$0xf] %v325_v59 }
  0x3a   : > { %328 = vst [vmem:[%s3885_s30 + $0xf0] sm:$0xf] %v327_v60  ;;  %330 = vst [vmem:[%s3885_s30 + $0xf4] sm:$0xf] %v329_v61  ;;  %v331_v62 = vld [vmem:[%s3878_s29 + $0x1f0] sm:$0xf] }
  0x3b   : > { %v333_v63 = vld [vmem:[%s3878_s29 + $0x1f8] sm:$0xf]  ;;  %v335_v0 = vld [vmem:[%s3878_s29 + $0x200] sm:$0xf]  ;;  %332 = vst [vmem:[%s3885_s30 + $0xf8] sm:$0xf] %v331_v62 }
  0x3c   : > { %334 = vst [vmem:[%s3885_s30 + $0xfc] sm:$0xf] %v333_v63  ;;  %336 = vst [vmem:[%s3885_s30 + $0x100] sm:$0xf] %v335_v0  ;;  %v337_v1 = vld [vmem:[%s3878_s29 + $0x208] sm:$0xf] }
  0x3d   : > { %v339_v2 = vld [vmem:[%s3878_s29 + $0x210] sm:$0xf]  ;;  %v341_v3 = vld [vmem:[%s3878_s29 + $0x218] sm:$0xf]  ;;  %338 = vst [vmem:[%s3885_s30 + $0x104] sm:$0xf] %v337_v1 }
  0x3e   : > { %340 = vst [vmem:[%s3885_s30 + $0x108] sm:$0xf] %v339_v2  ;;  %342 = vst [vmem:[%s3885_s30 + $0x10c] sm:$0xf] %v341_v3  ;;  %v343_v4 = vld [vmem:[%s3878_s29 + $0x220] sm:$0xf] }
  0x3f   : > { %v345_v5 = vld [vmem:[%s3878_s29 + $0x228] sm:$0xf]  ;;  %v347_v6 = vld [vmem:[%s3878_s29 + $0x230] sm:$0xf]  ;;  %344 = vst [vmem:[%s3885_s30 + $0x110] sm:$0xf] %v343_v4 }
  0x40   : > { %346 = vst [vmem:[%s3885_s30 + $0x114] sm:$0xf] %v345_v5  ;;  %348 = vst [vmem:[%s3885_s30 + $0x118] sm:$0xf] %v347_v6  ;;  %v349_v7 = vld [vmem:[%s3878_s29 + $0x238] sm:$0xf] }
  0x41   : > { %v351_v8 = vld [vmem:[%s3878_s29 + $0x240] sm:$0xf]  ;;  %v353_v9 = vld [vmem:[%s3878_s29 + $0x248] sm:$0xf]  ;;  %350 = vst [vmem:[%s3885_s30 + $0x11c] sm:$0xf] %v349_v7 }
  0x42   : > { %352 = vst [vmem:[%s3885_s30 + $0x120] sm:$0xf] %v351_v8  ;;  %354 = vst [vmem:[%s3885_s30 + $0x124] sm:$0xf] %v353_v9  ;;  %v355_v10 = vld [vmem:[%s3878_s29 + $0x250] sm:$0xf] }
  0x43   : > { %v357_v11 = vld [vmem:[%s3878_s29 + $0x258] sm:$0xf]  ;;  %v359_v12 = vld [vmem:[%s3878_s29 + $0x260] sm:$0xf]  ;;  %356 = vst [vmem:[%s3885_s30 + $0x128] sm:$0xf] %v355_v10 }
  0x44   : > { %358 = vst [vmem:[%s3885_s30 + $0x12c] sm:$0xf] %v357_v11  ;;  %360 = vst [vmem:[%s3885_s30 + $0x130] sm:$0xf] %v359_v12  ;;  %v361_v13 = vld [vmem:[%s3878_s29 + $0x268] sm:$0xf] }
  0x45   : > { %v363_v14 = vld [vmem:[%s3878_s29 + $0x270] sm:$0xf]  ;;  %v365_v15 = vld [vmem:[%s3878_s29 + $0x278] sm:$0xf]  ;;  %362 = vst [vmem:[%s3885_s30 + $0x134] sm:$0xf] %v361_v13 }
  0x46   : > { %364 = vst [vmem:[%s3885_s30 + $0x138] sm:$0xf] %v363_v14  ;;  %366 = vst [vmem:[%s3885_s30 + $0x13c] sm:$0xf] %v365_v15  ;;  %v367_v16 = vld [vmem:[%s3878_s29 + $0x280] sm:$0xf] }
  0x47   : > { %v369_v17 = vld [vmem:[%s3878_s29 + $0x288] sm:$0xf]  ;;  %v371_v18 = vld [vmem:[%s3878_s29 + $0x290] sm:$0xf]  ;;  %368 = vst [vmem:[%s3885_s30 + $0x140] sm:$0xf] %v367_v16 }
  0x48   : > { %370 = vst [vmem:[%s3885_s30 + $0x144] sm:$0xf] %v369_v17  ;;  %372 = vst [vmem:[%s3885_s30 + $0x148] sm:$0xf] %v371_v18  ;;  %v373_v19 = vld [vmem:[%s3878_s29 + $0x298] sm:$0xf] }
  0x49   : > { %v375_v20 = vld [vmem:[%s3878_s29 + $0x2a0] sm:$0xf]  ;;  %v377_v21 = vld [vmem:[%s3878_s29 + $0x2a8] sm:$0xf]  ;;  %374 = vst [vmem:[%s3885_s30 + $0x14c] sm:$0xf] %v373_v19 }
  0x4a   : > { %376 = vst [vmem:[%s3885_s30 + $0x150] sm:$0xf] %v375_v20  ;;  %378 = vst [vmem:[%s3885_s30 + $0x154] sm:$0xf] %v377_v21  ;;  %v379_v22 = vld [vmem:[%s3878_s29 + $0x2b0] sm:$0xf] }
  0x4b   : > { %v381_v23 = vld [vmem:[%s3878_s29 + $0x2b8] sm:$0xf]  ;;  %v383_v24 = vld [vmem:[%s3878_s29 + $0x2c0] sm:$0xf]  ;;  %380 = vst [vmem:[%s3885_s30 + $0x158] sm:$0xf] %v379_v22 }
  0x4c   : > { %382 = vst [vmem:[%s3885_s30 + $0x15c] sm:$0xf] %v381_v23  ;;  %384 = vst [vmem:[%s3885_s30 + $0x160] sm:$0xf] %v383_v24  ;;  %v385_v25 = vld [vmem:[%s3878_s29 + $0x2c8] sm:$0xf] }
  0x4d   : > { %v387_v26 = vld [vmem:[%s3878_s29 + $0x2d0] sm:$0xf]  ;;  %v389_v27 = vld [vmem:[%s3878_s29 + $0x2d8] sm:$0xf]  ;;  %386 = vst [vmem:[%s3885_s30 + $0x164] sm:$0xf] %v385_v25 }
  0x4e   : > { %388 = vst [vmem:[%s3885_s30 + $0x168] sm:$0xf] %v387_v26  ;;  %390 = vst [vmem:[%s3885_s30 + $0x16c] sm:$0xf] %v389_v27  ;;  %v391_v28 = vld [vmem:[%s3878_s29 + $0x2e0] sm:$0xf] }
  0x4f   : > { %v393_v29 = vld [vmem:[%s3878_s29 + $0x2e8] sm:$0xf]  ;;  %v395_v30 = vld [vmem:[%s3878_s29 + $0x2f0] sm:$0xf]  ;;  %392 = vst [vmem:[%s3885_s30 + $0x170] sm:$0xf] %v391_v28 }
  0x50   : > { %394 = vst [vmem:[%s3885_s30 + $0x174] sm:$0xf] %v393_v29  ;;  %396 = vst [vmem:[%s3885_s30 + $0x178] sm:$0xf] %v395_v30  ;;  %v397_v31 = vld [vmem:[%s3878_s29 + $0x2f8] sm:$0xf] }
  0x51   : > { %v399_v32 = vld [vmem:[%s3878_s29 + $0x300] sm:$0xf]  ;;  %v401_v33 = vld [vmem:[%s3878_s29 + $0x308] sm:$0xf]  ;;  %398 = vst [vmem:[%s3885_s30 + $0x17c] sm:$0xf] %v397_v31 }
  0x52   : > { %400 = vst [vmem:[%s3885_s30 + $0x180] sm:$0xf] %v399_v32  ;;  %402 = vst [vmem:[%s3885_s30 + $0x184] sm:$0xf] %v401_v33  ;;  %v403_v34 = vld [vmem:[%s3878_s29 + $0x310] sm:$0xf] }
  0x53   : > { %v405_v35 = vld [vmem:[%s3878_s29 + $0x318] sm:$0xf]  ;;  %v407_v36 = vld [vmem:[%s3878_s29 + $0x320] sm:$0xf]  ;;  %404 = vst [vmem:[%s3885_s30 + $0x188] sm:$0xf] %v403_v34 }
  0x54   : > { %406 = vst [vmem:[%s3885_s30 + $0x18c] sm:$0xf] %v405_v35  ;;  %408 = vst [vmem:[%s3885_s30 + $0x190] sm:$0xf] %v407_v36  ;;  %v409_v37 = vld [vmem:[%s3878_s29 + $0x328] sm:$0xf] }
  0x55   : > { %v411_v38 = vld [vmem:[%s3878_s29 + $0x330] sm:$0xf]  ;;  %v413_v39 = vld [vmem:[%s3878_s29 + $0x338] sm:$0xf]  ;;  %410 = vst [vmem:[%s3885_s30 + $0x194] sm:$0xf] %v409_v37 }
  0x56   : > { %412 = vst [vmem:[%s3885_s30 + $0x198] sm:$0xf] %v411_v38  ;;  %414 = vst [vmem:[%s3885_s30 + $0x19c] sm:$0xf] %v413_v39  ;;  %v415_v40 = vld [vmem:[%s3878_s29 + $0x340] sm:$0xf] }
  0x57   : > { %v417_v41 = vld [vmem:[%s3878_s29 + $0x348] sm:$0xf]  ;;  %v419_v42 = vld [vmem:[%s3878_s29 + $0x350] sm:$0xf]  ;;  %416 = vst [vmem:[%s3885_s30 + $0x1a0] sm:$0xf] %v415_v40 }
  0x58   : > { %418 = vst [vmem:[%s3885_s30 + $0x1a4] sm:$0xf] %v417_v41  ;;  %420 = vst [vmem:[%s3885_s30 + $0x1a8] sm:$0xf] %v419_v42  ;;  %v421_v43 = vld [vmem:[%s3878_s29 + $0x358] sm:$0xf] }
  0x59   : > { %v423_v44 = vld [vmem:[%s3878_s29 + $0x360] sm:$0xf]  ;;  %v425_v45 = vld [vmem:[%s3878_s29 + $0x368] sm:$0xf]  ;;  %422 = vst [vmem:[%s3885_s30 + $0x1ac] sm:$0xf] %v421_v43 }
  0x5a   : > { %424 = vst [vmem:[%s3885_s30 + $0x1b0] sm:$0xf] %v423_v44  ;;  %426 = vst [vmem:[%s3885_s30 + $0x1b4] sm:$0xf] %v425_v45  ;;  %v427_v46 = vld [vmem:[%s3878_s29 + $0x370] sm:$0xf] }
  0x5b   : > { %v429_v47 = vld [vmem:[%s3878_s29 + $0x378] sm:$0xf]  ;;  %v431_v48 = vld [vmem:[%s3878_s29 + $0x380] sm:$0xf]  ;;  %428 = vst [vmem:[%s3885_s30 + $0x1b8] sm:$0xf] %v427_v46 }
  0x5c   : > { %430 = vst [vmem:[%s3885_s30 + $0x1bc] sm:$0xf] %v429_v47  ;;  %432 = vst [vmem:[%s3885_s30 + $0x1c0] sm:$0xf] %v431_v48  ;;  %v433_v49 = vld [vmem:[%s3878_s29 + $0x388] sm:$0xf] }
  0x5d   : > { %v435_v50 = vld [vmem:[%s3878_s29 + $0x390] sm:$0xf]  ;;  %v437_v51 = vld [vmem:[%s3878_s29 + $0x398] sm:$0xf]  ;;  %434 = vst [vmem:[%s3885_s30 + $0x1c4] sm:$0xf] %v433_v49 }
  0x5e   : > { %436 = vst [vmem:[%s3885_s30 + $0x1c8] sm:$0xf] %v435_v50  ;;  %438 = vst [vmem:[%s3885_s30 + $0x1cc] sm:$0xf] %v437_v51  ;;  %v439_v52 = vld [vmem:[%s3878_s29 + $0x3a0] sm:$0xf] }
  0x5f   : > { %v441_v53 = vld [vmem:[%s3878_s29 + $0x3a8] sm:$0xf]  ;;  %v443_v54 = vld [vmem:[%s3878_s29 + $0x3b0] sm:$0xf]  ;;  %440 = vst [vmem:[%s3885_s30 + $0x1d0] sm:$0xf] %v439_v52 }
  0x60   : > { %442 = vst [vmem:[%s3885_s30 + $0x1d4] sm:$0xf] %v441_v53  ;;  %444 = vst [vmem:[%s3885_s30 + $0x1d8] sm:$0xf] %v443_v54  ;;  %v445_v55 = vld [vmem:[%s3878_s29 + $0x3b8] sm:$0xf] }
  0x61   : > { %v447_v56 = vld [vmem:[%s3878_s29 + $0x3c0] sm:$0xf]  ;;  %v449_v57 = vld [vmem:[%s3878_s29 + $0x3c8] sm:$0xf]  ;;  %446 = vst [vmem:[%s3885_s30 + $0x1dc] sm:$0xf] %v445_v55 }
  0x62   : > { %448 = vst [vmem:[%s3885_s30 + $0x1e0] sm:$0xf] %v447_v56  ;;  %450 = vst [vmem:[%s3885_s30 + $0x1e4] sm:$0xf] %v449_v57  ;;  %v451_v58 = vld [vmem:[%s3878_s29 + $0x3d0] sm:$0xf] }
  0x63   : > { %v453_v59 = vld [vmem:[%s3878_s29 + $0x3d8] sm:$0xf]  ;;  %v455_v60 = vld [vmem:[%s3878_s29 + $0x3e0] sm:$0xf]  ;;  %452 = vst [vmem:[%s3885_s30 + $0x1e8] sm:$0xf] %v451_v58 }
  0x64   : > { %454 = vst [vmem:[%s3885_s30 + $0x1ec] sm:$0xf] %v453_v59  ;;  %456 = vst [vmem:[%s3885_s30 + $0x1f0] sm:$0xf] %v455_v60  ;;  %v457_v61 = vld [vmem:[%s3878_s29 + $0x3e8] sm:$0xf] }
  0x65   : > { %v459_v62 = vld [vmem:[%s3878_s29 + $0x3f0] sm:$0xf]  ;;  %v461_v63 = vld [vmem:[%s3878_s29 + $0x3f8] sm:$0xf]  ;;  %458 = vst [vmem:[%s3885_s30 + $0x1f4] sm:$0xf] %v457_v61 }
  0x66   : > { %460 = vst [vmem:[%s3885_s30 + $0x1f8] sm:$0xf] %v459_v62  ;;  %462 = vst [vmem:[%s3885_s30 + $0x1fc] sm:$0xf] %v461_v63  ;;  %v463_v0 = vld [vmem:[%s3878_s29 + $0x400] sm:$0xf] }
  0x67   : > { %v465_v1 = vld [vmem:[%s3878_s29 + $0x408] sm:$0xf]  ;;  %v467_v2 = vld [vmem:[%s3878_s29 + $0x410] sm:$0xf]  ;;  %464 = vst [vmem:[%s3885_s30 + $0x200] sm:$0xf] %v463_v0 }
  0x68   : > { %466 = vst [vmem:[%s3885_s30 + $0x204] sm:$0xf] %v465_v1  ;;  %468 = vst [vmem:[%s3885_s30 + $0x208] sm:$0xf] %v467_v2  ;;  %v469_v3 = vld [vmem:[%s3878_s29 + $0x418] sm:$0xf] }
  0x69   : > { %v471_v4 = vld [vmem:[%s3878_s29 + $0x420] sm:$0xf]  ;;  %v473_v5 = vld [vmem:[%s3878_s29 + $0x428] sm:$0xf]  ;;  %470 = vst [vmem:[%s3885_s30 + $0x20c] sm:$0xf] %v469_v3 }
  0x6a   : > { %472 = vst [vmem:[%s3885_s30 + $0x210] sm:$0xf] %v471_v4  ;;  %474 = vst [vmem:[%s3885_s30 + $0x214] sm:$0xf] %v473_v5  ;;  %v475_v6 = vld [vmem:[%s3878_s29 + $0x430] sm:$0xf] }
  0x6b   : > { %v477_v7 = vld [vmem:[%s3878_s29 + $0x438] sm:$0xf]  ;;  %v479_v8 = vld [vmem:[%s3878_s29 + $0x440] sm:$0xf]  ;;  %476 = vst [vmem:[%s3885_s30 + $0x218] sm:$0xf] %v475_v6 }
  0x6c   : > { %478 = vst [vmem:[%s3885_s30 + $0x21c] sm:$0xf] %v477_v7  ;;  %480 = vst [vmem:[%s3885_s30 + $0x220] sm:$0xf] %v479_v8  ;;  %v481_v9 = vld [vmem:[%s3878_s29 + $0x448] sm:$0xf] }
  0x6d   : > { %v483_v10 = vld [vmem:[%s3878_s29 + $0x450] sm:$0xf]  ;;  %v485_v11 = vld [vmem:[%s3878_s29 + $0x458] sm:$0xf]  ;;  %482 = vst [vmem:[%s3885_s30 + $0x224] sm:$0xf] %v481_v9 }
  0x6e   : > { %484 = vst [vmem:[%s3885_s30 + $0x228] sm:$0xf] %v483_v10  ;;  %486 = vst [vmem:[%s3885_s30 + $0x22c] sm:$0xf] %v485_v11  ;;  %v487_v12 = vld [vmem:[%s3878_s29 + $0x460] sm:$0xf] }
  0x6f   : > { %v489_v13 = vld [vmem:[%s3878_s29 + $0x468] sm:$0xf]  ;;  %v491_v14 = vld [vmem:[%s3878_s29 + $0x470] sm:$0xf]  ;;  %488 = vst [vmem:[%s3885_s30 + $0x230] sm:$0xf] %v487_v12 }
  0x70   : > { %490 = vst [vmem:[%s3885_s30 + $0x234] sm:$0xf] %v489_v13  ;;  %492 = vst [vmem:[%s3885_s30 + $0x238] sm:$0xf] %v491_v14  ;;  %v493_v15 = vld [vmem:[%s3878_s29 + $0x478] sm:$0xf] }
  0x71   : > { %v495_v16 = vld [vmem:[%s3878_s29 + $0x480] sm:$0xf]  ;;  %v497_v17 = vld [vmem:[%s3878_s29 + $0x488] sm:$0xf]  ;;  %494 = vst [vmem:[%s3885_s30 + $0x23c] sm:$0xf] %v493_v15 }
  0x72   : > { %496 = vst [vmem:[%s3885_s30 + $0x240] sm:$0xf] %v495_v16  ;;  %498 = vst [vmem:[%s3885_s30 + $0x244] sm:$0xf] %v497_v17  ;;  %v499_v18 = vld [vmem:[%s3878_s29 + $0x490] sm:$0xf] }
  0x73   : > { %v501_v19 = vld [vmem:[%s3878_s29 + $0x498] sm:$0xf]  ;;  %v503_v20 = vld [vmem:[%s3878_s29 + $0x4a0] sm:$0xf]  ;;  %500 = vst [vmem:[%s3885_s30 + $0x248] sm:$0xf] %v499_v18 }
  0x74   : > { %502 = vst [vmem:[%s3885_s30 + $0x24c] sm:$0xf] %v501_v19  ;;  %504 = vst [vmem:[%s3885_s30 + $0x250] sm:$0xf] %v503_v20  ;;  %v505_v21 = vld [vmem:[%s3878_s29 + $0x4a8] sm:$0xf] }
  0x75   : > { %v507_v22 = vld [vmem:[%s3878_s29 + $0x4b0] sm:$0xf]  ;;  %v509_v23 = vld [vmem:[%s3878_s29 + $0x4b8] sm:$0xf]  ;;  %506 = vst [vmem:[%s3885_s30 + $0x254] sm:$0xf] %v505_v21 }
  0x76   : > { %508 = vst [vmem:[%s3885_s30 + $0x258] sm:$0xf] %v507_v22  ;;  %510 = vst [vmem:[%s3885_s30 + $0x25c] sm:$0xf] %v509_v23  ;;  %v511_v24 = vld [vmem:[%s3878_s29 + $0x4c0] sm:$0xf] }
  0x77   : > { %v513_v25 = vld [vmem:[%s3878_s29 + $0x4c8] sm:$0xf]  ;;  %v515_v26 = vld [vmem:[%s3878_s29 + $0x4d0] sm:$0xf]  ;;  %512 = vst [vmem:[%s3885_s30 + $0x260] sm:$0xf] %v511_v24 }
  0x78   : > { %514 = vst [vmem:[%s3885_s30 + $0x264] sm:$0xf] %v513_v25  ;;  %516 = vst [vmem:[%s3885_s30 + $0x268] sm:$0xf] %v515_v26  ;;  %v517_v27 = vld [vmem:[%s3878_s29 + $0x4d8] sm:$0xf] }
  0x79   : > { %v519_v28 = vld [vmem:[%s3878_s29 + $0x4e0] sm:$0xf]  ;;  %v521_v29 = vld [vmem:[%s3878_s29 + $0x4e8] sm:$0xf]  ;;  %518 = vst [vmem:[%s3885_s30 + $0x26c] sm:$0xf] %v517_v27 }
  0x7a   : > { %520 = vst [vmem:[%s3885_s30 + $0x270] sm:$0xf] %v519_v28  ;;  %522 = vst [vmem:[%s3885_s30 + $0x274] sm:$0xf] %v521_v29  ;;  %v523_v30 = vld [vmem:[%s3878_s29 + $0x4f0] sm:$0xf] }
  0x7b   : > { %v525_v31 = vld [vmem:[%s3878_s29 + $0x4f8] sm:$0xf]  ;;  %v527_v32 = vld [vmem:[%s3878_s29 + $0x500] sm:$0xf]  ;;  %524 = vst [vmem:[%s3885_s30 + $0x278] sm:$0xf] %v523_v30 }
  0x7c   : > { %526 = vst [vmem:[%s3885_s30 + $0x27c] sm:$0xf] %v525_v31  ;;  %528 = vst [vmem:[%s3885_s30 + $0x280] sm:$0xf] %v527_v32  ;;  %v529_v33 = vld [vmem:[%s3878_s29 + $0x508] sm:$0xf] }
  0x7d   : > { %v531_v34 = vld [vmem:[%s3878_s29 + $0x510] sm:$0xf]  ;;  %v533_v35 = vld [vmem:[%s3878_s29 + $0x518] sm:$0xf]  ;;  %530 = vst [vmem:[%s3885_s30 + $0x284] sm:$0xf] %v529_v33 }
  0x7e   : > { %532 = vst [vmem:[%s3885_s30 + $0x288] sm:$0xf] %v531_v34  ;;  %534 = vst [vmem:[%s3885_s30 + $0x28c] sm:$0xf] %v533_v35  ;;  %v535_v36 = vld [vmem:[%s3878_s29 + $0x520] sm:$0xf] }
  0x7f   : > { %v537_v37 = vld [vmem:[%s3878_s29 + $0x528] sm:$0xf]  ;;  %v539_v38 = vld [vmem:[%s3878_s29 + $0x530] sm:$0xf]  ;;  %536 = vst [vmem:[%s3885_s30 + $0x290] sm:$0xf] %v535_v36 }
  0x80   : > { %538 = vst [vmem:[%s3885_s30 + $0x294] sm:$0xf] %v537_v37  ;;  %540 = vst [vmem:[%s3885_s30 + $0x298] sm:$0xf] %v539_v38  ;;  %v541_v39 = vld [vmem:[%s3878_s29 + $0x538] sm:$0xf] }
  0x81   : > { %v543_v40 = vld [vmem:[%s3878_s29 + $0x540] sm:$0xf]  ;;  %v545_v41 = vld [vmem:[%s3878_s29 + $0x548] sm:$0xf]  ;;  %542 = vst [vmem:[%s3885_s30 + $0x29c] sm:$0xf] %v541_v39 }
  0x82   : > { %544 = vst [vmem:[%s3885_s30 + $0x2a0] sm:$0xf] %v543_v40  ;;  %546 = vst [vmem:[%s3885_s30 + $0x2a4] sm:$0xf] %v545_v41  ;;  %v547_v42 = vld [vmem:[%s3878_s29 + $0x550] sm:$0xf] }
  0x83   : > { %v549_v43 = vld [vmem:[%s3878_s29 + $0x558] sm:$0xf]  ;;  %v551_v44 = vld [vmem:[%s3878_s29 + $0x560] sm:$0xf]  ;;  %548 = vst [vmem:[%s3885_s30 + $0x2a8] sm:$0xf] %v547_v42 }
  0x84   : > { %550 = vst [vmem:[%s3885_s30 + $0x2ac] sm:$0xf] %v549_v43  ;;  %552 = vst [vmem:[%s3885_s30 + $0x2b0] sm:$0xf] %v551_v44  ;;  %v553_v45 = vld [vmem:[%s3878_s29 + $0x568] sm:$0xf] }
  0x85   : > { %v555_v46 = vld [vmem:[%s3878_s29 + $0x570] sm:$0xf]  ;;  %v557_v47 = vld [vmem:[%s3878_s29 + $0x578] sm:$0xf]  ;;  %554 = vst [vmem:[%s3885_s30 + $0x2b4] sm:$0xf] %v553_v45 }
  0x86   : > { %556 = vst [vmem:[%s3885_s30 + $0x2b8] sm:$0xf] %v555_v46  ;;  %558 = vst [vmem:[%s3885_s30 + $0x2bc] sm:$0xf] %v557_v47  ;;  %v559_v48 = vld [vmem:[%s3878_s29 + $0x580] sm:$0xf] }
  0x87   : > { %v561_v49 = vld [vmem:[%s3878_s29 + $0x588] sm:$0xf]  ;;  %v563_v50 = vld [vmem:[%s3878_s29 + $0x590] sm:$0xf]  ;;  %560 = vst [vmem:[%s3885_s30 + $0x2c0] sm:$0xf] %v559_v48 }
  0x88   : > { %562 = vst [vmem:[%s3885_s30 + $0x2c4] sm:$0xf] %v561_v49  ;;  %564 = vst [vmem:[%s3885_s30 + $0x2c8] sm:$0xf] %v563_v50  ;;  %v565_v51 = vld [vmem:[%s3878_s29 + $0x598] sm:$0xf] }
  0x89   : > { %v567_v52 = vld [vmem:[%s3878_s29 + $0x5a0] sm:$0xf]  ;;  %v569_v53 = vld [vmem:[%s3878_s29 + $0x5a8] sm:$0xf]  ;;  %566 = vst [vmem:[%s3885_s30 + $0x2cc] sm:$0xf] %v565_v51 }
  0x8a   : > { %568 = vst [vmem:[%s3885_s30 + $0x2d0] sm:$0xf] %v567_v52  ;;  %570 = vst [vmem:[%s3885_s30 + $0x2d4] sm:$0xf] %v569_v53  ;;  %v571_v54 = vld [vmem:[%s3878_s29 + $0x5b0] sm:$0xf] }
  0x8b   : > { %v573_v55 = vld [vmem:[%s3878_s29 + $0x5b8] sm:$0xf]  ;;  %v575_v56 = vld [vmem:[%s3878_s29 + $0x5c0] sm:$0xf]  ;;  %572 = vst [vmem:[%s3885_s30 + $0x2d8] sm:$0xf] %v571_v54 }
  0x8c   : > { %574 = vst [vmem:[%s3885_s30 + $0x2dc] sm:$0xf] %v573_v55  ;;  %576 = vst [vmem:[%s3885_s30 + $0x2e0] sm:$0xf] %v575_v56  ;;  %v577_v57 = vld [vmem:[%s3878_s29 + $0x5c8] sm:$0xf] }
  0x8d   : > { %v579_v58 = vld [vmem:[%s3878_s29 + $0x5d0] sm:$0xf]  ;;  %v581_v59 = vld [vmem:[%s3878_s29 + $0x5d8] sm:$0xf]  ;;  %578 = vst [vmem:[%s3885_s30 + $0x2e4] sm:$0xf] %v577_v57 }
  0x8e   : > { %580 = vst [vmem:[%s3885_s30 + $0x2e8] sm:$0xf] %v579_v58  ;;  %582 = vst [vmem:[%s3885_s30 + $0x2ec] sm:$0xf] %v581_v59  ;;  %v583_v60 = vld [vmem:[%s3878_s29 + $0x5e0] sm:$0xf] }
  0x8f   : > { %v585_v61 = vld [vmem:[%s3878_s29 + $0x5e8] sm:$0xf]  ;;  %v587_v62 = vld [vmem:[%s3878_s29 + $0x5f0] sm:$0xf]  ;;  %584 = vst [vmem:[%s3885_s30 + $0x2f0] sm:$0xf] %v583_v60 }
  0x90   : > { %586 = vst [vmem:[%s3885_s30 + $0x2f4] sm:$0xf] %v585_v61  ;;  %588 = vst [vmem:[%s3885_s30 + $0x2f8] sm:$0xf] %v587_v62  ;;  %v589_v63 = vld [vmem:[%s3878_s29 + $0x5f8] sm:$0xf] }
  0x91   : > { %v591_v0 = vld [vmem:[%s3878_s29 + $0x600] sm:$0xf]  ;;  %v593_v1 = vld [vmem:[%s3878_s29 + $0x608] sm:$0xf]  ;;  %590 = vst [vmem:[%s3885_s30 + $0x2fc] sm:$0xf] %v589_v63 }
  0x92   : > { %592 = vst [vmem:[%s3885_s30 + $0x300] sm:$0xf] %v591_v0  ;;  %594 = vst [vmem:[%s3885_s30 + $0x304] sm:$0xf] %v593_v1  ;;  %v595_v2 = vld [vmem:[%s3878_s29 + $0x610] sm:$0xf] }
  0x93   : > { %v597_v3 = vld [vmem:[%s3878_s29 + $0x618] sm:$0xf]  ;;  %v599_v4 = vld [vmem:[%s3878_s29 + $0x620] sm:$0xf]  ;;  %596 = vst [vmem:[%s3885_s30 + $0x308] sm:$0xf] %v595_v2 }
  0x94   : > { %598 = vst [vmem:[%s3885_s30 + $0x30c] sm:$0xf] %v597_v3  ;;  %600 = vst [vmem:[%s3885_s30 + $0x310] sm:$0xf] %v599_v4  ;;  %v601_v5 = vld [vmem:[%s3878_s29 + $0x628] sm:$0xf] }
  0x95   : > { %v603_v6 = vld [vmem:[%s3878_s29 + $0x630] sm:$0xf]  ;;  %v605_v7 = vld [vmem:[%s3878_s29 + $0x638] sm:$0xf]  ;;  %602 = vst [vmem:[%s3885_s30 + $0x314] sm:$0xf] %v601_v5 }
  0x96   : > { %604 = vst [vmem:[%s3885_s30 + $0x318] sm:$0xf] %v603_v6  ;;  %606 = vst [vmem:[%s3885_s30 + $0x31c] sm:$0xf] %v605_v7  ;;  %v607_v8 = vld [vmem:[%s3878_s29 + $0x640] sm:$0xf] }
  0x97   : > { %v609_v9 = vld [vmem:[%s3878_s29 + $0x648] sm:$0xf]  ;;  %v611_v10 = vld [vmem:[%s3878_s29 + $0x650] sm:$0xf]  ;;  %608 = vst [vmem:[%s3885_s30 + $0x320] sm:$0xf] %v607_v8 }
  0x98   : > { %610 = vst [vmem:[%s3885_s30 + $0x324] sm:$0xf] %v609_v9  ;;  %612 = vst [vmem:[%s3885_s30 + $0x328] sm:$0xf] %v611_v10  ;;  %v613_v11 = vld [vmem:[%s3878_s29 + $0x658] sm:$0xf] }
  0x99   : > { %v615_v12 = vld [vmem:[%s3878_s29 + $0x660] sm:$0xf]  ;;  %v617_v13 = vld [vmem:[%s3878_s29 + $0x668] sm:$0xf]  ;;  %614 = vst [vmem:[%s3885_s30 + $0x32c] sm:$0xf] %v613_v11 }
  0x9a   : > { %616 = vst [vmem:[%s3885_s30 + $0x330] sm:$0xf] %v615_v12  ;;  %618 = vst [vmem:[%s3885_s30 + $0x334] sm:$0xf] %v617_v13  ;;  %v619_v14 = vld [vmem:[%s3878_s29 + $0x670] sm:$0xf] }
  0x9b   : > { %v621_v15 = vld [vmem:[%s3878_s29 + $0x678] sm:$0xf]  ;;  %v623_v16 = vld [vmem:[%s3878_s29 + $0x680] sm:$0xf]  ;;  %620 = vst [vmem:[%s3885_s30 + $0x338] sm:$0xf] %v619_v14 }
  0x9c   : > { %622 = vst [vmem:[%s3885_s30 + $0x33c] sm:$0xf] %v621_v15  ;;  %624 = vst [vmem:[%s3885_s30 + $0x340] sm:$0xf] %v623_v16  ;;  %v625_v17 = vld [vmem:[%s3878_s29 + $0x688] sm:$0xf] }
  0x9d   : > { %v627_v18 = vld [vmem:[%s3878_s29 + $0x690] sm:$0xf]  ;;  %v629_v19 = vld [vmem:[%s3878_s29 + $0x698] sm:$0xf]  ;;  %626 = vst [vmem:[%s3885_s30 + $0x344] sm:$0xf] %v625_v17 }
  0x9e   : > { %628 = vst [vmem:[%s3885_s30 + $0x348] sm:$0xf] %v627_v18  ;;  %630 = vst [vmem:[%s3885_s30 + $0x34c] sm:$0xf] %v629_v19  ;;  %v631_v20 = vld [vmem:[%s3878_s29 + $0x6a0] sm:$0xf] }
  0x9f   : > { %v633_v21 = vld [vmem:[%s3878_s29 + $0x6a8] sm:$0xf]  ;;  %v635_v22 = vld [vmem:[%s3878_s29 + $0x6b0] sm:$0xf]  ;;  %632 = vst [vmem:[%s3885_s30 + $0x350] sm:$0xf] %v631_v20 }
  0xa0   : > { %634 = vst [vmem:[%s3885_s30 + $0x354] sm:$0xf] %v633_v21  ;;  %636 = vst [vmem:[%s3885_s30 + $0x358] sm:$0xf] %v635_v22  ;;  %v637_v23 = vld [vmem:[%s3878_s29 + $0x6b8] sm:$0xf] }
  0xa1   : > { %v639_v24 = vld [vmem:[%s3878_s29 + $0x6c0] sm:$0xf]  ;;  %v641_v25 = vld [vmem:[%s3878_s29 + $0x6c8] sm:$0xf]  ;;  %638 = vst [vmem:[%s3885_s30 + $0x35c] sm:$0xf] %v637_v23 }
  0xa2   : > { %640 = vst [vmem:[%s3885_s30 + $0x360] sm:$0xf] %v639_v24  ;;  %642 = vst [vmem:[%s3885_s30 + $0x364] sm:$0xf] %v641_v25  ;;  %v643_v26 = vld [vmem:[%s3878_s29 + $0x6d0] sm:$0xf] }
  0xa3   : > { %v645_v27 = vld [vmem:[%s3878_s29 + $0x6d8] sm:$0xf]  ;;  %v647_v28 = vld [vmem:[%s3878_s29 + $0x6e0] sm:$0xf]  ;;  %644 = vst [vmem:[%s3885_s30 + $0x368] sm:$0xf] %v643_v26 }
  0xa4   : > { %646 = vst [vmem:[%s3885_s30 + $0x36c] sm:$0xf] %v645_v27  ;;  %648 = vst [vmem:[%s3885_s30 + $0x370] sm:$0xf] %v647_v28  ;;  %v649_v29 = vld [vmem:[%s3878_s29 + $0x6e8] sm:$0xf] }
  0xa5   : > { %v651_v30 = vld [vmem:[%s3878_s29 + $0x6f0] sm:$0xf]  ;;  %v653_v31 = vld [vmem:[%s3878_s29 + $0x6f8] sm:$0xf]  ;;  %650 = vst [vmem:[%s3885_s30 + $0x374] sm:$0xf] %v649_v29 }
  0xa6   : > { %652 = vst [vmem:[%s3885_s30 + $0x378] sm:$0xf] %v651_v30  ;;  %654 = vst [vmem:[%s3885_s30 + $0x37c] sm:$0xf] %v653_v31  ;;  %v655_v32 = vld [vmem:[%s3878_s29 + $0x700] sm:$0xf] }
  0xa7   : > { %v657_v33 = vld [vmem:[%s3878_s29 + $0x708] sm:$0xf]  ;;  %v659_v34 = vld [vmem:[%s3878_s29 + $0x710] sm:$0xf]  ;;  %656 = vst [vmem:[%s3885_s30 + $0x380] sm:$0xf] %v655_v32 }
  0xa8   : > { %658 = vst [vmem:[%s3885_s30 + $0x384] sm:$0xf] %v657_v33  ;;  %660 = vst [vmem:[%s3885_s30 + $0x388] sm:$0xf] %v659_v34  ;;  %v661_v35 = vld [vmem:[%s3878_s29 + $0x718] sm:$0xf] }
  0xa9   : > { %v663_v36 = vld [vmem:[%s3878_s29 + $0x720] sm:$0xf]  ;;  %v665_v37 = vld [vmem:[%s3878_s29 + $0x728] sm:$0xf]  ;;  %662 = vst [vmem:[%s3885_s30 + $0x38c] sm:$0xf] %v661_v35 }
  0xaa   : > { %664 = vst [vmem:[%s3885_s30 + $0x390] sm:$0xf] %v663_v36  ;;  %666 = vst [vmem:[%s3885_s30 + $0x394] sm:$0xf] %v665_v37  ;;  %v667_v38 = vld [vmem:[%s3878_s29 + $0x730] sm:$0xf] }
  0xab   : > { %v669_v39 = vld [vmem:[%s3878_s29 + $0x738] sm:$0xf]  ;;  %v671_v40 = vld [vmem:[%s3878_s29 + $0x740] sm:$0xf]  ;;  %668 = vst [vmem:[%s3885_s30 + $0x398] sm:$0xf] %v667_v38 }
  0xac   : > { %670 = vst [vmem:[%s3885_s30 + $0x39c] sm:$0xf] %v669_v39  ;;  %672 = vst [vmem:[%s3885_s30 + $0x3a0] sm:$0xf] %v671_v40  ;;  %v673_v41 = vld [vmem:[%s3878_s29 + $0x748] sm:$0xf] }
  0xad   : > { %v675_v42 = vld [vmem:[%s3878_s29 + $0x750] sm:$0xf]  ;;  %v677_v43 = vld [vmem:[%s3878_s29 + $0x758] sm:$0xf]  ;;  %674 = vst [vmem:[%s3885_s30 + $0x3a4] sm:$0xf] %v673_v41 }
  0xae   : > { %676 = vst [vmem:[%s3885_s30 + $0x3a8] sm:$0xf] %v675_v42  ;;  %678 = vst [vmem:[%s3885_s30 + $0x3ac] sm:$0xf] %v677_v43  ;;  %v679_v44 = vld [vmem:[%s3878_s29 + $0x760] sm:$0xf] }
  0xaf   : > { %v681_v45 = vld [vmem:[%s3878_s29 + $0x768] sm:$0xf]  ;;  %v683_v46 = vld [vmem:[%s3878_s29 + $0x770] sm:$0xf]  ;;  %680 = vst [vmem:[%s3885_s30 + $0x3b0] sm:$0xf] %v679_v44 }
  0xb0   : > { %682 = vst [vmem:[%s3885_s30 + $0x3b4] sm:$0xf] %v681_v45  ;;  %684 = vst [vmem:[%s3885_s30 + $0x3b8] sm:$0xf] %v683_v46  ;;  %v685_v47 = vld [vmem:[%s3878_s29 + $0x778] sm:$0xf] }
  0xb1   : > { %v687_v48 = vld [vmem:[%s3878_s29 + $0x780] sm:$0xf]  ;;  %v689_v49 = vld [vmem:[%s3878_s29 + $0x788] sm:$0xf]  ;;  %686 = vst [vmem:[%s3885_s30 + $0x3bc] sm:$0xf] %v685_v47 }
  0xb2   : > { %688 = vst [vmem:[%s3885_s30 + $0x3c0] sm:$0xf] %v687_v48  ;;  %690 = vst [vmem:[%s3885_s30 + $0x3c4] sm:$0xf] %v689_v49  ;;  %v691_v50 = vld [vmem:[%s3878_s29 + $0x790] sm:$0xf] }
  0xb3   : > { %v693_v51 = vld [vmem:[%s3878_s29 + $0x798] sm:$0xf]  ;;  %v695_v52 = vld [vmem:[%s3878_s29 + $0x7a0] sm:$0xf]  ;;  %692 = vst [vmem:[%s3885_s30 + $0x3c8] sm:$0xf] %v691_v50 }
  0xb4   : > { %694 = vst [vmem:[%s3885_s30 + $0x3cc] sm:$0xf] %v693_v51  ;;  %696 = vst [vmem:[%s3885_s30 + $0x3d0] sm:$0xf] %v695_v52  ;;  %v697_v53 = vld [vmem:[%s3878_s29 + $0x7a8] sm:$0xf] }
  0xb5   : > { %v699_v54 = vld [vmem:[%s3878_s29 + $0x7b0] sm:$0xf]  ;;  %v701_v55 = vld [vmem:[%s3878_s29 + $0x7b8] sm:$0xf]  ;;  %698 = vst [vmem:[%s3885_s30 + $0x3d4] sm:$0xf] %v697_v53 }
  0xb6   : > { %700 = vst [vmem:[%s3885_s30 + $0x3d8] sm:$0xf] %v699_v54  ;;  %702 = vst [vmem:[%s3885_s30 + $0x3dc] sm:$0xf] %v701_v55  ;;  %v703_v56 = vld [vmem:[%s3878_s29 + $0x7c0] sm:$0xf] }
  0xb7   : > { %v705_v57 = vld [vmem:[%s3878_s29 + $0x7c8] sm:$0xf]  ;;  %v707_v58 = vld [vmem:[%s3878_s29 + $0x7d0] sm:$0xf]  ;;  %704 = vst [vmem:[%s3885_s30 + $0x3e0] sm:$0xf] %v703_v56 }
  0xb8   : > { %706 = vst [vmem:[%s3885_s30 + $0x3e4] sm:$0xf] %v705_v57  ;;  %708 = vst [vmem:[%s3885_s30 + $0x3e8] sm:$0xf] %v707_v58  ;;  %v709_v59 = vld [vmem:[%s3878_s29 + $0x7d8] sm:$0xf] }
  0xb9   : > { %v711_v60 = vld [vmem:[%s3878_s29 + $0x7e0] sm:$0xf]  ;;  %v713_v61 = vld [vmem:[%s3878_s29 + $0x7e8] sm:$0xf]  ;;  %710 = vst [vmem:[%s3885_s30 + $0x3ec] sm:$0xf] %v709_v59 }
  0xba   : > { %712 = vst [vmem:[%s3885_s30 + $0x3f0] sm:$0xf] %v711_v60  ;;  %714 = vst [vmem:[%s3885_s30 + $0x3f4] sm:$0xf] %v713_v61  ;;  %v715_v62 = vld [vmem:[%s3878_s29 + $0x7f0] sm:$0xf] }
  0xbb   : > { %v717_v63 = vld [vmem:[%s3878_s29 + $0x7f8] sm:$0xf]  ;;  %v719_v0 = vld [vmem:[%s3878_s29 + $0x800] sm:$0xf]  ;;  %716 = vst [vmem:[%s3885_s30 + $0x3f8] sm:$0xf] %v715_v62 }
  0xbc   : > { %718 = vst [vmem:[%s3885_s30 + $0x3fc] sm:$0xf] %v717_v63  ;;  %720 = vst [vmem:[%s3885_s30 + $0x400] sm:$0xf] %v719_v0  ;;  %v721_v1 = vld [vmem:[%s3878_s29 + $0x808] sm:$0xf] }
  0xbd   : > { %v723_v2 = vld [vmem:[%s3878_s29 + $0x810] sm:$0xf]  ;;  %v725_v3 = vld [vmem:[%s3878_s29 + $0x818] sm:$0xf]  ;;  %722 = vst [vmem:[%s3885_s30 + $0x404] sm:$0xf] %v721_v1 }
  0xbe   : > { %724 = vst [vmem:[%s3885_s30 + $0x408] sm:$0xf] %v723_v2  ;;  %726 = vst [vmem:[%s3885_s30 + $0x40c] sm:$0xf] %v725_v3  ;;  %v727_v4 = vld [vmem:[%s3878_s29 + $0x820] sm:$0xf] }
  0xbf   : > { %v729_v5 = vld [vmem:[%s3878_s29 + $0x828] sm:$0xf]  ;;  %v731_v6 = vld [vmem:[%s3878_s29 + $0x830] sm:$0xf]  ;;  %728 = vst [vmem:[%s3885_s30 + $0x410] sm:$0xf] %v727_v4 }
  0xc0   : > { %730 = vst [vmem:[%s3885_s30 + $0x414] sm:$0xf] %v729_v5  ;;  %732 = vst [vmem:[%s3885_s30 + $0x418] sm:$0xf] %v731_v6  ;;  %v733_v7 = vld [vmem:[%s3878_s29 + $0x838] sm:$0xf] }
  0xc1   : > { %v735_v8 = vld [vmem:[%s3878_s29 + $0x840] sm:$0xf]  ;;  %v737_v9 = vld [vmem:[%s3878_s29 + $0x848] sm:$0xf]  ;;  %734 = vst [vmem:[%s3885_s30 + $0x41c] sm:$0xf] %v733_v7 }
  0xc2   : > { %736 = vst [vmem:[%s3885_s30 + $0x420] sm:$0xf] %v735_v8  ;;  %738 = vst [vmem:[%s3885_s30 + $0x424] sm:$0xf] %v737_v9  ;;  %v739_v10 = vld [vmem:[%s3878_s29 + $0x850] sm:$0xf] }
  0xc3   : > { %v741_v11 = vld [vmem:[%s3878_s29 + $0x858] sm:$0xf]  ;;  %v743_v12 = vld [vmem:[%s3878_s29 + $0x860] sm:$0xf]  ;;  %740 = vst [vmem:[%s3885_s30 + $0x428] sm:$0xf] %v739_v10 }
  0xc4   : > { %742 = vst [vmem:[%s3885_s30 + $0x42c] sm:$0xf] %v741_v11  ;;  %744 = vst [vmem:[%s3885_s30 + $0x430] sm:$0xf] %v743_v12  ;;  %v745_v13 = vld [vmem:[%s3878_s29 + $0x868] sm:$0xf] }
  0xc5   : > { %v747_v14 = vld [vmem:[%s3878_s29 + $0x870] sm:$0xf]  ;;  %v749_v15 = vld [vmem:[%s3878_s29 + $0x878] sm:$0xf]  ;;  %746 = vst [vmem:[%s3885_s30 + $0x434] sm:$0xf] %v745_v13 }
  0xc6   : > { %748 = vst [vmem:[%s3885_s30 + $0x438] sm:$0xf] %v747_v14  ;;  %750 = vst [vmem:[%s3885_s30 + $0x43c] sm:$0xf] %v749_v15  ;;  %v751_v16 = vld [vmem:[%s3878_s29 + $0x880] sm:$0xf] }
  0xc7   : > { %v753_v17 = vld [vmem:[%s3878_s29 + $0x888] sm:$0xf]  ;;  %v755_v18 = vld [vmem:[%s3878_s29 + $0x890] sm:$0xf]  ;;  %752 = vst [vmem:[%s3885_s30 + $0x440] sm:$0xf] %v751_v16 }
  0xc8   : > { %754 = vst [vmem:[%s3885_s30 + $0x444] sm:$0xf] %v753_v17  ;;  %756 = vst [vmem:[%s3885_s30 + $0x448] sm:$0xf] %v755_v18  ;;  %v757_v19 = vld [vmem:[%s3878_s29 + $0x898] sm:$0xf] }
  0xc9   : > { %v759_v20 = vld [vmem:[%s3878_s29 + $0x8a0] sm:$0xf]  ;;  %v761_v21 = vld [vmem:[%s3878_s29 + $0x8a8] sm:$0xf]  ;;  %758 = vst [vmem:[%s3885_s30 + $0x44c] sm:$0xf] %v757_v19 }
  0xca   : > { %760 = vst [vmem:[%s3885_s30 + $0x450] sm:$0xf] %v759_v20  ;;  %762 = vst [vmem:[%s3885_s30 + $0x454] sm:$0xf] %v761_v21  ;;  %v763_v22 = vld [vmem:[%s3878_s29 + $0x8b0] sm:$0xf] }
  0xcb   : > { %v765_v23 = vld [vmem:[%s3878_s29 + $0x8b8] sm:$0xf]  ;;  %v767_v24 = vld [vmem:[%s3878_s29 + $0x8c0] sm:$0xf]  ;;  %764 = vst [vmem:[%s3885_s30 + $0x458] sm:$0xf] %v763_v22 }
  0xcc   : > { %766 = vst [vmem:[%s3885_s30 + $0x45c] sm:$0xf] %v765_v23  ;;  %768 = vst [vmem:[%s3885_s30 + $0x460] sm:$0xf] %v767_v24  ;;  %v769_v25 = vld [vmem:[%s3878_s29 + $0x8c8] sm:$0xf] }
  0xcd   : > { %v771_v26 = vld [vmem:[%s3878_s29 + $0x8d0] sm:$0xf]  ;;  %v773_v27 = vld [vmem:[%s3878_s29 + $0x8d8] sm:$0xf]  ;;  %770 = vst [vmem:[%s3885_s30 + $0x464] sm:$0xf] %v769_v25 }
  0xce   : > { %772 = vst [vmem:[%s3885_s30 + $0x468] sm:$0xf] %v771_v26  ;;  %774 = vst [vmem:[%s3885_s30 + $0x46c] sm:$0xf] %v773_v27  ;;  %v775_v28 = vld [vmem:[%s3878_s29 + $0x8e0] sm:$0xf] }
  0xcf   : > { %v777_v29 = vld [vmem:[%s3878_s29 + $0x8e8] sm:$0xf]  ;;  %v779_v30 = vld [vmem:[%s3878_s29 + $0x8f0] sm:$0xf]  ;;  %776 = vst [vmem:[%s3885_s30 + $0x470] sm:$0xf] %v775_v28 }
  0xd0   : > { %778 = vst [vmem:[%s3885_s30 + $0x474] sm:$0xf] %v777_v29  ;;  %780 = vst [vmem:[%s3885_s30 + $0x478] sm:$0xf] %v779_v30  ;;  %v781_v31 = vld [vmem:[%s3878_s29 + $0x8f8] sm:$0xf] }
  0xd1   : > { %782 = vst [vmem:[%s3885_s30 + $0x47c] sm:$0xf] %v781_v31 }
  0xd2 PF: > { %p3200_p6 = scmp.ge.s32.totalorder %s3808_s19, 1  ;;  %p1397_p7 = scmp.lt.s32.totalorder %s3808_s19, 3 }
  0xd4   : > { %p1398_p8 = pnand %p3200_p6, %p1397_p7 }
  0xd5   : > { %s1404_s5 = sand.u32 (!%p1398_p8), 1, %s3792_s15   ;;  %v4464_v32 = vld [vmem:[%s4706_s0] sm:$0xff] (!%p1398_p8)  ;;  %v4469_v33 = vld [vmem:[%s4706_s0 + $0x8] sm:$0xff] (!%p1398_p8)  ;;  %v4507_v63 = vld [vmem:[%s4706_s0 + $0x10] sm:$0xff] (!%p1398_p8)  ;;  %p1453_p9 = scmp.lt.s32.totalorder (!%p1398_p8), %s3800_s17, 1 }
  0xd6   : > { %1401 = sbr.rel (%p1398_p8) target bundleno = 601 (0x259), region = 73  ;;  %v3205_v34 = vcombine.high (!%p1398_p8), %v4464_v32, %v4464_v32  ;;  %v3207_v35 = vcombine.high (!%p1398_p8), %v4469_v33, %v4469_v33  ;;  %v4514_v2 = vld [vmem:[%s4706_s0 + $0x18] sm:$0xff] (!%p1398_p8)  ;;  %v3204_v5 = vcombine.low (!%p1398_p8), %v4464_v32, %v4464_v32  ;;  %v3209_v7 = vcombine.high (!%p1398_p8), %v4507_v63, %v4507_v63 }
  0xd7   : > { %s3567_s10 = smul.u32 (!%p1398_p8), 1152, %s1404_s5  ;;  %v3206_v9 = vcombine.low (!%p1398_p8), %v4469_v33, %v4469_v33  ;;  %v3211_v11 = vcombine.high (!%p1398_p8), %v4514_v2, %v4514_v2 }
  0xd8   : > { %2736 = vmatprep.mubr.bf16.mxu0 (!%p1398_p8), %v3205_v34  ;;  %2776 = vmatprep.mubr.bf16.mxu1 (!%p1398_p8), %v3207_v35 }
  0xd9   : > { %s4475_s11 = scalar_lea.vmem (!%p1398_p8), [#allocation2], %s3567_s10 }
  0xda   : > { %v3608_v36 = vld [vmem:[%s4475_s11 + $0x40] sm:$0xff] (!%p1398_p8)   ;;  %v3612_v40 = vld [vmem:[%s4475_s11 + $0x48] sm:$0xff] (!%p1398_p8)   ;;  %v3616_v44 = vld [vmem:[%s4475_s11 + $0x50] sm:$0xff] (!%p1398_p8)  }
  0xdb   : > { %v3609_v37 = vld [vmem:[%s4475_s11] sm:$0xff] (!%p1398_p8)   ;;  %3368 = vmatprep.subr.bf16.mxu0 (!%p1398_p8), %v3608_v36  ;;  %v3613_v41 = vld [vmem:[%s4475_s11 + $0x8] sm:$0xff] (!%p1398_p8)   ;;  %v3617_v45 = vld [vmem:[%s4475_s11 + $0x10] sm:$0xff] (!%p1398_p8)  }
  0xdc   : > { %v3610_v38 = vld [vmem:[%s4475_s11 + $0xc0] sm:$0xff] (!%p1398_p8)   ;;  %3369 = vmatpush3.bf16.msra.mxu0 (!%p1398_p8), %v3609_v37  ;;  %v3614_v42 = vld [vmem:[%s4475_s11 + $0xc8] sm:$0xff] (!%p1398_p8)   ;;  %v3618_v46 = vld [vmem:[%s4475_s11 + $0xd0] sm:$0xff] (!%p1398_p8)  }
  0xdd   : > { %v3611_v39 = vld [vmem:[%s4475_s11 + $0x80] sm:$0xff]   ;;  %3390 = vmatprep.subr.bf16.mxu1 %v3610_v38  ;;  %3370 = vmatprep.subr.bf16.mxu0 %v3612_v40  ;;  %v3615_v43 = vld [vmem:[%s4475_s11 + $0x88] sm:$0xff]   ;;  %v3619_v47 = vld [vmem:[%s4475_s11 + $0x90] sm:$0xff]   ;;  %s4718_s17 = smov (!%p1453_p9, %s3800_s17), 1 }
  0xde   : > { %3391 = vmatpush3.bf16.msra.mxu1 %v3611_v39  ;;  %v3620_v48 = vld [vmem:[%s4475_s11 + $0x58] sm:$0xff]   ;;  %v3624_v52 = vld [vmem:[%s4475_s11 + $0x60] sm:$0xff]   ;;  %v3628_v56 = vld [vmem:[%s4475_s11 + $0x68] sm:$0xff]   ;;  %s1455_s8 = scalar_lea.vmem %s4708_s2, %s4718_s17  ;;  %s3201_s9 = sshll.u32 %s4718_s17, 3 }
  0xdf   : > { %3392 = vmatprep.subr.bf16.mxu1 %v3614_v42  ;;  %v3621_v49 = vld [vmem:[%s4475_s11 + $0x18] sm:$0xff]   ;;  %v3625_v53 = vld [vmem:[%s4475_s11 + $0x20] sm:$0xff]   ;;  %v3629_v57 = vld [vmem:[%s4475_s11 + $0x28] sm:$0xff]   ;;  %s1463_s12 = scalar_lea.vmem %s4709_s3, %s3201_s9  ;;  %s1471_s15 = scalar_lea.vmem %s4710_s4, %s3201_s9 }
  0xe0   : > { %3371 = vmatpush3.bf16.msra.mxu0 %v3613_v41  ;;  %v3622_v50 = vld [vmem:[%s4475_s11 + $0xd8] sm:$0xff]   ;;  %v3626_v54 = vld [vmem:[%s4475_s11 + $0xe0] sm:$0xff]   ;;  %v3630_v58 = vld [vmem:[%s4475_s11 + $0xe8] sm:$0xff]  }
  0xe1   : > { %3372 = vmatprep.subr.bf16.mxu0 %v3616_v44  ;;  %v3623_v51 = vld [vmem:[%s4475_s11 + $0x98] sm:$0xff]   ;;  %v3627_v55 = vld [vmem:[%s4475_s11 + $0xa0] sm:$0xff]   ;;  %v3631_v59 = vld [vmem:[%s4475_s11 + $0xa8] sm:$0xff]  }
  0xe2   : > { %3393 = vmatpush3.bf16.msra.mxu1 %v3615_v43  ;;  %v3632_v60 = vld [vmem:[%s4475_s11 + $0x70] sm:$0xff]   ;;  %v3636_v1 = vld [vmem:[%s4475_s11 + $0x78] sm:$0xff]   ;;  %v3642_v8 = vld [vmem:[%s4475_s11 + $0x140] sm:$0xff]   ;;  %v3208_v43 = vcombine.low %v4507_v63, %v4507_v63 }
  0xe3   : > { %3394 = vmatprep.subr.bf16.mxu1 %v3618_v46  ;;  %v3633_v61 = vld [vmem:[%s4475_s11 + $0x30] sm:$0xff]   ;;  %v3637_v3 = vld [vmem:[%s4475_s11 + $0x38] sm:$0xff]   ;;  %v3645_v10 = vld [vmem:[%s4475_s11 + $0x100] sm:$0xff]  }
  0xe4   : > { %3373 = vmatpush3.bf16.msra.mxu0 %v3617_v45  ;;  %v3634_v62 = vld [vmem:[%s4475_s11 + $0xf0] sm:$0xff]   ;;  %v3638_v4 = vld [vmem:[%s4475_s11 + $0xf8] sm:$0xff]   ;;  %v3646_v12 = vld [vmem:[%s4475_s11 + $0x1c0] sm:$0xff]  }
  0xe5   : > { %3374 = vmatprep.subr.bf16.mxu0 %v3620_v48  ;;  %v3635_v0 = vld [vmem:[%s4475_s11 + $0xb0] sm:$0xff]   ;;  %v3641_v6 = vld [vmem:[%s4475_s11 + $0xb8] sm:$0xff]   ;;  %v3647_v13 = vld [vmem:[%s4475_s11 + $0x180] sm:$0xff]  }
  0xe6   : > { %3395 = vmatpush3.bf16.msra.mxu1 %v3619_v47  ;;  %v3648_v14 = vld [vmem:[%s4475_s11 + $0x148] sm:$0xff]   ;;  %v3652_v18 = vld [vmem:[%s4475_s11 + $0x150] sm:$0xff]   ;;  %v3656_v22 = vld [vmem:[%s4475_s11 + $0x158] sm:$0xff]   ;;  %v3210_v47 = vcombine.low %v4514_v2, %v4514_v2 }
  0xe7   : > { %3396 = vmatprep.subr.bf16.mxu1 %v3622_v50  ;;  %v3649_v15 = vld [vmem:[%s4475_s11 + $0x108] sm:$0xff]   ;;  %v3653_v19 = vld [vmem:[%s4475_s11 + $0x110] sm:$0xff]   ;;  %v3657_v23 = vld [vmem:[%s4475_s11 + $0x118] sm:$0xff]  }
  0xe8   : > { %3375 = vmatpush3.bf16.msra.mxu0 %v3621_v49  ;;  %v3650_v16 = vld [vmem:[%s4475_s11 + $0x1c8] sm:$0xff]   ;;  %v3654_v20 = vld [vmem:[%s4475_s11 + $0x1d0] sm:$0xff]   ;;  %v3658_v24 = vld [vmem:[%s4475_s11 + $0x1d8] sm:$0xff]  }
  0xe9   : > { %3376 = vmatprep.subr.bf16.mxu0 %v3624_v52  ;;  %v3651_v17 = vld [vmem:[%s4475_s11 + $0x188] sm:$0xff]   ;;  %v3655_v21 = vld [vmem:[%s4475_s11 + $0x190] sm:$0xff]   ;;  %v3659_v25 = vld [vmem:[%s4475_s11 + $0x198] sm:$0xff]  }
  0xea   : > { %3397 = vmatpush3.bf16.msra.mxu1 %v3623_v51  ;;  %v3660_v26 = vld [vmem:[%s4475_s11 + $0x160] sm:$0xff]   ;;  %v3664_v30 = vld [vmem:[%s4475_s11 + $0x168] sm:$0xff]   ;;  %v3668_v34 = vld [vmem:[%s4475_s11 + $0x170] sm:$0xff]  }
  0xeb   : > { %3398 = vmatprep.subr.bf16.mxu1 %v3626_v54  ;;  %v3661_v27 = vld [vmem:[%s4475_s11 + $0x120] sm:$0xff]   ;;  %v3665_v31 = vld [vmem:[%s4475_s11 + $0x128] sm:$0xff]   ;;  %v3669_v35 = vld [vmem:[%s4475_s11 + $0x130] sm:$0xff]  }
  0xec   : > { %3377 = vmatpush3.bf16.msra.mxu0 %v3625_v53  ;;  %v3662_v28 = vld [vmem:[%s4475_s11 + $0x1e0] sm:$0xff]   ;;  %v3666_v32 = vld [vmem:[%s4475_s11 + $0x1e8] sm:$0xff]   ;;  %v3670_v36 = vld [vmem:[%s4475_s11 + $0x1f0] sm:$0xff]  }
  0xed   : > { %3378 = vmatprep.subr.bf16.mxu0 %v3628_v56  ;;  %v3663_v29 = vld [vmem:[%s4475_s11 + $0x1a0] sm:$0xff]   ;;  %v3667_v33 = vld [vmem:[%s4475_s11 + $0x1a8] sm:$0xff]   ;;  %v3671_v38 = vld [vmem:[%s4475_s11 + $0x1b0] sm:$0xff]  }
  0xee   : > { %3399 = vmatpush3.bf16.msra.mxu1 %v3627_v55  ;;  %v4557_v37 = vld [vmem:[%s4706_s0 + $0x20] sm:$0xff]  ;;  %v3672_v39 = vld [vmem:[%s4475_s11 + $0x178] sm:$0xff]   ;;  %v4564_v40 = vld [vmem:[%s4706_s0 + $0x28] sm:$0xff] }
  0xef   : > { %3400 = vmatprep.subr.bf16.mxu1 %v3630_v58  ;;  %v3673_v41 = vld [vmem:[%s4475_s11 + $0x138] sm:$0xff]   ;;  %v3213_v45 = vcombine.high %v4557_v37, %v4557_v37  ;;  %v3678_v46 = vld [vmem:[%s4475_s11 + $0x240] sm:$0xff]   ;;  %v3215_v49 = vcombine.high %v4564_v40, %v4564_v40  ;;  %v3684_v52 = vld [vmem:[%s4475_s11 + $0x248] sm:$0xff]  }
  0xf0   : > { %3379 = vmatpush3.bf16.msra.mxu0 %v3629_v57  ;;  %v3674_v42 = vld [vmem:[%s4475_s11 + $0x1f8] sm:$0xff]   ;;  %v3681_v48 = vld [vmem:[%s4475_s11 + $0x200] sm:$0xff]   ;;  %v3685_v53 = vld [vmem:[%s4475_s11 + $0x208] sm:$0xff]  }
  0xf1   : > { %3380 = vmatprep.subr.bf16.mxu0 %v3632_v60  ;;  %v3677_v44 = vld [vmem:[%s4475_s11 + $0x1b8] sm:$0xff]   ;;  %v3682_v50 = vld [vmem:[%s4475_s11 + $0x2c0] sm:$0xff]   ;;  %v3686_v54 = vld [vmem:[%s4475_s11 + $0x2c8] sm:$0xff]  }
  0xf2   : > { %3401 = vmatpush3.bf16.msra.mxu1 %v3631_v59  ;;  %v3683_v51 = vld [vmem:[%s4475_s11 + $0x280] sm:$0xff]   ;;  %v3687_v55 = vld [vmem:[%s4475_s11 + $0x288] sm:$0xff]   ;;  %v3688_v56 = vld [vmem:[%s4475_s11 + $0x250] sm:$0xff]  }
  0xf3   : > { %3402 = vmatprep.subr.bf16.mxu1 %v3634_v62  ;;  %v3689_v57 = vld [vmem:[%s4475_s11 + $0x210] sm:$0xff]   ;;  %v3692_v60 = vld [vmem:[%s4475_s11 + $0x258] sm:$0xff]   ;;  %v3698_v2 = vld [vmem:[%s4475_s11 + $0x2e0] sm:$0xff]  }
  0xf4   : > { %3381 = vmatpush3.bf16.msra.mxu0 %v3633_v61  ;;  %v3690_v58 = vld [vmem:[%s4475_s11 + $0x2d0] sm:$0xff]   ;;  %v3693_v61 = vld [vmem:[%s4475_s11 + $0x218] sm:$0xff]  }
  0xf5   : > { %3382 = vmatprep.subr.bf16.mxu0 %v3636_v1  ;;  %v3691_v59 = vld [vmem:[%s4475_s11 + $0x290] sm:$0xff]   ;;  %v3694_v62 = vld [vmem:[%s4475_s11 + $0x2d8] sm:$0xff]   ;;  %v3697_v1 = vld [vmem:[%s4475_s11 + $0x220] sm:$0xff]  }
  0xf6   : > { %3403 = vmatpush3.bf16.msra.mxu1 %v3635_v0  ;;  %v3695_v63 = vld [vmem:[%s4475_s11 + $0x298] sm:$0xff]   ;;  %v3696_v0 = vld [vmem:[%s4475_s11 + $0x260] sm:$0xff]  }
  0xf7   : > { %3404 = vmatprep.subr.bf16.mxu1 %v3638_v4  ;;  %v3700_v4 = vld [vmem:[%s4475_s11 + $0x268] sm:$0xff]  }
  0xf8   : > { %3383 = vmatpush3.bf16.msra.mxu0 %v3637_v3  ;;  %v3699_v3 = vld [vmem:[%s4475_s11 + $0x2a0] sm:$0xff]  }
  0xf9   : > { %3412 = vmatprep.subr.bf16.mxu0 %v3642_v8  ;;  %v3704_v8 = vld [vmem:[%s4475_s11 + $0x270] sm:$0xff]  }
  0xfa   : > { %3405 = vmatpush3.bf16.msra.mxu1 %v3641_v6  ;;  %v3702_v6 = vld [vmem:[%s4475_s11 + $0x2e8] sm:$0xff]  }
  0xfb   : > { %2737 = vmatmul.mubr.bf16.vlgmr.msra.gmra.mrb[0].mxu0 %v3204_v5  ;;  %3434 = vmatprep.subr.bf16.mxu1 %v3646_v12  ;;  %v3701_v5 = vld [vmem:[%s4475_s11 + $0x228] sm:$0xff]   ;;  %v3707_v12 = vld [vmem:[%s4475_s11 + $0x2b0] sm:$0xff]  }
  0xfc   : > { %3413 = vmatpush3.bf16.msra.mxu0 %v3645_v10  ;;  %2816 = vmatprep.mubr.bf16.mxu0 %v3209_v7  ;;  %v3703_v7 = vld [vmem:[%s4475_s11 + $0x2a8] sm:$0xff]   ;;  %v3706_v10 = vld [vmem:[%s4475_s11 + $0x2f0] sm:$0xff]  }
  0xfd   : > { %2777 = vmatmul.mubr.bf16.vlgmr.msra.gmra.mrb[0].mxu1 %v3206_v9  ;;  %3414 = vmatprep.subr.bf16.mxu0 %v3648_v14  ;;  %v3705_v9 = vld [vmem:[%s4475_s11 + $0x230] sm:$0xff]   ;;  %v3709_v14 = vld [vmem:[%s4475_s11 + $0x238] sm:$0xff]  }
  0xfe   : > { %3435 = vmatpush3.bf16.msra.mxu1 %v3647_v13  ;;  %2856 = vmatprep.mubr.bf16.mxu1 %v3211_v11  ;;  %v4607_v11 = vld [vmem:[%s4706_s0 + $0x30] sm:$0xff]  ;;  %v3708_v13 = vld [vmem:[%s4475_s11 + $0x278] sm:$0xff]  }
  0xff   : > { %3436 = vmatprep.subr.bf16.mxu1 %v3650_v16  ;;  %v3212_v16 = vcombine.low %v4557_v37, %v4557_v37  ;;  %v3733_v37 = vld [vmem:[%s4475_s11 + $0x320] sm:$0xff]  }
 0x100   : > { %3415 = vmatpush3.bf16.msra.mxu0 %v3649_v15  ;;  %v3710_v15 = vld [vmem:[%s4475_s11 + $0x2f8] sm:$0xff]  }
 0x101   : > { %3416 = vmatprep.subr.bf16.mxu0 %v3652_v18  ;;  %v3217_v18 = vcombine.high %v4607_v11, %v4607_v11 }
 0x102   : > { %3437 = vmatpush3.bf16.msra.mxu1 %v3651_v17  ;;  %v3713_v17 = vld [vmem:[%s4475_s11 + $0x2b8] sm:$0xff]  }
 0x103   : > { %3438 = vmatprep.subr.bf16.mxu1 %v3654_v20  ;;  %v3214_v20 = vcombine.low %v4564_v40, %v4564_v40  ;;  %v3736_v40 = vld [vmem:[%s4475_s11 + $0x368] sm:$0xff]  }
 0x104   : > { %3417 = vmatpush3.bf16.msra.mxu0 %v3653_v19  ;;  %v3714_v19 = vld [vmem:[%s4475_s11 + $0x340] sm:$0xff]  }
 0x105   : > { %3418 = vmatprep.subr.bf16.mxu0 %v3656_v22  ;;  %v3718_v22 = vld [vmem:[%s4475_s11 + $0x3c0] sm:$0xff]  }
 0x106   : > { %3439 = vmatpush3.bf16.msra.mxu1 %v3655_v21  ;;  %v3717_v21 = vld [vmem:[%s4475_s11 + $0x300] sm:$0xff]  }
 0x107   : > { %3440 = vmatprep.subr.bf16.mxu1 %v3658_v24  ;;  %v3720_v24 = vld [vmem:[%s4475_s11 + $0x348] sm:$0xff]  }
 0x108   : > { %3419 = vmatpush3.bf16.msra.mxu0 %v3657_v23  ;;  %v3719_v23 = vld [vmem:[%s4475_s11 + $0x380] sm:$0xff]  }
 0x109   : > { %3420 = vmatprep.subr.bf16.mxu0 %v3660_v26  ;;  %v3722_v26 = vld [vmem:[%s4475_s11 + $0x3c8] sm:$0xff]  }
 0x10a   : > { %3441 = vmatpush3.bf16.msra.mxu1 %v3659_v25  ;;  %v3721_v25 = vld [vmem:[%s4475_s11 + $0x308] sm:$0xff]  }
 0x10b   : > { %3442 = vmatprep.subr.bf16.mxu1 %v3662_v28  ;;  %v3724_v28 = vld [vmem:[%s4475_s11 + $0x350] sm:$0xff]  }
 0x10c   : > { %3421 = vmatpush3.bf16.msra.mxu0 %v3661_v27  ;;  %v3723_v27 = vld [vmem:[%s4475_s11 + $0x388] sm:$0xff]  }
 0x10d   : > { %3422 = vmatprep.subr.bf16.mxu0 %v3664_v30  ;;  %v3726_v30 = vld [vmem:[%s4475_s11 + $0x3d0] sm:$0xff]  }
 0x10e   : > { %3443 = vmatpush3.bf16.msra.mxu1 %v3663_v29  ;;  %v3725_v29 = vld [vmem:[%s4475_s11 + $0x310] sm:$0xff]  }
 0x10f   : > { %3444 = vmatprep.subr.bf16.mxu1 %v3666_v32  ;;  %v3728_v32 = vld [vmem:[%s4475_s11 + $0x358] sm:$0xff]  }
 0x110   : > { %3423 = vmatpush3.bf16.msra.mxu0 %v3665_v31  ;;  %v3727_v31 = vld [vmem:[%s4475_s11 + $0x390] sm:$0xff]  }
 0x111   : > { %3424 = vmatprep.subr.bf16.mxu0 %v3668_v34  ;;  %v3730_v34 = vld [vmem:[%s4475_s11 + $0x3d8] sm:$0xff]  }
 0x112   : > { %3445 = vmatpush3.bf16.msra.mxu1 %v3667_v33  ;;  %v3729_v33 = vld [vmem:[%s4475_s11 + $0x318] sm:$0xff]  }
 0x113   : > { %3446 = vmatprep.subr.bf16.mxu1 %v3670_v36  ;;  %v3732_v36 = vld [vmem:[%s4475_s11 + $0x360] sm:$0xff]  }
 0x114   : > { %3425 = vmatpush3.bf16.msra.mxu0 %v3669_v35  ;;  %v3731_v35 = vld [vmem:[%s4475_s11 + $0x398] sm:$0xff]  }
 0x115   : > { %3426 = vmatprep.subr.bf16.mxu0 %v3672_v39  ;;  %v3735_v39 = vld [vmem:[%s4475_s11 + $0x3a0] sm:$0xff]  }
 0x116   : > { %3447 = vmatpush3.bf16.msra.mxu1 %v3671_v38  ;;  %v3734_v38 = vld [vmem:[%s4475_s11 + $0x3e0] sm:$0xff]  }
 0x117   : > { %3448 = vmatprep.subr.bf16.mxu1 %v3674_v42  ;;  %v3738_v42 = vld [vmem:[%s4475_s11 + $0x3e8] sm:$0xff]  }
 0x118   : > { %3427 = vmatpush3.bf16.msra.mxu0 %v3673_v41  ;;  %v3737_v41 = vld [vmem:[%s4475_s11 + $0x328] sm:$0xff]  }
 0x119   : > { %3456 = vmatprep.subr.bf16.mxu0 %v3678_v46  ;;  %v3742_v46 = vld [vmem:[%s4475_s11 + $0x3f0] sm:$0xff]  }
 0x11a   : > { %3449 = vmatpush3.bf16.msra.mxu1 %v3677_v44  ;;  %v3740_v44 = vld [vmem:[%s4475_s11 + $0x370] sm:$0xff]  }
 0x11b   : > { %2817 = vmatmul.mubr.bf16.vlgmr.msra.gmra.mrb[4].mxu0 %v3208_v43  ;;  %3478 = vmatprep.subr.bf16.mxu1 %v3682_v50  ;;  %v3739_v43 = vld [vmem:[%s4475_s11 + $0x3a8] sm:$0xff]   ;;  %v3746_v50 = vld [vmem:[%s4475_s11 + $0x3f8] sm:$0xff]  }
 0x11c   : > { %3457 = vmatpush3.bf16.msra.mxu0 %v3681_v48  ;;  %2896 = vmatprep.mubr.bf16.mxu0 %v3213_v45  ;;  %v3741_v45 = vld [vmem:[%s4475_s11 + $0x330] sm:$0xff]   ;;  %v3744_v48 = vld [vmem:[%s4475_s11 + $0x378] sm:$0xff]  }
 0x11d   : > { %2857 = vmatmul.mubr.bf16.vlgmr.msra.gmra.mrb[4].mxu1 %v3210_v47  ;;  %3458 = vmatprep.subr.bf16.mxu0 %v3684_v52  ;;  %v3743_v47 = vld [vmem:[%s4475_s11 + $0x3b0] sm:$0xff]   ;;  %v3749_v52 = vld [vmem:[%s4475_s11 + $0x3b8] sm:$0xff]  }
 0x11e   : > { %3479 = vmatpush3.bf16.msra.mxu1 %v3683_v51  ;;  %2936 = vmatprep.mubr.bf16.mxu1 %v3215_v49  ;;  %v3745_v49 = vld [vmem:[%s4475_s11 + $0x338] sm:$0xff]   ;;  %v3216_v51 = vcombine.low %v4607_v11, %v4607_v11 }
 0x11f   : > { %3480 = vmatprep.subr.bf16.mxu1 %v3686_v54  ;;  %v1480_v54 = vld [vmem:[%s4706_s0 + $0x38] sm:$0xff] }
 0x120   : > { %3459 = vmatpush3.bf16.msra.mxu0 %v3685_v53  ;;  %v3750_v53 = vld [vmem:[%s4475_s11 + $0x440] sm:$0xff]  }
 0x121   : > { %3460 = vmatprep.subr.bf16.mxu0 %v3688_v56  ;;  %v3219_v56 = vcombine.high %v1480_v54, %v1480_v54 }
 0x122   : > { %3481 = vmatpush3.bf16.msra.mxu1 %v3687_v55  ;;  %v3218_v55 = vcombine.low %v1480_v54, %v1480_v54 }
 0x123   : > { %3482 = vmatprep.subr.bf16.mxu1 %v3690_v58  ;;  %v3754_v58 = vld [vmem:[%s4475_s11 + $0x448] sm:$0xff]  }
 0x124   : > { %3461 = vmatpush3.bf16.msra.mxu0 %v3689_v57  ;;  %v3753_v57 = vld [vmem:[%s4475_s11 + $0x400] sm:$0xff]  }
 0x125   : > { %3462 = vmatprep.subr.bf16.mxu0 %v3692_v60  ;;  %v3756_v60 = vld [vmem:[%s4475_s11 + $0x450] sm:$0xff]  }
 0x126   : > { %3483 = vmatpush3.bf16.msra.mxu1 %v3691_v59  ;;  %v3755_v59 = vld [vmem:[%s4475_s11 + $0x408] sm:$0xff]  }
 0x127   : > { %3484 = vmatprep.subr.bf16.mxu1 %v3694_v62  ;;  %v3758_v62 = vld [vmem:[%s4475_s11 + $0x458] sm:$0xff]  }
 0x128   : > { %3463 = vmatpush3.bf16.msra.mxu0 %v3693_v61  ;;  %v3757_v61 = vld [vmem:[%s4475_s11 + $0x410] sm:$0xff]  }
 0x129   : > { %3464 = vmatprep.subr.bf16.mxu0 %v3696_v0  ;;  %v3760_v0 = vld [vmem:[%s4475_s11 + $0x460] sm:$0xff]  }
 0x12a   : > { %3485 = vmatpush3.bf16.msra.mxu1 %v3695_v63  ;;  %v3759_v63 = vld [vmem:[%s4475_s11 + $0x418] sm:$0xff]  }
 0x12b   : > { %3486 = vmatprep.subr.bf16.mxu1 %v3698_v2  ;;  %v1481_v2 = vld [vmem:[%s4706_s0 + $0x40] sm:$0xff] }
 0x12c   : > { %3465 = vmatpush3.bf16.msra.mxu0 %v3697_v1  ;;  %v3761_v1 = vld [vmem:[%s4475_s11 + $0x420] sm:$0xff]  }
 0x12d   : > { %3466 = vmatprep.subr.bf16.mxu0 %v3700_v4  ;;  %v3221_v4 = vcombine.high %v1481_v2, %v1481_v2 }
 0x12e   : > { %3487 = vmatpush3.bf16.msra.mxu1 %v3699_v3  ;;  %v3762_v3 = vld [vmem:[%s4475_s11 + $0x468] sm:$0xff]  }
 0x12f   : > { %3488 = vmatprep.subr.bf16.mxu1 %v3702_v6  ;;  %v3764_v6 = vld [vmem:[%s4475_s11 + $0x470] sm:$0xff]  }
 0x130   : > { %3467 = vmatpush3.bf16.msra.mxu0 %v3701_v5  ;;  %v3763_v5 = vld [vmem:[%s4475_s11 + $0x428] sm:$0xff]  }
 0x131   : > { %3468 = vmatprep.subr.bf16.mxu0 %v3704_v8  ;;  %v3766_v8 = vld [vmem:[%s4475_s11 + $0x478] sm:$0xff]  }
 0x132   : > { %3489 = vmatpush3.bf16.msra.mxu1 %v3703_v7  ;;  %v3765_v7 = vld [vmem:[%s4475_s11 + $0x430] sm:$0xff]  }
 0x133   : > { %3490 = vmatprep.subr.bf16.mxu1 %v3706_v10  ;;  %v3220_v10 = vcombine.low %v1481_v2, %v1481_v2 }
 0x134   : > { %3469 = vmatpush3.bf16.msra.mxu0 %v3705_v9  ;;  %v3767_v9 = vld [vmem:[%s4475_s11 + $0x438] sm:$0xff]  }
 0x135   : > { %3470 = vmatprep.subr.bf16.mxu0 %v3708_v13 }
 0x136   : > { %3491 = vmatpush3.bf16.msra.mxu1 %v3707_v12  ;;  %v3203_v12 = vld [vmem:[%s1455_s8] ss:$0 sm:$0xff] }
 0x137   : > { %3492 = vmatprep.subr.bf16.mxu1 %v3710_v15 }
 0x138   : > { %3471 = vmatpush3.bf16.msra.mxu0 %v3709_v14 }
 0x139   : > { %3500 = vmatprep.subr.bf16.mxu0 %v3714_v19 }
 0x13a   : > { %3493 = vmatpush3.bf16.msra.mxu1 %v3713_v17 }
 0x13b   : > { %2897 = vmatmul.mubr.bf16.vlgmr.msra.gmra.mrb[8].mxu0 %v3212_v16  ;;  %3522 = vmatprep.subr.bf16.mxu1 %v3718_v22 }
 0x13c   : > { %3501 = vmatpush3.bf16.msra.mxu0 %v3717_v21  ;;  %2976 = vmatprep.mubr.bf16.mxu0 %v3217_v18 }
 0x13d   : > { %2937 = vmatmul.mubr.bf16.vlgmr.msra.gmra.mrb[8].mxu1 %v3214_v20  ;;  %3502 = vmatprep.subr.bf16.mxu0 %v3720_v24 }
 0x13e   : > { %3523 = vmatpush3.bf16.msra.mxu1 %v3719_v23  ;;  %3016 = vmatprep.mubr.bf16.mxu1 %v3219_v56 }
 0x13f   : > { %3524 = vmatprep.subr.bf16.mxu1 %v3722_v26 }
 0x140   : > { %3503 = vmatpush3.bf16.msra.mxu0 %v3721_v25 }
 0x141   : > { %3504 = vmatprep.subr.bf16.mxu0 %v3724_v28 }
 0x142   : > { %3525 = vmatpush3.bf16.msra.mxu1 %v3723_v27 }
 0x143   : > { %3526 = vmatprep.subr.bf16.mxu1 %v3726_v30 }
 0x144   : > { %3505 = vmatpush3.bf16.msra.mxu0 %v3725_v29 }
 0x145   : > { %3506 = vmatprep.subr.bf16.mxu0 %v3728_v32 }
 0x146   : > { %3527 = vmatpush3.bf16.msra.mxu1 %v3727_v31 }
 0x147   : > { %3528 = vmatprep.subr.bf16.mxu1 %v3730_v34 }
 0x148   : > { %3507 = vmatpush3.bf16.msra.mxu0 %v3729_v33 }
 0x149   : > { %3508 = vmatprep.subr.bf16.mxu0 %v3732_v36 }
 0x14a   : > { %3529 = vmatpush3.bf16.msra.mxu1 %v3731_v35 }
 0x14b   : > { %3530 = vmatprep.subr.bf16.mxu1 %v3734_v38 }
 0x14c   : > { %3509 = vmatpush3.bf16.msra.mxu0 %v3733_v37 }
 0x14d   : > { %3510 = vmatprep.subr.bf16.mxu0 %v3736_v40 }
 0x14e   : > { %3531 = vmatpush3.bf16.msra.mxu1 %v3735_v39 }
 0x14f   : > { %3532 = vmatprep.subr.bf16.mxu1 %v3738_v42 }
 0x150   : > { %3511 = vmatpush3.bf16.msra.mxu0 %v3737_v41 }
 0x151   : > { %3512 = vmatprep.subr.bf16.mxu0 %v3740_v44 }
 0x152   : > { %3533 = vmatpush3.bf16.msra.mxu1 %v3739_v43 }
 0x153   : > { %3534 = vmatprep.subr.bf16.mxu1 %v3742_v46 }
 0x154   : > { %3513 = vmatpush3.bf16.msra.mxu0 %v3741_v45 }
 0x155   : > { %3514 = vmatprep.subr.bf16.mxu0 %v3744_v48 }
 0x156   : > { %3535 = vmatpush3.bf16.msra.mxu1 %v3743_v47 }
 0x157   : > { %3536 = vmatprep.subr.bf16.mxu1 %v3746_v50 }
 0x158   : > { %3515 = vmatpush3.bf16.msra.mxu0 %v3745_v49 }
 0x159   : > { %3544 = vmatprep.subr.bf16.mxu0 %v3750_v53 }
 0x15a   : > { %3537 = vmatpush3.bf16.msra.mxu1 %v3749_v52 }
 0x15b   : > { %2977 = vmatmul.mubr.bf16.vlgmr.msra.gmra.mrb[12].mxu0 %v3216_v51 }
 0x15c   : > { %3545 = vmatpush3.bf16.msra.mxu0 %v3753_v57  ;;  %3056 = vmatprep.mubr.bf16.mxu0 %v3221_v4 }
 0x15d   : > { %3017 = vmatmul.mubr.bf16.vlgmr.msra.gmra.mrb[12].mxu1 %v3218_v55  ;;  %3546 = vmatprep.subr.bf16.mxu0 %v3754_v58 }
 0x160   : > { %3547 = vmatpush3.bf16.msra.mxu0 %v3755_v59 }
 0x161   : > { %3548 = vmatprep.subr.bf16.mxu0 %v3756_v60 }
 0x164   : > { %3549 = vmatpush3.bf16.msra.mxu0 %v3757_v61 }
 0x165   : > { %3550 = vmatprep.subr.bf16.mxu0 %v3758_v62 }
 0x168   : > { %3551 = vmatpush3.bf16.msra.mxu0 %v3759_v63 }
 0x169   : > { %3552 = vmatprep.subr.bf16.mxu0 %v3760_v0  ;;  %v3064_v0 = vld [vmem:[%s1463_s12] sm:$0xff] }
 0x16c   : > { %3553 = vmatpush3.bf16.msra.mxu0 %v3761_v1 }
 0x16d   : > { %3554 = vmatprep.subr.bf16.mxu0 %v3762_v3 }
 0x170   : > { %3555 = vmatpush3.bf16.msra.mxu0 %v3763_v5 }
 0x171   : > { %3556 = vmatprep.subr.bf16.mxu0 %v3764_v6 }
 0x174   : > { %3557 = vmatpush3.bf16.msra.mxu0 %v3765_v7 }
 0x175   : > { %3558 = vmatprep.subr.bf16.mxu0 %v3766_v8 }
 0x178   : > { %3559 = vmatpush3.bf16.msra.mxu0 %v3767_v9 }
 0x17b   : > { %3057 = vmatmul.mubr.bf16.vlgmr.msra.gmra.mrb[16].mxu0 %v3220_v10 }
 0x1ce   : > { %v3384_v11 = vpop.f32.mrb[0].mxu0 }
 0x1cf   : > { %v3385_v13 = vpop.f32.mrb[1].mxu0 }
 0x1d0   : > { %v3386_v14 = vadd.f32 %v3385_v13, %v3384_v11  ;;  %v3387_v15 = vpop.f32.mrb[2].mxu0  ;;  %v3406_v16 = vpop.f32.mrb[0].mxu1 }
 0x1d1   : > { %v3388_v17 = vpop.f32.mrb[3].mxu0  ;;  %v3407_v18 = vpop.f32.mrb[1].mxu1 }
 0x1d2   : > { %v2739_v19 = vadd.f32 %v3386_v14, %v3203_v12  ;;  %v3408_v20 = vadd.f32 %v3407_v18, %v3406_v16  ;;  %v3409_v21 = vpop.f32.mrb[2].mxu1 }
 0x1d3   : > { %v3410_v22 = vpop.f32.mrb[3].mxu1 }
 0x1d4   : > { %v2779_v23 = vadd.f32 %v3408_v20, %v2739_v19 }
 0x1ee   : > { %v3428_v24 = vpop.f32.mrb[4].mxu0 }
 0x1ef   : > { %v3429_v25 = vpop.f32.mrb[5].mxu0 }
 0x1f0   : > { %v3430_v26 = vadd.f32 %v3429_v25, %v3428_v24  ;;  %v3431_v27 = vpop.f32.mrb[6].mxu0  ;;  %v3450_v28 = vpop.f32.mrb[4].mxu1 }
 0x1f1   : > { %v3432_v29 = vpop.f32.mrb[7].mxu0  ;;  %v3451_v30 = vpop.f32.mrb[5].mxu1 }
 0x1f2   : > { %v2819_v31 = vadd.f32 %v3430_v26, %v2779_v23  ;;  %v3452_v32 = vadd.f32 %v3451_v30, %v3450_v28  ;;  %v3453_v33 = vpop.f32.mrb[6].mxu1 }
 0x1f3   : > { %v3454_v34 = vpop.f32.mrb[7].mxu1 }
 0x1f4   : > { %v2859_v35 = vadd.f32 %v3452_v32, %v2819_v31 }
 0x20e   : > { %v3472_v36 = vpop.f32.mrb[8].mxu0 }
 0x20f   : > { %v3473_v37 = vpop.f32.mrb[9].mxu0 }
 0x210   : > { %v3474_v38 = vadd.f32 %v3473_v37, %v3472_v36  ;;  %v3475_v39 = vpop.f32.mrb[10].mxu0  ;;  %v3494_v40 = vpop.f32.mrb[8].mxu1 }
 0x211   : > { %v3476_v41 = vpop.f32.mrb[11].mxu0  ;;  %v3495_v42 = vpop.f32.mrb[9].mxu1 }
 0x212   : > { %v2899_v43 = vadd.f32 %v3474_v38, %v2859_v35  ;;  %v3496_v44 = vadd.f32 %v3495_v42, %v3494_v40  ;;  %v3497_v45 = vpop.f32.mrb[10].mxu1 }
 0x213   : > { %v3498_v46 = vpop.f32.mrb[11].mxu1 }
 0x214   : > { %v2939_v47 = vadd.f32 %v3496_v44, %v2899_v43 }
 0x22e   : > { %v3516_v48 = vpop.f32.mrb[12].mxu0 }
 0x22f   : > { %v3517_v49 = vpop.f32.mrb[13].mxu0 }
 0x230   : > { %v3518_v50 = vadd.f32 %v3517_v49, %v3516_v48  ;;  %v3519_v51 = vpop.f32.mrb[14].mxu0  ;;  %v3538_v52 = vpop.f32.mrb[12].mxu1 }
 0x231   : > { %v3520_v53 = vpop.f32.mrb[15].mxu0  ;;  %v3539_v55 = vpop.f32.mrb[13].mxu1 }
 0x232   : > { %v2979_v54 = vadd.f32 %v3518_v50, %v2939_v47  ;;  %v3540_v56 = vadd.f32 %v3539_v55, %v3538_v52  ;;  %v3541_v57 = vpop.f32.mrb[14].mxu1 }
 0x233   : > { %v3542_v58 = vpop.f32.mrb[15].mxu1 }
 0x234   : > { %v3019_v59 = vadd.f32 %v3540_v56, %v2979_v54 }
 0x24e   : > { %v3560_v60 = vpop.f32.mrb[16].mxu0 }
 0x24f   : > { %v3561_v61 = vpop.f32.mrb[17].mxu0 }
 0x250   : > { %v3562_v62 = vadd.f32 %v3561_v61, %v3560_v60  ;;  %v3563_v63 = vpop.f32.mrb[18].mxu0 }
 0x251   : > { %v3564_v1 = vpop.f32.mrb[19].mxu0 }
 0x252   : > { %v3059_v2 = vadd.f32 %v3562_v62, %v3019_v59 }
 0x254   : > { %v3065_v3 = vadd.f32 %v3064_v0, %v3059_v2 }
 0x256   : > { %v3066_v4 = vmax.f32 %v3065_v3, 0.0 }
 0x258   : > { %3067 = vst [vmem:[%s1471_s15] sm:$0xff] %v3066_v4 }
 0x259 PF: > { %s14_s19 = sadd.s32 1, %s3808_s19   ;;  %s4711_s15 = smov %s3796_s16 }
 0x25a   : > { %p11_p10 = scmp.ge.s32.totalorder %s14_s19, 4   ;;  %s4712_s16 = smov %s3870_s23 }
 0x25b   : > { %s4713_s17 = smov %s3804_s18  ;;  %s4714_s18 = smov %s4716_s20 }
 0x25c   :  { %13 = sbr.rel (!%p11_p10) target bundleno = 3 (0x3), region = 121 }

// kernel: resnet18_conv5_forward.32
= control target key start
LH: loop header
LB: loop body
LE: loop exit
PB: predicated region body
PF: predicated region fallthrough
CT: control target
= control target key end

     0   :  { %s3751_s12 = smov 0   ;;  %s3753_s13 = smov 0   ;;  %s4619_s0 = inlined_call_operand.vmem [shape: bf16[8,2304], index: 0, kind: input, shape index: {}]   ;;  %s4620_s1 = inlined_call_operand.vmem [shape: bf16[2304,256], index: 1, kind: input, shape index: {}]   ;;  %s4621_s2 = inlined_call_operand.vmem [shape: f32[1,256], index: 2, kind: input, shape index: {}]   ;;  %s4622_s3 = inlined_call_operand.vmem [shape: f32[8,256], index: 3, kind: output, shape index: {}]  }
   0x1   :  { %s3755_s14 = smov 0   ;;  %s3757_s15 = smov 0  }
   0x2   :  { %s3759_s16 = smov 0  }
   0x3 LB: > { %s22_s17 = sadd.s32 1, %s3725_s15  ;;  %p65_p1 = scmp.ne.s32.totalorder %s3717_s13, %s3713_s12  ;;  %s3729_s16 = sphi %s3759_s16, %s13_s16   ;;  %s3725_s15 = sphi %s3757_s15, %s4626_s15   ;;  %s3721_s14 = sphi %s3755_s14, %s4625_s14   ;;  %s3717_s13 = sphi %s3753_s13, %s4624_s13   ;;  %s3713_s12 = sphi %s3751_s12, %s4623_s12  }
   0x4   : > { %p23_p0 = scmp.ge.s32.totalorder %s22_s17, 2  ;;  %p66_p2 = scmp.eq.s32.totalorder %s3729_s16, 0 }
   0x5   : > { %s58_s19 = sadd.s32 1, %s3717_s13  ;;  %p3120_p5 = scmp.ge.s32.totalorder %s3729_s16, 2 }
   0x6   : > { %s4628_s17 = smov (%p23_p0, %s22_s17), 0  ;;  %p67_p3 = por %p66_p2, %p65_p1 }
   0x7   : > { %s55_s18 = ssub.s32 %s3725_s15, %s4628_s17  ;;  %153 = sbr.rel (%p3120_p5) target bundleno = 210 (0xd2), region = 20 }
   0x8   : > { %p56_p4 = scmp.eq.s32.totalorder %s55_s18, 0 }
   0xa   : > { %s3786_s20 = scalar_select %p56_p4, %s3717_s13, %s58_s19  }
   0xe   : > { %156 = sbr.rel (!%p67_p3) target bundleno = 210 (0xd2), region = 24  ;;  %s158_s21 = sand.u32 (%p67_p3), 1, %s3717_s13  }
   0xf   : > { %s3121_s22 = sshll.u32 (%p67_p3), %s3725_s15, 2  ;;  %s3487_s23 = smul.u32 (%p67_p3), 1152, %s158_s21 }
  0x10   : > { %s3794_s26 = scalar_lea.vmem (%p67_p3), %s4620_s1, %s3121_s22 }
  0x11   : > { %v178_v0 = vld [vmem:[%s3794_s26] sm:$0xf] (%p67_p3)  ;;  %v180_v1 = vld [vmem:[%s3794_s26 + $0x8] sm:$0xf] (%p67_p3)  ;;  %v182_v2 = vld [vmem:[%s3794_s26 + $0x10] sm:$0xf] (%p67_p3) }
  0x12   : > { %v184_v3 = vld [vmem:[%s3794_s26 + $0x18] sm:$0xf] (%p67_p3)  ;;  %v186_v4 = vld [vmem:[%s3794_s26 + $0x20] sm:$0xf] (%p67_p3)  ;;  %s3801_s27 = scalar_lea.vmem (%p67_p3), [#allocation2], %s3487_s23 }
  0x13   : > { %179 = vst [vmem:[%s3801_s27] sm:$0xf] (%p67_p3), %v178_v0  ;;  %181 = vst [vmem:[%s3801_s27 + $0x4] sm:$0xf] (%p67_p3), %v180_v1  ;;  %v188_v5 = vld [vmem:[%s3794_s26 + $0x28] sm:$0xf] (%p67_p3) }
  0x14   : > { %183 = vst [vmem:[%s3801_s27 + $0x8] sm:$0xf] (%p67_p3), %v182_v2  ;;  %185 = vst [vmem:[%s3801_s27 + $0xc] sm:$0xf] (%p67_p3), %v184_v3  ;;  %v190_v6 = vld [vmem:[%s3794_s26 + $0x30] sm:$0xf] (%p67_p3) }
  0x15   : > { %187 = vst [vmem:[%s3801_s27 + $0x10] sm:$0xf] %v186_v4  ;;  %v192_v7 = vld [vmem:[%s3794_s26 + $0x38] sm:$0xf]  ;;  %189 = vst [vmem:[%s3801_s27 + $0x14] sm:$0xf] %v188_v5 }
  0x16   : > { %191 = vst [vmem:[%s3801_s27 + $0x18] sm:$0xf] %v190_v6  ;;  %193 = vst [vmem:[%s3801_s27 + $0x1c] sm:$0xf] %v192_v7  ;;  %v194_v8 = vld [vmem:[%s3794_s26 + $0x40] sm:$0xf] }
  0x17   : > { %v196_v9 = vld [vmem:[%s3794_s26 + $0x48] sm:$0xf]  ;;  %v198_v10 = vld [vmem:[%s3794_s26 + $0x50] sm:$0xf]  ;;  %195 = vst [vmem:[%s3801_s27 + $0x20] sm:$0xf] %v194_v8 }
  0x18   : > { %197 = vst [vmem:[%s3801_s27 + $0x24] sm:$0xf] %v196_v9  ;;  %199 = vst [vmem:[%s3801_s27 + $0x28] sm:$0xf] %v198_v10  ;;  %v200_v11 = vld [vmem:[%s3794_s26 + $0x58] sm:$0xf] }
  0x19   : > { %v202_v12 = vld [vmem:[%s3794_s26 + $0x60] sm:$0xf]  ;;  %v204_v13 = vld [vmem:[%s3794_s26 + $0x68] sm:$0xf]  ;;  %201 = vst [vmem:[%s3801_s27 + $0x2c] sm:$0xf] %v200_v11 }
  0x1a   : > { %203 = vst [vmem:[%s3801_s27 + $0x30] sm:$0xf] %v202_v12  ;;  %205 = vst [vmem:[%s3801_s27 + $0x34] sm:$0xf] %v204_v13  ;;  %v206_v14 = vld [vmem:[%s3794_s26 + $0x70] sm:$0xf] }
  0x1b   : > { %v208_v15 = vld [vmem:[%s3794_s26 + $0x78] sm:$0xf]  ;;  %v210_v16 = vld [vmem:[%s3794_s26 + $0x80] sm:$0xf]  ;;  %207 = vst [vmem:[%s3801_s27 + $0x38] sm:$0xf] %v206_v14 }
  0x1c   : > { %209 = vst [vmem:[%s3801_s27 + $0x3c] sm:$0xf] %v208_v15  ;;  %211 = vst [vmem:[%s3801_s27 + $0x40] sm:$0xf] %v210_v16  ;;  %v212_v17 = vld [vmem:[%s3794_s26 + $0x88] sm:$0xf] }
  0x1d   : > { %v214_v18 = vld [vmem:[%s3794_s26 + $0x90] sm:$0xf]  ;;  %v216_v19 = vld [vmem:[%s3794_s26 + $0x98] sm:$0xf]  ;;  %213 = vst [vmem:[%s3801_s27 + $0x44] sm:$0xf] %v212_v17 }
  0x1e   : > { %215 = vst [vmem:[%s3801_s27 + $0x48] sm:$0xf] %v214_v18  ;;  %217 = vst [vmem:[%s3801_s27 + $0x4c] sm:$0xf] %v216_v19  ;;  %v218_v20 = vld [vmem:[%s3794_s26 + $0xa0] sm:$0xf] }
  0x1f   : > { %v220_v21 = vld [vmem:[%s3794_s26 + $0xa8] sm:$0xf]  ;;  %v222_v22 = vld [vmem:[%s3794_s26 + $0xb0] sm:$0xf]  ;;  %219 = vst [vmem:[%s3801_s27 + $0x50] sm:$0xf] %v218_v20 }
  0x20   : > { %221 = vst [vmem:[%s3801_s27 + $0x54] sm:$0xf] %v220_v21  ;;  %223 = vst [vmem:[%s3801_s27 + $0x58] sm:$0xf] %v222_v22  ;;  %v224_v23 = vld [vmem:[%s3794_s26 + $0xb8] sm:$0xf] }
  0x21   : > { %v226_v24 = vld [vmem:[%s3794_s26 + $0xc0] sm:$0xf]  ;;  %v228_v25 = vld [vmem:[%s3794_s26 + $0xc8] sm:$0xf]  ;;  %225 = vst [vmem:[%s3801_s27 + $0x5c] sm:$0xf] %v224_v23 }
  0x22   : > { %227 = vst [vmem:[%s3801_s27 + $0x60] sm:$0xf] %v226_v24  ;;  %229 = vst [vmem:[%s3801_s27 + $0x64] sm:$0xf] %v228_v25  ;;  %v230_v26 = vld [vmem:[%s3794_s26 + $0xd0] sm:$0xf] }
  0x23   : > { %v232_v27 = vld [vmem:[%s3794_s26 + $0xd8] sm:$0xf]  ;;  %v234_v28 = vld [vmem:[%s3794_s26 + $0xe0] sm:$0xf]  ;;  %231 = vst [vmem:[%s3801_s27 + $0x68] sm:$0xf] %v230_v26 }
  0x24   : > { %233 = vst [vmem:[%s3801_s27 + $0x6c] sm:$0xf] %v232_v27  ;;  %235 = vst [vmem:[%s3801_s27 + $0x70] sm:$0xf] %v234_v28  ;;  %v236_v29 = vld [vmem:[%s3794_s26 + $0xe8] sm:$0xf] }
  0x25   : > { %v238_v30 = vld [vmem:[%s3794_s26 + $0xf0] sm:$0xf]  ;;  %v240_v31 = vld [vmem:[%s3794_s26 + $0xf8] sm:$0xf]  ;;  %237 = vst [vmem:[%s3801_s27 + $0x74] sm:$0xf] %v236_v29 }
  0x26   : > { %239 = vst [vmem:[%s3801_s27 + $0x78] sm:$0xf] %v238_v30  ;;  %241 = vst [vmem:[%s3801_s27 + $0x7c] sm:$0xf] %v240_v31  ;;  %v242_v32 = vld [vmem:[%s3794_s26 + $0x100] sm:$0xf] }
  0x27   : > { %v244_v33 = vld [vmem:[%s3794_s26 + $0x108] sm:$0xf]  ;;  %v246_v34 = vld [vmem:[%s3794_s26 + $0x110] sm:$0xf]  ;;  %243 = vst [vmem:[%s3801_s27 + $0x80] sm:$0xf] %v242_v32 }
  0x28   : > { %245 = vst [vmem:[%s3801_s27 + $0x84] sm:$0xf] %v244_v33  ;;  %247 = vst [vmem:[%s3801_s27 + $0x88] sm:$0xf] %v246_v34  ;;  %v248_v35 = vld [vmem:[%s3794_s26 + $0x118] sm:$0xf] }
  0x29   : > { %v250_v36 = vld [vmem:[%s3794_s26 + $0x120] sm:$0xf]  ;;  %v252_v37 = vld [vmem:[%s3794_s26 + $0x128] sm:$0xf]  ;;  %249 = vst [vmem:[%s3801_s27 + $0x8c] sm:$0xf] %v248_v35 }
  0x2a   : > { %251 = vst [vmem:[%s3801_s27 + $0x90] sm:$0xf] %v250_v36  ;;  %253 = vst [vmem:[%s3801_s27 + $0x94] sm:$0xf] %v252_v37  ;;  %v254_v38 = vld [vmem:[%s3794_s26 + $0x130] sm:$0xf] }
  0x2b   : > { %v256_v39 = vld [vmem:[%s3794_s26 + $0x138] sm:$0xf]  ;;  %v258_v40 = vld [vmem:[%s3794_s26 + $0x140] sm:$0xf]  ;;  %255 = vst [vmem:[%s3801_s27 + $0x98] sm:$0xf] %v254_v38 }
  0x2c   : > { %257 = vst [vmem:[%s3801_s27 + $0x9c] sm:$0xf] %v256_v39  ;;  %259 = vst [vmem:[%s3801_s27 + $0xa0] sm:$0xf] %v258_v40  ;;  %v260_v41 = vld [vmem:[%s3794_s26 + $0x148] sm:$0xf] }
  0x2d   : > { %v262_v42 = vld [vmem:[%s3794_s26 + $0x150] sm:$0xf]  ;;  %v264_v43 = vld [vmem:[%s3794_s26 + $0x158] sm:$0xf]  ;;  %261 = vst [vmem:[%s3801_s27 + $0xa4] sm:$0xf] %v260_v41 }
  0x2e   : > { %263 = vst [vmem:[%s3801_s27 + $0xa8] sm:$0xf] %v262_v42  ;;  %265 = vst [vmem:[%s3801_s27 + $0xac] sm:$0xf] %v264_v43  ;;  %v266_v44 = vld [vmem:[%s3794_s26 + $0x160] sm:$0xf] }
  0x2f   : > { %v268_v45 = vld [vmem:[%s3794_s26 + $0x168] sm:$0xf]  ;;  %v270_v46 = vld [vmem:[%s3794_s26 + $0x170] sm:$0xf]  ;;  %267 = vst [vmem:[%s3801_s27 + $0xb0] sm:$0xf] %v266_v44 }
  0x30   : > { %269 = vst [vmem:[%s3801_s27 + $0xb4] sm:$0xf] %v268_v45  ;;  %271 = vst [vmem:[%s3801_s27 + $0xb8] sm:$0xf] %v270_v46  ;;  %v272_v47 = vld [vmem:[%s3794_s26 + $0x178] sm:$0xf] }
  0x31   : > { %v274_v48 = vld [vmem:[%s3794_s26 + $0x180] sm:$0xf]  ;;  %v276_v49 = vld [vmem:[%s3794_s26 + $0x188] sm:$0xf]  ;;  %273 = vst [vmem:[%s3801_s27 + $0xbc] sm:$0xf] %v272_v47 }
  0x32   : > { %275 = vst [vmem:[%s3801_s27 + $0xc0] sm:$0xf] %v274_v48  ;;  %277 = vst [vmem:[%s3801_s27 + $0xc4] sm:$0xf] %v276_v49  ;;  %v278_v50 = vld [vmem:[%s3794_s26 + $0x190] sm:$0xf] }
  0x33   : > { %v280_v51 = vld [vmem:[%s3794_s26 + $0x198] sm:$0xf]  ;;  %v282_v52 = vld [vmem:[%s3794_s26 + $0x1a0] sm:$0xf]  ;;  %279 = vst [vmem:[%s3801_s27 + $0xc8] sm:$0xf] %v278_v50 }
  0x34   : > { %281 = vst [vmem:[%s3801_s27 + $0xcc] sm:$0xf] %v280_v51  ;;  %283 = vst [vmem:[%s3801_s27 + $0xd0] sm:$0xf] %v282_v52  ;;  %v284_v53 = vld [vmem:[%s3794_s26 + $0x1a8] sm:$0xf] }
  0x35   : > { %v286_v54 = vld [vmem:[%s3794_s26 + $0x1b0] sm:$0xf]  ;;  %v288_v55 = vld [vmem:[%s3794_s26 + $0x1b8] sm:$0xf]  ;;  %285 = vst [vmem:[%s3801_s27 + $0xd4] sm:$0xf] %v284_v53 }
  0x36   : > { %287 = vst [vmem:[%s3801_s27 + $0xd8] sm:$0xf] %v286_v54  ;;  %289 = vst [vmem:[%s3801_s27 + $0xdc] sm:$0xf] %v288_v55  ;;  %v290_v56 = vld [vmem:[%s3794_s26 + $0x1c0] sm:$0xf] }
  0x37   : > { %v292_v57 = vld [vmem:[%s3794_s26 + $0x1c8] sm:$0xf]  ;;  %v294_v58 = vld [vmem:[%s3794_s26 + $0x1d0] sm:$0xf]  ;;  %291 = vst [vmem:[%s3801_s27 + $0xe0] sm:$0xf] %v290_v56 }
  0x38   : > { %293 = vst [vmem:[%s3801_s27 + $0xe4] sm:$0xf] %v292_v57  ;;  %295 = vst [vmem:[%s3801_s27 + $0xe8] sm:$0xf] %v294_v58  ;;  %v296_v59 = vld [vmem:[%s3794_s26 + $0x1d8] sm:$0xf] }
  0x39   : > { %v298_v60 = vld [vmem:[%s3794_s26 + $0x1e0] sm:$0xf]  ;;  %v300_v61 = vld [vmem:[%s3794_s26 + $0x1e8] sm:$0xf]  ;;  %297 = vst [vmem:[%s3801_s27 + $0xec] sm:$0xf] %v296_v59 }
  0x3a   : > { %299 = vst [vmem:[%s3801_s27 + $0xf0] sm:$0xf] %v298_v60  ;;  %301 = vst [vmem:[%s3801_s27 + $0xf4] sm:$0xf] %v300_v61  ;;  %v302_v62 = vld [vmem:[%s3794_s26 + $0x1f0] sm:$0xf] }
  0x3b   : > { %v304_v63 = vld [vmem:[%s3794_s26 + $0x1f8] sm:$0xf]  ;;  %v306_v0 = vld [vmem:[%s3794_s26 + $0x200] sm:$0xf]  ;;  %303 = vst [vmem:[%s3801_s27 + $0xf8] sm:$0xf] %v302_v62 }
  0x3c   : > { %305 = vst [vmem:[%s3801_s27 + $0xfc] sm:$0xf] %v304_v63  ;;  %307 = vst [vmem:[%s3801_s27 + $0x100] sm:$0xf] %v306_v0  ;;  %v308_v1 = vld [vmem:[%s3794_s26 + $0x208] sm:$0xf] }
  0x3d   : > { %v310_v2 = vld [vmem:[%s3794_s26 + $0x210] sm:$0xf]  ;;  %v312_v3 = vld [vmem:[%s3794_s26 + $0x218] sm:$0xf]  ;;  %309 = vst [vmem:[%s3801_s27 + $0x104] sm:$0xf] %v308_v1 }
  0x3e   : > { %311 = vst [vmem:[%s3801_s27 + $0x108] sm:$0xf] %v310_v2  ;;  %313 = vst [vmem:[%s3801_s27 + $0x10c] sm:$0xf] %v312_v3  ;;  %v314_v4 = vld [vmem:[%s3794_s26 + $0x220] sm:$0xf] }
  0x3f   : > { %v316_v5 = vld [vmem:[%s3794_s26 + $0x228] sm:$0xf]  ;;  %v318_v6 = vld [vmem:[%s3794_s26 + $0x230] sm:$0xf]  ;;  %315 = vst [vmem:[%s3801_s27 + $0x110] sm:$0xf] %v314_v4 }
  0x40   : > { %317 = vst [vmem:[%s3801_s27 + $0x114] sm:$0xf] %v316_v5  ;;  %319 = vst [vmem:[%s3801_s27 + $0x118] sm:$0xf] %v318_v6  ;;  %v320_v7 = vld [vmem:[%s3794_s26 + $0x238] sm:$0xf] }
  0x41   : > { %v322_v8 = vld [vmem:[%s3794_s26 + $0x240] sm:$0xf]  ;;  %v324_v9 = vld [vmem:[%s3794_s26 + $0x248] sm:$0xf]  ;;  %321 = vst [vmem:[%s3801_s27 + $0x11c] sm:$0xf] %v320_v7 }
  0x42   : > { %323 = vst [vmem:[%s3801_s27 + $0x120] sm:$0xf] %v322_v8  ;;  %325 = vst [vmem:[%s3801_s27 + $0x124] sm:$0xf] %v324_v9  ;;  %v326_v10 = vld [vmem:[%s3794_s26 + $0x250] sm:$0xf] }
  0x43   : > { %v328_v11 = vld [vmem:[%s3794_s26 + $0x258] sm:$0xf]  ;;  %v330_v12 = vld [vmem:[%s3794_s26 + $0x260] sm:$0xf]  ;;  %327 = vst [vmem:[%s3801_s27 + $0x128] sm:$0xf] %v326_v10 }
  0x44   : > { %329 = vst [vmem:[%s3801_s27 + $0x12c] sm:$0xf] %v328_v11  ;;  %331 = vst [vmem:[%s3801_s27 + $0x130] sm:$0xf] %v330_v12  ;;  %v332_v13 = vld [vmem:[%s3794_s26 + $0x268] sm:$0xf] }
  0x45   : > { %v334_v14 = vld [vmem:[%s3794_s26 + $0x270] sm:$0xf]  ;;  %v336_v15 = vld [vmem:[%s3794_s26 + $0x278] sm:$0xf]  ;;  %333 = vst [vmem:[%s3801_s27 + $0x134] sm:$0xf] %v332_v13 }
  0x46   : > { %335 = vst [vmem:[%s3801_s27 + $0x138] sm:$0xf] %v334_v14  ;;  %337 = vst [vmem:[%s3801_s27 + $0x13c] sm:$0xf] %v336_v15  ;;  %v338_v16 = vld [vmem:[%s3794_s26 + $0x280] sm:$0xf] }
  0x47   : > { %v340_v17 = vld [vmem:[%s3794_s26 + $0x288] sm:$0xf]  ;;  %v342_v18 = vld [vmem:[%s3794_s26 + $0x290] sm:$0xf]  ;;  %339 = vst [vmem:[%s3801_s27 + $0x140] sm:$0xf] %v338_v16 }
  0x48   : > { %341 = vst [vmem:[%s3801_s27 + $0x144] sm:$0xf] %v340_v17  ;;  %343 = vst [vmem:[%s3801_s27 + $0x148] sm:$0xf] %v342_v18  ;;  %v344_v19 = vld [vmem:[%s3794_s26 + $0x298] sm:$0xf] }
  0x49   : > { %v346_v20 = vld [vmem:[%s3794_s26 + $0x2a0] sm:$0xf]  ;;  %v348_v21 = vld [vmem:[%s3794_s26 + $0x2a8] sm:$0xf]  ;;  %345 = vst [vmem:[%s3801_s27 + $0x14c] sm:$0xf] %v344_v19 }
  0x4a   : > { %347 = vst [vmem:[%s3801_s27 + $0x150] sm:$0xf] %v346_v20  ;;  %349 = vst [vmem:[%s3801_s27 + $0x154] sm:$0xf] %v348_v21  ;;  %v350_v22 = vld [vmem:[%s3794_s26 + $0x2b0] sm:$0xf] }
  0x4b   : > { %v352_v23 = vld [vmem:[%s3794_s26 + $0x2b8] sm:$0xf]  ;;  %v354_v24 = vld [vmem:[%s3794_s26 + $0x2c0] sm:$0xf]  ;;  %351 = vst [vmem:[%s3801_s27 + $0x158] sm:$0xf] %v350_v22 }
  0x4c   : > { %353 = vst [vmem:[%s3801_s27 + $0x15c] sm:$0xf] %v352_v23  ;;  %355 = vst [vmem:[%s3801_s27 + $0x160] sm:$0xf] %v354_v24  ;;  %v356_v25 = vld [vmem:[%s3794_s26 + $0x2c8] sm:$0xf] }
  0x4d   : > { %v358_v26 = vld [vmem:[%s3794_s26 + $0x2d0] sm:$0xf]  ;;  %v360_v27 = vld [vmem:[%s3794_s26 + $0x2d8] sm:$0xf]  ;;  %357 = vst [vmem:[%s3801_s27 + $0x164] sm:$0xf] %v356_v25 }
  0x4e   : > { %359 = vst [vmem:[%s3801_s27 + $0x168] sm:$0xf] %v358_v26  ;;  %361 = vst [vmem:[%s3801_s27 + $0x16c] sm:$0xf] %v360_v27  ;;  %v362_v28 = vld [vmem:[%s3794_s26 + $0x2e0] sm:$0xf] }
  0x4f   : > { %v364_v29 = vld [vmem:[%s3794_s26 + $0x2e8] sm:$0xf]  ;;  %v366_v30 = vld [vmem:[%s3794_s26 + $0x2f0] sm:$0xf]  ;;  %363 = vst [vmem:[%s3801_s27 + $0x170] sm:$0xf] %v362_v28 }
  0x50   : > { %365 = vst [vmem:[%s3801_s27 + $0x174] sm:$0xf] %v364_v29  ;;  %367 = vst [vmem:[%s3801_s27 + $0x178] sm:$0xf] %v366_v30  ;;  %v368_v31 = vld [vmem:[%s3794_s26 + $0x2f8] sm:$0xf] }
  0x51   : > { %v370_v32 = vld [vmem:[%s3794_s26 + $0x300] sm:$0xf]  ;;  %v372_v33 = vld [vmem:[%s3794_s26 + $0x308] sm:$0xf]  ;;  %369 = vst [vmem:[%s3801_s27 + $0x17c] sm:$0xf] %v368_v31 }
  0x52   : > { %371 = vst [vmem:[%s3801_s27 + $0x180] sm:$0xf] %v370_v32  ;;  %373 = vst [vmem:[%s3801_s27 + $0x184] sm:$0xf] %v372_v33  ;;  %v374_v34 = vld [vmem:[%s3794_s26 + $0x310] sm:$0xf] }
  0x53   : > { %v376_v35 = vld [vmem:[%s3794_s26 + $0x318] sm:$0xf]  ;;  %v378_v36 = vld [vmem:[%s3794_s26 + $0x320] sm:$0xf]  ;;  %375 = vst [vmem:[%s3801_s27 + $0x188] sm:$0xf] %v374_v34 }
  0x54   : > { %377 = vst [vmem:[%s3801_s27 + $0x18c] sm:$0xf] %v376_v35  ;;  %379 = vst [vmem:[%s3801_s27 + $0x190] sm:$0xf] %v378_v36  ;;  %v380_v37 = vld [vmem:[%s3794_s26 + $0x328] sm:$0xf] }
  0x55   : > { %v382_v38 = vld [vmem:[%s3794_s26 + $0x330] sm:$0xf]  ;;  %v384_v39 = vld [vmem:[%s3794_s26 + $0x338] sm:$0xf]  ;;  %381 = vst [vmem:[%s3801_s27 + $0x194] sm:$0xf] %v380_v37 }
  0x56   : > { %383 = vst [vmem:[%s3801_s27 + $0x198] sm:$0xf] %v382_v38  ;;  %385 = vst [vmem:[%s3801_s27 + $0x19c] sm:$0xf] %v384_v39  ;;  %v386_v40 = vld [vmem:[%s3794_s26 + $0x340] sm:$0xf] }
  0x57   : > { %v388_v41 = vld [vmem:[%s3794_s26 + $0x348] sm:$0xf]  ;;  %v390_v42 = vld [vmem:[%s3794_s26 + $0x350] sm:$0xf]  ;;  %387 = vst [vmem:[%s3801_s27 + $0x1a0] sm:$0xf] %v386_v40 }
  0x58   : > { %389 = vst [vmem:[%s3801_s27 + $0x1a4] sm:$0xf] %v388_v41  ;;  %391 = vst [vmem:[%s3801_s27 + $0x1a8] sm:$0xf] %v390_v42  ;;  %v392_v43 = vld [vmem:[%s3794_s26 + $0x358] sm:$0xf] }
  0x59   : > { %v394_v44 = vld [vmem:[%s3794_s26 + $0x360] sm:$0xf]  ;;  %v396_v45 = vld [vmem:[%s3794_s26 + $0x368] sm:$0xf]  ;;  %393 = vst [vmem:[%s3801_s27 + $0x1ac] sm:$0xf] %v392_v43 }
  0x5a   : > { %395 = vst [vmem:[%s3801_s27 + $0x1b0] sm:$0xf] %v394_v44  ;;  %397 = vst [vmem:[%s3801_s27 + $0x1b4] sm:$0xf] %v396_v45  ;;  %v398_v46 = vld [vmem:[%s3794_s26 + $0x370] sm:$0xf] }
  0x5b   : > { %v400_v47 = vld [vmem:[%s3794_s26 + $0x378] sm:$0xf]  ;;  %v402_v48 = vld [vmem:[%s3794_s26 + $0x380] sm:$0xf]  ;;  %399 = vst [vmem:[%s3801_s27 + $0x1b8] sm:$0xf] %v398_v46 }
  0x5c   : > { %401 = vst [vmem:[%s3801_s27 + $0x1bc] sm:$0xf] %v400_v47  ;;  %403 = vst [vmem:[%s3801_s27 + $0x1c0] sm:$0xf] %v402_v48  ;;  %v404_v49 = vld [vmem:[%s3794_s26 + $0x388] sm:$0xf] }
  0x5d   : > { %v406_v50 = vld [vmem:[%s3794_s26 + $0x390] sm:$0xf]  ;;  %v408_v51 = vld [vmem:[%s3794_s26 + $0x398] sm:$0xf]  ;;  %405 = vst [vmem:[%s3801_s27 + $0x1c4] sm:$0xf] %v404_v49 }
  0x5e   : > { %407 = vst [vmem:[%s3801_s27 + $0x1c8] sm:$0xf] %v406_v50  ;;  %409 = vst [vmem:[%s3801_s27 + $0x1cc] sm:$0xf] %v408_v51  ;;  %v410_v52 = vld [vmem:[%s3794_s26 + $0x3a0] sm:$0xf] }
  0x5f   : > { %v412_v53 = vld [vmem:[%s3794_s26 + $0x3a8] sm:$0xf]  ;;  %v414_v54 = vld [vmem:[%s3794_s26 + $0x3b0] sm:$0xf]  ;;  %411 = vst [vmem:[%s3801_s27 + $0x1d0] sm:$0xf] %v410_v52 }
  0x60   : > { %413 = vst [vmem:[%s3801_s27 + $0x1d4] sm:$0xf] %v412_v53  ;;  %415 = vst [vmem:[%s3801_s27 + $0x1d8] sm:$0xf] %v414_v54  ;;  %v416_v55 = vld [vmem:[%s3794_s26 + $0x3b8] sm:$0xf] }
  0x61   : > { %v418_v56 = vld [vmem:[%s3794_s26 + $0x3c0] sm:$0xf]  ;;  %v420_v57 = vld [vmem:[%s3794_s26 + $0x3c8] sm:$0xf]  ;;  %417 = vst [vmem:[%s3801_s27 + $0x1dc] sm:$0xf] %v416_v55 }
  0x62   : > { %419 = vst [vmem:[%s3801_s27 + $0x1e0] sm:$0xf] %v418_v56  ;;  %421 = vst [vmem:[%s3801_s27 + $0x1e4] sm:$0xf] %v420_v57  ;;  %v422_v58 = vld [vmem:[%s3794_s26 + $0x3d0] sm:$0xf] }
  0x63   : > { %v424_v59 = vld [vmem:[%s3794_s26 + $0x3d8] sm:$0xf]  ;;  %v426_v60 = vld [vmem:[%s3794_s26 + $0x3e0] sm:$0xf]  ;;  %423 = vst [vmem:[%s3801_s27 + $0x1e8] sm:$0xf] %v422_v58 }
  0x64   : > { %425 = vst [vmem:[%s3801_s27 + $0x1ec] sm:$0xf] %v424_v59  ;;  %427 = vst [vmem:[%s3801_s27 + $0x1f0] sm:$0xf] %v426_v60  ;;  %v428_v61 = vld [vmem:[%s3794_s26 + $0x3e8] sm:$0xf] }
  0x65   : > { %v430_v62 = vld [vmem:[%s3794_s26 + $0x3f0] sm:$0xf]  ;;  %v432_v63 = vld [vmem:[%s3794_s26 + $0x3f8] sm:$0xf]  ;;  %429 = vst [vmem:[%s3801_s27 + $0x1f4] sm:$0xf] %v428_v61 }
  0x66   : > { %431 = vst [vmem:[%s3801_s27 + $0x1f8] sm:$0xf] %v430_v62  ;;  %433 = vst [vmem:[%s3801_s27 + $0x1fc] sm:$0xf] %v432_v63  ;;  %v434_v0 = vld [vmem:[%s3794_s26 + $0x400] sm:$0xf] }
  0x67   : > { %v436_v1 = vld [vmem:[%s3794_s26 + $0x408] sm:$0xf]  ;;  %v438_v2 = vld [vmem:[%s3794_s26 + $0x410] sm:$0xf]  ;;  %435 = vst [vmem:[%s3801_s27 + $0x200] sm:$0xf] %v434_v0 }
  0x68   : > { %437 = vst [vmem:[%s3801_s27 + $0x204] sm:$0xf] %v436_v1  ;;  %439 = vst [vmem:[%s3801_s27 + $0x208] sm:$0xf] %v438_v2  ;;  %v440_v3 = vld [vmem:[%s3794_s26 + $0x418] sm:$0xf] }
  0x69   : > { %v442_v4 = vld [vmem:[%s3794_s26 + $0x420] sm:$0xf]  ;;  %v444_v5 = vld [vmem:[%s3794_s26 + $0x428] sm:$0xf]  ;;  %441 = vst [vmem:[%s3801_s27 + $0x20c] sm:$0xf] %v440_v3 }
  0x6a   : > { %443 = vst [vmem:[%s3801_s27 + $0x210] sm:$0xf] %v442_v4  ;;  %445 = vst [vmem:[%s3801_s27 + $0x214] sm:$0xf] %v444_v5  ;;  %v446_v6 = vld [vmem:[%s3794_s26 + $0x430] sm:$0xf] }
  0x6b   : > { %v448_v7 = vld [vmem:[%s3794_s26 + $0x438] sm:$0xf]  ;;  %v450_v8 = vld [vmem:[%s3794_s26 + $0x440] sm:$0xf]  ;;  %447 = vst [vmem:[%s3801_s27 + $0x218] sm:$0xf] %v446_v6 }
  0x6c   : > { %449 = vst [vmem:[%s3801_s27 + $0x21c] sm:$0xf] %v448_v7  ;;  %451 = vst [vmem:[%s3801_s27 + $0x220] sm:$0xf] %v450_v8  ;;  %v452_v9 = vld [vmem:[%s3794_s26 + $0x448] sm:$0xf] }
  0x6d   : > { %v454_v10 = vld [vmem:[%s3794_s26 + $0x450] sm:$0xf]  ;;  %v456_v11 = vld [vmem:[%s3794_s26 + $0x458] sm:$0xf]  ;;  %453 = vst [vmem:[%s3801_s27 + $0x224] sm:$0xf] %v452_v9 }
  0x6e   : > { %455 = vst [vmem:[%s3801_s27 + $0x228] sm:$0xf] %v454_v10  ;;  %457 = vst [vmem:[%s3801_s27 + $0x22c] sm:$0xf] %v456_v11  ;;  %v458_v12 = vld [vmem:[%s3794_s26 + $0x460] sm:$0xf] }
  0x6f   : > { %v460_v13 = vld [vmem:[%s3794_s26 + $0x468] sm:$0xf]  ;;  %v462_v14 = vld [vmem:[%s3794_s26 + $0x470] sm:$0xf]  ;;  %459 = vst [vmem:[%s3801_s27 + $0x230] sm:$0xf] %v458_v12 }
  0x70   : > { %461 = vst [vmem:[%s3801_s27 + $0x234] sm:$0xf] %v460_v13  ;;  %463 = vst [vmem:[%s3801_s27 + $0x238] sm:$0xf] %v462_v14  ;;  %v464_v15 = vld [vmem:[%s3794_s26 + $0x478] sm:$0xf] }
  0x71   : > { %v466_v16 = vld [vmem:[%s3794_s26 + $0x480] sm:$0xf]  ;;  %v468_v17 = vld [vmem:[%s3794_s26 + $0x488] sm:$0xf]  ;;  %465 = vst [vmem:[%s3801_s27 + $0x23c] sm:$0xf] %v464_v15 }
  0x72   : > { %467 = vst [vmem:[%s3801_s27 + $0x240] sm:$0xf] %v466_v16  ;;  %469 = vst [vmem:[%s3801_s27 + $0x244] sm:$0xf] %v468_v17  ;;  %v470_v18 = vld [vmem:[%s3794_s26 + $0x490] sm:$0xf] }
  0x73   : > { %v472_v19 = vld [vmem:[%s3794_s26 + $0x498] sm:$0xf]  ;;  %v474_v20 = vld [vmem:[%s3794_s26 + $0x4a0] sm:$0xf]  ;;  %471 = vst [vmem:[%s3801_s27 + $0x248] sm:$0xf] %v470_v18 }
  0x74   : > { %473 = vst [vmem:[%s3801_s27 + $0x24c] sm:$0xf] %v472_v19  ;;  %475 = vst [vmem:[%s3801_s27 + $0x250] sm:$0xf] %v474_v20  ;;  %v476_v21 = vld [vmem:[%s3794_s26 + $0x4a8] sm:$0xf] }
  0x75   : > { %v478_v22 = vld [vmem:[%s3794_s26 + $0x4b0] sm:$0xf]  ;;  %v480_v23 = vld [vmem:[%s3794_s26 + $0x4b8] sm:$0xf]  ;;  %477 = vst [vmem:[%s3801_s27 + $0x254] sm:$0xf] %v476_v21 }
  0x76   : > { %479 = vst [vmem:[%s3801_s27 + $0x258] sm:$0xf] %v478_v22  ;;  %481 = vst [vmem:[%s3801_s27 + $0x25c] sm:$0xf] %v480_v23  ;;  %v482_v24 = vld [vmem:[%s3794_s26 + $0x4c0] sm:$0xf] }
  0x77   : > { %v484_v25 = vld [vmem:[%s3794_s26 + $0x4c8] sm:$0xf]  ;;  %v486_v26 = vld [vmem:[%s3794_s26 + $0x4d0] sm:$0xf]  ;;  %483 = vst [vmem:[%s3801_s27 + $0x260] sm:$0xf] %v482_v24 }
  0x78   : > { %485 = vst [vmem:[%s3801_s27 + $0x264] sm:$0xf] %v484_v25  ;;  %487 = vst [vmem:[%s3801_s27 + $0x268] sm:$0xf] %v486_v26  ;;  %v488_v27 = vld [vmem:[%s3794_s26 + $0x4d8] sm:$0xf] }
  0x79   : > { %v490_v28 = vld [vmem:[%s3794_s26 + $0x4e0] sm:$0xf]  ;;  %v492_v29 = vld [vmem:[%s3794_s26 + $0x4e8] sm:$0xf]  ;;  %489 = vst [vmem:[%s3801_s27 + $0x26c] sm:$0xf] %v488_v27 }
  0x7a   : > { %491 = vst [vmem:[%s3801_s27 + $0x270] sm:$0xf] %v490_v28  ;;  %493 = vst [vmem:[%s3801_s27 + $0x274] sm:$0xf] %v492_v29  ;;  %v494_v30 = vld [vmem:[%s3794_s26 + $0x4f0] sm:$0xf] }
  0x7b   : > { %v496_v31 = vld [vmem:[%s3794_s26 + $0x4f8] sm:$0xf]  ;;  %v498_v32 = vld [vmem:[%s3794_s26 + $0x500] sm:$0xf]  ;;  %495 = vst [vmem:[%s3801_s27 + $0x278] sm:$0xf] %v494_v30 }
  0x7c   : > { %497 = vst [vmem:[%s3801_s27 + $0x27c] sm:$0xf] %v496_v31  ;;  %499 = vst [vmem:[%s3801_s27 + $0x280] sm:$0xf] %v498_v32  ;;  %v500_v33 = vld [vmem:[%s3794_s26 + $0x508] sm:$0xf] }
  0x7d   : > { %v502_v34 = vld [vmem:[%s3794_s26 + $0x510] sm:$0xf]  ;;  %v504_v35 = vld [vmem:[%s3794_s26 + $0x518] sm:$0xf]  ;;  %501 = vst [vmem:[%s3801_s27 + $0x284] sm:$0xf] %v500_v33 }
  0x7e   : > { %503 = vst [vmem:[%s3801_s27 + $0x288] sm:$0xf] %v502_v34  ;;  %505 = vst [vmem:[%s3801_s27 + $0x28c] sm:$0xf] %v504_v35  ;;  %v506_v36 = vld [vmem:[%s3794_s26 + $0x520] sm:$0xf] }
  0x7f   : > { %v508_v37 = vld [vmem:[%s3794_s26 + $0x528] sm:$0xf]  ;;  %v510_v38 = vld [vmem:[%s3794_s26 + $0x530] sm:$0xf]  ;;  %507 = vst [vmem:[%s3801_s27 + $0x290] sm:$0xf] %v506_v36 }
  0x80   : > { %509 = vst [vmem:[%s3801_s27 + $0x294] sm:$0xf] %v508_v37  ;;  %511 = vst [vmem:[%s3801_s27 + $0x298] sm:$0xf] %v510_v38  ;;  %v512_v39 = vld [vmem:[%s3794_s26 + $0x538] sm:$0xf] }
  0x81   : > { %v514_v40 = vld [vmem:[%s3794_s26 + $0x540] sm:$0xf]  ;;  %v516_v41 = vld [vmem:[%s3794_s26 + $0x548] sm:$0xf]  ;;  %513 = vst [vmem:[%s3801_s27 + $0x29c] sm:$0xf] %v512_v39 }
  0x82   : > { %515 = vst [vmem:[%s3801_s27 + $0x2a0] sm:$0xf] %v514_v40  ;;  %517 = vst [vmem:[%s3801_s27 + $0x2a4] sm:$0xf] %v516_v41  ;;  %v518_v42 = vld [vmem:[%s3794_s26 + $0x550] sm:$0xf] }
  0x83   : > { %v520_v43 = vld [vmem:[%s3794_s26 + $0x558] sm:$0xf]  ;;  %v522_v44 = vld [vmem:[%s3794_s26 + $0x560] sm:$0xf]  ;;  %519 = vst [vmem:[%s3801_s27 + $0x2a8] sm:$0xf] %v518_v42 }
  0x84   : > { %521 = vst [vmem:[%s3801_s27 + $0x2ac] sm:$0xf] %v520_v43  ;;  %523 = vst [vmem:[%s3801_s27 + $0x2b0] sm:$0xf] %v522_v44  ;;  %v524_v45 = vld [vmem:[%s3794_s26 + $0x568] sm:$0xf] }
  0x85   : > { %v526_v46 = vld [vmem:[%s3794_s26 + $0x570] sm:$0xf]  ;;  %v528_v47 = vld [vmem:[%s3794_s26 + $0x578] sm:$0xf]  ;;  %525 = vst [vmem:[%s3801_s27 + $0x2b4] sm:$0xf] %v524_v45 }
  0x86   : > { %527 = vst [vmem:[%s3801_s27 + $0x2b8] sm:$0xf] %v526_v46  ;;  %529 = vst [vmem:[%s3801_s27 + $0x2bc] sm:$0xf] %v528_v47  ;;  %v530_v48 = vld [vmem:[%s3794_s26 + $0x580] sm:$0xf] }
  0x87   : > { %v532_v49 = vld [vmem:[%s3794_s26 + $0x588] sm:$0xf]  ;;  %v534_v50 = vld [vmem:[%s3794_s26 + $0x590] sm:$0xf]  ;;  %531 = vst [vmem:[%s3801_s27 + $0x2c0] sm:$0xf] %v530_v48 }
  0x88   : > { %533 = vst [vmem:[%s3801_s27 + $0x2c4] sm:$0xf] %v532_v49  ;;  %535 = vst [vmem:[%s3801_s27 + $0x2c8] sm:$0xf] %v534_v50  ;;  %v536_v51 = vld [vmem:[%s3794_s26 + $0x598] sm:$0xf] }
  0x89   : > { %v538_v52 = vld [vmem:[%s3794_s26 + $0x5a0] sm:$0xf]  ;;  %v540_v53 = vld [vmem:[%s3794_s26 + $0x5a8] sm:$0xf]  ;;  %537 = vst [vmem:[%s3801_s27 + $0x2cc] sm:$0xf] %v536_v51 }
  0x8a   : > { %539 = vst [vmem:[%s3801_s27 + $0x2d0] sm:$0xf] %v538_v52  ;;  %541 = vst [vmem:[%s3801_s27 + $0x2d4] sm:$0xf] %v540_v53  ;;  %v542_v54 = vld [vmem:[%s3794_s26 + $0x5b0] sm:$0xf] }
  0x8b   : > { %v544_v55 = vld [vmem:[%s3794_s26 + $0x5b8] sm:$0xf]  ;;  %v546_v56 = vld [vmem:[%s3794_s26 + $0x5c0] sm:$0xf]  ;;  %543 = vst [vmem:[%s3801_s27 + $0x2d8] sm:$0xf] %v542_v54 }
  0x8c   : > { %545 = vst [vmem:[%s3801_s27 + $0x2dc] sm:$0xf] %v544_v55  ;;  %547 = vst [vmem:[%s3801_s27 + $0x2e0] sm:$0xf] %v546_v56  ;;  %v548_v57 = vld [vmem:[%s3794_s26 + $0x5c8] sm:$0xf] }
  0x8d   : > { %v550_v58 = vld [vmem:[%s3794_s26 + $0x5d0] sm:$0xf]  ;;  %v552_v59 = vld [vmem:[%s3794_s26 + $0x5d8] sm:$0xf]  ;;  %549 = vst [vmem:[%s3801_s27 + $0x2e4] sm:$0xf] %v548_v57 }
  0x8e   : > { %551 = vst [vmem:[%s3801_s27 + $0x2e8] sm:$0xf] %v550_v58  ;;  %553 = vst [vmem:[%s3801_s27 + $0x2ec] sm:$0xf] %v552_v59  ;;  %v554_v60 = vld [vmem:[%s3794_s26 + $0x5e0] sm:$0xf] }
  0x8f   : > { %v556_v61 = vld [vmem:[%s3794_s26 + $0x5e8] sm:$0xf]  ;;  %v558_v62 = vld [vmem:[%s3794_s26 + $0x5f0] sm:$0xf]  ;;  %555 = vst [vmem:[%s3801_s27 + $0x2f0] sm:$0xf] %v554_v60 }
  0x90   : > { %557 = vst [vmem:[%s3801_s27 + $0x2f4] sm:$0xf] %v556_v61  ;;  %559 = vst [vmem:[%s3801_s27 + $0x2f8] sm:$0xf] %v558_v62  ;;  %v560_v63 = vld [vmem:[%s3794_s26 + $0x5f8] sm:$0xf] }
  0x91   : > { %v562_v0 = vld [vmem:[%s3794_s26 + $0x600] sm:$0xf]  ;;  %v564_v1 = vld [vmem:[%s3794_s26 + $0x608] sm:$0xf]  ;;  %561 = vst [vmem:[%s3801_s27 + $0x2fc] sm:$0xf] %v560_v63 }
  0x92   : > { %563 = vst [vmem:[%s3801_s27 + $0x300] sm:$0xf] %v562_v0  ;;  %565 = vst [vmem:[%s3801_s27 + $0x304] sm:$0xf] %v564_v1  ;;  %v566_v2 = vld [vmem:[%s3794_s26 + $0x610] sm:$0xf] }
  0x93   : > { %v568_v3 = vld [vmem:[%s3794_s26 + $0x618] sm:$0xf]  ;;  %v570_v4 = vld [vmem:[%s3794_s26 + $0x620] sm:$0xf]  ;;  %567 = vst [vmem:[%s3801_s27 + $0x308] sm:$0xf] %v566_v2 }
  0x94   : > { %569 = vst [vmem:[%s3801_s27 + $0x30c] sm:$0xf] %v568_v3  ;;  %571 = vst [vmem:[%s3801_s27 + $0x310] sm:$0xf] %v570_v4  ;;  %v572_v5 = vld [vmem:[%s3794_s26 + $0x628] sm:$0xf] }
  0x95   : > { %v574_v6 = vld [vmem:[%s3794_s26 + $0x630] sm:$0xf]  ;;  %v576_v7 = vld [vmem:[%s3794_s26 + $0x638] sm:$0xf]  ;;  %573 = vst [vmem:[%s3801_s27 + $0x314] sm:$0xf] %v572_v5 }
  0x96   : > { %575 = vst [vmem:[%s3801_s27 + $0x318] sm:$0xf] %v574_v6  ;;  %577 = vst [vmem:[%s3801_s27 + $0x31c] sm:$0xf] %v576_v7  ;;  %v578_v8 = vld [vmem:[%s3794_s26 + $0x640] sm:$0xf] }
  0x97   : > { %v580_v9 = vld [vmem:[%s3794_s26 + $0x648] sm:$0xf]  ;;  %v582_v10 = vld [vmem:[%s3794_s26 + $0x650] sm:$0xf]  ;;  %579 = vst [vmem:[%s3801_s27 + $0x320] sm:$0xf] %v578_v8 }
  0x98   : > { %581 = vst [vmem:[%s3801_s27 + $0x324] sm:$0xf] %v580_v9  ;;  %583 = vst [vmem:[%s3801_s27 + $0x328] sm:$0xf] %v582_v10  ;;  %v584_v11 = vld [vmem:[%s3794_s26 + $0x658] sm:$0xf] }
  0x99   : > { %v586_v12 = vld [vmem:[%s3794_s26 + $0x660] sm:$0xf]  ;;  %v588_v13 = vld [vmem:[%s3794_s26 + $0x668] sm:$0xf]  ;;  %585 = vst [vmem:[%s3801_s27 + $0x32c] sm:$0xf] %v584_v11 }
  0x9a   : > { %587 = vst [vmem:[%s3801_s27 + $0x330] sm:$0xf] %v586_v12  ;;  %589 = vst [vmem:[%s3801_s27 + $0x334] sm:$0xf] %v588_v13  ;;  %v590_v14 = vld [vmem:[%s3794_s26 + $0x670] sm:$0xf] }
  0x9b   : > { %v592_v15 = vld [vmem:[%s3794_s26 + $0x678] sm:$0xf]  ;;  %v594_v16 = vld [vmem:[%s3794_s26 + $0x680] sm:$0xf]  ;;  %591 = vst [vmem:[%s3801_s27 + $0x338] sm:$0xf] %v590_v14 }
  0x9c   : > { %593 = vst [vmem:[%s3801_s27 + $0x33c] sm:$0xf] %v592_v15  ;;  %595 = vst [vmem:[%s3801_s27 + $0x340] sm:$0xf] %v594_v16  ;;  %v596_v17 = vld [vmem:[%s3794_s26 + $0x688] sm:$0xf] }
  0x9d   : > { %v598_v18 = vld [vmem:[%s3794_s26 + $0x690] sm:$0xf]  ;;  %v600_v19 = vld [vmem:[%s3794_s26 + $0x698] sm:$0xf]  ;;  %597 = vst [vmem:[%s3801_s27 + $0x344] sm:$0xf] %v596_v17 }
  0x9e   : > { %599 = vst [vmem:[%s3801_s27 + $0x348] sm:$0xf] %v598_v18  ;;  %601 = vst [vmem:[%s3801_s27 + $0x34c] sm:$0xf] %v600_v19  ;;  %v602_v20 = vld [vmem:[%s3794_s26 + $0x6a0] sm:$0xf] }
  0x9f   : > { %v604_v21 = vld [vmem:[%s3794_s26 + $0x6a8] sm:$0xf]  ;;  %v606_v22 = vld [vmem:[%s3794_s26 + $0x6b0] sm:$0xf]  ;;  %603 = vst [vmem:[%s3801_s27 + $0x350] sm:$0xf] %v602_v20 }
  0xa0   : > { %605 = vst [vmem:[%s3801_s27 + $0x354] sm:$0xf] %v604_v21  ;;  %607 = vst [vmem:[%s3801_s27 + $0x358] sm:$0xf] %v606_v22  ;;  %v608_v23 = vld [vmem:[%s3794_s26 + $0x6b8] sm:$0xf] }
  0xa1   : > { %v610_v24 = vld [vmem:[%s3794_s26 + $0x6c0] sm:$0xf]  ;;  %v612_v25 = vld [vmem:[%s3794_s26 + $0x6c8] sm:$0xf]  ;;  %609 = vst [vmem:[%s3801_s27 + $0x35c] sm:$0xf] %v608_v23 }
  0xa2   : > { %611 = vst [vmem:[%s3801_s27 + $0x360] sm:$0xf] %v610_v24  ;;  %613 = vst [vmem:[%s3801_s27 + $0x364] sm:$0xf] %v612_v25  ;;  %v614_v26 = vld [vmem:[%s3794_s26 + $0x6d0] sm:$0xf] }
  0xa3   : > { %v616_v27 = vld [vmem:[%s3794_s26 + $0x6d8] sm:$0xf]  ;;  %v618_v28 = vld [vmem:[%s3794_s26 + $0x6e0] sm:$0xf]  ;;  %615 = vst [vmem:[%s3801_s27 + $0x368] sm:$0xf] %v614_v26 }
  0xa4   : > { %617 = vst [vmem:[%s3801_s27 + $0x36c] sm:$0xf] %v616_v27  ;;  %619 = vst [vmem:[%s3801_s27 + $0x370] sm:$0xf] %v618_v28  ;;  %v620_v29 = vld [vmem:[%s3794_s26 + $0x6e8] sm:$0xf] }
  0xa5   : > { %v622_v30 = vld [vmem:[%s3794_s26 + $0x6f0] sm:$0xf]  ;;  %v624_v31 = vld [vmem:[%s3794_s26 + $0x6f8] sm:$0xf]  ;;  %621 = vst [vmem:[%s3801_s27 + $0x374] sm:$0xf] %v620_v29 }
  0xa6   : > { %623 = vst [vmem:[%s3801_s27 + $0x378] sm:$0xf] %v622_v30  ;;  %625 = vst [vmem:[%s3801_s27 + $0x37c] sm:$0xf] %v624_v31  ;;  %v626_v32 = vld [vmem:[%s3794_s26 + $0x700] sm:$0xf] }
  0xa7   : > { %v628_v33 = vld [vmem:[%s3794_s26 + $0x708] sm:$0xf]  ;;  %v630_v34 = vld [vmem:[%s3794_s26 + $0x710] sm:$0xf]  ;;  %627 = vst [vmem:[%s3801_s27 + $0x380] sm:$0xf] %v626_v32 }
  0xa8   : > { %629 = vst [vmem:[%s3801_s27 + $0x384] sm:$0xf] %v628_v33  ;;  %631 = vst [vmem:[%s3801_s27 + $0x388] sm:$0xf] %v630_v34  ;;  %v632_v35 = vld [vmem:[%s3794_s26 + $0x718] sm:$0xf] }
  0xa9   : > { %v634_v36 = vld [vmem:[%s3794_s26 + $0x720] sm:$0xf]  ;;  %v636_v37 = vld [vmem:[%s3794_s26 + $0x728] sm:$0xf]  ;;  %633 = vst [vmem:[%s3801_s27 + $0x38c] sm:$0xf] %v632_v35 }
  0xaa   : > { %635 = vst [vmem:[%s3801_s27 + $0x390] sm:$0xf] %v634_v36  ;;  %637 = vst [vmem:[%s3801_s27 + $0x394] sm:$0xf] %v636_v37  ;;  %v638_v38 = vld [vmem:[%s3794_s26 + $0x730] sm:$0xf] }
  0xab   : > { %v640_v39 = vld [vmem:[%s3794_s26 + $0x738] sm:$0xf]  ;;  %v642_v40 = vld [vmem:[%s3794_s26 + $0x740] sm:$0xf]  ;;  %639 = vst [vmem:[%s3801_s27 + $0x398] sm:$0xf] %v638_v38 }
  0xac   : > { %641 = vst [vmem:[%s3801_s27 + $0x39c] sm:$0xf] %v640_v39  ;;  %643 = vst [vmem:[%s3801_s27 + $0x3a0] sm:$0xf] %v642_v40  ;;  %v644_v41 = vld [vmem:[%s3794_s26 + $0x748] sm:$0xf] }
  0xad   : > { %v646_v42 = vld [vmem:[%s3794_s26 + $0x750] sm:$0xf]  ;;  %v648_v43 = vld [vmem:[%s3794_s26 + $0x758] sm:$0xf]  ;;  %645 = vst [vmem:[%s3801_s27 + $0x3a4] sm:$0xf] %v644_v41 }
  0xae   : > { %647 = vst [vmem:[%s3801_s27 + $0x3a8] sm:$0xf] %v646_v42  ;;  %649 = vst [vmem:[%s3801_s27 + $0x3ac] sm:$0xf] %v648_v43  ;;  %v650_v44 = vld [vmem:[%s3794_s26 + $0x760] sm:$0xf] }
  0xaf   : > { %v652_v45 = vld [vmem:[%s3794_s26 + $0x768] sm:$0xf]  ;;  %v654_v46 = vld [vmem:[%s3794_s26 + $0x770] sm:$0xf]  ;;  %651 = vst [vmem:[%s3801_s27 + $0x3b0] sm:$0xf] %v650_v44 }
  0xb0   : > { %653 = vst [vmem:[%s3801_s27 + $0x3b4] sm:$0xf] %v652_v45  ;;  %655 = vst [vmem:[%s3801_s27 + $0x3b8] sm:$0xf] %v654_v46  ;;  %v656_v47 = vld [vmem:[%s3794_s26 + $0x778] sm:$0xf] }
  0xb1   : > { %v658_v48 = vld [vmem:[%s3794_s26 + $0x780] sm:$0xf]  ;;  %v660_v49 = vld [vmem:[%s3794_s26 + $0x788] sm:$0xf]  ;;  %657 = vst [vmem:[%s3801_s27 + $0x3bc] sm:$0xf] %v656_v47 }
  0xb2   : > { %659 = vst [vmem:[%s3801_s27 + $0x3c0] sm:$0xf] %v658_v48  ;;  %661 = vst [vmem:[%s3801_s27 + $0x3c4] sm:$0xf] %v660_v49  ;;  %v662_v50 = vld [vmem:[%s3794_s26 + $0x790] sm:$0xf] }
  0xb3   : > { %v664_v51 = vld [vmem:[%s3794_s26 + $0x798] sm:$0xf]  ;;  %v666_v52 = vld [vmem:[%s3794_s26 + $0x7a0] sm:$0xf]  ;;  %663 = vst [vmem:[%s3801_s27 + $0x3c8] sm:$0xf] %v662_v50 }
  0xb4   : > { %665 = vst [vmem:[%s3801_s27 + $0x3cc] sm:$0xf] %v664_v51  ;;  %667 = vst [vmem:[%s3801_s27 + $0x3d0] sm:$0xf] %v666_v52  ;;  %v668_v53 = vld [vmem:[%s3794_s26 + $0x7a8] sm:$0xf] }
  0xb5   : > { %v670_v54 = vld [vmem:[%s3794_s26 + $0x7b0] sm:$0xf]  ;;  %v672_v55 = vld [vmem:[%s3794_s26 + $0x7b8] sm:$0xf]  ;;  %669 = vst [vmem:[%s3801_s27 + $0x3d4] sm:$0xf] %v668_v53 }
  0xb6   : > { %671 = vst [vmem:[%s3801_s27 + $0x3d8] sm:$0xf] %v670_v54  ;;  %673 = vst [vmem:[%s3801_s27 + $0x3dc] sm:$0xf] %v672_v55  ;;  %v674_v56 = vld [vmem:[%s3794_s26 + $0x7c0] sm:$0xf] }
  0xb7   : > { %v676_v57 = vld [vmem:[%s3794_s26 + $0x7c8] sm:$0xf]  ;;  %v678_v58 = vld [vmem:[%s3794_s26 + $0x7d0] sm:$0xf]  ;;  %675 = vst [vmem:[%s3801_s27 + $0x3e0] sm:$0xf] %v674_v56 }
  0xb8   : > { %677 = vst [vmem:[%s3801_s27 + $0x3e4] sm:$0xf] %v676_v57  ;;  %679 = vst [vmem:[%s3801_s27 + $0x3e8] sm:$0xf] %v678_v58  ;;  %v680_v59 = vld [vmem:[%s3794_s26 + $0x7d8] sm:$0xf] }
  0xb9   : > { %v682_v60 = vld [vmem:[%s3794_s26 + $0x7e0] sm:$0xf]  ;;  %v684_v61 = vld [vmem:[%s3794_s26 + $0x7e8] sm:$0xf]  ;;  %681 = vst [vmem:[%s3801_s27 + $0x3ec] sm:$0xf] %v680_v59 }
  0xba   : > { %683 = vst [vmem:[%s3801_s27 + $0x3f0] sm:$0xf] %v682_v60  ;;  %685 = vst [vmem:[%s3801_s27 + $0x3f4] sm:$0xf] %v684_v61  ;;  %v686_v62 = vld [vmem:[%s3794_s26 + $0x7f0] sm:$0xf] }
  0xbb   : > { %v688_v63 = vld [vmem:[%s3794_s26 + $0x7f8] sm:$0xf]  ;;  %v690_v0 = vld [vmem:[%s3794_s26 + $0x800] sm:$0xf]  ;;  %687 = vst [vmem:[%s3801_s27 + $0x3f8] sm:$0xf] %v686_v62 }
  0xbc   : > { %689 = vst [vmem:[%s3801_s27 + $0x3fc] sm:$0xf] %v688_v63  ;;  %691 = vst [vmem:[%s3801_s27 + $0x400] sm:$0xf] %v690_v0  ;;  %v692_v1 = vld [vmem:[%s3794_s26 + $0x808] sm:$0xf] }
  0xbd   : > { %v694_v2 = vld [vmem:[%s3794_s26 + $0x810] sm:$0xf]  ;;  %v696_v3 = vld [vmem:[%s3794_s26 + $0x818] sm:$0xf]  ;;  %693 = vst [vmem:[%s3801_s27 + $0x404] sm:$0xf] %v692_v1 }
  0xbe   : > { %695 = vst [vmem:[%s3801_s27 + $0x408] sm:$0xf] %v694_v2  ;;  %697 = vst [vmem:[%s3801_s27 + $0x40c] sm:$0xf] %v696_v3  ;;  %v698_v4 = vld [vmem:[%s3794_s26 + $0x820] sm:$0xf] }
  0xbf   : > { %v700_v5 = vld [vmem:[%s3794_s26 + $0x828] sm:$0xf]  ;;  %v702_v6 = vld [vmem:[%s3794_s26 + $0x830] sm:$0xf]  ;;  %699 = vst [vmem:[%s3801_s27 + $0x410] sm:$0xf] %v698_v4 }
  0xc0   : > { %701 = vst [vmem:[%s3801_s27 + $0x414] sm:$0xf] %v700_v5  ;;  %703 = vst [vmem:[%s3801_s27 + $0x418] sm:$0xf] %v702_v6  ;;  %v704_v7 = vld [vmem:[%s3794_s26 + $0x838] sm:$0xf] }
  0xc1   : > { %v706_v8 = vld [vmem:[%s3794_s26 + $0x840] sm:$0xf]  ;;  %v708_v9 = vld [vmem:[%s3794_s26 + $0x848] sm:$0xf]  ;;  %705 = vst [vmem:[%s3801_s27 + $0x41c] sm:$0xf] %v704_v7 }
  0xc2   : > { %707 = vst [vmem:[%s3801_s27 + $0x420] sm:$0xf] %v706_v8  ;;  %709 = vst [vmem:[%s3801_s27 + $0x424] sm:$0xf] %v708_v9  ;;  %v710_v10 = vld [vmem:[%s3794_s26 + $0x850] sm:$0xf] }
  0xc3   : > { %v712_v11 = vld [vmem:[%s3794_s26 + $0x858] sm:$0xf]  ;;  %v714_v12 = vld [vmem:[%s3794_s26 + $0x860] sm:$0xf]  ;;  %711 = vst [vmem:[%s3801_s27 + $0x428] sm:$0xf] %v710_v10 }
  0xc4   : > { %713 = vst [vmem:[%s3801_s27 + $0x42c] sm:$0xf] %v712_v11  ;;  %715 = vst [vmem:[%s3801_s27 + $0x430] sm:$0xf] %v714_v12  ;;  %v716_v13 = vld [vmem:[%s3794_s26 + $0x868] sm:$0xf] }
  0xc5   : > { %v718_v14 = vld [vmem:[%s3794_s26 + $0x870] sm:$0xf]  ;;  %v720_v15 = vld [vmem:[%s3794_s26 + $0x878] sm:$0xf]  ;;  %717 = vst [vmem:[%s3801_s27 + $0x434] sm:$0xf] %v716_v13 }
  0xc6   : > { %719 = vst [vmem:[%s3801_s27 + $0x438] sm:$0xf] %v718_v14  ;;  %721 = vst [vmem:[%s3801_s27 + $0x43c] sm:$0xf] %v720_v15  ;;  %v722_v16 = vld [vmem:[%s3794_s26 + $0x880] sm:$0xf] }
  0xc7   : > { %v724_v17 = vld [vmem:[%s3794_s26 + $0x888] sm:$0xf]  ;;  %v726_v18 = vld [vmem:[%s3794_s26 + $0x890] sm:$0xf]  ;;  %723 = vst [vmem:[%s3801_s27 + $0x440] sm:$0xf] %v722_v16 }
  0xc8   : > { %725 = vst [vmem:[%s3801_s27 + $0x444] sm:$0xf] %v724_v17  ;;  %727 = vst [vmem:[%s3801_s27 + $0x448] sm:$0xf] %v726_v18  ;;  %v728_v19 = vld [vmem:[%s3794_s26 + $0x898] sm:$0xf] }
  0xc9   : > { %v730_v20 = vld [vmem:[%s3794_s26 + $0x8a0] sm:$0xf]  ;;  %v732_v21 = vld [vmem:[%s3794_s26 + $0x8a8] sm:$0xf]  ;;  %729 = vst [vmem:[%s3801_s27 + $0x44c] sm:$0xf] %v728_v19 }
  0xca   : > { %731 = vst [vmem:[%s3801_s27 + $0x450] sm:$0xf] %v730_v20  ;;  %733 = vst [vmem:[%s3801_s27 + $0x454] sm:$0xf] %v732_v21  ;;  %v734_v22 = vld [vmem:[%s3794_s26 + $0x8b0] sm:$0xf] }
  0xcb   : > { %v736_v23 = vld [vmem:[%s3794_s26 + $0x8b8] sm:$0xf]  ;;  %v738_v24 = vld [vmem:[%s3794_s26 + $0x8c0] sm:$0xf]  ;;  %735 = vst [vmem:[%s3801_s27 + $0x458] sm:$0xf] %v734_v22 }
  0xcc   : > { %737 = vst [vmem:[%s3801_s27 + $0x45c] sm:$0xf] %v736_v23  ;;  %739 = vst [vmem:[%s3801_s27 + $0x460] sm:$0xf] %v738_v24  ;;  %v740_v25 = vld [vmem:[%s3794_s26 + $0x8c8] sm:$0xf] }
  0xcd   : > { %v742_v26 = vld [vmem:[%s3794_s26 + $0x8d0] sm:$0xf]  ;;  %v744_v27 = vld [vmem:[%s3794_s26 + $0x8d8] sm:$0xf]  ;;  %741 = vst [vmem:[%s3801_s27 + $0x464] sm:$0xf] %v740_v25 }
  0xce   : > { %743 = vst [vmem:[%s3801_s27 + $0x468] sm:$0xf] %v742_v26  ;;  %745 = vst [vmem:[%s3801_s27 + $0x46c] sm:$0xf] %v744_v27  ;;  %v746_v28 = vld [vmem:[%s3794_s26 + $0x8e0] sm:$0xf] }
  0xcf   : > { %v748_v29 = vld [vmem:[%s3794_s26 + $0x8e8] sm:$0xf]  ;;  %v750_v30 = vld [vmem:[%s3794_s26 + $0x8f0] sm:$0xf]  ;;  %747 = vst [vmem:[%s3801_s27 + $0x470] sm:$0xf] %v746_v28 }
  0xd0   : > { %749 = vst [vmem:[%s3801_s27 + $0x474] sm:$0xf] %v748_v29  ;;  %751 = vst [vmem:[%s3801_s27 + $0x478] sm:$0xf] %v750_v30  ;;  %v752_v31 = vld [vmem:[%s3794_s26 + $0x8f8] sm:$0xf] }
  0xd1   : > { %753 = vst [vmem:[%s3801_s27 + $0x47c] sm:$0xf] %v752_v31 }
  0xd2 PF: > { %p3122_p6 = scmp.ge.s32.totalorder %s3729_s16, 1  ;;  %p1357_p7 = scmp.lt.s32.totalorder %s3729_s16, 3 }
  0xd4   : > { %p1358_p8 = pnand %p3122_p6, %p1357_p7 }
  0xd5   : > { %s1364_s28 = sand.u32 (!%p1358_p8), 1, %s3713_s12   ;;  %v4380_v32 = vld [vmem:[%s4619_s0] sm:$0xff] (!%p1358_p8)  ;;  %v4385_v33 = vld [vmem:[%s4619_s0 + $0x8] sm:$0xff] (!%p1358_p8)  ;;  %v4423_v63 = vld [vmem:[%s4619_s0 + $0x10] sm:$0xff] (!%p1358_p8)  ;;  %p1403_p9 = scmp.lt.s32.totalorder (!%p1358_p8), %s3721_s14, 1 }
  0xd6   : > { %1361 = sbr.rel (%p1358_p8) target bundleno = 599 (0x257), region = 69  ;;  %v3126_v34 = vcombine.high (!%p1358_p8), %v4380_v32, %v4380_v32  ;;  %v3128_v35 = vcombine.high (!%p1358_p8), %v4385_v33, %v4385_v33  ;;  %v4430_v2 = vld [vmem:[%s4619_s0 + $0x18] sm:$0xff] (!%p1358_p8)  ;;  %v3125_v5 = vcombine.low (!%p1358_p8), %v4380_v32, %v4380_v32  ;;  %v3130_v7 = vcombine.high (!%p1358_p8), %v4423_v63, %v4423_v63 }
  0xd7   : > { %s3488_s6 = smul.u32 (!%p1358_p8), 1152, %s1364_s28  ;;  %v3127_v9 = vcombine.low (!%p1358_p8), %v4385_v33, %v4385_v33  ;;  %v3132_v11 = vcombine.high (!%p1358_p8), %v4430_v2, %v4430_v2 }
  0xd8   : > { %2678 = vmatprep.mubr.bf16.mxu0 (!%p1358_p8), %v3126_v34  ;;  %2718 = vmatprep.mubr.bf16.mxu1 (!%p1358_p8), %v3128_v35 }
  0xd9   : > { %s4391_s7 = scalar_lea.vmem (!%p1358_p8), [#allocation2], %s3488_s6 }
  0xda   : > { %v3529_v36 = vld [vmem:[%s4391_s7 + $0x40] sm:$0xff] (!%p1358_p8)   ;;  %v3533_v40 = vld [vmem:[%s4391_s7 + $0x48] sm:$0xff] (!%p1358_p8)   ;;  %v3537_v44 = vld [vmem:[%s4391_s7 + $0x50] sm:$0xff] (!%p1358_p8)  }
  0xdb   : > { %v3530_v37 = vld [vmem:[%s4391_s7] sm:$0xff] (!%p1358_p8)   ;;  %3289 = vmatprep.subr.bf16.mxu0 (!%p1358_p8), %v3529_v36  ;;  %v3534_v41 = vld [vmem:[%s4391_s7 + $0x8] sm:$0xff] (!%p1358_p8)   ;;  %v3538_v45 = vld [vmem:[%s4391_s7 + $0x10] sm:$0xff] (!%p1358_p8)  }
  0xdc   : > { %v3531_v38 = vld [vmem:[%s4391_s7 + $0xc0] sm:$0xff] (!%p1358_p8)   ;;  %3290 = vmatpush3.bf16.msra.mxu0 (!%p1358_p8), %v3530_v37  ;;  %v3535_v42 = vld [vmem:[%s4391_s7 + $0xc8] sm:$0xff] (!%p1358_p8)   ;;  %v3539_v46 = vld [vmem:[%s4391_s7 + $0xd0] sm:$0xff] (!%p1358_p8)  }
  0xdd   : > { %v3532_v39 = vld [vmem:[%s4391_s7 + $0x80] sm:$0xff]   ;;  %3311 = vmatprep.subr.bf16.mxu1 %v3531_v38  ;;  %3291 = vmatprep.subr.bf16.mxu0 %v3533_v40  ;;  %v3536_v43 = vld [vmem:[%s4391_s7 + $0x88] sm:$0xff]   ;;  %v3540_v47 = vld [vmem:[%s4391_s7 + $0x90] sm:$0xff]   ;;  %s4630_s14 = smov (!%p1403_p9, %s3721_s14), 1 }
  0xde   : > { %3312 = vmatpush3.bf16.msra.mxu1 %v3532_v39  ;;  %v3541_v48 = vld [vmem:[%s4391_s7 + $0x58] sm:$0xff]   ;;  %v3545_v52 = vld [vmem:[%s4391_s7 + $0x60] sm:$0xff]   ;;  %v3549_v56 = vld [vmem:[%s4391_s7 + $0x68] sm:$0xff]   ;;  %s1405_s30 = scalar_lea.vmem %s4621_s2, %s4630_s14  ;;  %s3123_s4 = sshll.u32 %s4630_s14, 3 }
  0xdf   : > { %3313 = vmatprep.subr.bf16.mxu1 %v3535_v42  ;;  %v3542_v49 = vld [vmem:[%s4391_s7 + $0x18] sm:$0xff]   ;;  %v3546_v53 = vld [vmem:[%s4391_s7 + $0x20] sm:$0xff]   ;;  %v3550_v57 = vld [vmem:[%s4391_s7 + $0x28] sm:$0xff]  }
  0xe0   : > { %3292 = vmatpush3.bf16.msra.mxu0 %v3534_v41  ;;  %v3543_v50 = vld [vmem:[%s4391_s7 + $0xd8] sm:$0xff]   ;;  %v3547_v54 = vld [vmem:[%s4391_s7 + $0xe0] sm:$0xff]   ;;  %v3551_v58 = vld [vmem:[%s4391_s7 + $0xe8] sm:$0xff]  }
  0xe1   : > { %3293 = vmatprep.subr.bf16.mxu0 %v3537_v44  ;;  %v3544_v51 = vld [vmem:[%s4391_s7 + $0x98] sm:$0xff]   ;;  %v3548_v55 = vld [vmem:[%s4391_s7 + $0xa0] sm:$0xff]   ;;  %v3552_v59 = vld [vmem:[%s4391_s7 + $0xa8] sm:$0xff]  }
  0xe2   : > { %3314 = vmatpush3.bf16.msra.mxu1 %v3536_v43  ;;  %v3553_v60 = vld [vmem:[%s4391_s7 + $0x70] sm:$0xff]   ;;  %v3557_v1 = vld [vmem:[%s4391_s7 + $0x78] sm:$0xff]   ;;  %v3563_v8 = vld [vmem:[%s4391_s7 + $0x140] sm:$0xff]   ;;  %v3129_v43 = vcombine.low %v4423_v63, %v4423_v63 }
  0xe3   : > { %3315 = vmatprep.subr.bf16.mxu1 %v3539_v46  ;;  %v3554_v61 = vld [vmem:[%s4391_s7 + $0x30] sm:$0xff]   ;;  %v3558_v3 = vld [vmem:[%s4391_s7 + $0x38] sm:$0xff]   ;;  %v3566_v10 = vld [vmem:[%s4391_s7 + $0x100] sm:$0xff]  }
  0xe4   : > { %3294 = vmatpush3.bf16.msra.mxu0 %v3538_v45  ;;  %v3555_v62 = vld [vmem:[%s4391_s7 + $0xf0] sm:$0xff]   ;;  %v3559_v4 = vld [vmem:[%s4391_s7 + $0xf8] sm:$0xff]   ;;  %v3567_v12 = vld [vmem:[%s4391_s7 + $0x1c0] sm:$0xff]  }
  0xe5   : > { %3295 = vmatprep.subr.bf16.mxu0 %v3541_v48  ;;  %v3556_v0 = vld [vmem:[%s4391_s7 + $0xb0] sm:$0xff]   ;;  %v3562_v6 = vld [vmem:[%s4391_s7 + $0xb8] sm:$0xff]   ;;  %v3568_v13 = vld [vmem:[%s4391_s7 + $0x180] sm:$0xff]  }
  0xe6   : > { %3316 = vmatpush3.bf16.msra.mxu1 %v3540_v47  ;;  %v3569_v14 = vld [vmem:[%s4391_s7 + $0x148] sm:$0xff]   ;;  %v3573_v18 = vld [vmem:[%s4391_s7 + $0x150] sm:$0xff]   ;;  %v3577_v22 = vld [vmem:[%s4391_s7 + $0x158] sm:$0xff]   ;;  %v3131_v47 = vcombine.low %v4430_v2, %v4430_v2 }
  0xe7   : > { %3317 = vmatprep.subr.bf16.mxu1 %v3543_v50  ;;  %v3570_v15 = vld [vmem:[%s4391_s7 + $0x108] sm:$0xff]   ;;  %v3574_v19 = vld [vmem:[%s4391_s7 + $0x110] sm:$0xff]   ;;  %v3578_v23 = vld [vmem:[%s4391_s7 + $0x118] sm:$0xff]  }
  0xe8   : > { %3296 = vmatpush3.bf16.msra.mxu0 %v3542_v49  ;;  %v3571_v16 = vld [vmem:[%s4391_s7 + $0x1c8] sm:$0xff]   ;;  %v3575_v20 = vld [vmem:[%s4391_s7 + $0x1d0] sm:$0xff]   ;;  %v3579_v24 = vld [vmem:[%s4391_s7 + $0x1d8] sm:$0xff]  }
  0xe9   : > { %3297 = vmatprep.subr.bf16.mxu0 %v3545_v52  ;;  %v3572_v17 = vld [vmem:[%s4391_s7 + $0x188] sm:$0xff]   ;;  %v3576_v21 = vld [vmem:[%s4391_s7 + $0x190] sm:$0xff]   ;;  %v3580_v25 = vld [vmem:[%s4391_s7 + $0x198] sm:$0xff]  }
  0xea   : > { %3318 = vmatpush3.bf16.msra.mxu1 %v3544_v51  ;;  %v3581_v26 = vld [vmem:[%s4391_s7 + $0x160] sm:$0xff]   ;;  %v3585_v30 = vld [vmem:[%s4391_s7 + $0x168] sm:$0xff]   ;;  %v3589_v34 = vld [vmem:[%s4391_s7 + $0x170] sm:$0xff]  }
  0xeb   : > { %3319 = vmatprep.subr.bf16.mxu1 %v3547_v54  ;;  %v3582_v27 = vld [vmem:[%s4391_s7 + $0x120] sm:$0xff]   ;;  %v3586_v31 = vld [vmem:[%s4391_s7 + $0x128] sm:$0xff]   ;;  %v3590_v35 = vld [vmem:[%s4391_s7 + $0x130] sm:$0xff]  }
  0xec   : > { %3298 = vmatpush3.bf16.msra.mxu0 %v3546_v53  ;;  %v3583_v28 = vld [vmem:[%s4391_s7 + $0x1e0] sm:$0xff]   ;;  %v3587_v32 = vld [vmem:[%s4391_s7 + $0x1e8] sm:$0xff]   ;;  %v3591_v36 = vld [vmem:[%s4391_s7 + $0x1f0] sm:$0xff]  }
  0xed   : > { %3299 = vmatprep.subr.bf16.mxu0 %v3549_v56  ;;  %v3584_v29 = vld [vmem:[%s4391_s7 + $0x1a0] sm:$0xff]   ;;  %v3588_v33 = vld [vmem:[%s4391_s7 + $0x1a8] sm:$0xff]   ;;  %v3592_v38 = vld [vmem:[%s4391_s7 + $0x1b0] sm:$0xff]  }
  0xee   : > { %3320 = vmatpush3.bf16.msra.mxu1 %v3548_v55  ;;  %v4473_v37 = vld [vmem:[%s4619_s0 + $0x20] sm:$0xff]  ;;  %v3593_v39 = vld [vmem:[%s4391_s7 + $0x178] sm:$0xff]   ;;  %v4480_v40 = vld [vmem:[%s4619_s0 + $0x28] sm:$0xff] }
  0xef   : > { %3321 = vmatprep.subr.bf16.mxu1 %v3551_v58  ;;  %v3594_v41 = vld [vmem:[%s4391_s7 + $0x138] sm:$0xff]   ;;  %v3134_v45 = vcombine.high %v4473_v37, %v4473_v37  ;;  %v3599_v46 = vld [vmem:[%s4391_s7 + $0x240] sm:$0xff]   ;;  %v3136_v49 = vcombine.high %v4480_v40, %v4480_v40  ;;  %v3605_v52 = vld [vmem:[%s4391_s7 + $0x248] sm:$0xff]  }
  0xf0   : > { %3300 = vmatpush3.bf16.msra.mxu0 %v3550_v57  ;;  %v3595_v42 = vld [vmem:[%s4391_s7 + $0x1f8] sm:$0xff]   ;;  %v3602_v48 = vld [vmem:[%s4391_s7 + $0x200] sm:$0xff]   ;;  %v3606_v53 = vld [vmem:[%s4391_s7 + $0x208] sm:$0xff]  }
  0xf1   : > { %3301 = vmatprep.subr.bf16.mxu0 %v3553_v60  ;;  %v3598_v44 = vld [vmem:[%s4391_s7 + $0x1b8] sm:$0xff]   ;;  %v3603_v50 = vld [vmem:[%s4391_s7 + $0x2c0] sm:$0xff]   ;;  %v3607_v54 = vld [vmem:[%s4391_s7 + $0x2c8] sm:$0xff]  }
  0xf2   : > { %3322 = vmatpush3.bf16.msra.mxu1 %v3552_v59  ;;  %v3604_v51 = vld [vmem:[%s4391_s7 + $0x280] sm:$0xff]   ;;  %v3608_v55 = vld [vmem:[%s4391_s7 + $0x288] sm:$0xff]   ;;  %v3609_v56 = vld [vmem:[%s4391_s7 + $0x250] sm:$0xff]  }
  0xf3   : > { %3323 = vmatprep.subr.bf16.mxu1 %v3555_v62  ;;  %v3610_v57 = vld [vmem:[%s4391_s7 + $0x210] sm:$0xff]   ;;  %v3613_v60 = vld [vmem:[%s4391_s7 + $0x258] sm:$0xff]   ;;  %v3619_v2 = vld [vmem:[%s4391_s7 + $0x2e0] sm:$0xff]  }
  0xf4   : > { %3302 = vmatpush3.bf16.msra.mxu0 %v3554_v61  ;;  %v3611_v58 = vld [vmem:[%s4391_s7 + $0x2d0] sm:$0xff]   ;;  %v3614_v61 = vld [vmem:[%s4391_s7 + $0x218] sm:$0xff]  }
  0xf5   : > { %3303 = vmatprep.subr.bf16.mxu0 %v3557_v1  ;;  %v3612_v59 = vld [vmem:[%s4391_s7 + $0x290] sm:$0xff]   ;;  %v3615_v62 = vld [vmem:[%s4391_s7 + $0x2d8] sm:$0xff]   ;;  %v3618_v1 = vld [vmem:[%s4391_s7 + $0x220] sm:$0xff]  }
  0xf6   : > { %3324 = vmatpush3.bf16.msra.mxu1 %v3556_v0  ;;  %v3616_v63 = vld [vmem:[%s4391_s7 + $0x298] sm:$0xff]   ;;  %v3617_v0 = vld [vmem:[%s4391_s7 + $0x260] sm:$0xff]  }
  0xf7   : > { %3325 = vmatprep.subr.bf16.mxu1 %v3559_v4  ;;  %v3621_v4 = vld [vmem:[%s4391_s7 + $0x268] sm:$0xff]  }
  0xf8   : > { %3304 = vmatpush3.bf16.msra.mxu0 %v3558_v3  ;;  %v3620_v3 = vld [vmem:[%s4391_s7 + $0x2a0] sm:$0xff]  }
  0xf9   : > { %3333 = vmatprep.subr.bf16.mxu0 %v3563_v8  ;;  %v3625_v8 = vld [vmem:[%s4391_s7 + $0x270] sm:$0xff]  }
  0xfa   : > { %3326 = vmatpush3.bf16.msra.mxu1 %v3562_v6  ;;  %v3623_v6 = vld [vmem:[%s4391_s7 + $0x2e8] sm:$0xff]  }
  0xfb   : > { %2679 = vmatmul.mubr.bf16.vlgmr.msra.gmra.mrb[0].mxu0 %v3125_v5  ;;  %3355 = vmatprep.subr.bf16.mxu1 %v3567_v12  ;;  %v3622_v5 = vld [vmem:[%s4391_s7 + $0x228] sm:$0xff]   ;;  %v3628_v12 = vld [vmem:[%s4391_s7 + $0x2b0] sm:$0xff]  }
  0xfc   : > { %3334 = vmatpush3.bf16.msra.mxu0 %v3566_v10  ;;  %2758 = vmatprep.mubr.bf16.mxu0 %v3130_v7  ;;  %v3624_v7 = vld [vmem:[%s4391_s7 + $0x2a8] sm:$0xff]   ;;  %v3627_v10 = vld [vmem:[%s4391_s7 + $0x2f0] sm:$0xff]  }
  0xfd   : > { %2719 = vmatmul.mubr.bf16.vlgmr.msra.gmra.mrb[0].mxu1 %v3127_v9  ;;  %3335 = vmatprep.subr.bf16.mxu0 %v3569_v14  ;;  %v3626_v9 = vld [vmem:[%s4391_s7 + $0x230] sm:$0xff]   ;;  %v3630_v14 = vld [vmem:[%s4391_s7 + $0x238] sm:$0xff]  }
  0xfe   : > { %3356 = vmatpush3.bf16.msra.mxu1 %v3568_v13  ;;  %2798 = vmatprep.mubr.bf16.mxu1 %v3132_v11  ;;  %v4523_v11 = vld [vmem:[%s4619_s0 + $0x30] sm:$0xff]  ;;  %v3629_v13 = vld [vmem:[%s4391_s7 + $0x278] sm:$0xff]  }
  0xff   : > { %3357 = vmatprep.subr.bf16.mxu1 %v3571_v16  ;;  %v3133_v16 = vcombine.low %v4473_v37, %v4473_v37  ;;  %v3654_v37 = vld [vmem:[%s4391_s7 + $0x320] sm:$0xff]  }
 0x100   : > { %3336 = vmatpush3.bf16.msra.mxu0 %v3570_v15  ;;  %v3631_v15 = vld [vmem:[%s4391_s7 + $0x2f8] sm:$0xff]  }
 0x101   : > { %3337 = vmatprep.subr.bf16.mxu0 %v3573_v18  ;;  %v3138_v18 = vcombine.high %v4523_v11, %v4523_v11 }
 0x102   : > { %3358 = vmatpush3.bf16.msra.mxu1 %v3572_v17  ;;  %v3634_v17 = vld [vmem:[%s4391_s7 + $0x2b8] sm:$0xff]  }
 0x103   : > { %3359 = vmatprep.subr.bf16.mxu1 %v3575_v20  ;;  %v3135_v20 = vcombine.low %v4480_v40, %v4480_v40  ;;  %v3657_v40 = vld [vmem:[%s4391_s7 + $0x368] sm:$0xff]  }
 0x104   : > { %3338 = vmatpush3.bf16.msra.mxu0 %v3574_v19  ;;  %v3635_v19 = vld [vmem:[%s4391_s7 + $0x340] sm:$0xff]  }
 0x105   : > { %3339 = vmatprep.subr.bf16.mxu0 %v3577_v22  ;;  %v3639_v22 = vld [vmem:[%s4391_s7 + $0x3c0] sm:$0xff]  }
 0x106   : > { %3360 = vmatpush3.bf16.msra.mxu1 %v3576_v21  ;;  %v3638_v21 = vld [vmem:[%s4391_s7 + $0x300] sm:$0xff]  }
 0x107   : > { %3361 = vmatprep.subr.bf16.mxu1 %v3579_v24  ;;  %v3641_v24 = vld [vmem:[%s4391_s7 + $0x348] sm:$0xff]  }
 0x108   : > { %3340 = vmatpush3.bf16.msra.mxu0 %v3578_v23  ;;  %v3640_v23 = vld [vmem:[%s4391_s7 + $0x380] sm:$0xff]  }
 0x109   : > { %3341 = vmatprep.subr.bf16.mxu0 %v3581_v26  ;;  %v3643_v26 = vld [vmem:[%s4391_s7 + $0x3c8] sm:$0xff]  }
 0x10a   : > { %3362 = vmatpush3.bf16.msra.mxu1 %v3580_v25  ;;  %v3642_v25 = vld [vmem:[%s4391_s7 + $0x308] sm:$0xff]  }
 0x10b   : > { %3363 = vmatprep.subr.bf16.mxu1 %v3583_v28  ;;  %v3645_v28 = vld [vmem:[%s4391_s7 + $0x350] sm:$0xff]  }
 0x10c   : > { %3342 = vmatpush3.bf16.msra.mxu0 %v3582_v27  ;;  %v3644_v27 = vld [vmem:[%s4391_s7 + $0x388] sm:$0xff]  }
 0x10d   : > { %3343 = vmatprep.subr.bf16.mxu0 %v3585_v30  ;;  %v3647_v30 = vld [vmem:[%s4391_s7 + $0x3d0] sm:$0xff]  }
 0x10e   : > { %3364 = vmatpush3.bf16.msra.mxu1 %v3584_v29  ;;  %v3646_v29 = vld [vmem:[%s4391_s7 + $0x310] sm:$0xff]  }
 0x10f   : > { %3365 = vmatprep.subr.bf16.mxu1 %v3587_v32  ;;  %v3649_v32 = vld [vmem:[%s4391_s7 + $0x358] sm:$0xff]  }
 0x110   : > { %3344 = vmatpush3.bf16.msra.mxu0 %v3586_v31  ;;  %v3648_v31 = vld [vmem:[%s4391_s7 + $0x390] sm:$0xff]  }
 0x111   : > { %3345 = vmatprep.subr.bf16.mxu0 %v3589_v34  ;;  %v3651_v34 = vld [vmem:[%s4391_s7 + $0x3d8] sm:$0xff]  }
 0x112   : > { %3366 = vmatpush3.bf16.msra.mxu1 %v3588_v33  ;;  %v3650_v33 = vld [vmem:[%s4391_s7 + $0x318] sm:$0xff]  }
 0x113   : > { %3367 = vmatprep.subr.bf16.mxu1 %v3591_v36  ;;  %v3653_v36 = vld [vmem:[%s4391_s7 + $0x360] sm:$0xff]  }
 0x114   : > { %3346 = vmatpush3.bf16.msra.mxu0 %v3590_v35  ;;  %v3652_v35 = vld [vmem:[%s4391_s7 + $0x398] sm:$0xff]  }
 0x115   : > { %3347 = vmatprep.subr.bf16.mxu0 %v3593_v39  ;;  %v3656_v39 = vld [vmem:[%s4391_s7 + $0x3a0] sm:$0xff]  }
 0x116   : > { %3368 = vmatpush3.bf16.msra.mxu1 %v3592_v38  ;;  %v3655_v38 = vld [vmem:[%s4391_s7 + $0x3e0] sm:$0xff]  }
 0x117   : > { %3369 = vmatprep.subr.bf16.mxu1 %v3595_v42  ;;  %v3659_v42 = vld [vmem:[%s4391_s7 + $0x3e8] sm:$0xff]  }
 0x118   : > { %3348 = vmatpush3.bf16.msra.mxu0 %v3594_v41  ;;  %v3658_v41 = vld [vmem:[%s4391_s7 + $0x328] sm:$0xff]  }
 0x119   : > { %3377 = vmatprep.subr.bf16.mxu0 %v3599_v46  ;;  %v3663_v46 = vld [vmem:[%s4391_s7 + $0x3f0] sm:$0xff]  }
 0x11a   : > { %3370 = vmatpush3.bf16.msra.mxu1 %v3598_v44  ;;  %v3661_v44 = vld [vmem:[%s4391_s7 + $0x370] sm:$0xff]  }
 0x11b   : > { %2759 = vmatmul.mubr.bf16.vlgmr.msra.gmra.mrb[4].mxu0 %v3129_v43  ;;  %3399 = vmatprep.subr.bf16.mxu1 %v3603_v50  ;;  %v3660_v43 = vld [vmem:[%s4391_s7 + $0x3a8] sm:$0xff]   ;;  %v3667_v50 = vld [vmem:[%s4391_s7 + $0x3f8] sm:$0xff]  }
 0x11c   : > { %3378 = vmatpush3.bf16.msra.mxu0 %v3602_v48  ;;  %2838 = vmatprep.mubr.bf16.mxu0 %v3134_v45  ;;  %v3662_v45 = vld [vmem:[%s4391_s7 + $0x330] sm:$0xff]   ;;  %v3665_v48 = vld [vmem:[%s4391_s7 + $0x378] sm:$0xff]  }
 0x11d   : > { %2799 = vmatmul.mubr.bf16.vlgmr.msra.gmra.mrb[4].mxu1 %v3131_v47  ;;  %3379 = vmatprep.subr.bf16.mxu0 %v3605_v52  ;;  %v3664_v47 = vld [vmem:[%s4391_s7 + $0x3b0] sm:$0xff]   ;;  %v3670_v52 = vld [vmem:[%s4391_s7 + $0x3b8] sm:$0xff]  }
 0x11e   : > { %3400 = vmatpush3.bf16.msra.mxu1 %v3604_v51  ;;  %2878 = vmatprep.mubr.bf16.mxu1 %v3136_v49  ;;  %v3666_v49 = vld [vmem:[%s4391_s7 + $0x338] sm:$0xff]   ;;  %v3137_v51 = vcombine.low %v4523_v11, %v4523_v11 }
 0x11f   : > { %3401 = vmatprep.subr.bf16.mxu1 %v3607_v54  ;;  %v1422_v54 = vld [vmem:[%s4619_s0 + $0x38] sm:$0xff] }
 0x120   : > { %3380 = vmatpush3.bf16.msra.mxu0 %v3606_v53  ;;  %v3671_v53 = vld [vmem:[%s4391_s7 + $0x440] sm:$0xff]  }
 0x121   : > { %3381 = vmatprep.subr.bf16.mxu0 %v3609_v56  ;;  %v3140_v56 = vcombine.high %v1422_v54, %v1422_v54 }
 0x122   : > { %3402 = vmatpush3.bf16.msra.mxu1 %v3608_v55  ;;  %v3139_v55 = vcombine.low %v1422_v54, %v1422_v54 }
 0x123   : > { %3403 = vmatprep.subr.bf16.mxu1 %v3611_v58  ;;  %v3675_v58 = vld [vmem:[%s4391_s7 + $0x448] sm:$0xff]  }
 0x124   : > { %3382 = vmatpush3.bf16.msra.mxu0 %v3610_v57  ;;  %v3674_v57 = vld [vmem:[%s4391_s7 + $0x400] sm:$0xff]  }
 0x125   : > { %3383 = vmatprep.subr.bf16.mxu0 %v3613_v60  ;;  %v3677_v60 = vld [vmem:[%s4391_s7 + $0x450] sm:$0xff]  }
 0x126   : > { %3404 = vmatpush3.bf16.msra.mxu1 %v3612_v59  ;;  %v3676_v59 = vld [vmem:[%s4391_s7 + $0x408] sm:$0xff]  }
 0x127   : > { %3405 = vmatprep.subr.bf16.mxu1 %v3615_v62  ;;  %v3679_v62 = vld [vmem:[%s4391_s7 + $0x458] sm:$0xff]  }
 0x128   : > { %3384 = vmatpush3.bf16.msra.mxu0 %v3614_v61  ;;  %v3678_v61 = vld [vmem:[%s4391_s7 + $0x410] sm:$0xff]  }
 0x129   : > { %3385 = vmatprep.subr.bf16.mxu0 %v3617_v0  ;;  %v3681_v0 = vld [vmem:[%s4391_s7 + $0x460] sm:$0xff]  }
 0x12a   : > { %3406 = vmatpush3.bf16.msra.mxu1 %v3616_v63  ;;  %v3680_v63 = vld [vmem:[%s4391_s7 + $0x418] sm:$0xff]  }
 0x12b   : > { %3407 = vmatprep.subr.bf16.mxu1 %v3619_v2  ;;  %v1423_v2 = vld [vmem:[%s4619_s0 + $0x40] sm:$0xff] }
 0x12c   : > { %3386 = vmatpush3.bf16.msra.mxu0 %v3618_v1  ;;  %v3682_v1 = vld [vmem:[%s4391_s7 + $0x420] sm:$0xff]  }
 0x12d   : > { %3387 = vmatprep.subr.bf16.mxu0 %v3621_v4  ;;  %v3142_v4 = vcombine.high %v1423_v2, %v1423_v2 }
 0x12e   : > { %3408 = vmatpush3.bf16.msra.mxu1 %v3620_v3  ;;  %v3683_v3 = vld [vmem:[%s4391_s7 + $0x468] sm:$0xff]  }
 0x12f   : > { %3409 = vmatprep.subr.bf16.mxu1 %v3623_v6  ;;  %v3685_v6 = vld [vmem:[%s4391_s7 + $0x470] sm:$0xff]  }
 0x130   : > { %3388 = vmatpush3.bf16.msra.mxu0 %v3622_v5  ;;  %v3684_v5 = vld [vmem:[%s4391_s7 + $0x428] sm:$0xff]  }
 0x131   : > { %3389 = vmatprep.subr.bf16.mxu0 %v3625_v8  ;;  %v3687_v8 = vld [vmem:[%s4391_s7 + $0x478] sm:$0xff]  }
 0x132   : > { %3410 = vmatpush3.bf16.msra.mxu1 %v3624_v7  ;;  %v3686_v7 = vld [vmem:[%s4391_s7 + $0x430] sm:$0xff]  }
 0x133   : > { %3411 = vmatprep.subr.bf16.mxu1 %v3627_v10  ;;  %v3141_v10 = vcombine.low %v1423_v2, %v1423_v2 }
 0x134   : > { %3390 = vmatpush3.bf16.msra.mxu0 %v3626_v9  ;;  %v3688_v9 = vld [vmem:[%s4391_s7 + $0x438] sm:$0xff]   ;;  %s1413_s7 = scalar_lea.vmem %s4622_s3, %s3123_s4 }
 0x135   : > { %3391 = vmatprep.subr.bf16.mxu0 %v3629_v13 }
 0x136   : > { %3412 = vmatpush3.bf16.msra.mxu1 %v3628_v12  ;;  %v3124_v12 = vld [vmem:[%s1405_s30] ss:$0 sm:$0xff] }
 0x137   : > { %3413 = vmatprep.subr.bf16.mxu1 %v3631_v15 }
 0x138   : > { %3392 = vmatpush3.bf16.msra.mxu0 %v3630_v14 }
 0x139   : > { %3421 = vmatprep.subr.bf16.mxu0 %v3635_v19 }
 0x13a   : > { %3414 = vmatpush3.bf16.msra.mxu1 %v3634_v17 }
 0x13b   : > { %2839 = vmatmul.mubr.bf16.vlgmr.msra.gmra.mrb[8].mxu0 %v3133_v16  ;;  %3443 = vmatprep.subr.bf16.mxu1 %v3639_v22 }
 0x13c   : > { %3422 = vmatpush3.bf16.msra.mxu0 %v3638_v21  ;;  %2918 = vmatprep.mubr.bf16.mxu0 %v3138_v18 }
 0x13d   : > { %2879 = vmatmul.mubr.bf16.vlgmr.msra.gmra.mrb[8].mxu1 %v3135_v20  ;;  %3423 = vmatprep.subr.bf16.mxu0 %v3641_v24 }
 0x13e   : > { %3444 = vmatpush3.bf16.msra.mxu1 %v3640_v23  ;;  %2958 = vmatprep.mubr.bf16.mxu1 %v3140_v56 }
 0x13f   : > { %3445 = vmatprep.subr.bf16.mxu1 %v3643_v26 }
 0x140   : > { %3424 = vmatpush3.bf16.msra.mxu0 %v3642_v25 }
 0x141   : > { %3425 = vmatprep.subr.bf16.mxu0 %v3645_v28 }
 0x142   : > { %3446 = vmatpush3.bf16.msra.mxu1 %v3644_v27 }
 0x143   : > { %3447 = vmatprep.subr.bf16.mxu1 %v3647_v30 }
 0x144   : > { %3426 = vmatpush3.bf16.msra.mxu0 %v3646_v29 }
 0x145   : > { %3427 = vmatprep.subr.bf16.mxu0 %v3649_v32 }
 0x146   : > { %3448 = vmatpush3.bf16.msra.mxu1 %v3648_v31 }
 0x147   : > { %3449 = vmatprep.subr.bf16.mxu1 %v3651_v34 }
 0x148   : > { %3428 = vmatpush3.bf16.msra.mxu0 %v3650_v33 }
 0x149   : > { %3429 = vmatprep.subr.bf16.mxu0 %v3653_v36 }
 0x14a   : > { %3450 = vmatpush3.bf16.msra.mxu1 %v3652_v35 }
 0x14b   : > { %3451 = vmatprep.subr.bf16.mxu1 %v3655_v38 }
 0x14c   : > { %3430 = vmatpush3.bf16.msra.mxu0 %v3654_v37 }
 0x14d   : > { %3431 = vmatprep.subr.bf16.mxu0 %v3657_v40 }
 0x14e   : > { %3452 = vmatpush3.bf16.msra.mxu1 %v3656_v39 }
 0x14f   : > { %3453 = vmatprep.subr.bf16.mxu1 %v3659_v42 }
 0x150   : > { %3432 = vmatpush3.bf16.msra.mxu0 %v3658_v41 }
 0x151   : > { %3433 = vmatprep.subr.bf16.mxu0 %v3661_v44 }
 0x152   : > { %3454 = vmatpush3.bf16.msra.mxu1 %v3660_v43 }
 0x153   : > { %3455 = vmatprep.subr.bf16.mxu1 %v3663_v46 }
 0x154   : > { %3434 = vmatpush3.bf16.msra.mxu0 %v3662_v45 }
 0x155   : > { %3435 = vmatprep.subr.bf16.mxu0 %v3665_v48 }
 0x156   : > { %3456 = vmatpush3.bf16.msra.mxu1 %v3664_v47 }
 0x157   : > { %3457 = vmatprep.subr.bf16.mxu1 %v3667_v50 }
 0x158   : > { %3436 = vmatpush3.bf16.msra.mxu0 %v3666_v49 }
 0x159   : > { %3465 = vmatprep.subr.bf16.mxu0 %v3671_v53 }
 0x15a   : > { %3458 = vmatpush3.bf16.msra.mxu1 %v3670_v52 }
 0x15b   : > { %2919 = vmatmul.mubr.bf16.vlgmr.msra.gmra.mrb[12].mxu0 %v3137_v51 }
 0x15c   : > { %3466 = vmatpush3.bf16.msra.mxu0 %v3674_v57  ;;  %2998 = vmatprep.mubr.bf16.mxu0 %v3142_v4 }
 0x15d   : > { %2959 = vmatmul.mubr.bf16.vlgmr.msra.gmra.mrb[12].mxu1 %v3139_v55  ;;  %3467 = vmatprep.subr.bf16.mxu0 %v3675_v58 }
 0x160   : > { %3468 = vmatpush3.bf16.msra.mxu0 %v3676_v59 }
 0x161   : > { %3469 = vmatprep.subr.bf16.mxu0 %v3677_v60 }
 0x164   : > { %3470 = vmatpush3.bf16.msra.mxu0 %v3678_v61 }
 0x165   : > { %3471 = vmatprep.subr.bf16.mxu0 %v3679_v62 }
 0x168   : > { %3472 = vmatpush3.bf16.msra.mxu0 %v3680_v63 }
 0x169   : > { %3473 = vmatprep.subr.bf16.mxu0 %v3681_v0 }
 0x16c   : > { %3474 = vmatpush3.bf16.msra.mxu0 %v3682_v1 }
 0x16d   : > { %3475 = vmatprep.subr.bf16.mxu0 %v3683_v3 }
 0x170   : > { %3476 = vmatpush3.bf16.msra.mxu0 %v3684_v5 }
 0x171   : > { %3477 = vmatprep.subr.bf16.mxu0 %v3685_v6 }
 0x174   : > { %3478 = vmatpush3.bf16.msra.mxu0 %v3686_v7 }
 0x175   : > { %3479 = vmatprep.subr.bf16.mxu0 %v3687_v8 }
 0x178   : > { %3480 = vmatpush3.bf16.msra.mxu0 %v3688_v9 }
 0x17b   : > { %2999 = vmatmul.mubr.bf16.vlgmr.msra.gmra.mrb[16].mxu0 %v3141_v10 }
 0x1ce   : > { %v3305_v11 = vpop.f32.mrb[0].mxu0 }
 0x1cf   : > { %v3306_v13 = vpop.f32.mrb[1].mxu0 }
 0x1d0   : > { %v3307_v14 = vadd.f32 %v3306_v13, %v3305_v11  ;;  %v3308_v15 = vpop.f32.mrb[2].mxu0  ;;  %v3327_v16 = vpop.f32.mrb[0].mxu1 }
 0x1d1   : > { %v3309_v17 = vpop.f32.mrb[3].mxu0  ;;  %v3328_v18 = vpop.f32.mrb[1].mxu1 }
 0x1d2   : > { %v2681_v19 = vadd.f32 %v3307_v14, %v3124_v12  ;;  %v3329_v20 = vadd.f32 %v3328_v18, %v3327_v16  ;;  %v3330_v21 = vpop.f32.mrb[2].mxu1 }
 0x1d3   : > { %v3331_v22 = vpop.f32.mrb[3].mxu1 }
 0x1d4   : > { %v2721_v23 = vadd.f32 %v3329_v20, %v2681_v19 }
 0x1ee   : > { %v3349_v24 = vpop.f32.mrb[4].mxu0 }
 0x1ef   : > { %v3350_v25 = vpop.f32.mrb[5].mxu0 }
 0x1f0   : > { %v3351_v26 = vadd.f32 %v3350_v25, %v3349_v24  ;;  %v3352_v27 = vpop.f32.mrb[6].mxu0  ;;  %v3371_v28 = vpop.f32.mrb[4].mxu1 }
 0x1f1   : > { %v3353_v29 = vpop.f32.mrb[7].mxu0  ;;  %v3372_v30 = vpop.f32.mrb[5].mxu1 }
 0x1f2   : > { %v2761_v31 = vadd.f32 %v3351_v26, %v2721_v23  ;;  %v3373_v32 = vadd.f32 %v3372_v30, %v3371_v28  ;;  %v3374_v33 = vpop.f32.mrb[6].mxu1 }
 0x1f3   : > { %v3375_v34 = vpop.f32.mrb[7].mxu1 }
 0x1f4   : > { %v2801_v35 = vadd.f32 %v3373_v32, %v2761_v31 }
 0x20e   : > { %v3393_v36 = vpop.f32.mrb[8].mxu0 }
 0x20f   : > { %v3394_v37 = vpop.f32.mrb[9].mxu0 }
 0x210   : > { %v3395_v38 = vadd.f32 %v3394_v37, %v3393_v36  ;;  %v3396_v39 = vpop.f32.mrb[10].mxu0  ;;  %v3415_v40 = vpop.f32.mrb[8].mxu1 }
 0x211   : > { %v3397_v41 = vpop.f32.mrb[11].mxu0  ;;  %v3416_v42 = vpop.f32.mrb[9].mxu1 }
 0x212   : > { %v2841_v43 = vadd.f32 %v3395_v38, %v2801_v35  ;;  %v3417_v44 = vadd.f32 %v3416_v42, %v3415_v40  ;;  %v3418_v45 = vpop.f32.mrb[10].mxu1 }
 0x213   : > { %v3419_v46 = vpop.f32.mrb[11].mxu1 }
 0x214   : > { %v2881_v47 = vadd.f32 %v3417_v44, %v2841_v43 }
 0x22e   : > { %v3437_v48 = vpop.f32.mrb[12].mxu0 }
 0x22f   : > { %v3438_v49 = vpop.f32.mrb[13].mxu0 }
 0x230   : > { %v3439_v50 = vadd.f32 %v3438_v49, %v3437_v48  ;;  %v3440_v51 = vpop.f32.mrb[14].mxu0  ;;  %v3459_v52 = vpop.f32.mrb[12].mxu1 }
 0x231   : > { %v3441_v53 = vpop.f32.mrb[15].mxu0  ;;  %v3460_v55 = vpop.f32.mrb[13].mxu1 }
 0x232   : > { %v2921_v54 = vadd.f32 %v3439_v50, %v2881_v47  ;;  %v3461_v56 = vadd.f32 %v3460_v55, %v3459_v52  ;;  %v3462_v57 = vpop.f32.mrb[14].mxu1 }
 0x233   : > { %v3463_v58 = vpop.f32.mrb[15].mxu1 }
 0x234   : > { %v2961_v59 = vadd.f32 %v3461_v56, %v2921_v54 }
 0x24e   : > { %v3481_v60 = vpop.f32.mrb[16].mxu0 }
 0x24f   : > { %v3482_v61 = vpop.f32.mrb[17].mxu0 }
 0x250   : > { %v3483_v62 = vadd.f32 %v3482_v61, %v3481_v60  ;;  %v3484_v63 = vpop.f32.mrb[18].mxu0 }
 0x251   : > { %v3485_v0 = vpop.f32.mrb[19].mxu0 }
 0x252   : > { %v3001_v1 = vadd.f32 %v3483_v62, %v2961_v59 }
 0x254   : > { %v3006_v2 = vmax.f32 %v3001_v1, 0.0 }
 0x256   : > { %3007 = vst [vmem:[%s1413_s7] sm:$0xff] %v3006_v2 }
 0x257 PF: > { %s13_s16 = sadd.s32 1, %s3729_s16   ;;  %s4623_s12 = smov %s3717_s13 }
 0x258   : > { %p10_p10 = scmp.ge.s32.totalorder %s13_s16, 4   ;;  %s4624_s13 = smov %s3786_s20 }
 0x259   : > { %s4625_s14 = smov %s3725_s15  ;;  %s4626_s15 = smov %s4628_s17 }
 0x25a   :  { %12 = sbr.rel (!%p10_p10) target bundleno = 3 (0x3), region = 114 }

</bundles_post_ra>
